<compile_context>
chip_gen: v5e
topology: v5e:2x2
jax: 0.10.0
libtpu: 0.0.40
codegen_flags: <defaults>
</compile_context>

<pallas_src>
import numpy as np
import jax
import jax.numpy as jnp
from jax.experimental import pallas as pl
from jax.experimental.pallas import tpu as pltpu

# ----------------------- synthetic small-Llama config -----------------------
VOCAB = 100                      # vocab size (synthetic)
D = 32                           # token_dim (4096 in the real model)
H = 4                            # attention heads
HD = D // H                      # head dim
FFI = 64                         # MLP intermediate size
L = 2                            # number of decoder layers
PREFIX = 2                       # config['lm_prefixes']
CHAR = 8                         # char_size
NUM_ATTR = 3                     # number of attributes
B = 2                            # batch (tuples)
S0 = 8                           # raw token sequence length
S = S0 + PREFIX                  # logical length after prefix insertion (10)
S_PAD = ((S + 7) // 8) * 8       # padded to the f32 sublane tile (16)
BS = B * S_PAD                   # batch folded into matmul rows (32)
FF = 512                         # final_layer hidden width
EPS = 1e-6
SCALE = 1.0 / (HD ** 0.5)


# ------------------------------ fused Pallas kernel ------------------------------
def model_kernel(x_ref, cos_ref, sin_ref, bias_ref,
                 wqkv_ref, wo_ref, wgu_ref, wd_ref,
                 pool_ref, chars_ref,
                 w1hT_ref, w1cT_ref, b1T_ref, w2T_ref, b2T_ref, w3T_ref, b3T_ref,
                 o_ref):
    """Whole LinkLlamaModel forward on a (B*S_PAD, D) activation slab."""
    f32 = jnp.float32
    bf16 = jnp.bfloat16
    cos = cos_ref[...]           # (BS, D)  head- and batch-tiled RoPE table
    sin = sin_ref[...]           # (BS, D)
    bias = bias_ref[...]         # (H, BS, BS) block-diagonal causal additive mask

    def rmsnorm(x):              # norm weight folded into the following matmul weight
        return x * jax.lax.rsqrt(jnp.mean(x * x, axis=-1, keepdims=True) + EPS)

    h = x_ref[...]               # (BS, D) f32

    for l in range(L):
        # --- RMSNorm + fused [Wq*s | Wk | Wv | WqR*s | WkR] projection (bf16 -> MXU) ---
        xn = rmsnorm(h).astype(bf16)
        qkv = jnp.dot(xn, wqkv_ref[l], preferred_element_type=f32)       # (BS, 5D) f32

        # --- RoPE as pure elementwise combine (rotate-half folded into the weights) ---
        q = qkv[:, 0 * D:1 * D] * cos + qkv[:, 3 * D:4 * D] * sin        # already * 1/sqrt(HD)
        k = qkv[:, 1 * D:2 * D] * cos + qkv[:, 4 * D:5 * D] * sin
        v = qkv[:, 2 * D:3 * D]

        qb = q.astype(bf16)
        kb = k.astype(bf16)
        vb = v.astype(bf16)
        q3 = jnp.stack([qb[:, hh * HD:(hh + 1) * HD] for hh in range(H)], axis=0)
        k3 = jnp.stack([kb[:, hh * HD:(hh + 1) * HD] for hh in range(H)], axis=0)
        v3 = jnp.stack([vb[:, hh * HD:(hh + 1) * HD] for hh in range(H)], axis=0)

        # --- both batches at once: head-batched attention with block-diag causal mask ---
        sc = jnp.einsum('hqd,hkd->hqk', q3, k3,
                        preferred_element_type=f32) + bias               # (H, BS, BS)
        sc = sc - jnp.max(sc, axis=-1, keepdims=True)
        p = jnp.exp(sc)
        # pl.reciprocal(approx=True): EUP approximation (~1e-3 rel) vs exact softmax.
        p = p * pl.reciprocal(jnp.sum(p, axis=-1, keepdims=True), approx=True)
        o3 = jnp.einsum('hqk,hkd->hqd', p.astype(bf16), v3,
                        preferred_element_type=f32)                      # (H, BS, HD)

        attn = jnp.concatenate([o3[hh] for hh in range(H)], axis=-1)     # (BS, D)
        h = h + jnp.dot(attn.astype(bf16), wo_ref[l], preferred_element_type=f32)

        # --- post-attention RMSNorm + SwiGLU MLP (fused gate/up weight) ---
        hn = rmsnorm(h).astype(bf16)
        gu = jnp.dot(hn, wgu_ref[l], preferred_element_type=f32)         # (BS, 2*FFI)
        g = gu[:, :FFI]
        u = gu[:, FFI:]
        act = (g * jax.nn.sigmoid(g) * u).astype(bf16)
        h = h + jnp.dot(act, wd_ref[l], preferred_element_type=f32)

    # --- final RMSNorm + mean pooling (prefix strip / pad rows = zero pool columns) ---
    hn = rmsnorm(h)                                                      # (BS, D)
    pooled = jnp.dot(pool_ref[...], hn, preferred_element_type=f32)      # (NSIG, D)

    # --- transposed 3-layer MLP head -> lane-dense (1, NSIG) output ---
    y = (jnp.einsum('fd,nd->fn', w1hT_ref[...], pooled, preferred_element_type=f32)
         + jnp.einsum('fc,nc->fn', w1cT_ref[...], chars_ref[...],
                      preferred_element_type=f32)
         + b1T_ref[...])                                                 # (FF, NSIG)
    y = jnp.maximum(y, 0.0)
    y = jnp.maximum(jnp.dot(w2T_ref[...], y, preferred_element_type=f32)
                    + b2T_ref[...], 0.0)
    y = jnp.dot(w3T_ref[...], y, preferred_element_type=f32) + b3T_ref[...]
    o_ref[...] = jax.nn.sigmoid(y)                                       # (1, NSIG)


# ------------------------------- model forward --------------------------------
def forward(input_ids, attribute_ids, base_characteristics, pool_flat, params, kern):
    # ---- XLA glue: embedding gathers + prefix prompt + attribute encoding + pad ----
    emb = params['word_emb'][input_ids]                                  # (B, S0, D)
    prefix = jnp.broadcast_to(params['prefix_emb'][None], (B, PREFIX, D))
    x = jnp.concatenate([emb[:, :1], prefix, emb[:, 1:]], axis=1)        # (B, S, D)
    attr_full = jnp.concatenate(
        [jnp.zeros((B, PREFIX), jnp.int32), attribute_ids], axis=1)
    x = x + params['attr_emb'][attr_full]
    x = jnp.pad(x, ((0, 0), (0, S_PAD - S), (0, 0)))                     # zero pad rows
    x_slab = x.reshape(BS, D)                                            # batch -> matmul rows

    nsig = pool_flat.shape[0]
    vmem = pl.BlockSpec(memory_space=pltpu.MemorySpace.VMEM)
    # TODO(synk): v7x — add a parallel grid axis over independent tuples to use the 2nd
    # TensorCore; at real dims stream per-layer / K-tiled bf16 weights via BlockSpecs with
    # pl.Buffered(2) and set pltpu.CompilerParams(vmem_limit_bytes=...) per generation.
    return pl.pallas_call(
        model_kernel,
        out_shape=jax.ShapeDtypeStruct((1, nsig), jnp.float32),
        in_specs=[vmem] * 17,
        out_specs=vmem,
    )(x_slab, kern['cos'], kern['sin'], kern['bias'],
      kern['wqkv'], kern['wo'], kern['wgu'], kern['wd'],
      pool_flat, base_characteristics,
      kern['w1hT'], kern['w1cT'], kern['b1T'],
      kern['w2T'], kern['b2T'], kern['w3T'], kern['b3T'])                # (1, NSIG)


# -------------------------------- parameters ----------------------------------
def init_params(key):
    ks = jax.random.split(key, 12)

    def nrm(k, shape, scale=0.02):
        return (scale * jax.random.normal(k, shape)).astype(jnp.float32)

    return dict(
        word_emb=nrm(ks[0], (VOCAB, D)),
        prefix_emb=nrm(ks[1], (PREFIX, D)),                              # prefix_encoder
        attr_emb=nrm(ks[2], (NUM_ATTR + 1, D)).at[0].set(0.0),           # padding_idx=0
        rms1=jnp.ones((L, 1, D), jnp.float32),
        wqkv=nrm(ks[3], (L, D, 3 * D)),                                  # fused Wq|Wk|Wv
        wo=nrm(ks[4], (L, D, D)),
        rms2=jnp.ones((L, 1, D), jnp.float32),
        wgu=nrm(ks[5], (L, D, 2 * FFI)),                                 # fused Wgate|Wup
        wd=nrm(ks[6], (L, FFI, D)),
        final_norm=jnp.ones((1, D), jnp.float32),
        w1h=nrm(ks[7], (D, FF), 0.05), w1c=nrm(ks[8], (CHAR, FF), 0.05),
        b1=jnp.zeros((1, FF), jnp.float32),
        w2=nrm(ks[9], (FF, FF), 0.05), b2=jnp.zeros((1, FF), jnp.float32),
        w3=nrm(ks[10], (FF, 1), 0.05), b3=jnp.zeros((1, 1), jnp.float32),
    )


def rope_tables(n):
    pos = np.arange(n, dtype=np.float32)
    inv_freq = 1.0 / (10000.0 ** (np.arange(0, HD, 2, dtype=np.float32) / HD))
    freqs = np.outer(pos, inv_freq)                                      # (n, HD/2)
    emb = np.concatenate([freqs, freqs], axis=-1)                        # (n, HD)
    return np.cos(emb).astype(np.float32), np.sin(emb).astype(np.float32)


def pack_params(params):
    """Fold RMSNorm weights, rotate-half and 1/sqrt(HD) into the matmul weights, cast the
    decoder weights to bf16, pre-transpose the head, precompute RoPE/mask in final layout."""
    f32 = np.float32

    # rotate-half matrix (block diagonal per head):  (x @ R) = [-x2, x1] per head
    R = np.zeros((D, D), f32)
    for hh in range(H):
        o = hh * HD
        for j in range(HD // 2):
            R[o + HD // 2 + j, o + j] = -1.0
            R[o + j, o + HD // 2 + j] = 1.0
    R = jnp.asarray(R)

    wqkv, wo, wgu, wd = [], [], [], []
    for l in range(L):
        w1 = params['rms1'][l][0][:, None]                               # (D, 1)
        wq = w1 * params['wqkv'][l][:, :D]
        wk = w1 * params['wqkv'][l][:, D:2 * D]
        wv = w1 * params['wqkv'][l][:, 2 * D:]
        wqkv.append(jnp.concatenate(
            [wq * SCALE, wk, wv, (wq @ R) * SCALE, wk @ R], axis=1))     # (D, 5D)
        wo.append(params['wo'][l])
        w2 = params['rms2'][l][0][:, None]
        wgu.append(w2 * params['wgu'][l])
        wd.append(params['wd'][l])

    def bf(t):
        return jnp.stack(t).astype(jnp.bfloat16)

    # RoPE tables tiled over heads then batch -> final (BS, D) layout
    cos_h, sin_h = rope_tables(S_PAD)                                    # (S_PAD, HD)
    cos = np.tile(np.tile(cos_h, (1, H)), (B, 1))                        # (BS, D)
    sin = np.tile(np.tile(sin_h, (1, H)), (B, 1))

    # block-diagonal causal additive mask, pre-broadcast over heads
    i = np.arange(S_PAD)
    causal = (i[:, None] >= i[None, :])
    bias = np.full((BS, BS), -1e30, f32)
    for b in range(B):
        sl = slice(b * S_PAD, (b + 1) * S_PAD)
        bias[sl, sl] = np.where(causal, 0.0, -1e30)
    bias = np.tile(bias[None], (H, 1, 1)).astype(f32)                    # (H, BS, BS)

    wn = params['final_norm'][0][:, None]                                # (D, 1)
    return dict(
        cos=jnp.asarray(cos), sin=jnp.asarray(sin), bias=jnp.asarray(bias),
        wqkv=bf(wqkv), wo=bf(wo), wgu=bf(wgu), wd=bf(wd),
        w1hT=(wn * params['w1h']).T,                                     # (FF, D) final-norm folded
        w1cT=params['w1c'].T, b1T=params['b1'].T,
        w2T=params['w2'].T, b2T=params['b2'].T,
        w3T=params['w3'].T, b3T=params['b3'].T,
    )


# ---------------------------- pure-JAX f32 reference ---------------------------
def ref_forward(input_ids, chars, pool_mat, attribute_ids, params, cos, sin):
    def rmsnorm(x, w):
        return x * jax.lax.rsqrt(jnp.mean(x * x, -1, keepdims=True) + EPS) * w

    emb = params['word_emb'][input_ids]
    prefix = jnp.broadcast_to(params['prefix_emb'][None], (B, PREFIX, D))
    x = jnp.concatenate([emb[:, :1], prefix, emb[:, 1:]], axis=1)
    attr_full = jnp.concatenate(
        [jnp.zeros((B, PREFIX), jnp.int32), attribute_ids], axis=1)
    x = x + params['attr_emb'][attr_full]

    causal = jnp.tril(jnp.ones((S, S), bool))
    cos4 = cos[None, :, None, :]
    sin4 = sin[None, :, None, :]

    def rope(t):                                                         # (B,S,H,HD)
        tr = jnp.concatenate([-t[..., HD // 2:], t[..., :HD // 2]], axis=-1)
        return t * cos4 + tr * sin4

    for l in range(L):
        xn = rmsnorm(x, params['rms1'][l])
        qkv = xn @ params['wqkv'][l]
        q = rope(qkv[..., :D].reshape(B, S, H, HD))
        k = rope(qkv[..., D:2 * D].reshape(B, S, H, HD))
        v = qkv[..., 2 * D:].reshape(B, S, H, HD)
        sc = jnp.einsum('bqhd,bkhd->bhqk', q, k) / np.sqrt(HD)
        sc = jnp.where(causal, sc, -1e30)
        pr = jax.nn.softmax(sc, axis=-1)
        o = jnp.einsum('bhqk,bkhd->bqhd', pr, v).reshape(B, S, D) @ params['wo'][l]
        x = x + o
        hn = rmsnorm(x, params['rms2'][l])
        gu = hn @ params['wgu'][l]
        x = x + (jax.nn.silu(gu[..., :FFI]) * gu[..., FFI:]) @ params['wd'][l]

    hn = rmsnorm(x, params['final_norm'])                                # (B, S, D)
    pooled = jnp.einsum('bns,bsd->nd', pool_mat, hn)                     # (NSIG, D)
    y = jax.nn.relu(pooled @ params['w1h'] + chars @ params['w1c'] + params['b1'])
    y = jax.nn.relu(y @ params['w2'] + params['b2'])
    y = jax.nn.sigmoid(y @ params['w3'] + params['b3'])
    return y.T


# ------------------------------------ main -------------------------------------
if __name__ == "__main__":
    key = jax.random.PRNGKey(0)
    k_par, k_ids, k_attr, k_chr = jax.random.split(key, 4)

    params = init_params(k_par)
    kern = pack_params(params)

    # token ids (BOS/EOS already embedded in the sequence by _prepare_sample)
    input_ids = jax.random.randint(k_ids, (B, S0), 1, VOCAB, dtype=jnp.int32)
    # attribute ids: first/last positions are padding (index 0), as in the module
    attribute_ids = jax.random.randint(k_attr, (B, S0), 1, NUM_ATTR + 1,
                                       dtype=jnp.int32)
    attribute_ids = attribute_ids.at[:, 0].set(0).at[:, -1].set(0)

    # POOLING_INDEXES[tup_i][sig_i] -> token positions within the STRIPPED sequence
    POOLING_INDEXES = [[[1, 2], [3, 4, 5]],
                       [[2], [0, 1, 6]]]
    NSIG = sum(len(p) for p in POOLING_INDEXES)

    # mean-pooling matrices: (B, NSIG, S) for the reference and a flattened
    # (NSIG, B*S_PAD) one for the kernel (prefix strip + pad rows = zero columns).
    pool_ref_np = np.zeros((B, NSIG, S), np.float32)
    pool_flat_np = np.zeros((NSIG, BS), np.float32)
    r = 0
    for tup_i, sigs in enumerate(POOLING_INDEXES):
        for idxs in sigs:
            for j in idxs:
                pool_ref_np[tup_i, r, PREFIX + j] = 1.0 / len(idxs)
                pool_flat_np[r, tup_i * S_PAD + PREFIX + j] = 1.0 / len(idxs)
            r += 1
    pool_mat = jnp.asarray(pool_ref_np)
    pool_flat = jnp.asarray(pool_flat_np)

    # BASE_CHARACTERISTICS stacked in the same (tup, sig) order
    base_characteristics = jax.random.normal(k_chr, (NSIG, CHAR), dtype=jnp.float32)

    fwd = jax.jit(forward)
    out = fwd(input_ids, attribute_ids, base_characteristics, pool_flat, params, kern)
    out = jax.block_until_ready(out)

    cos_s, sin_s = rope_tables(S)
    ref = ref_forward(input_ids, base_characteristics, pool_mat, attribute_ids,
                      params, jnp.asarray(cos_s), jnp.asarray(sin_s))
    ref = jax.block_until_ready(ref)

    assert out.shape == (1, NSIG), out.shape
    assert np.all(np.isfinite(np.asarray(out)))
    # bf16 MXU operands + EUP approx-reciprocal softmax vs f32 reference -> 1e-2 tolerance.
    assert np.allclose(np.asarray(out), np.asarray(ref), atol=1e-2, rtol=1e-2), \
        (np.asarray(out), np.asarray(ref))

    print("KERNEL_OK")
</pallas_src>

<mosaic_0001>
module attributes {stable_mosaic.version = 11 : i64} {
  func.func @model_kernel(%arg0: memref<32x32xf32, #tpu.memory_space<vmem>>, %arg1: memref<32x32xf32, #tpu.memory_space<vmem>>, %arg2: memref<32x32xf32, #tpu.memory_space<vmem>>, %arg3: memref<4x32x32xf32, #tpu.memory_space<vmem>>, %arg4: memref<2x32x160xbf16, #tpu.memory_space<vmem>>, %arg5: memref<2x32x32xbf16, #tpu.memory_space<vmem>>, %arg6: memref<2x32x128xbf16, #tpu.memory_space<vmem>>, %arg7: memref<2x64x32xbf16, #tpu.memory_space<vmem>>, %arg8: memref<4x32xf32, #tpu.memory_space<vmem>>, %arg9: memref<4x8xf32, #tpu.memory_space<vmem>>, %arg10: memref<512x32xf32, #tpu.memory_space<vmem>>, %arg11: memref<512x8xf32, #tpu.memory_space<vmem>>, %arg12: memref<512x1xf32, #tpu.memory_space<vmem>>, %arg13: memref<512x512xf32, #tpu.memory_space<vmem>>, %arg14: memref<512x1xf32, #tpu.memory_space<vmem>>, %arg15: memref<1x512xf32, #tpu.memory_space<vmem>>, %arg16: memref<1x1xf32, #tpu.memory_space<vmem>>, %arg17: memref<1x4xf32, #tpu.memory_space<vmem>>) attributes {dimension_semantics = [], scalar_prefetch = 0 : i64, scratch_operands = 0 : i64, tpu.core_type = #tpu.core_type<tc>} {
    %c0 = arith.constant 0 : index
    %c0_0 = arith.constant 0 : index
    %0 = vector.load %arg1[%c0, %c0_0] : memref<32x32xf32, #tpu.memory_space<vmem>>, vector<32x32xf32>
    %c0_1 = arith.constant 0 : index
    %c0_2 = arith.constant 0 : index
    %1 = vector.load %arg2[%c0_1, %c0_2] : memref<32x32xf32, #tpu.memory_space<vmem>>, vector<32x32xf32>
    %c0_3 = arith.constant 0 : index
    %c0_4 = arith.constant 0 : index
    %c0_5 = arith.constant 0 : index
    %2 = vector.load %arg3[%c0_3, %c0_4, %c0_5] : memref<4x32x32xf32, #tpu.memory_space<vmem>>, vector<4x32x32xf32>
    %c0_6 = arith.constant 0 : index
    %c0_7 = arith.constant 0 : index
    %3 = vector.load %arg0[%c0_6, %c0_7] : memref<32x32xf32, #tpu.memory_space<vmem>>, vector<32x32xf32>
    %4 = arith.mulf %3, %3 : vector<32x32xf32>
    %cst = arith.constant dense<0.000000e+00> : vector<32xf32>
    %5 = vector.multi_reduction <add>, %4, %cst [1] : vector<32x32xf32> to vector<32xf32>
    %6 = vector.shape_cast %5 : vector<32xf32> to vector<32x1xf32>
    %cst_8 = arith.constant 3.200000e+01 : f32
    %7 = vector.broadcast %cst_8 : f32 to vector<32x1xf32>
    %8 = arith.divf %6, %7 : vector<32x1xf32>
    %cst_9 = arith.constant 9.99999997E-7 : f32
    %9 = vector.broadcast %cst_9 : f32 to vector<32x1xf32>
    %10 = arith.addf %8, %9 : vector<32x1xf32>
    %11 = math.rsqrt %10 : vector<32x1xf32>
    %12 = vector.broadcast %11 : vector<32x1xf32> to vector<32x32xf32>
    %13 = arith.mulf %3, %12 : vector<32x32xf32>
    %14 = arith.truncf %13 : vector<32x32xf32> to vector<32x32xbf16>
    %c0_10 = arith.constant 0 : index
    %c0_11 = arith.constant 0 : index
    %c0_12 = arith.constant 0 : index
    %15 = vector.load %arg4[%c0_10, %c0_11, %c0_12] : memref<2x32x160xbf16, #tpu.memory_space<vmem>>, vector<1x32x160xbf16>
    %16 = vector.shape_cast %15 : vector<1x32x160xbf16> to vector<32x160xbf16>
    %cst_13 = arith.constant dense<0.000000e+00> : vector<32x160xf32>
    %17 = tpu.matmul %14, %16, %cst_13 {dimension_numbers = #tpu.dot_dimension_numbers<[1], [0], [0], [1], [0, 0, 1, 1], [], []>} : vector<32x32xbf16>, vector<32x160xbf16>, vector<32x160xf32> -> vector<32x160xf32>
    %18 = vector.extract_strided_slice %17 {offsets = [0, 0], sizes = [32, 32], strides = [1, 1]} : vector<32x160xf32> to vector<32x32xf32>
    %19 = arith.mulf %18, %0 : vector<32x32xf32>
    %20 = vector.extract_strided_slice %17 {offsets = [0, 96], sizes = [32, 32], strides = [1, 1]} : vector<32x160xf32> to vector<32x32xf32>
    %21 = arith.mulf %20, %1 : vector<32x32xf32>
    %22 = arith.addf %19, %21 : vector<32x32xf32>
    %23 = vector.extract_strided_slice %17 {offsets = [0, 32], sizes = [32, 32], strides = [1, 1]} : vector<32x160xf32> to vector<32x32xf32>
    %24 = arith.mulf %23, %0 : vector<32x32xf32>
    %25 = vector.extract_strided_slice %17 {offsets = [0, 128], sizes = [32, 32], strides = [1, 1]} : vector<32x160xf32> to vector<32x32xf32>
    %26 = arith.mulf %25, %1 : vector<32x32xf32>
    %27 = arith.addf %24, %26 : vector<32x32xf32>
    %28 = vector.extract_strided_slice %17 {offsets = [0, 64], sizes = [32, 32], strides = [1, 1]} : vector<32x160xf32> to vector<32x32xf32>
    %29 = arith.truncf %22 : vector<32x32xf32> to vector<32x32xbf16>
    %30 = arith.truncf %27 : vector<32x32xf32> to vector<32x32xbf16>
    %31 = arith.truncf %28 : vector<32x32xf32> to vector<32x32xbf16>
    %32 = vector.extract_strided_slice %29 {offsets = [0, 0], sizes = [32, 8], strides = [1, 1]} : vector<32x32xbf16> to vector<32x8xbf16>
    %33 = vector.extract_strided_slice %29 {offsets = [0, 8], sizes = [32, 8], strides = [1, 1]} : vector<32x32xbf16> to vector<32x8xbf16>
    %34 = vector.extract_strided_slice %29 {offsets = [0, 16], sizes = [32, 8], strides = [1, 1]} : vector<32x32xbf16> to vector<32x8xbf16>
    %35 = vector.extract_strided_slice %29 {offsets = [0, 24], sizes = [32, 8], strides = [1, 1]} : vector<32x32xbf16> to vector<32x8xbf16>
    %36 = vector.shape_cast %32 : vector<32x8xbf16> to vector<1x32x8xbf16>
    %37 = vector.shape_cast %33 : vector<32x8xbf16> to vector<1x32x8xbf16>
    %38 = vector.shape_cast %34 : vector<32x8xbf16> to vector<1x32x8xbf16>
    %39 = vector.shape_cast %35 : vector<32x8xbf16> to vector<1x32x8xbf16>
    %40 = tpu.concatenate %36, %37, %38, %39 in 0 : vector<1x32x8xbf16>, vector<1x32x8xbf16>, vector<1x32x8xbf16>, vector<1x32x8xbf16> -> vector<4x32x8xbf16>
    %41 = vector.extract_strided_slice %30 {offsets = [0, 0], sizes = [32, 8], strides = [1, 1]} : vector<32x32xbf16> to vector<32x8xbf16>
    %42 = vector.extract_strided_slice %30 {offsets = [0, 8], sizes = [32, 8], strides = [1, 1]} : vector<32x32xbf16> to vector<32x8xbf16>
    %43 = vector.extract_strided_slice %30 {offsets = [0, 16], sizes = [32, 8], strides = [1, 1]} : vector<32x32xbf16> to vector<32x8xbf16>
    %44 = vector.extract_strided_slice %30 {offsets = [0, 24], sizes = [32, 8], strides = [1, 1]} : vector<32x32xbf16> to vector<32x8xbf16>
    %45 = vector.shape_cast %41 : vector<32x8xbf16> to vector<1x32x8xbf16>
    %46 = vector.shape_cast %42 : vector<32x8xbf16> to vector<1x32x8xbf16>
    %47 = vector.shape_cast %43 : vector<32x8xbf16> to vector<1x32x8xbf16>
    %48 = vector.shape_cast %44 : vector<32x8xbf16> to vector<1x32x8xbf16>
    %49 = tpu.concatenate %45, %46, %47, %48 in 0 : vector<1x32x8xbf16>, vector<1x32x8xbf16>, vector<1x32x8xbf16>, vector<1x32x8xbf16> -> vector<4x32x8xbf16>
    %50 = vector.extract_strided_slice %31 {offsets = [0, 0], sizes = [32, 8], strides = [1, 1]} : vector<32x32xbf16> to vector<32x8xbf16>
    %51 = vector.extract_strided_slice %31 {offsets = [0, 8], sizes = [32, 8], strides = [1, 1]} : vector<32x32xbf16> to vector<32x8xbf16>
    %52 = vector.extract_strided_slice %31 {offsets = [0, 16], sizes = [32, 8], strides = [1, 1]} : vector<32x32xbf16> to vector<32x8xbf16>
    %53 = vector.extract_strided_slice %31 {offsets = [0, 24], sizes = [32, 8], strides = [1, 1]} : vector<32x32xbf16> to vector<32x8xbf16>
    %54 = vector.shape_cast %50 : vector<32x8xbf16> to vector<1x32x8xbf16>
    %55 = vector.shape_cast %51 : vector<32x8xbf16> to vector<1x32x8xbf16>
    %56 = vector.shape_cast %52 : vector<32x8xbf16> to vector<1x32x8xbf16>
    %57 = vector.shape_cast %53 : vector<32x8xbf16> to vector<1x32x8xbf16>
    %58 = tpu.concatenate %54, %55, %56, %57 in 0 : vector<1x32x8xbf16>, vector<1x32x8xbf16>, vector<1x32x8xbf16>, vector<1x32x8xbf16> -> vector<4x32x8xbf16>
    "tpu.trace_start"() <{level = 10 : i32, message = "hqd,hkd->hqk"}> : () -> ()
    %cst_14 = arith.constant dense<0.000000e+00> : vector<4x32x32xf32>
    %59 = tpu.matmul %40, %49, %cst_14 {dimension_numbers = #tpu.dot_dimension_numbers<[2], [2], [1], [1], [0, 0, 0, 1, 1, 1], [0], [0]>} : vector<4x32x8xbf16>, vector<4x32x8xbf16>, vector<4x32x32xf32> -> vector<4x32x32xf32>
    "tpu.trace_stop"() : () -> ()
    %60 = arith.addf %59, %2 : vector<4x32x32xf32>
    %cst_15 = arith.constant dense<0xFF800000> : vector<4x32xf32>
    %61 = vector.multi_reduction <maximumf>, %60, %cst_15 [2] : vector<4x32x32xf32> to vector<4x32xf32>
    %62 = vector.shape_cast %61 : vector<4x32xf32> to vector<4x32x1xf32>
    %63 = vector.broadcast %62 : vector<4x32x1xf32> to vector<4x32x32xf32>
    %64 = arith.subf %60, %63 : vector<4x32x32xf32>
    %65 = math.exp %64 : vector<4x32x32xf32>
    %cst_16 = arith.constant dense<0.000000e+00> : vector<4x32xf32>
    %66 = vector.multi_reduction <add>, %65, %cst_16 [2] : vector<4x32x32xf32> to vector<4x32xf32>
    %67 = vector.shape_cast %66 : vector<4x32xf32> to vector<4x32x1xf32>
    %68 = tpu.reciprocal %67 {approx = true} : vector<4x32x1xf32> -> vector<4x32x1xf32>
    %69 = vector.broadcast %68 : vector<4x32x1xf32> to vector<4x32x32xf32>
    %70 = arith.mulf %65, %69 : vector<4x32x32xf32>
    %71 = arith.truncf %70 : vector<4x32x32xf32> to vector<4x32x32xbf16>
    "tpu.trace_start"() <{level = 10 : i32, message = "hqk,hkd->hqd"}> : () -> ()
    %cst_17 = arith.constant dense<0.000000e+00> : vector<4x32x8xf32>
    %72 = tpu.matmul %71, %58, %cst_17 {dimension_numbers = #tpu.dot_dimension_numbers<[2], [1], [1], [2], [0, 0, 0, 1, 1, 2], [0], [0]>} : vector<4x32x32xbf16>, vector<4x32x8xbf16>, vector<4x32x8xf32> -> vector<4x32x8xf32>
    "tpu.trace_stop"() : () -> ()
    %73 = vector.extract_strided_slice %72 {offsets = [0, 0, 0], sizes = [1, 32, 8], strides = [1, 1, 1]} : vector<4x32x8xf32> to vector<1x32x8xf32>
    %74 = vector.shape_cast %73 : vector<1x32x8xf32> to vector<32x8xf32>
    %75 = vector.extract_strided_slice %72 {offsets = [1, 0, 0], sizes = [1, 32, 8], strides = [1, 1, 1]} : vector<4x32x8xf32> to vector<1x32x8xf32>
    %76 = vector.shape_cast %75 : vector<1x32x8xf32> to vector<32x8xf32>
    %77 = vector.extract_strided_slice %72 {offsets = [2, 0, 0], sizes = [1, 32, 8], strides = [1, 1, 1]} : vector<4x32x8xf32> to vector<1x32x8xf32>
    %78 = vector.shape_cast %77 : vector<1x32x8xf32> to vector<32x8xf32>
    %79 = vector.extract_strided_slice %72 {offsets = [3, 0, 0], sizes = [1, 32, 8], strides = [1, 1, 1]} : vector<4x32x8xf32> to vector<1x32x8xf32>
    %80 = vector.shape_cast %79 : vector<1x32x8xf32> to vector<32x8xf32>
    %81 = tpu.concatenate %74, %76, %78, %80 in 1 : vector<32x8xf32>, vector<32x8xf32>, vector<32x8xf32>, vector<32x8xf32> -> vector<32x32xf32>
    %82 = arith.truncf %81 : vector<32x32xf32> to vector<32x32xbf16>
    %c0_18 = arith.constant 0 : index
    %c0_19 = arith.constant 0 : index
    %c0_20 = arith.constant 0 : index
    %83 = vector.load %arg5[%c0_18, %c0_19, %c0_20] : memref<2x32x32xbf16, #tpu.memory_space<vmem>>, vector<1x32x32xbf16>
    %84 = vector.shape_cast %83 : vector<1x32x32xbf16> to vector<32x32xbf16>
    %cst_21 = arith.constant dense<0.000000e+00> : vector<32x32xf32>
    %85 = tpu.matmul %82, %84, %cst_21 {dimension_numbers = #tpu.dot_dimension_numbers<[1], [0], [0], [1], [0, 0, 1, 1], [], []>} : vector<32x32xbf16>, vector<32x32xbf16>, vector<32x32xf32> -> vector<32x32xf32>
    %86 = arith.addf %3, %85 : vector<32x32xf32>
    %87 = arith.mulf %86, %86 : vector<32x32xf32>
    %cst_22 = arith.constant dense<0.000000e+00> : vector<32xf32>
    %88 = vector.multi_reduction <add>, %87, %cst_22 [1] : vector<32x32xf32> to vector<32xf32>
    %89 = vector.shape_cast %88 : vector<32xf32> to vector<32x1xf32>
    %cst_23 = arith.constant 3.200000e+01 : f32
    %90 = vector.broadcast %cst_23 : f32 to vector<32x1xf32>
    %91 = arith.divf %89, %90 : vector<32x1xf32>
    %cst_24 = arith.constant 9.99999997E-7 : f32
    %92 = vector.broadcast %cst_24 : f32 to vector<32x1xf32>
    %93 = arith.addf %91, %92 : vector<32x1xf32>
    %94 = math.rsqrt %93 : vector<32x1xf32>
    %95 = vector.broadcast %94 : vector<32x1xf32> to vector<32x32xf32>
    %96 = arith.mulf %86, %95 : vector<32x32xf32>
    %97 = arith.truncf %96 : vector<32x32xf32> to vector<32x32xbf16>
    %c0_25 = arith.constant 0 : index
    %c0_26 = arith.constant 0 : index
    %c0_27 = arith.constant 0 : index
    %98 = vector.load %arg6[%c0_25, %c0_26, %c0_27] : memref<2x32x128xbf16, #tpu.memory_space<vmem>>, vector<1x32x128xbf16>
    %99 = vector.shape_cast %98 : vector<1x32x128xbf16> to vector<32x128xbf16>
    %cst_28 = arith.constant dense<0.000000e+00> : vector<32x128xf32>
    %100 = tpu.matmul %97, %99, %cst_28 {dimension_numbers = #tpu.dot_dimension_numbers<[1], [0], [0], [1], [0, 0, 1, 1], [], []>} : vector<32x32xbf16>, vector<32x128xbf16>, vector<32x128xf32> -> vector<32x128xf32>
    %101 = vector.extract_strided_slice %100 {offsets = [0, 0], sizes = [32, 64], strides = [1, 1]} : vector<32x128xf32> to vector<32x64xf32>
    %102 = vector.extract_strided_slice %100 {offsets = [0, 64], sizes = [32, 64], strides = [1, 1]} : vector<32x128xf32> to vector<32x64xf32>
    %103 = arith.negf %101 : vector<32x64xf32>
    %104 = math.exp %103 : vector<32x64xf32>
    %cst_29 = arith.constant 1.000000e+00 : f32
    %105 = vector.broadcast %cst_29 : f32 to vector<32x64xf32>
    %106 = arith.addf %105, %104 : vector<32x64xf32>
    %107 = arith.divf %105, %106 : vector<32x64xf32>
    %108 = arith.mulf %101, %107 : vector<32x64xf32>
    %109 = arith.mulf %108, %102 : vector<32x64xf32>
    %110 = arith.truncf %109 : vector<32x64xf32> to vector<32x64xbf16>
    %c0_30 = arith.constant 0 : index
    %c0_31 = arith.constant 0 : index
    %c0_32 = arith.constant 0 : index
    %111 = vector.load %arg7[%c0_30, %c0_31, %c0_32] : memref<2x64x32xbf16, #tpu.memory_space<vmem>>, vector<1x64x32xbf16>
    %112 = vector.shape_cast %111 : vector<1x64x32xbf16> to vector<64x32xbf16>
    %cst_33 = arith.constant dense<0.000000e+00> : vector<32x32xf32>
    %113 = tpu.matmul %110, %112, %cst_33 {dimension_numbers = #tpu.dot_dimension_numbers<[1], [0], [0], [1], [0, 0, 1, 1], [], []>} : vector<32x64xbf16>, vector<64x32xbf16>, vector<32x32xf32> -> vector<32x32xf32>
    %114 = arith.addf %86, %113 : vector<32x32xf32>
    %115 = arith.mulf %114, %114 : vector<32x32xf32>
    %cst_34 = arith.constant dense<0.000000e+00> : vector<32xf32>
    %116 = vector.multi_reduction <add>, %115, %cst_34 [1] : vector<32x32xf32> to vector<32xf32>
    %117 = vector.shape_cast %116 : vector<32xf32> to vector<32x1xf32>
    %cst_35 = arith.constant 3.200000e+01 : f32
    %118 = vector.broadcast %cst_35 : f32 to vector<32x1xf32>
    %119 = arith.divf %117, %118 : vector<32x1xf32>
    %cst_36 = arith.constant 9.99999997E-7 : f32
    %120 = vector.broadcast %cst_36 : f32 to vector<32x1xf32>
    %121 = arith.addf %119, %120 : vector<32x1xf32>
    %122 = math.rsqrt %121 : vector<32x1xf32>
    %123 = vector.broadcast %122 : vector<32x1xf32> to vector<32x32xf32>
    %124 = arith.mulf %114, %123 : vector<32x32xf32>
    %125 = arith.truncf %124 : vector<32x32xf32> to vector<32x32xbf16>
    %c1 = arith.constant 1 : index
    %c0_37 = arith.constant 0 : index
    %c0_38 = arith.constant 0 : index
    %126 = vector.load %arg4[%c1, %c0_37, %c0_38] : memref<2x32x160xbf16, #tpu.memory_space<vmem>>, vector<1x32x160xbf16>
    %127 = vector.shape_cast %126 : vector<1x32x160xbf16> to vector<32x160xbf16>
    %cst_39 = arith.constant dense<0.000000e+00> : vector<32x160xf32>
    %128 = tpu.matmul %125, %127, %cst_39 {dimension_numbers = #tpu.dot_dimension_numbers<[1], [0], [0], [1], [0, 0, 1, 1], [], []>} : vector<32x32xbf16>, vector<32x160xbf16>, vector<32x160xf32> -> vector<32x160xf32>
    %129 = vector.extract_strided_slice %128 {offsets = [0, 0], sizes = [32, 32], strides = [1, 1]} : vector<32x160xf32> to vector<32x32xf32>
    %130 = arith.mulf %129, %0 : vector<32x32xf32>
    %131 = vector.extract_strided_slice %128 {offsets = [0, 96], sizes = [32, 32], strides = [1, 1]} : vector<32x160xf32> to vector<32x32xf32>
    %132 = arith.mulf %131, %1 : vector<32x32xf32>
    %133 = arith.addf %130, %132 : vector<32x32xf32>
    %134 = vector.extract_strided_slice %128 {offsets = [0, 32], sizes = [32, 32], strides = [1, 1]} : vector<32x160xf32> to vector<32x32xf32>
    %135 = arith.mulf %134, %0 : vector<32x32xf32>
    %136 = vector.extract_strided_slice %128 {offsets = [0, 128], sizes = [32, 32], strides = [1, 1]} : vector<32x160xf32> to vector<32x32xf32>
    %137 = arith.mulf %136, %1 : vector<32x32xf32>
    %138 = arith.addf %135, %137 : vector<32x32xf32>
    %139 = vector.extract_strided_slice %128 {offsets = [0, 64], sizes = [32, 32], strides = [1, 1]} : vector<32x160xf32> to vector<32x32xf32>
    %140 = arith.truncf %133 : vector<32x32xf32> to vector<32x32xbf16>
    %141 = arith.truncf %138 : vector<32x32xf32> to vector<32x32xbf16>
    %142 = arith.truncf %139 : vector<32x32xf32> to vector<32x32xbf16>
    %143 = vector.extract_strided_slice %140 {offsets = [0, 0], sizes = [32, 8], strides = [1, 1]} : vector<32x32xbf16> to vector<32x8xbf16>
    %144 = vector.extract_strided_slice %140 {offsets = [0, 8], sizes = [32, 8], strides = [1, 1]} : vector<32x32xbf16> to vector<32x8xbf16>
    %145 = vector.extract_strided_slice %140 {offsets = [0, 16], sizes = [32, 8], strides = [1, 1]} : vector<32x32xbf16> to vector<32x8xbf16>
    %146 = vector.extract_strided_slice %140 {offsets = [0, 24], sizes = [32, 8], strides = [1, 1]} : vector<32x32xbf16> to vector<32x8xbf16>
    %147 = vector.shape_cast %143 : vector<32x8xbf16> to vector<1x32x8xbf16>
    %148 = vector.shape_cast %144 : vector<32x8xbf16> to vector<1x32x8xbf16>
    %149 = vector.shape_cast %145 : vector<32x8xbf16> to vector<1x32x8xbf16>
    %150 = vector.shape_cast %146 : vector<32x8xbf16> to vector<1x32x8xbf16>
    %151 = tpu.concatenate %147, %148, %149, %150 in 0 : vector<1x32x8xbf16>, vector<1x32x8xbf16>, vector<1x32x8xbf16>, vector<1x32x8xbf16> -> vector<4x32x8xbf16>
    %152 = vector.extract_strided_slice %141 {offsets = [0, 0], sizes = [32, 8], strides = [1, 1]} : vector<32x32xbf16> to vector<32x8xbf16>
    %153 = vector.extract_strided_slice %141 {offsets = [0, 8], sizes = [32, 8], strides = [1, 1]} : vector<32x32xbf16> to vector<32x8xbf16>
    %154 = vector.extract_strided_slice %141 {offsets = [0, 16], sizes = [32, 8], strides = [1, 1]} : vector<32x32xbf16> to vector<32x8xbf16>
    %155 = vector.extract_strided_slice %141 {offsets = [0, 24], sizes = [32, 8], strides = [1, 1]} : vector<32x32xbf16> to vector<32x8xbf16>
    %156 = vector.shape_cast %152 : vector<32x8xbf16> to vector<1x32x8xbf16>
    %157 = vector.shape_cast %153 : vector<32x8xbf16> to vector<1x32x8xbf16>
    %158 = vector.shape_cast %154 : vector<32x8xbf16> to vector<1x32x8xbf16>
    %159 = vector.shape_cast %155 : vector<32x8xbf16> to vector<1x32x8xbf16>
    %160 = tpu.concatenate %156, %157, %158, %159 in 0 : vector<1x32x8xbf16>, vector<1x32x8xbf16>, vector<1x32x8xbf16>, vector<1x32x8xbf16> -> vector<4x32x8xbf16>
    %161 = vector.extract_strided_slice %142 {offsets = [0, 0], sizes = [32, 8], strides = [1, 1]} : vector<32x32xbf16> to vector<32x8xbf16>
    %162 = vector.extract_strided_slice %142 {offsets = [0, 8], sizes = [32, 8], strides = [1, 1]} : vector<32x32xbf16> to vector<32x8xbf16>
    %163 = vector.extract_strided_slice %142 {offsets = [0, 16], sizes = [32, 8], strides = [1, 1]} : vector<32x32xbf16> to vector<32x8xbf16>
    %164 = vector.extract_strided_slice %142 {offsets = [0, 24], sizes = [32, 8], strides = [1, 1]} : vector<32x32xbf16> to vector<32x8xbf16>
    %165 = vector.shape_cast %161 : vector<32x8xbf16> to vector<1x32x8xbf16>
    %166 = vector.shape_cast %162 : vector<32x8xbf16> to vector<1x32x8xbf16>
    %167 = vector.shape_cast %163 : vector<32x8xbf16> to vector<1x32x8xbf16>
    %168 = vector.shape_cast %164 : vector<32x8xbf16> to vector<1x32x8xbf16>
    %169 = tpu.concatenate %165, %166, %167, %168 in 0 : vector<1x32x8xbf16>, vector<1x32x8xbf16>, vector<1x32x8xbf16>, vector<1x32x8xbf16> -> vector<4x32x8xbf16>
    "tpu.trace_start"() <{level = 10 : i32, message = "hqd,hkd->hqk"}> : () -> ()
    %cst_40 = arith.constant dense<0.000000e+00> : vector<4x32x32xf32>
    %170 = tpu.matmul %151, %160, %cst_40 {dimension_numbers = #tpu.dot_dimension_numbers<[2], [2], [1], [1], [0, 0, 0, 1, 1, 1], [0], [0]>} : vector<4x32x8xbf16>, vector<4x32x8xbf16>, vector<4x32x32xf32> -> vector<4x32x32xf32>
    "tpu.trace_stop"() : () -> ()
    %171 = arith.addf %170, %2 : vector<4x32x32xf32>
    %cst_41 = arith.constant dense<0xFF800000> : vector<4x32xf32>
    %172 = vector.multi_reduction <maximumf>, %171, %cst_41 [2] : vector<4x32x32xf32> to vector<4x32xf32>
    %173 = vector.shape_cast %172 : vector<4x32xf32> to vector<4x32x1xf32>
    %174 = vector.broadcast %173 : vector<4x32x1xf32> to vector<4x32x32xf32>
    %175 = arith.subf %171, %174 : vector<4x32x32xf32>
    %176 = math.exp %175 : vector<4x32x32xf32>
    %cst_42 = arith.constant dense<0.000000e+00> : vector<4x32xf32>
    %177 = vector.multi_reduction <add>, %176, %cst_42 [2] : vector<4x32x32xf32> to vector<4x32xf32>
    %178 = vector.shape_cast %177 : vector<4x32xf32> to vector<4x32x1xf32>
    %179 = tpu.reciprocal %178 {approx = true} : vector<4x32x1xf32> -> vector<4x32x1xf32>
    %180 = vector.broadcast %179 : vector<4x32x1xf32> to vector<4x32x32xf32>
    %181 = arith.mulf %176, %180 : vector<4x32x32xf32>
    %182 = arith.truncf %181 : vector<4x32x32xf32> to vector<4x32x32xbf16>
    "tpu.trace_start"() <{level = 10 : i32, message = "hqk,hkd->hqd"}> : () -> ()
    %cst_43 = arith.constant dense<0.000000e+00> : vector<4x32x8xf32>
    %183 = tpu.matmul %182, %169, %cst_43 {dimension_numbers = #tpu.dot_dimension_numbers<[2], [1], [1], [2], [0, 0, 0, 1, 1, 2], [0], [0]>} : vector<4x32x32xbf16>, vector<4x32x8xbf16>, vector<4x32x8xf32> -> vector<4x32x8xf32>
    "tpu.trace_stop"() : () -> ()
    %184 = vector.extract_strided_slice %183 {offsets = [0, 0, 0], sizes = [1, 32, 8], strides = [1, 1, 1]} : vector<4x32x8xf32> to vector<1x32x8xf32>
    %185 = vector.shape_cast %184 : vector<1x32x8xf32> to vector<32x8xf32>
    %186 = vector.extract_strided_slice %183 {offsets = [1, 0, 0], sizes = [1, 32, 8], strides = [1, 1, 1]} : vector<4x32x8xf32> to vector<1x32x8xf32>
    %187 = vector.shape_cast %186 : vector<1x32x8xf32> to vector<32x8xf32>
    %188 = vector.extract_strided_slice %183 {offsets = [2, 0, 0], sizes = [1, 32, 8], strides = [1, 1, 1]} : vector<4x32x8xf32> to vector<1x32x8xf32>
    %189 = vector.shape_cast %188 : vector<1x32x8xf32> to vector<32x8xf32>
    %190 = vector.extract_strided_slice %183 {offsets = [3, 0, 0], sizes = [1, 32, 8], strides = [1, 1, 1]} : vector<4x32x8xf32> to vector<1x32x8xf32>
    %191 = vector.shape_cast %190 : vector<1x32x8xf32> to vector<32x8xf32>
    %192 = tpu.concatenate %185, %187, %189, %191 in 1 : vector<32x8xf32>, vector<32x8xf32>, vector<32x8xf32>, vector<32x8xf32> -> vector<32x32xf32>
    %193 = arith.truncf %192 : vector<32x32xf32> to vector<32x32xbf16>
    %c1_44 = arith.constant 1 : index
    %c0_45 = arith.constant 0 : index
    %c0_46 = arith.constant 0 : index
    %194 = vector.load %arg5[%c1_44, %c0_45, %c0_46] : memref<2x32x32xbf16, #tpu.memory_space<vmem>>, vector<1x32x32xbf16>
    %195 = vector.shape_cast %194 : vector<1x32x32xbf16> to vector<32x32xbf16>
    %cst_47 = arith.constant dense<0.000000e+00> : vector<32x32xf32>
    %196 = tpu.matmul %193, %195, %cst_47 {dimension_numbers = #tpu.dot_dimension_numbers<[1], [0], [0], [1], [0, 0, 1, 1], [], []>} : vector<32x32xbf16>, vector<32x32xbf16>, vector<32x32xf32> -> vector<32x32xf32>
    %197 = arith.addf %114, %196 : vector<32x32xf32>
    %198 = arith.mulf %197, %197 : vector<32x32xf32>
    %cst_48 = arith.constant dense<0.000000e+00> : vector<32xf32>
    %199 = vector.multi_reduction <add>, %198, %cst_48 [1] : vector<32x32xf32> to vector<32xf32>
    %200 = vector.shape_cast %199 : vector<32xf32> to vector<32x1xf32>
    %cst_49 = arith.constant 3.200000e+01 : f32
    %201 = vector.broadcast %cst_49 : f32 to vector<32x1xf32>
    %202 = arith.divf %200, %201 : vector<32x1xf32>
    %cst_50 = arith.constant 9.99999997E-7 : f32
    %203 = vector.broadcast %cst_50 : f32 to vector<32x1xf32>
    %204 = arith.addf %202, %203 : vector<32x1xf32>
    %205 = math.rsqrt %204 : vector<32x1xf32>
    %206 = vector.broadcast %205 : vector<32x1xf32> to vector<32x32xf32>
    %207 = arith.mulf %197, %206 : vector<32x32xf32>
    %208 = arith.truncf %207 : vector<32x32xf32> to vector<32x32xbf16>
    %c1_51 = arith.constant 1 : index
    %c0_52 = arith.constant 0 : index
    %c0_53 = arith.constant 0 : index
    %209 = vector.load %arg6[%c1_51, %c0_52, %c0_53] : memref<2x32x128xbf16, #tpu.memory_space<vmem>>, vector<1x32x128xbf16>
    %210 = vector.shape_cast %209 : vector<1x32x128xbf16> to vector<32x128xbf16>
    %cst_54 = arith.constant dense<0.000000e+00> : vector<32x128xf32>
    %211 = tpu.matmul %208, %210, %cst_54 {dimension_numbers = #tpu.dot_dimension_numbers<[1], [0], [0], [1], [0, 0, 1, 1], [], []>} : vector<32x32xbf16>, vector<32x128xbf16>, vector<32x128xf32> -> vector<32x128xf32>
    %212 = vector.extract_strided_slice %211 {offsets = [0, 0], sizes = [32, 64], strides = [1, 1]} : vector<32x128xf32> to vector<32x64xf32>
    %213 = vector.extract_strided_slice %211 {offsets = [0, 64], sizes = [32, 64], strides = [1, 1]} : vector<32x128xf32> to vector<32x64xf32>
    %214 = arith.negf %212 : vector<32x64xf32>
    %215 = math.exp %214 : vector<32x64xf32>
    %cst_55 = arith.constant 1.000000e+00 : f32
    %216 = vector.broadcast %cst_55 : f32 to vector<32x64xf32>
    %217 = arith.addf %216, %215 : vector<32x64xf32>
    %218 = arith.divf %216, %217 : vector<32x64xf32>
    %219 = arith.mulf %212, %218 : vector<32x64xf32>
    %220 = arith.mulf %219, %213 : vector<32x64xf32>
    %221 = arith.truncf %220 : vector<32x64xf32> to vector<32x64xbf16>
    %c1_56 = arith.constant 1 : index
    %c0_57 = arith.constant 0 : index
    %c0_58 = arith.constant 0 : index
    %222 = vector.load %arg7[%c1_56, %c0_57, %c0_58] : memref<2x64x32xbf16, #tpu.memory_space<vmem>>, vector<1x64x32xbf16>
    %223 = vector.shape_cast %222 : vector<1x64x32xbf16> to vector<64x32xbf16>
    %cst_59 = arith.constant dense<0.000000e+00> : vector<32x32xf32>
    %224 = tpu.matmul %221, %223, %cst_59 {dimension_numbers = #tpu.dot_dimension_numbers<[1], [0], [0], [1], [0, 0, 1, 1], [], []>} : vector<32x64xbf16>, vector<64x32xbf16>, vector<32x32xf32> -> vector<32x32xf32>
    %225 = arith.addf %197, %224 : vector<32x32xf32>
    %226 = arith.mulf %225, %225 : vector<32x32xf32>
    %cst_60 = arith.constant dense<0.000000e+00> : vector<32xf32>
    %227 = vector.multi_reduction <add>, %226, %cst_60 [1] : vector<32x32xf32> to vector<32xf32>
    %228 = vector.shape_cast %227 : vector<32xf32> to vector<32x1xf32>
    %cst_61 = arith.constant 3.200000e+01 : f32
    %229 = vector.broadcast %cst_61 : f32 to vector<32x1xf32>
    %230 = arith.divf %228, %229 : vector<32x1xf32>
    %cst_62 = arith.constant 9.99999997E-7 : f32
    %231 = vector.broadcast %cst_62 : f32 to vector<32x1xf32>
    %232 = arith.addf %230, %231 : vector<32x1xf32>
    %233 = math.rsqrt %232 : vector<32x1xf32>
    %234 = vector.broadcast %233 : vector<32x1xf32> to vector<32x32xf32>
    %235 = arith.mulf %225, %234 : vector<32x32xf32>
    %c0_63 = arith.constant 0 : index
    %c0_64 = arith.constant 0 : index
    %236 = vector.load %arg8[%c0_63, %c0_64] : memref<4x32xf32, #tpu.memory_space<vmem>>, vector<4x32xf32>
    %cst_65 = arith.constant dense<0.000000e+00> : vector<4x32xf32>
    %237 = tpu.matmul %236, %235, %cst_65 {dimension_numbers = #tpu.dot_dimension_numbers<[1], [0], [0], [1], [0, 0, 1, 1], [], []>} : vector<4x32xf32>, vector<32x32xf32>, vector<4x32xf32> -> vector<4x32xf32>
    %c0_66 = arith.constant 0 : index
    %c0_67 = arith.constant 0 : index
    %238 = vector.load %arg10[%c0_66, %c0_67] : memref<512x32xf32, #tpu.memory_space<vmem>>, vector<512x32xf32>
    "tpu.trace_start"() <{level = 10 : i32, message = "fd,nd->fn"}> : () -> ()
    %cst_68 = arith.constant dense<0.000000e+00> : vector<512x4xf32>
    %239 = tpu.matmul %238, %237, %cst_68 {dimension_numbers = #tpu.dot_dimension_numbers<[1], [1], [0], [0], [0, 0, 1, 0], [], []>} : vector<512x32xf32>, vector<4x32xf32>, vector<512x4xf32> -> vector<512x4xf32>
    "tpu.trace_stop"() : () -> ()
    %c0_69 = arith.constant 0 : index
    %c0_70 = arith.constant 0 : index
    %240 = vector.load %arg11[%c0_69, %c0_70] : memref<512x8xf32, #tpu.memory_space<vmem>>, vector<512x8xf32>
    %c0_71 = arith.constant 0 : index
    %c0_72 = arith.constant 0 : index
    %241 = vector.load %arg9[%c0_71, %c0_72] : memref<4x8xf32, #tpu.memory_space<vmem>>, vector<4x8xf32>
    "tpu.trace_start"() <{level = 10 : i32, message = "fc,nc->fn"}> : () -> ()
    %cst_73 = arith.constant dense<0.000000e+00> : vector<512x4xf32>
    %242 = tpu.matmul %240, %241, %cst_73 {dimension_numbers = #tpu.dot_dimension_numbers<[1], [1], [0], [0], [0, 0, 1, 0], [], []>} : vector<512x8xf32>, vector<4x8xf32>, vector<512x4xf32> -> vector<512x4xf32>
    "tpu.trace_stop"() : () -> ()
    %243 = arith.addf %239, %242 : vector<512x4xf32>
    %c0_74 = arith.constant 0 : index
    %c0_75 = arith.constant 0 : index
    %244 = vector.load %arg12[%c0_74, %c0_75] : memref<512x1xf32, #tpu.memory_space<vmem>>, vector<512x1xf32>
    %245 = vector.broadcast %244 : vector<512x1xf32> to vector<512x4xf32>
    %246 = arith.addf %243, %245 : vector<512x4xf32>
    %cst_76 = arith.constant 0.000000e+00 : f32
    %247 = vector.broadcast %cst_76 : f32 to vector<512x4xf32>
    %248 = arith.maximumf %246, %247 : vector<512x4xf32>
    %c0_77 = arith.constant 0 : index
    %c0_78 = arith.constant 0 : index
    %249 = vector.load %arg13[%c0_77, %c0_78] : memref<512x512xf32, #tpu.memory_space<vmem>>, vector<512x512xf32>
    %cst_79 = arith.constant dense<0.000000e+00> : vector<512x4xf32>
    %250 = tpu.matmul %249, %248, %cst_79 {dimension_numbers = #tpu.dot_dimension_numbers<[1], [0], [0], [1], [0, 0, 1, 1], [], []>} : vector<512x512xf32>, vector<512x4xf32>, vector<512x4xf32> -> vector<512x4xf32>
    %c0_80 = arith.constant 0 : index
    %c0_81 = arith.constant 0 : index
    %251 = vector.load %arg14[%c0_80, %c0_81] : memref<512x1xf32, #tpu.memory_space<vmem>>, vector<512x1xf32>
    %252 = vector.broadcast %251 : vector<512x1xf32> to vector<512x4xf32>
    %253 = arith.addf %250, %252 : vector<512x4xf32>
    %cst_82 = arith.constant 0.000000e+00 : f32
    %254 = vector.broadcast %cst_82 : f32 to vector<512x4xf32>
    %255 = arith.maximumf %253, %254 : vector<512x4xf32>
    %c0_83 = arith.constant 0 : index
    %c0_84 = arith.constant 0 : index
    %256 = vector.load %arg15[%c0_83, %c0_84] : memref<1x512xf32, #tpu.memory_space<vmem>>, vector<1x512xf32>
    %cst_85 = arith.constant dense<0.000000e+00> : vector<1x4xf32>
    %257 = tpu.matmul %256, %255, %cst_85 {dimension_numbers = #tpu.dot_dimension_numbers<[1], [0], [0], [1], [0, 0, 1, 1], [], []>} : vector<1x512xf32>, vector<512x4xf32>, vector<1x4xf32> -> vector<1x4xf32>
    %c0_86 = arith.constant 0 : index
    %c0_87 = arith.constant 0 : index
    %258 = vector.load %arg16[%c0_86, %c0_87] : memref<1x1xf32, #tpu.memory_space<vmem>>, vector<1x1xf32>
    %259 = vector.broadcast %258 : vector<1x1xf32> to vector<1x4xf32>
    %260 = arith.addf %257, %259 : vector<1x4xf32>
    %261 = arith.negf %260 : vector<1x4xf32>
    %262 = math.exp %261 : vector<1x4xf32>
    %cst_88 = arith.constant 1.000000e+00 : f32
    %263 = vector.broadcast %cst_88 : f32 to vector<1x4xf32>
    %264 = arith.addf %263, %262 : vector<1x4xf32>
    %265 = arith.divf %263, %264 : vector<1x4xf32>
    %c0_89 = arith.constant 0 : index
    %c0_90 = arith.constant 0 : index
    %266 = vector.load %arg17[%c0_89, %c0_90] : memref<1x4xf32, #tpu.memory_space<vmem>>, vector<1x4xf32>
    tpu.vector_store %arg17[%c0_89, %c0_90], %265 {strides = array<i32>} : memref<1x4xf32, #tpu.memory_space<vmem>>, vector<1x4xf32>,
    return
  }
}

</mosaic_0001>

<bundles_post_ra>
// kernel: forward.1
= control target key start
LH: loop header
LB: loop body
LE: loop exit
PB: predicated region body
PF: predicated region fallthrough
CT: control target
= control target key end

     0   :  { %s10039_s0 = inlined_call_operand.vmem [shape: f32[32,32], index: 0, kind: input, shape index: {}]   ;;  %s10040_s1 = inlined_call_operand.vmem [shape: f32[32,32], index: 1, kind: input, shape index: {}]   ;;  %s10041_s2 = inlined_call_operand.vmem [shape: f32[32,32], index: 2, kind: input, shape index: {}]   ;;  %s10042_s3 = inlined_call_operand.vmem [shape: f32[4,32,32], index: 3, kind: input, shape index: {}]   ;;  %s10043_s4 = inlined_call_operand.vmem [shape: bf16[2,32,160], index: 4, kind: input, shape index: {}]   ;;  %s10044_s5 = inlined_call_operand.vmem [shape: bf16[2,32,32], index: 5, kind: input, shape index: {}]   ;;  %s10045_s6 = inlined_call_operand.vmem [shape: bf16[2,32,128], index: 6, kind: input, shape index: {}]   ;;  %s10046_s7 = inlined_call_operand.vmem [shape: bf16[2,64,32], index: 7, kind: input, shape index: {}]   ;;  %s10047_s8 = inlined_call_operand.vmem [shape: f32[4,32], index: 8, kind: input, shape index: {}]   ;;  %s10048_s9 = inlined_call_operand.vmem [shape: f32[4,8], index: 9, kind: input, shape index: {}]   ;;  %s10049_s10 = inlined_call_operand.vmem [shape: f32[512,32], index: 10, kind: input, shape index: {}]   ;;  %s10050_s11 = inlined_call_operand.vmem [shape: f32[512,8], index: 11, kind: input, shape index: {}]   ;;  %s10051_s12 = inlined_call_operand.vmem [shape: f32[512,1], index: 12, kind: input, shape index: {}]   ;;  %s10052_s13 = inlined_call_operand.hbm [shape: f32[512,512], index: 13, kind: input, shape index: {}]   ;;  %s10053_s14 = inlined_call_operand.vmem [shape: f32[512,1], index: 14, kind: input, shape index: {}]   ;;  %s10054_s15 = inlined_call_operand.vmem [shape: f32[1,512], index: 15, kind: input, shape index: {}]   ;;  %s10055_s16 = inlined_call_operand.<no memory space> [shape: f32[1,1], index: 16, kind: input, shape index: {}]   ;;  %s10056_s17 = inlined_call_operand.hbm [shape: f32[1,4], index: 17, kind: output, shape index: {}]  }
   0x1   :  { %10067 = sst [smem:[#allocation71_spill]] %s10039_s0  ;;  %v22_v0 = vstv %s10055_s16 }
   0x2   :  { %10068 = sst [smem:[#allocation72_spill]] %s10040_s1  ;;  %23 = vst [vmem:[#allocation2] sm:$0x1] %v22_v0 }
   0x3   :  { %24 = vsyncpa [#allocation4], 0 }
   0x4   :  { %25 = vsyncpa [#allocation5], 0  ;;  %s56_s28 = sshll.u32 %s10052_s13, 4  ;;  %s6543_s29 = smov [#allocation3]   ;;  %s57_s28 = int_to_ptr.hbm [resolvable:$true] %s56_s28 }
   0x5   :  { %s58_s0 = sshll.u32 %s6543_s29, 4  ;;  %s6544_s30 = smov 512   ;;  %s59_s0 = int_to_ptr.vmem [resolvable:$true] %s58_s0 }
   0x6   :  { %s6545_s18 = smov 32  }
   0x7   :  { %64 = dma.hbm_to_vmem [thread:$0]  %s57_s28, 32768, %s59_s0, [#allocation4], %s6544_s30, %s6544_s30, %s6545_s18  }
   0x8   :  { %6539 = dma.done.wait [#allocation4], 32768  }
   0x9   :  { %6540 = vsyncadd [#allocation4], 4294934528  ;;  %s10069_s16 = sld [smem:[#allocation71_spill]]  ;;  %vm108_vm0 = vcmask 261120   ;;  %v6546_v13 = vmov 32.0   ;;  %s6547_s22 = smov 96  }
   0xa   :  { %6257 = vrcp.f32 %v6546_v13  ;;  %v5856_v19 = vld [vmem:[%s10043_s4 + $0x10] sm:$0xf]  ;;  %v6157_v20 = vld [vmem:[%s10043_s4 + $0x14] sm:$0xf0]  ;;  %v6156_v21 = vld [vmem:[%s10043_s4 + $0x14] sm:$0xf] }
   0xb   :  { %v5857_v22 = vor.u32 %v6157_v20, %v5856_v19  ;;  %v5858_v23 = vld [vmem:[%s10043_s4 + $0x18] sm:$0xf0]  ;;  %v5848_v24 = vld [vmem:[%s10043_s4] sm:$0xf]  ;;  %v6155_v25 = vld [vmem:[%s10043_s4 + $0x4] sm:$0xf0] }
   0xc   :  { %v5861_v26 = vor.u32 %v6156_v21, %v5858_v23  ;;  %v6154_v27 = vld [vmem:[%s10043_s4 + $0x4] sm:$0xf]  ;;  %v5850_v28 = vld [vmem:[%s10043_s4 + $0x8] sm:$0xf0]  ;;  %v5849_v29 = vor.u32 %v6155_v25, %v5848_v24  ;;  %s10070_s28 = sld [smem:[#allocation72_spill]]  ;;  %v83_v24 = vld [vmem:[%s10041_s2 + $0x18] sm:$0xff] }
   0xd   :  { %218 = vmatpush.bf16.msra.mxu0 %v5857_v22  ;;  %v5853_v31 = vor.u32 %v6154_v27, %v5850_v28  ;;  %v80_v20 = vld [vmem:[%s10041_s2] sm:$0xff]  ;;  %s6548_s0 = smov 120   ;;  %s6549_s30 = smov 112   ;;  %vm450_vm14 = vcmask 64512   ;;  %vm1055_vm15 = vcmask 130048  }
   0xe   :  { %237 = vmatpush.bf16.msra.mxu1 %v5861_v26  ;;  %v81_v26 = vld [vmem:[%s10041_s2 + $0x8] sm:$0xff]  ;;  %s6550_s19 = smov 104   ;;  %s6551_s1 = smov 64  }
   0xf   :  { %v6657_v1 = vld [vmem:[%s10069_s16 + $0x10] sm:$0xff]  ;;  %v6662_v2 = vld [vmem:[%s10069_s16] sm:$0xff]  ;;  %v6671_v5 = vld [vmem:[%s10069_s16 + $0x18] sm:$0xff]  ;;  %s10061_s25 = smov 16   ;;  %s10063_s26 = smov 8  }
  0x10   :  { %v106_v3 = vmul.f32 %v6657_v1, %v6657_v1  ;;  %v104_v4 = vmul.f32 %v6662_v2, %v6662_v2  ;;  %v6676_v6 = vld [vmem:[%s10069_s16 + $0x8] sm:$0xff]  ;;  %v107_v9 = vmul.f32 %v6671_v5, %v6671_v5  ;;  %v6258_v14 = vpop.eup %6257  ;;  %s10059_s27 = smov 24   ;;  %s10072_s13 = smov 16  }
  0x11   :  { %v105_v10 = vmul.f32 %v6676_v6, %v6676_v6  ;;  %v122_v15 = vmul.f32 32.0, %v6258_v14  ;;  %vm126_vm1 = vweird.f32 %v6258_v14  ;;  %219 = vmatpush.bf16.msra.mxu0 %v5849_v29 }
  0x12   :  { %v115_v7 = vsel %vm108_vm0, %v106_v3, 0.0  ;;  %v109_v8 = vsel %vm108_vm0, %v104_v4, 0.0  ;;  %v118_v11 = vsel %vm108_vm0, %v107_v9, 0.0  ;;  %238 = vmatpush.bf16.msra.mxu1 %v5853_v31  ;;  %v6719_v50 = vld [vmem:[%s10070_s28 + $0x10] sm:$0xff]  ;;  %v6726_v59 = vld [vmem:[%s10070_s28 + $0x18] sm:$0xff] }
  0x13   :  { %116 = vadd.xlane.f32.xlu1 %v115_v7  ;;  %110 = vadd.xlane.f32.xlu0 %v109_v8  ;;  %v112_v12 = vsel %vm108_vm0, %v105_v10, 0.0  ;;  %v123_v16 = vsub.f32 1.0, %v122_v15 }
  0x14   :  { %302 = vrot.lane.b32.xlu2 %v6719_v50, %s6545_s18 }
  0x15   :  { %v124_v17 = vmul.f32 %v6258_v14, %v123_v16 }
  0x17   :  { %v125_v18 = vadd.f32 %v6258_v14, %v124_v17 }
  0x19   :  { %v6710_v30 = vsel %vm126_vm1, %v6258_v14, %v125_v18  ;;  %v6744_v14 = vld [vmem:[%s10070_s28 + $0x8] sm:$0xff]  ;;  %vm1060_vm1 = vcmask 195584  }
  0x1b   :  { %119 = vadd.xlane.f32.xlu1 %v118_v11  ;;  %113 = vadd.xlane.f32.xlu0 %v112_v12  ;;  %v6735_v11 = vld [vmem:[%s10070_s28] sm:$0xff] }
  0x1c   :  { %304 = vrot.lane.b32.xlu2 %v6726_v59, %s6545_s18 }
  0x24   :  { %298 = vrot.lane.b32.xlu2 %v6735_v11, %s6545_s18 }
  0x2c   :  { %300 = vrot.lane.b32.xlu2 %v6744_v14, %s6545_s18 }
  0x6e   :  { %v6772_v31 = vpop.permute.xlu2 %302 }
  0x86   :  { %v117_v32 = vpop.xlane.xlu1 %116  ;;  %v111_v33 = vpop.xlane.xlu0 %110 }
  0x87   :  { %v128_v34 = vmul.f32 %v6710_v30, %v111_v33  ;;  %v130_v36 = vmul.f32 %v6710_v30, %v117_v32  ;;  %v6774_v32 = vpop.permute.xlu2 %304 }
  0x89   :  { %v132_v35 = vadd.f32 1e-06, %v128_v34  ;;  %v134_v44 = vadd.f32 1e-06, %v130_v36 }
  0x8b   :  { %6259 = vrsqrt.f32 %v132_v35  ;;  %vm142_vm3 = vweird.f32 %v132_v35  ;;  %vm162_vm10 = vweird.f32 %v134_v44 }
  0x8e   :  { %v120_v37 = vpop.xlane.xlu1 %119  ;;  %v114_v38 = vpop.xlane.xlu0 %113 }
  0x8f   :  { %v131_v39 = vmul.f32 %v6710_v30, %v120_v37  ;;  %v129_v40 = vmul.f32 %v6710_v30, %v114_v38  ;;  %v6776_v33 = vpop.permute.xlu2 %298 }
  0x91   :  { %v135_v41 = vadd.f32 1e-06, %v131_v39  ;;  %v133_v42 = vadd.f32 1e-06, %v129_v40  ;;  %v6260_v43 = vpop.eup %6259 }
  0x92   :  { %v137_v45 = vmul.f32 %v6260_v43, %v132_v35  ;;  %vm143_vm2 = vweird.f32 %v6260_v43 }
  0x93   :  { %6261 = vrsqrt.f32 %v135_v41  ;;  %vm144_vm5 = vmor %vm142_vm3, %vm143_vm2  ;;  %vm152_vm6 = vweird.f32 %v133_v42  ;;  %vm172_vm8 = vweird.f32 %v135_v41 }
  0x94   :  { %6263 = vrsqrt.f32 %v133_v42  ;;  %v138_v46 = vmul.f32 %v6260_v43, %v137_v45 }
  0x95   :  { %6265 = vrsqrt.f32 %v134_v44 }
  0x96   :  { %v139_v47 = vmul.f32 0.5, %v138_v46 }
  0x97   :  { %v6778_v34 = vpop.permute.xlu2 %300 }
  0x98   :  { %v140_v51 = vsub.f32 1.5, %v139_v47 }
  0x99   :  { %v6262_v48 = vpop.eup %6261 }
  0x9a   :  { %v6264_v49 = vpop.eup %6263  ;;  %v167_v54 = vmul.f32 %v6262_v48, %v135_v41  ;;  %v141_v58 = vmul.f32 %v6260_v43, %v140_v51  ;;  %vm173_vm9 = vweird.f32 %v6262_v48 }
  0x9b   :  { %v147_v52 = vmul.f32 %v6264_v49, %v133_v42  ;;  %v6266_v53 = vpop.eup %6265  ;;  %vm153_vm4 = vweird.f32 %v6264_v49  ;;  %vm174_vm12 = vmor %vm172_vm8, %vm173_vm9 }
  0x9c   :  { %v157_v56 = vmul.f32 %v6266_v53, %v134_v44  ;;  %v168_v60 = vmul.f32 %v6262_v48, %v167_v54  ;;  %v145_v63 = vsel %vm144_vm5, %v6260_v43, %v141_v58  ;;  %vm154_vm7 = vmor %vm152_vm6, %vm153_vm4  ;;  %vm163_vm11 = vweird.f32 %v6266_v53 }
  0x9d   :  { %v148_v55 = vmul.f32 %v6264_v49, %v147_v52  ;;  %v176_v7 = vmul.f32 %v145_v63, %v6662_v2  ;;  %vm164_vm13 = vmor %vm162_vm10, %vm163_vm11 }
  0x9e   :  { %v158_v62 = vmul.f32 %v6266_v53, %v157_v56  ;;  %v169_v3 = vmul.f32 0.5, %v168_v60 }
  0x9f   :  { %v149_v57 = vmul.f32 0.5, %v148_v55 }
  0xa0   :  { %v159_v9 = vmul.f32 0.5, %v158_v62  ;;  %v170_v12 = vsub.f32 1.5, %v169_v3 }
  0xa1   :  { %v150_v61 = vsub.f32 1.5, %v149_v57 }
  0xa2   :  { %v160_v13 = vsub.f32 1.5, %v159_v9  ;;  %v171_v2 = vmul.f32 %v6262_v48, %v170_v12 }
  0xa3   :  { %v151_v0 = vmul.f32 %v6264_v49, %v150_v61 }
  0xa4   :  { %v175_v15 = vsel %vm174_vm12, %v6262_v48, %v171_v2 }
  0xa5   :  { %v155_v4 = vsel %vm154_vm7, %v6264_v49, %v151_v0  ;;  %v179_v17 = vmul.f32 %v175_v15, %v6671_v5 }
  0xa6   :  { %v177_v8 = vmul.f32 %v155_v4, %v6676_v6  ;;  %v161_v6 = vmul.f32 %v6266_v53, %v160_v13 }
  0xa8   :  { %v180_v10 = vpack.c.bf16 %v177_v8, %v176_v7  ;;  %v165_v16 = vsel %vm164_vm13, %v6266_v53, %v161_v6 }
  0xa9   :  { %v178_v18 = vmul.f32 %v165_v16, %v6657_v1  ;;  %v82_v1 = vld [vmem:[%s10041_s2 + $0x10] sm:$0xff] }
  0xaa   :  { %5862 = vmatmul.msk.bf16.vlgmr.msra.gmra.mxu0 %vm108_vm0, %v180_v10  ;;  %5864 = vmatmul.msk.bf16.vlgmr.msra.gmra.mxu1 %vm108_vm0, %v180_v10 }
  0xab   :  { %v181_v19 = vpack.c.bf16 %v179_v17, %v178_v18 }
  0xba   :  { %5863 = vmatmul.msk.bf16.gmra.mxu0 %vm108_vm0, %v181_v19  ;;  %5865 = vmatmul.msk.bf16.gmra.mxu1 %vm108_vm0, %v181_v19 }
 0x127   :  { %v240_v21 = vpop.f32.mrf.mxu1  ;;  %v6780_v36 = vpop.f32.mrf.mxu0 }
 0x128   :  { %v314_v22 = vmul.f32 %v240_v21, %v80_v20  ;;  %v310_v61 = vmul.f32 %v6776_v33, %v6780_v36  ;;  %v250_v8 = vmul.f32 %v6780_v36, %v6735_v11 }
 0x12a   :  { %322 = vrot.lane.b32.xlu2 %v314_v22, %s6545_s18 }
 0x12f   :  { %v242_v23 = vpop.f32.mrf.mxu1  ;;  %v6787_v39 = vpop.f32.mrf.mxu0 }
 0x130   :  { %v315_v29 = vmul.f32 %v242_v23, %v81_v26  ;;  %v311_v45 = vmul.f32 %v6778_v34, %v6787_v39 }
 0x132   :  { %258 = vrot.lane.b32.xlu2 %v80_v20, %s6547_s22 }
 0x137   :  { %v245_v5 = vpop.f32.mrf.mxu1  ;;  %v6789_v40 = vpop.f32.mrf.mxu0 }
 0x138   :  { %v316_v25 = vmul.f32 %v245_v5, %v82_v1  ;;  %v312_v42 = vmul.f32 %v6772_v31, %v6789_v40 }
 0x13a   :  { %326 = vrot.lane.b32.xlu0 %v316_v25, %s6545_s18  ;;  %264 = vrot.lane.b32.xlu2 %v83_v24, %s6547_s22 }
 0x13f   :  { %v247_v27 = vpop.f32.mrf.mxu1  ;;  %v6793_v43 = vpop.f32.mrf.mxu0 }
 0x140   :  { %v317_v28 = vmul.f32 %v247_v27, %v83_v24  ;;  %v313_v46 = vmul.f32 %v6774_v32, %v6793_v43 }
 0x142   :  { %328 = vrot.lane.b32.xlu1 %v317_v28, %s6545_s18  ;;  %324 = vrot.lane.b32.xlu0 %v315_v29, %s6545_s18 }
 0x14a   :  { %260 = vrot.lane.b32.xlu1 %v81_v26, %s6547_s22  ;;  %262 = vrot.lane.b32.xlu0 %v82_v1, %s6547_s22  ;;  %v251_v1 = vmul.f32 %v6787_v39, %v6744_v14 }
 0x184   :  { %v323_v35 = vpop.permute.xlu2 %322 }
 0x185   :  { %v334_v62 = vadd.f32 %v323_v35, %v310_v61 }
 0x187   :  { %v6815_v63 = vpack.c.bf16 %v334_v62, %v334_v62 }
 0x18c   :  { %v6782_v37 = vpop.permute.xlu2 %258 }
 0x18d   :  { %v270_v38 = vmul.f32 %v6782_v37, %v6780_v36 }
 0x18f   :  { %278 = vrot.lane.b32.xlu0 %v270_v38, %s6545_s18 }
 0x194   :  { %v6832_v3 = vpop.permute.xlu2 %264 }
 0x195   :  { %v273_v7 = vmul.f32 %v6832_v3, %v6793_v43 }
 0x1ac   :  { %v327_v41 = vpop.permute.xlu0 %326 }
 0x1ad   :  { %v336_v44 = vadd.f32 %v327_v41, %v312_v42 }
 0x1af   :  { %v344_v49 = vpack.c.bf16 %v336_v44, %v336_v44 }
 0x1b1   :  { %v442_v55 = vunpack.c.l.b16 %v344_v49 }
 0x1b4   :  { %v329_v47 = vpop.permute.xlu1 %328  ;;  %v325_v48 = vpop.permute.xlu0 %324 }
 0x1b5   :  { %v337_v51 = vadd.f32 %v329_v47, %v313_v46  ;;  %v335_v52 = vadd.f32 %v325_v48, %v311_v45 }
 0x1b7   :  { %v345_v53 = vpack.c.bf16 %v337_v51, %v337_v51  ;;  %v6799_v54 = vpack.c.bf16 %v335_v52, %v335_v52 }
 0x1b9   :  { %384 = vrot.lane.b32.xlu1 %v6799_v54, %s6548_s0  ;;  %388 = vrot.lane.b32.xlu0 %v345_v53, %s6548_s0  ;;  %v443_v56 = vunpack.c.l.b16 %v345_v53 }
 0x1bb   :  { %v6804_v57 = vpack.c.b16 %v443_v56, %v442_v55  ;;  %v253_v55 = vmul.f32 %v6793_v43, %v6726_v59  ;;  %v6881_v59 = vpack.c.bf16 %v6780_v36, %v6780_v36  ;;  %v6896_v36 = vpack.c.bf16 %v6789_v40, %v6789_v40 }
 0x1bc   :  { %v6806_v58 = vpop.permute.xlu1 %260  ;;  %v6830_v0 = vpop.permute.xlu0 %262 }
 0x1bd   :  { %v271_v60 = vmul.f32 %v6806_v58, %v6787_v39  ;;  %v272_v4 = vmul.f32 %v6830_v0, %v6789_v40 }
 0x1bf   :  { %280 = vrot.lane.b32.xlu2 %v271_v60, %s6545_s18 }
 0x1c1   :  { %386 = vrot.lane.b32.xlu1 %v344_v49, %s6548_s0  ;;  %396 = vrot.lane.b32.xlu0 %v345_v53, %s6549_s30 }
 0x1c7   :  { %382 = vrot.lane.b32.xlu2 %v6815_v63, %s6548_s0 }
 0x1c9   :  { %394 = vrot.lane.b32.xlu1 %v344_v49, %s6549_s30  ;;  %390 = vrot.lane.b32.xlu0 %v6815_v63, %s6549_s30 }
 0x1cf   :  { %402 = vrot.lane.b32.xlu2 %v344_v49, %s6550_s19  ;;  %v252_v49 = vmul.f32 %v6789_v40, %v6719_v50  ;;  %v6911_v40 = vpack.c.bf16 %v6787_v39, %v6787_v39 }
 0x1d1   :  { %404 = vrot.lane.b32.xlu1 %v345_v53, %s6550_s19  ;;  %400 = vrot.lane.b32.xlu0 %v6799_v54, %s6550_s19 }
 0x1d7   :  { %392 = vrot.lane.b32.xlu2 %v6799_v54, %s6549_s30 }
 0x1d9   :  { %398 = vrot.lane.b32.xlu1 %v6815_v63, %s6550_s19 }
 0x1df   :  { %282 = vrot.lane.b32.xlu2 %v272_v4, %s6545_s18 }
 0x1e1   :  { %284 = vrot.lane.b32.xlu1 %v273_v7, %s6545_s18 }
 0x201   :  { %v279_v9 = vpop.permute.xlu0 %278 }
 0x202   :  { %v290_v10 = vadd.f32 %v279_v9, %v250_v8 }
 0x204   :  { %v6842_v12 = vpack.c.bf16 %v290_v10, %v290_v10  ;;  %v6885_v10 = vpack.c.bf16 %v6793_v43, %v6793_v43 }
 0x206   :  { %354 = vrot.lane.b32.xlu1 %v6842_v12, %s6548_s0 }
 0x219   :  { %v281_v13 = vpop.permute.xlu2 %280 }
 0x21a   :  { %v291_v5 = vadd.f32 %v281_v13, %v251_v1  ;;  %v440_v13 = vunpack.c.l.b16 %v6815_v63 }
 0x21c   :  { %v6850_v25 = vpack.c.bf16 %v291_v5, %v291_v5 }
 0x221   :  { %v383_v2 = vpop.permute.xlu2 %382 }
 0x222   :  { %v488_v16 = vunpack.c.l.b16 %v383_v2 }
 0x229   :  { %v403_v23 = vpop.permute.xlu2 %402 }
 0x22a   :  { %v584_v35 = vunpack.c.l.b16 %v403_v23 }
 0x22b   :  { %v385_v6 = vpop.permute.xlu1 %384  ;;  %v389_v15 = vpop.permute.xlu0 %388 }
 0x22c   :  { %v489_v17 = vunpack.c.l.b16 %v385_v6  ;;  %v491_v20 = vunpack.c.l.b16 %v389_v15 }
 0x22e   :  { %v492_v18 = vpack.c.b16 %v489_v17, %v488_v16 }
 0x230   :  { %494 = vrot.lane.b32.xlu2 %v492_v18, %s6547_s22 }
 0x231   :  { %v393_v27 = vpop.permute.xlu2 %392 }
 0x232   :  { %v536_v38 = vunpack.c.l.b16 %v393_v27 }
 0x233   :  { %v387_v19 = vpop.permute.xlu1 %386  ;;  %v397_v11 = vpop.permute.xlu0 %396 }
 0x234   :  { %v490_v21 = vunpack.c.l.b16 %v387_v19  ;;  %v538_v60 = vunpack.c.l.b16 %v397_v11 }
 0x236   :  { %v493_v22 = vpack.c.b16 %v491_v20, %v490_v21 }
 0x238   :  { %496 = vrot.lane.b32.xlu0 %v493_v22, %s6547_s22 }
 0x239   :  { %v283_v48 = vpop.permute.xlu2 %282 }
 0x23a   :  { %v292_v52 = vadd.f32 %v283_v48, %v252_v49 }
 0x23b   :  { %v395_v24 = vpop.permute.xlu1 %394  ;;  %v391_v26 = vpop.permute.xlu0 %390 }
 0x23c   :  { %v535_v28 = vunpack.c.l.b16 %v391_v26  ;;  %v537_v53 = vunpack.c.l.b16 %v395_v24  ;;  %v340_v61 = vpack.c.bf16 %v292_v52, %v292_v52 }
 0x23e   :  { %v539_v42 = vpack.c.b16 %v536_v38, %v535_v28  ;;  %v540_v4 = vpack.c.b16 %v538_v60, %v537_v53  ;;  %v436_v7 = vunpack.c.l.b16 %v340_v61 }
 0x240   :  { %356 = vrot.lane.b32.xlu0 %v6850_v25, %s6548_s0 }
 0x243   :  { %v405_v29 = vpop.permute.xlu1 %404  ;;  %v401_v14 = vpop.permute.xlu0 %400 }
 0x244   :  { %v585_v41 = vunpack.c.l.b16 %v405_v29  ;;  %v583_v46 = vunpack.c.l.b16 %v401_v14 }
 0x246   :  { %v587_v44 = vpack.c.b16 %v585_v41, %v584_v35 }
 0x248   :  { %541 = vrot.lane.b32.xlu0 %v539_v42, %s6547_s22  ;;  %590 = vrot.lane.b32.xlu1 %v587_v44, %s6547_s22 }
 0x24b   :  { %v399_v45 = vpop.permute.xlu1 %398 }
 0x24c   :  { %v582_v47 = vunpack.c.l.b16 %v399_v45 }
 0x24e   :  { %v586_v51 = vpack.c.b16 %v583_v46, %v582_v47 }
 0x250   :  { %588 = vrot.lane.b32.xlu2 %v586_v51, %s6547_s22  ;;  %364 = vrot.lane.b32.xlu0 %v6850_v25, %s6549_s30 }
 0x251   :  { %362 = vrot.lane.b32.xlu1 %v6842_v12, %s6549_s30 }
 0x253   :  { %v285_v56 = vpop.permute.xlu1 %284 }
 0x254   :  { %v293_v62 = vadd.f32 %v285_v56, %v253_v55 }
 0x256   :  { %v341_v50 = vpack.c.bf16 %v293_v62, %v293_v62 }
 0x258   :  { %543 = vrot.lane.b32.xlu2 %v540_v4, %s6547_s22  ;;  %358 = vrot.lane.b32.xlu0 %v340_v61, %s6548_s0  ;;  %v437_v8 = vunpack.c.l.b16 %v341_v50 }
 0x259   :  { %372 = vrot.lane.b32.xlu1 %v6850_v25, %s6550_s19 }
 0x25a   :  { %v6869_v9 = vpack.c.b16 %v437_v8, %v436_v7 }
 0x260   :  { %366 = vrot.lane.b32.xlu0 %v340_v61, %s6549_s30  ;;  %370 = vrot.lane.b32.xlu2 %v6842_v12, %s6550_s19 }
 0x261   :  { %448 = vrot.lane.b32.xlu1 %v6804_v57, %s6547_s22  ;;  %v441_v57 = vunpack.c.l.b16 %v6799_v54 }
 0x263   :  { %v444_v2 = vpack.c.b16 %v441_v57, %v440_v13 }
 0x268   :  { %376 = vrot.lane.b32.xlu0 %v341_v50, %s6550_s19  ;;  %360 = vrot.lane.b32.xlu2 %v341_v50, %s6548_s0 }
 0x269   :  { %374 = vrot.lane.b32.xlu1 %v340_v61, %s6550_s19 }
 0x270   :  { %410 = vrot.lane.b32.xlu0 %v6881_v59, %s6548_s0  ;;  %368 = vrot.lane.b32.xlu2 %v341_v50, %s6549_s30 }
 0x271   :  { %416 = vrot.lane.b32.xlu1 %v6885_v10, %s6548_s0 }
 0x278   :  { %430 = vrot.lane.b32.xlu0 %v6896_v36, %s6550_s19  ;;  %446 = vrot.lane.b32.xlu2 %v444_v2, %s6547_s22  ;;  %v355_v16 = vpop.permute.xlu1 %354  ;;  %v435_v2 = vunpack.c.l.b16 %v6850_v25 }
 0x279   :  { %422 = vrot.lane.b32.xlu1 %v6896_v36, %s6549_s30  ;;  %v482_v20 = vunpack.c.l.b16 %v355_v16 }
 0x280   :  { %418 = vrot.lane.b32.xlu0 %v6881_v59, %s6549_s30  ;;  %414 = vrot.lane.b32.xlu2 %v6896_v36, %s6548_s0 }
 0x281   :  { %432 = vrot.lane.b32.xlu1 %v6885_v10, %s6550_s19 }
 0x288   :  { %428 = vrot.lane.b32.xlu0 %v6911_v40, %s6550_s19  ;;  %412 = vrot.lane.b32.xlu2 %v6911_v40, %s6548_s0 }
 0x289   :  { %426 = vrot.lane.b32.xlu1 %v6881_v59, %s6550_s19 }
 0x28a   :  { %v495_v43 = vpop.permute.xlu2 %494 }
 0x28b   :  { %v505_v17 = vsel %vm450_vm14, %v495_v43, 0  ;;  %v434_v43 = vunpack.c.l.b16 %v6842_v12 }
 0x290   :  { %424 = vrot.lane.b32.xlu2 %v6885_v10, %s6549_s30 }
 0x298   :  { %420 = vrot.lane.b32.xlu2 %v6911_v40, %s6549_s30 }
 0x2aa   :  { %v497_v54 = vpop.permute.xlu0 %496  ;;  %v589_v63 = vpop.permute.xlu2 %588 }
 0x2ab   :  { %v508_v39 = vsel %vm450_vm14, %v497_v54, 0  ;;  %v599_v35 = vsel %vm450_vm14, %v589_v63, 0 }
 0x2ac   :  { %516 = vmatpush.bf16.xpose.msra.mxu3 %v508_v39  ;;  %v438_v39 = vpack.c.b16 %v435_v2, %v434_v43  ;;  %v88_v43 = vld [vmem:[%s10042_s3 + $0x20] sm:$0xff] }
 0x2b2   :  { %v357_v6 = vpop.permute.xlu0 %356  ;;  %v544_v15 = vpop.permute.xlu2 %543 }
 0x2b3   :  { %v555_v18 = vsel %vm450_vm14, %v544_v15, 0  ;;  %v483_v19 = vunpack.c.l.b16 %v357_v6 }
 0x2b4   :  { %517 = vmatpush.bf16.xpose.msra.mxu3 %v505_v17  ;;  %563 = vmatpush.bf16.xpose.msrb.mxu0 %v555_v18 }
 0x2b5   :  { %v486_v21 = vpack.c.b16 %v483_v19, %v482_v20 }
 0x2ba   :  { %v542_v11 = vpop.permute.xlu0 %541  ;;  %v371_v22 = vpop.permute.xlu2 %370 }
 0x2bb   :  { %v591_v23 = vpop.permute.xlu1 %590  ;;  %5868 = vmatmul.msk.bf16.vlgmr.msra.gmra.mxu3 %vm450_vm14, %v486_v21  ;;  %v552_v1 = vsel %vm450_vm14, %v542_v11, 0  ;;  %v576_v46 = vunpack.c.l.b16 %v371_v22 }
 0x2bc   :  { %564 = vmatpush.bf16.xpose.msrb.mxu0 %v552_v1  ;;  %v602_v5 = vsel %vm450_vm14, %v591_v23, 0 }
 0x2bd   :  { %610 = vmatpush.bf16.xpose.msrb.mxu1 %v602_v5 }
 0x2c2   :  { %v365_v24 = vpop.permute.xlu0 %364  ;;  %v361_v26 = vpop.permute.xlu2 %360 }
 0x2c3   :  { %v530_v27 = vunpack.c.l.b16 %v365_v24  ;;  %v363_v28 = vpop.permute.xlu1 %362  ;;  %v485_v44 = vunpack.c.l.b16 %v361_v26 }
 0x2c4   :  { %v529_v29 = vunpack.c.l.b16 %v363_v28 }
 0x2c5   :  { %611 = vmatpush.bf16.xpose.msrb.mxu1 %v599_v35 }
 0x2c6   :  { %v533_v38 = vpack.c.b16 %v530_v27, %v529_v29 }
 0x2c8   :  { %5870 = vmatmul.msk.bf16.vlgmr.msrb.gmra.mxu0 %vm450_vm14, %v533_v38 }
 0x2ca   :  { %v359_v41 = vpop.permute.xlu0 %358  ;;  %v369_v42 = vpop.permute.xlu2 %368 }
 0x2cb   :  { %v484_v14 = vunpack.c.l.b16 %v359_v41  ;;  %v373_v45 = vpop.permute.xlu1 %372  ;;  %v532_v53 = vunpack.c.l.b16 %v369_v42 }
 0x2cc   :  { %v577_v47 = vunpack.c.l.b16 %v373_v45 }
 0x2cd   :  { %v487_v48 = vpack.c.b16 %v485_v44, %v484_v14 }
 0x2ce   :  { %v580_v49 = vpack.c.b16 %v577_v47, %v576_v46 }
 0x2cf   :  { %5869 = vmatmul.msk.bf16.gmra.mxu3 %vm450_vm14, %v487_v48  ;;  %v92_v48 = vld [vmem:[%s10042_s3 + $0x40] sm:$0xff] }
 0x2d0   :  { %5872 = vmatmul.msk.bf16.vlgmr.msrb.gmra.mxu1 %vm450_vm14, %v580_v49 }
 0x2d2   :  { %v367_v51 = vpop.permute.xlu0 %366  ;;  %v447_v52 = vpop.permute.xlu2 %446 }
 0x2d3   :  { %v531_v55 = vunpack.c.l.b16 %v367_v51  ;;  %v449_v56 = vpop.permute.xlu1 %448  ;;  %v458_v57 = vsel %vm450_vm14, %v447_v52, 0  ;;  %v85_v51 = vld [vmem:[%s10042_s3 + $0x8] sm:$0xff] }
 0x2d4   :  { %v461_v60 = vsel %vm450_vm14, %v449_v56, 0 }
 0x2d5   :  { %v534_v61 = vpack.c.b16 %v532_v53, %v531_v55  ;;  %469 = vmatpush.bf16.xpose.msra.mxu2 %v461_v60 }
 0x2d8   :  { %5871 = vmatmul.msk.bf16.gmra.mxu0 %vm450_vm14, %v534_v61 }
 0x2da   :  { %v377_v62 = vpop.permute.xlu0 %376  ;;  %v415_v4 = vpop.permute.xlu2 %414 }
 0x2db   :  { %v579_v50 = vunpack.c.l.b16 %v377_v62  ;;  %v375_v7 = vpop.permute.xlu1 %374  ;;  %v874_v17 = vunpack.c.l.b16 %v415_v4  ;;  %v97_v62 = vld [vmem:[%s10042_s3 + $0x68] sm:$0xff]  ;;  %v86_v4 = vld [vmem:[%s10042_s3 + $0x10] sm:$0xff] }
 0x2dc   :  { %v578_v8 = vunpack.c.l.b16 %v375_v7 }
 0x2dd   :  { %470 = vmatpush.bf16.xpose.msra.mxu2 %v458_v57 }
 0x2de   :  { %v581_v13 = vpack.c.b16 %v579_v50, %v578_v8 }
 0x2e0   :  { %5873 = vmatmul.msk.bf16.gmra.mxu1 %vm450_vm14, %v581_v13 }
 0x2e2   :  { %v411_v54 = vpop.permute.xlu0 %410  ;;  %v413_v63 = vpop.permute.xlu2 %412 }
 0x2e3   :  { %v872_v6 = vunpack.c.l.b16 %v411_v54  ;;  %v873_v15 = vunpack.c.l.b16 %v413_v63  ;;  %v417_v16 = vpop.permute.xlu1 %416  ;;  %v98_v54 = vld [vmem:[%s10042_s3 + $0x70] sm:$0xff] }
 0x2e4   :  { %v875_v18 = vunpack.c.l.b16 %v417_v16  ;;  %5866 = vmatmul.msk.bf16.vlgmr.msra.gmra.mxu2 %vm450_vm14, %v438_v39  ;;  %v87_v39 = vld [vmem:[%s10042_s3 + $0x18] sm:$0xff] }
 0x2e5   :  { %v876_v19 = vpack.c.b16 %v873_v15, %v872_v6 }
 0x2e6   :  { %v877_v20 = vpack.c.b16 %v875_v18, %v874_v17 }
 0x2e7   :  { %878 = vrot.lane.b32.xlu0 %v876_v19, %s6551_s1 }
 0x2e8   :  { %880 = vrot.lane.b32.xlu1 %v877_v20, %s6551_s1 }
 0x2ea   :  { %v425_v25 = vpop.permute.xlu2 %424  ;;  %v431_v23 = vpop.permute.xlu0 %430 }
 0x2eb   :  { %v922_v21 = vunpack.c.l.b16 %v425_v25  ;;  %v423_v12 = vpop.permute.xlu1 %422  ;;  %v968_v5 = vunpack.c.l.b16 %v431_v23 }
 0x2ec   :  { %v921_v11 = vunpack.c.l.b16 %v423_v12  ;;  %v96_v12 = vld [vmem:[%s10042_s3 + $0x60] sm:$0xff] }
 0x2ee   :  { %v924_v22 = vpack.c.b16 %v922_v21, %v921_v11  ;;  %v93_v21 = vld [vmem:[%s10042_s3 + $0x48] sm:$0xff] }
 0x2f0   :  { %927 = vrot.lane.b32.xlu2 %v924_v22, %s6551_s1 }
 0x2f2   :  { %v6946_v27 = vpop.permute.xlu2 %420  ;;  %v6948_v29 = vpop.permute.xlu0 %418 }
 0x2f3   :  { %v433_v1 = vpop.permute.xlu1 %432 }
 0x2f4   :  { %v969_v24 = vunpack.c.l.b16 %v433_v1  ;;  %5867 = vmatmul.msk.bf16.gmra.mxu2 %vm450_vm14, %v6869_v9  ;;  %v84_v9 = vld [vmem:[%s10042_s3] sm:$0xff] }
 0x2f6   :  { %v971_v26 = vpack.c.b16 %v969_v24, %v968_v5 }
 0x2f8   :  { %974 = vrot.lane.b32.xlu0 %v971_v26, %s6551_s1  ;;  %v89_v26 = vld [vmem:[%s10042_s3 + $0x28] sm:$0xff] }
 0x2fa   :  { %v6952_v38 = vpop.permute.xlu0 %428 }
 0x2fb   :  { %v6950_v35 = vpop.permute.xlu1 %426 }
 0x33e   :  { %v519_v57 = vpop.f32.mrf.mxu3 }
 0x33f   :  { %v6998_v6 = vadd.f32 %v519_v57, %v88_v43 }
 0x341   :  { %v635_v20 = vsel %vm108_vm0, %v6998_v6, -inf }
 0x345   :  { %v566_v49 = vpop.f32.mrf.mxu0 }
 0x346   :  { %v6967_v52 = vadd.f32 %v566_v49, %v92_v48  ;;  %v521_v25 = vpop.f32.mrf.mxu3 }
 0x348   :  { %v647_v61 = vsel %vm108_vm0, %v6967_v52, -inf }
 0x34a   :  { %v928_v28 = vpop.permute.xlu2 %927 }
 0x34b   :  { %943 = vmatpush.bf16.msra.mxu0 %v928_v28  ;;  %v90_v28 = vld [vmem:[%s10042_s3 + $0x30] sm:$0xff] }
 0x34d   :  { %v613_v14 = vpop.f32.mrf.mxu1  ;;  %v568_v15 = vpop.f32.mrf.mxu0 }
 0x34e   :  { %v569_v22 = vadd.f32 %v568_v15, %v93_v21  ;;  %v614_v23 = vadd.f32 %v613_v14, %v96_v12 }
 0x350   :  { %v659_v5 = vsel %vm108_vm0, %v614_v23, -inf  ;;  %v650_v24 = vsel %vm108_vm0, %v569_v22, -inf }
 0x355   :  { %v615_v56 = vpop.f32.mrf.mxu1  ;;  %v571_v1 = vpop.f32.mrf.mxu0 }
 0x356   :  { %v6981_v50 = vadd.f32 %v615_v56, %v97_v62 }
 0x358   :  { %v662_v2 = vsel %vm108_vm0, %v6981_v50, -inf }
 0x359   :  { %v879_v42 = vpop.permute.xlu0 %878 }
 0x35a   :  { %v881_v41 = vpop.permute.xlu1 %880 }
 0x35b   :  { %896 = vmatpush.bf16.msrb.mxu3 %v881_v41  ;;  %v524_v41 = vpop.f32.mrf.mxu3 }
 0x35d   :  { %v618_v63 = vpop.f32.mrf.mxu1  ;;  %v573_v48 = vpop.f32.mrf.mxu0 }
 0x35e   :  { %v7000_v16 = vadd.f32 %v618_v63, %v98_v54 }
 0x35f   :  { %897 = vmatpush.bf16.msrb.mxu3 %v879_v42  ;;  %v522_v42 = vadd.f32 %v521_v25, %v89_v26 }
 0x360   :  { %v665_v11 = vsel %vm108_vm0, %v7000_v16, -inf }
 0x363   :  { %v526_v57 = vpop.f32.mrf.mxu3 }
 0x367   :  { %v472_v44 = vpop.f32.mrf.mxu2 }
 0x368   :  { %v6957_v45 = vadd.f32 %v472_v44, %v84_v9  ;;  %v7024_v9 = vadd.f32 %v524_v41, %v90_v28  ;;  %v638_v44 = vsel %vm108_vm0, %v522_v42, -inf }
 0x36a   :  { %v975_v46 = vpop.permute.xlu0 %974  ;;  %v623_v47 = vsel %vm108_vm0, %v6957_v45, -inf  ;;  %v641_v14 = vsel %vm108_vm0, %v7024_v9, -inf }
 0x36b   :  { %990 = vmatpush.bf16.msra.mxu1 %v975_v46  ;;  %624 = vmax.xlane.f32.xlu2 %v623_v47  ;;  %v94_v46 = vld [vmem:[%s10042_s3 + $0x50] sm:$0xff]  ;;  %v95_v47 = vld [vmem:[%s10042_s3 + $0x58] sm:$0xff] }
 0x36c   :  { %v7035_v49 = vadd.f32 %v571_v1, %v94_v46 }
 0x36f   :  { %v474_v53 = vpop.f32.mrf.mxu2 }
 0x370   :  { %v6969_v55 = vadd.f32 %v474_v53, %v85_v51  ;;  %v7037_v51 = vadd.f32 %v573_v48, %v95_v47  ;;  %v653_v53 = vsel %vm108_vm0, %v7035_v49, -inf }
 0x372   :  { %v626_v60 = vsel %vm108_vm0, %v6969_v55, -inf  ;;  %v656_v56 = vsel %vm108_vm0, %v7037_v51, -inf }
 0x373   :  { %627 = vmax.xlane.f32.xlu1 %v626_v60  ;;  %648 = vmax.xlane.f32.xlu2 %v647_v61  ;;  %v99_v60 = vld [vmem:[%s10042_s3 + $0x78] sm:$0xff]  ;;  %v620_v61 = vpop.f32.mrf.mxu1 }
 0x374   :  { %v7046_v62 = vadd.f32 %v620_v61, %v99_v60 }
 0x377   :  { %v477_v7 = vpop.f32.mrf.mxu2 }
 0x378   :  { %v6983_v8 = vadd.f32 %v477_v7, %v86_v4  ;;  %v668_v4 = vsel %vm108_vm0, %v7046_v62, -inf  ;;  %v91_v7 = vld [vmem:[%s10042_s3 + $0x38] sm:$0xff] }
 0x37a   :  { %v629_v13 = vsel %vm108_vm0, %v6983_v8, -inf }
 0x37b   :  { %630 = vmax.xlane.f32.xlu1 %v629_v13  ;;  %663 = vmax.xlane.f32.xlu2 %v662_v2  ;;  %v7053_v13 = vadd.f32 %v526_v57, %v91_v7 }
 0x37d   :  { %v644_v2 = vsel %vm108_vm0, %v7053_v13, -inf }
 0x37f   :  { %v479_v17 = vpop.f32.mrf.mxu2 }
 0x380   :  { %v7002_v18 = vadd.f32 %v479_v17, %v87_v39 }
 0x382   :  { %v632_v19 = vsel %vm108_vm0, %v7002_v18, -inf }
 0x383   :  { %633 = vmax.xlane.f32.xlu0 %v632_v19  ;;  %636 = vmax.xlane.f32.xlu1 %v635_v20 }
 0x384   :  { %666 = vmax.xlane.f32.xlu2 %v665_v11 }
 0x38b   :  { %660 = vmax.xlane.f32.xlu0 %v659_v5  ;;  %651 = vmax.xlane.f32.xlu1 %v650_v24 }
 0x393   :  { %639 = vmax.xlane.f32.xlu0 %v638_v44  ;;  %642 = vmax.xlane.f32.xlu1 %v641_v14 }
 0x39b   :  { %654 = vmax.xlane.f32.xlu0 %v653_v53  ;;  %657 = vmax.xlane.f32.xlu1 %v656_v56 }
 0x3a3   :  { %669 = vmax.xlane.f32.xlu0 %v668_v4 }
 0x3ab   :  { %645 = vmax.xlane.f32.xlu0 %v644_v2 }
 0x3de   :  { %v7057_v43 = vpop.xlane.xlu2 %624 }
 0x3e6   :  { %v7059_v54 = vpop.xlane.xlu1 %627  ;;  %v649_v63 = vpop.xlane.xlu2 %648 }
 0x3e7   :  { %v679_v39 = vsub.f32 %v6967_v52, %v649_v63 }
 0x3e9   :  { %v703_v15 = vmul.f32 1.442695, %v679_v39 }
 0x3eb   :  { %6267 = vpow2.f32 %v703_v15 }
 0x3ee   :  { %v7062_v17 = vpop.xlane.xlu1 %630  ;;  %v664_v19 = vpop.xlane.xlu2 %663 }
 0x3ef   :  { %v684_v20 = vsub.f32 %v6981_v50, %v664_v19 }
 0x3f1   :  { %v713_v25 = vmul.f32 1.442695, %v684_v20  ;;  %v7065_v21 = vpop.eup %6267 }
 0x3f2   :  { %v743_v12 = vsel %vm108_vm0, %v7065_v21, 0.0 }
 0x3f3   :  { %6269 = vpow2.f32 %v713_v25  ;;  %744 = vadd.xlane.f32.xlu2 %v743_v12 }
 0x3f6   :  { %v7069_v11 = vpop.xlane.xlu0 %633  ;;  %v637_v1 = vpop.xlane.xlu1 %636 }
 0x3f7   :  { %v675_v41 = vsub.f32 %v6998_v6, %v637_v1  ;;  %v667_v47 = vpop.xlane.xlu2 %666 }
 0x3f8   :  { %v685_v60 = vsub.f32 %v7000_v16, %v667_v47  ;;  %v827_v47 = vunpack.c.l.b16 %v6896_v36  ;;  %v672_v36 = vsub.f32 %v6969_v55, %v7059_v54 }
 0x3f9   :  { %v7071_v5 = vpop.eup %6269  ;;  %v695_v46 = vmul.f32 1.442695, %v675_v41 }
 0x3fa   :  { %v758_v52 = vsel %vm108_vm0, %v7071_v5, 0.0 }
 0x3fb   :  { %759 = vadd.xlane.f32.xlu2 %v758_v52  ;;  %v920_v52 = vunpack.c.l.b16 %v6946_v27 }
 0x3fe   :  { %v661_v24 = vpop.xlane.xlu0 %660  ;;  %v652_v26 = vpop.xlane.xlu1 %651 }
 0x3ff   :  { %v683_v50 = vsub.f32 %v614_v23, %v661_v24  ;;  %v680_v28 = vsub.f32 %v569_v22, %v652_v26  ;;  %v715_v23 = vmul.f32 1.442695, %v685_v60  ;;  %v967_v26 = vunpack.c.l.b16 %v6952_v38 }
 0x401   :  { %v711_v44 = vmul.f32 1.442695, %v683_v50  ;;  %v705_v14 = vmul.f32 1.442695, %v680_v28  ;;  %v966_v50 = vunpack.c.l.b16 %v6950_v35 }
 0x403   :  { %6271 = vpow2.f32 %v711_v44 }
 0x404   :  { %6273 = vpow2.f32 %v705_v14  ;;  %v970_v14 = vpack.c.b16 %v967_v26, %v966_v50 }
 0x405   :  { %6275 = vpow2.f32 %v695_v46 }
 0x406   :  { %v640_v48 = vpop.xlane.xlu0 %639  ;;  %v643_v7 = vpop.xlane.xlu1 %642 }
 0x407   :  { %v676_v53 = vsub.f32 %v522_v42, %v640_v48  ;;  %v677_v16 = vsub.f32 %v7024_v9, %v643_v7  ;;  %v919_v9 = vunpack.c.l.b16 %v6948_v29 }
 0x409   :  { %v7076_v56 = vpop.eup %6271  ;;  %v697_v61 = vmul.f32 1.442695, %v676_v53  ;;  %v699_v15 = vmul.f32 1.442695, %v677_v16  ;;  %v923_v44 = vpack.c.b16 %v920_v52, %v919_v9 }
 0x40a   :  { %v7079_v4 = vpop.eup %6273  ;;  %v755_v22 = vsel %vm108_vm0, %v7076_v56, 0.0 }
 0x40b   :  { %6277 = vpow2.f32 %v697_v61  ;;  %756 = vadd.xlane.f32.xlu0 %v755_v22  ;;  %v746_v6 = vsel %vm108_vm0, %v7079_v4, 0.0  ;;  %v7085_v57 = vpop.eup %6275  ;;  %v671_v22 = vsub.f32 %v6957_v45, %v7057_v43  ;;  %v689_v45 = vmul.f32 1.442695, %v672_v36 }
 0x40c   :  { %747 = vadd.xlane.f32.xlu1 %v746_v6  ;;  %6279 = vpow2.f32 %v715_v23  ;;  %v731_v63 = vsel %vm108_vm0, %v7085_v57, 0.0 }
 0x40d   :  { %6281 = vpow2.f32 %v699_v15 }
 0x40e   :  { %v655_v42 = vpop.xlane.xlu0 %654  ;;  %v658_v38 = vpop.xlane.xlu1 %657 }
 0x40f   :  { %v681_v35 = vsub.f32 %v7035_v49, %v655_v42  ;;  %v682_v46 = vsub.f32 %v7037_v51, %v658_v38  ;;  %v673_v42 = vsub.f32 %v6983_v8, %v7062_v17 }
 0x411   :  { %v7087_v2 = vpop.eup %6277  ;;  %v707_v48 = vmul.f32 1.442695, %v681_v35  ;;  %v709_v60 = vmul.f32 1.442695, %v682_v46  ;;  %v691_v16 = vmul.f32 1.442695, %v673_v42 }
 0x412   :  { %v734_v39 = vsel %vm108_vm0, %v7087_v2, 0.0  ;;  %v7094_v20 = vpop.eup %6279 }
 0x413   :  { %732 = vadd.xlane.f32.xlu0 %v731_v63  ;;  %735 = vadd.xlane.f32.xlu2 %v734_v39  ;;  %v761_v25 = vsel %vm108_vm0, %v7094_v20, 0.0  ;;  %v7098_v1 = vpop.eup %6281  ;;  %v674_v39 = vsub.f32 %v7002_v18, %v7069_v11 }
 0x414   :  { %v737_v41 = vsel %vm108_vm0, %v7098_v1, 0.0 }
 0x415   :  { %v693_v8 = vmul.f32 1.442695, %v674_v39 }
 0x416   :  { %v670_v19 = vpop.xlane.xlu0 %669 }
 0x417   :  { %v686_v61 = vsub.f32 %v7046_v62, %v670_v19 }
 0x419   :  { %v717_v6 = vmul.f32 1.442695, %v686_v61 }
 0x41b   :  { %762 = vadd.xlane.f32.xlu2 %v761_v25  ;;  %v826_v25 = vunpack.c.l.b16 %v6911_v40 }
 0x41e   :  { %v646_v12 = vpop.xlane.xlu0 %645 }
 0x41f   :  { %v678_v24 = vsub.f32 %v7053_v13, %v646_v12  ;;  %v828_v13 = vunpack.c.l.b16 %v6885_v10  ;;  %v687_v10 = vmul.f32 1.442695, %v671_v22  ;;  %v825_v12 = vunpack.c.l.b16 %v6881_v59 }
 0x421   :  { %v701_v28 = vmul.f32 1.442695, %v678_v24  ;;  %v830_v53 = vpack.c.b16 %v828_v13, %v827_v47  ;;  %v829_v52 = vpack.c.b16 %v826_v25, %v825_v12 }
 0x423   :  { %6283 = vpow2.f32 %v701_v28  ;;  %738 = vadd.xlane.f32.xlu2 %v737_v41 }
 0x424   :  { %6285 = vpow2.f32 %v707_v48 }
 0x425   :  { %925 = vrot.lane.b32.xlu1 %v923_v44, %s6551_s1  ;;  %6287 = vpow2.f32 %v709_v60 }
 0x426   :  { %6289 = vpow2.f32 %v717_v6 }
 0x427   :  { %972 = vrot.lane.b32.xlu0 %v970_v14, %s6551_s1  ;;  %6291 = vpow2.f32 %v687_v10 }
 0x428   :  { %6293 = vpow2.f32 %v689_v45 }
 0x429   :  { %v7109_v29 = vpop.eup %6283  ;;  %6295 = vpow2.f32 %v691_v16 }
 0x42a   :  { %v740_v27 = vsel %vm108_vm0, %v7109_v29, 0.0  ;;  %v7121_v49 = vpop.eup %6285  ;;  %6297 = vpow2.f32 %v693_v8 }
 0x42b   :  { %741 = vadd.xlane.f32.xlu2 %v740_v27  ;;  %v7123_v23 = vpop.eup %6287  ;;  %v749_v51 = vsel %vm108_vm0, %v7121_v49, 0.0 }
 0x42c   :  { %v752_v62 = vsel %vm108_vm0, %v7123_v23, 0.0  ;;  %v7131_v43 = vpop.eup %6289 }
 0x42d   :  { %v7133_v7 = vpop.eup %6291  ;;  %v764_v55 = vsel %vm108_vm0, %v7131_v43, 0.0 }
 0x42e   :  { %v719_v54 = vsel %vm108_vm0, %v7133_v7, 0.0  ;;  %v7141_v63 = vpop.eup %6293 }
 0x42f   :  { %v722_v15 = vsel %vm108_vm0, %v7141_v63, 0.0  ;;  %v7147_v17 = vpop.eup %6295 }
 0x430   :  { %v725_v19 = vsel %vm108_vm0, %v7147_v17, 0.0  ;;  %v7153_v9 = vpop.eup %6297 }
 0x431   :  { %v728_v18 = vsel %vm108_vm0, %v7153_v9, 0.0 }
 0x443   :  { %833 = vrot.lane.b32.xlu2 %v830_v53, %s6551_s1 }
 0x44f   :  { %750 = vadd.xlane.f32.xlu1 %v749_v51 }
 0x451   :  { %753 = vadd.xlane.f32.xlu0 %v752_v62 }
 0x457   :  { %765 = vadd.xlane.f32.xlu1 %v764_v55 }
 0x459   :  { %720 = vadd.xlane.f32.xlu0 %v719_v54 }
 0x45f   :  { %723 = vadd.xlane.f32.xlu1 %v722_v15 }
 0x466   :  { %v745_v11 = vpop.xlane.xlu2 %744 }
 0x467   :  { %726 = vadd.xlane.f32.xlu1 %v725_v19  ;;  %6299 = vrcp.f32 %v745_v11 }
 0x46d   :  { %831 = vrot.lane.b32.xlu0 %v829_v52, %s6551_s1  ;;  %v6300_v59 = vpop.eup %6299 }
 0x46e   :  { %v760_v24 = vpop.xlane.xlu2 %759  ;;  %v791_v47 = vmul.f32 %v6300_v59, %v7065_v21 }
 0x46f   :  { %729 = vadd.xlane.f32.xlu1 %v728_v18 }
 0x470   :  { %v807_v36 = vpack.c.bf16 %v791_v47, %v791_v47 }
 0x472   :  { %v913_v55 = vunpack.c.l.b16 %v807_v36 }
 0x47e   :  { %v757_v26 = vpop.xlane.xlu0 %756 }
 0x47f   :  { %v748_v50 = vpop.xlane.xlu1 %747 }
 0x480   :  { %6301 = vrcp.f32 %v748_v50 }
 0x481   :  { %6303 = vrcp.f32 %v760_v24 }
 0x482   :  { %6305 = vrcp.f32 %v757_v26 }
 0x486   :  { %v733_v40 = vpop.xlane.xlu0 %732  ;;  %v736_v28 = vpop.xlane.xlu2 %735 }
 0x487   :  { %6307 = vrcp.f32 %v733_v40  ;;  %v6302_v41 = vpop.eup %6301 }
 0x488   :  { %6309 = vrcp.f32 %v736_v28  ;;  %v6304_v44 = vpop.eup %6303  ;;  %v792_v38 = vmul.f32 %v6302_v41, %v7079_v4 }
 0x489   :  { %v6306_v14 = vpop.eup %6305  ;;  %v796_v61 = vmul.f32 %v6304_v44, %v7071_v5 }
 0x48a   :  { %v795_v48 = vmul.f32 %v6306_v14, %v7076_v56  ;;  %v808_v22 = vpack.c.bf16 %v792_v38, %v792_v38 }
 0x48b   :  { %v812_v4 = vpack.c.bf16 %v796_v61, %v796_v61 }
 0x48c   :  { %v811_v51 = vpack.c.bf16 %v795_v48, %v795_v48  ;;  %v914_v45 = vunpack.c.l.b16 %v808_v22 }
 0x48d   :  { %v6308_v27 = vpop.eup %6307  ;;  %v961_v56 = vunpack.c.l.b16 %v812_v4 }
 0x48e   :  { %v6310_v35 = vpop.eup %6309  ;;  %v787_v13 = vmul.f32 %v6308_v27, %v7085_v57  ;;  %v763_v46 = vpop.xlane.xlu2 %762  ;;  %v960_v54 = vunpack.c.l.b16 %v811_v51 }
 0x48f   :  { %v788_v53 = vmul.f32 %v6310_v35, %v7087_v2  ;;  %v917_v2 = vpack.c.b16 %v914_v45, %v913_v55 }
 0x490   :  { %v803_v60 = vpack.c.bf16 %v787_v13, %v787_v13  ;;  %v964_v16 = vpack.c.b16 %v961_v56, %v960_v54 }
 0x491   :  { %v804_v6 = vpack.c.bf16 %v788_v53, %v788_v53 }
 0x492   :  { %v866_v10 = vunpack.c.l.b16 %v803_v60 }
 0x493   :  { %v867_v62 = vunpack.c.l.b16 %v804_v6 }
 0x495   :  { %v870_v42 = vpack.c.b16 %v867_v62, %v866_v10 }
 0x496   :  { %v739_v57 = vpop.xlane.xlu2 %738 }
 0x497   :  { %v926_v21 = vpop.permute.xlu1 %925  ;;  %5876 = vmatmul.msk.bf16.vlgmr.msrb.gmra.mxu3 %vm108_vm0, %v870_v42  ;;  %6311 = vrcp.f32 %v739_v57 }
 0x498   :  { %944 = vmatpush.bf16.msra.mxu0 %v926_v21 }
 0x499   :  { %v973_v5 = vpop.permute.xlu0 %972 }
 0x49a   :  { %991 = vmatpush.bf16.msra.mxu1 %v973_v5 }
 0x49b   :  { %5878 = vmatmul.msk.bf16.vlgmr.msra.gmra.mxu0 %vm108_vm0, %v917_v2 }
 0x49d   :  { %5880 = vmatmul.msk.bf16.vlgmr.msra.gmra.mxu1 %vm108_vm0, %v964_v16  ;;  %v6312_v15 = vpop.eup %6311 }
 0x49e   :  { %v742_v39 = vpop.xlane.xlu2 %741  ;;  %v789_v8 = vmul.f32 %v6312_v15, %v7098_v1 }
 0x49f   :  { %6313 = vrcp.f32 %v742_v39 }
 0x4a0   :  { %v805_v52 = vpack.c.bf16 %v789_v8, %v789_v8 }
 0x4a2   :  { %v868_v11 = vunpack.c.l.b16 %v805_v52 }
 0x4a5   :  { %v6314_v19 = vpop.eup %6313 }
 0x4a6   :  { %v834_v25 = vpop.permute.xlu2 %833  ;;  %v790_v12 = vmul.f32 %v6314_v19, %v7109_v29 }
 0x4a7   :  { %849 = vmatpush.bf16.msrb.mxu2 %v834_v25 }
 0x4a8   :  { %v806_v18 = vpack.c.bf16 %v790_v12, %v790_v12 }
 0x4aa   :  { %v869_v24 = vunpack.c.l.b16 %v806_v18 }
 0x4ac   :  { %v871_v26 = vpack.c.b16 %v869_v24, %v868_v11 }
 0x4ae   :  { %5877 = vmatmul.msk.bf16.gmra.mxu3 %vm108_vm0, %v871_v26 }
 0x4c2   :  { %v751_v50 = vpop.xlane.xlu1 %750 }
 0x4c3   :  { %6315 = vrcp.f32 %v751_v50 }
 0x4c4   :  { %6317 = vrcp.f32 %v763_v46  ;;  %v754_v40 = vpop.xlane.xlu0 %753 }
 0x4c5   :  { %6319 = vrcp.f32 %v754_v40 }
 0x4c9   :  { %v6316_v28 = vpop.eup %6315 }
 0x4ca   :  { %v6318_v59 = vpop.eup %6317  ;;  %v766_v1 = vpop.xlane.xlu1 %765  ;;  %v793_v41 = vmul.f32 %v6316_v28, %v7121_v49 }
 0x4cb   :  { %v6320_v44 = vpop.eup %6319  ;;  %6321 = vrcp.f32 %v766_v1  ;;  %v797_v35 = vmul.f32 %v6318_v59, %v7094_v20 }
 0x4cc   :  { %v721_v29 = vpop.xlane.xlu0 %720  ;;  %v794_v14 = vmul.f32 %v6320_v44, %v7123_v23  ;;  %v809_v27 = vpack.c.bf16 %v793_v41, %v793_v41 }
 0x4cd   :  { %6323 = vrcp.f32 %v721_v29  ;;  %v813_v61 = vpack.c.bf16 %v797_v35, %v797_v35  ;;  %v6159_v29 = vld [vmem:[%s10044_s5 + $0x8] sm:$0xff] }
 0x4ce   :  { %v810_v38 = vpack.c.bf16 %v794_v14, %v794_v14  ;;  %v915_v13 = vunpack.c.l.b16 %v809_v27  ;;  %v6158_v14 = vld [vmem:[%s10044_s5] sm:$0xff] }
 0x4cf   :  { %v962_v6 = vunpack.c.l.b16 %v813_v61 }
 0x4d0   :  { %v916_v47 = vunpack.c.l.b16 %v810_v38 }
 0x4d1   :  { %v6322_v46 = vpop.eup %6321 }
 0x4d2   :  { %v724_v48 = vpop.xlane.xlu1 %723  ;;  %v918_v53 = vpack.c.b16 %v916_v47, %v915_v13  ;;  %v798_v60 = vmul.f32 %v6322_v46, %v7131_v43 }
 0x4d3   :  { %6325 = vrcp.f32 %v724_v48  ;;  %v6324_v49 = vpop.eup %6323 }
 0x4d4   :  { %5879 = vmatmul.msk.bf16.gmra.mxu0 %vm108_vm0, %v918_v53  ;;  %v814_v22 = vpack.c.bf16 %v798_v60, %v798_v60  ;;  %v783_v10 = vmul.f32 %v6324_v49, %v7133_v7 }
 0x4d6   :  { %v963_v23 = vunpack.c.l.b16 %v814_v22  ;;  %v799_v4 = vpack.c.bf16 %v783_v10, %v783_v10 }
 0x4d8   :  { %v965_v36 = vpack.c.b16 %v963_v23, %v962_v6  ;;  %v819_v57 = vunpack.c.l.b16 %v799_v4 }
 0x4d9   :  { %v6326_v51 = vpop.eup %6325 }
 0x4da   :  { %v784_v20 = vmul.f32 %v6326_v51, %v7141_v63  ;;  %v727_v62 = vpop.xlane.xlu1 %726  ;;  %5881 = vmatmul.msk.bf16.gmra.mxu1 %vm108_vm0, %v965_v36 }
 0x4db   :  { %6327 = vrcp.f32 %v727_v62 }
 0x4dc   :  { %v800_v45 = vpack.c.bf16 %v784_v20, %v784_v20 }
 0x4de   :  { %v820_v43 = vunpack.c.l.b16 %v800_v45 }
 0x4df   :  { %v832_v42 = vpop.permute.xlu0 %831 }
 0x4e0   :  { %850 = vmatpush.bf16.msrb.mxu2 %v832_v42  ;;  %v823_v55 = vpack.c.b16 %v820_v43, %v819_v57 }
 0x4e1   :  { %v6328_v7 = vpop.eup %6327 }
 0x4e2   :  { %v730_v54 = vpop.xlane.xlu1 %729  ;;  %v785_v21 = vmul.f32 %v6328_v7, %v7147_v17 }
 0x4e3   :  { %6329 = vrcp.f32 %v730_v54  ;;  %5874 = vmatmul.msk.bf16.vlgmr.msrb.gmra.mxu2 %vm108_vm0, %v823_v55 }
 0x4e4   :  { %v801_v2 = vpack.c.bf16 %v785_v21, %v785_v21  ;;  %1095 = vmatpush.bf16.msra.mxu2 %v6159_v29 }
 0x4e6   :  { %v821_v39 = vunpack.c.l.b16 %v801_v2 }
 0x4e8   :  { %1096 = vmatpush.bf16.msra.mxu2 %v6158_v14 }
 0x4e9   :  { %v6330_v56 = vpop.eup %6329 }
 0x4ea   :  { %v786_v63 = vmul.f32 %v6330_v56, %v7153_v9 }
 0x4ec   :  { %v802_v5 = vpack.c.bf16 %v786_v63, %v786_v63 }
 0x4ee   :  { %v822_v16 = vunpack.c.l.b16 %v802_v5 }
 0x4f0   :  { %v824_v15 = vpack.c.b16 %v822_v16, %v821_v39 }
 0x4f3   :  { %5875 = vmatmul.msk.bf16.gmra.mxu2 %vm108_vm0, %v824_v15 }
 0x518   :  { %v946_v8 = vpop.f32.mrf.mxu0 }
 0x51a   :  { %v899_v19 = vpop.f32.mrf.mxu3  ;;  %v993_v25 = vpop.f32.mrf.mxu1 }
 0x520   :  { %v948_v12 = vpop.f32.mrf.mxu0 }
 0x521   :  { %v6199_v52 = vpack.i.bf16 %v948_v12, %v946_v8 }
 0x522   :  { %v901_v18 = vpop.f32.mrf.mxu3  ;;  %v995_v11 = vpop.f32.mrf.mxu1 }
 0x523   :  { %v6194_v24 = vpack.i.bf16 %v901_v18, %v899_v19  ;;  %6200 = vrot.lane.b32.xlu1 %v6199_v52, %s10061_s25  ;;  %v6204_v17 = vpack.i.bf16 %v995_v11, %v993_v25  ;;  %v6463_v25 = vld [vmem:[%s10069_s16] sm:$0xff] }
 0x525   :  { %6195 = vrot.lane.b32.xlu0 %v6194_v24, %s10063_s26  ;;  %6205 = vrot.lane.b32.xlu2 %v6204_v17, %s10059_s27  ;;  %v6464_v24 = vld [vmem:[%s10069_s16 + $0x8] sm:$0xff] }
 0x531   :  { %v904_v9 = vpop.f32.mrf.mxu3 }
 0x539   :  { %v906_v26 = vpop.f32.mrf.mxu3 }
 0x53a   :  { %v6214_v50 = vpack.i.bf16 %v906_v26, %v904_v9 }
 0x53c   :  { %6215 = vrot.lane.b32.xlu0 %v6214_v50, %s10063_s26 }
 0x551   :  { %v951_v40 = vpop.f32.mrf.mxu0 }
 0x557   :  { %v998_v28 = vpop.f32.mrf.mxu1 }
 0x559   :  { %v953_v59 = vpop.f32.mrf.mxu0 }
 0x55a   :  { %v6209_v1 = vpack.i.bf16 %v953_v59, %v951_v40  ;;  %v6465_v40 = vld [vmem:[%s10069_s16 + $0x10] sm:$0xff] }
 0x55c   :  { %6210 = vrot.lane.b32.xlu2 %v6209_v1, %s10061_s25 }
 0x55f   :  { %v1000_v41 = vpop.f32.mrf.mxu1 }
 0x560   :  { %v6219_v44 = vpack.i.bf16 %v1000_v41, %v998_v28 }
 0x562   :  { %6220 = vrot.lane.b32.xlu0 %v6219_v44, %s10059_s27  ;;  %v6466_v44 = vld [vmem:[%s10069_s16 + $0x18] sm:$0xff] }
 0x566   :  { %v852_v27 = vpop.f32.mrf.mxu2 }
 0x56e   :  { %v854_v48 = vpop.f32.mrf.mxu2 }
 0x576   :  { %v857_v62 = vpop.f32.mrf.mxu2 }
 0x57e   :  { %v859_v54 = vpop.f32.mrf.mxu2 }
 0x57f   :  { %v6206_v35 = vpop.permute.xlu2 %6205 }
 0x580   :  { %v6208_v61 = vunpack.i.h.bf16 %v6206_v35  ;;  %v6207_v49 = vunpack.i.l.bf16 %v6206_v35  ;;  %v6160_v35 = vld [vmem:[%s10045_s6] sm:$0xff] }
 0x595   :  { %v6201_v38 = vpop.permute.xlu1 %6200 }
 0x596   :  { %v6203_v53 = vunpack.i.h.bf16 %v6201_v38  ;;  %v6202_v60 = vunpack.i.l.bf16 %v6201_v38  ;;  %v6161_v38 = vld [vmem:[%s10045_s6 + $0x8] sm:$0xff] }
 0x597   :  { %v6196_v13 = vpop.permute.xlu0 %6195  ;;  %1210 = vmatpush.bf16.msra.mxu3 %v6161_v38  ;;  %v6165_v38 = vld [vmem:[%s10046_s7 + $0x18] sm:$0xff] }
 0x598   :  { %v6198_v47 = vunpack.i.h.bf16 %v6196_v13  ;;  %v6197_v46 = vunpack.i.l.bf16 %v6196_v13  ;;  %1368 = vmatpush.bf16.msrb.mxu0 %v6165_v38 }
 0x59a   :  { %v1051_v22 = vsel %vm450_vm14, %v852_v27, %v6197_v46  ;;  %v1052_v6 = vsel %vm450_vm14, %v854_v48, %v6198_v47 }
 0x59b   :  { %v1056_v23 = vsel %vm1055_vm15, %v1051_v22, %v6202_v60  ;;  %v1057_v10 = vsel %vm1055_vm15, %v1052_v6, %v6203_v53  ;;  %1211 = vmatpush.bf16.msra.mxu3 %v6160_v35  ;;  %v6164_v35 = vld [vmem:[%s10046_s7 + $0x10] sm:$0xff] }
 0x59c   :  { %v1061_v36 = vsel %vm1060_vm1, %v1056_v23, %v6207_v49  ;;  %v1062_v51 = vsel %vm1060_vm1, %v1057_v10, %v6208_v61  ;;  %1369 = vmatpush.bf16.msrb.mxu0 %v6164_v35 }
 0x59d   :  { %v1065_v20 = vpack.c.bf16 %v1062_v51, %v1061_v36 }
 0x59f   :  { %5890 = vmatmul.msk.bf16.vlgmr.msra.gmra.mxu2 %vm108_vm0, %v1065_v20 }
 0x5ae   :  { %v6216_v4 = vpop.permute.xlu0 %6215 }
 0x5af   :  { %v6218_v43 = vunpack.i.h.bf16 %v6216_v4  ;;  %v6217_v42 = vunpack.i.l.bf16 %v6216_v4 }
 0x5b1   :  { %v1053_v21 = vsel %vm450_vm14, %v857_v62, %v6217_v42  ;;  %v1054_v56 = vsel %vm450_vm14, %v859_v54, %v6218_v43 }
 0x5b6   :  { %v6211_v45 = vpop.permute.xlu2 %6210 }
 0x5b7   :  { %v6213_v57 = vunpack.i.h.bf16 %v6211_v45  ;;  %v6212_v55 = vunpack.i.l.bf16 %v6211_v45 }
 0x5b9   :  { %v1058_v5 = vsel %vm1055_vm15, %v1053_v21, %v6212_v55  ;;  %v1059_v16 = vsel %vm1055_vm15, %v1054_v56, %v6213_v57 }
 0x5d4   :  { %v6221_v7 = vpop.permute.xlu0 %6220 }
 0x5d5   :  { %v6223_v63 = vunpack.i.h.bf16 %v6221_v7  ;;  %v6222_v2 = vunpack.i.l.bf16 %v6221_v7 }
 0x5d7   :  { %v1063_v39 = vsel %vm1060_vm1, %v1058_v5, %v6222_v2  ;;  %v1064_v15 = vsel %vm1060_vm1, %v1059_v16, %v6223_v63 }
 0x5d8   :  { %v1066_v8 = vpack.c.bf16 %v1064_v15, %v1063_v39 }
 0x5da   :  { %5891 = vmatmul.msk.bf16.gmra.mxu2 %vm108_vm0, %v1066_v8 }
 0x622   :  { %v1098_v19 = vpop.f32.mrf.mxu2 }
 0x623   :  { %v7211_v12 = vadd.f32 %v6463_v25, %v1098_v19 }
 0x625   :  { %v1112_v52 = vmul.f32 %v7211_v12, %v7211_v12 }
 0x627   :  { %v1116_v18 = vsel %vm108_vm0, %v1112_v52, 0.0 }
 0x628   :  { %1117 = vadd.xlane.f32.xlu2 %v1116_v18 }
 0x62a   :  { %v1100_v11 = vpop.f32.mrf.mxu2 }
 0x62b   :  { %v7219_v17 = vadd.f32 %v6464_v24, %v1100_v11 }
 0x62d   :  { %v1113_v9 = vmul.f32 %v7219_v17, %v7219_v17 }
 0x62f   :  { %v1119_v26 = vsel %vm108_vm0, %v1113_v9, 0.0 }
 0x630   :  { %1120 = vadd.xlane.f32.xlu0 %v1119_v26 }
 0x65d   :  { %v1103_v50 = vpop.f32.mrf.mxu2 }
 0x65e   :  { %v7227_v28 = vadd.f32 %v6465_v40, %v1103_v50 }
 0x660   :  { %v1114_v59 = vmul.f32 %v7227_v28, %v7227_v28 }
 0x662   :  { %v1122_v1 = vsel %vm108_vm0, %v1114_v59, 0.0 }
 0x663   :  { %1123 = vadd.xlane.f32.xlu1 %v1122_v1 }
 0x665   :  { %v1105_v41 = vpop.f32.mrf.mxu2 }
 0x666   :  { %v7235_v29 = vadd.f32 %v6466_v44, %v1105_v41 }
 0x668   :  { %v1115_v14 = vmul.f32 %v7235_v29, %v7235_v29 }
 0x66a   :  { %v1125_v27 = vsel %vm108_vm0, %v1115_v14, 0.0 }
 0x66b   :  { %1126 = vadd.xlane.f32.xlu2 %v1125_v27 }
 0x69b   :  { %v1118_v13 = vpop.xlane.xlu2 %1117 }
 0x69c   :  { %v1128_v47 = vmul.f32 %v1118_v13, %v6710_v30  ;;  %v6163_v13 = vld [vmem:[%s10046_s7 + $0x8] sm:$0xff] }
 0x69d   :  { %1370 = vmatpush.bf16.msrb.mxu0 %v6163_v13 }
 0x69e   :  { %v1132_v46 = vadd.f32 1e-06, %v1128_v47 }
 0x6a0   :  { %6331 = vrsqrt.f32 %v1132_v46  ;;  %vm1142_vm3 = vweird.f32 %v1132_v46 }
 0x6a3   :  { %v1121_v48 = vpop.xlane.xlu0 %1120 }
 0x6a4   :  { %v1129_v53 = vmul.f32 %v1121_v48, %v6710_v30 }
 0x6a6   :  { %v6332_v60 = vpop.eup %6331  ;;  %v1133_v61 = vadd.f32 1e-06, %v1129_v53 }
 0x6a7   :  { %v1137_v49 = vmul.f32 %v6332_v60, %v1132_v46  ;;  %vm1143_vm2 = vweird.f32 %v6332_v60 }
 0x6a8   :  { %6333 = vrsqrt.f32 %v1133_v61  ;;  %vm1144_vm5 = vmor %vm1142_vm3, %vm1143_vm2  ;;  %vm1152_vm6 = vweird.f32 %v1133_v61 }
 0x6a9   :  { %v1138_v22 = vmul.f32 %v6332_v60, %v1137_v49 }
 0x6ab   :  { %v1139_v6 = vmul.f32 0.5, %v1138_v22  ;;  %v6162_v22 = vld [vmem:[%s10046_s7] sm:$0xff] }
 0x6ac   :  { %1371 = vmatpush.bf16.msrb.mxu0 %v6162_v22 }
 0x6ad   :  { %v1140_v10 = vsub.f32 1.5, %v1139_v6 }
 0x6ae   :  { %v6334_v23 = vpop.eup %6333 }
 0x6af   :  { %v1147_v36 = vmul.f32 %v6334_v23, %v1133_v61  ;;  %v1141_v20 = vmul.f32 %v6332_v60, %v1140_v10  ;;  %vm1153_vm4 = vweird.f32 %v6334_v23 }
 0x6b0   :  { %vm1154_vm7 = vmor %vm1152_vm6, %vm1153_vm4 }
 0x6b1   :  { %v1148_v51 = vmul.f32 %v6334_v23, %v1147_v36  ;;  %v1145_v45 = vsel %vm1144_vm5, %v6332_v60, %v1141_v20 }
 0x6b2   :  { %v1176_v57 = vmul.f32 %v1145_v45, %v7211_v12 }
 0x6b3   :  { %v1149_v62 = vmul.f32 0.5, %v1148_v51 }
 0x6b5   :  { %v1150_v4 = vsub.f32 1.5, %v1149_v62 }
 0x6b7   :  { %v1151_v43 = vmul.f32 %v6334_v23, %v1150_v4 }
 0x6b9   :  { %v1155_v42 = vsel %vm1154_vm7, %v6334_v23, %v1151_v43 }
 0x6ba   :  { %v1177_v55 = vmul.f32 %v1155_v42, %v7219_v17 }
 0x6bc   :  { %v1180_v54 = vpack.c.bf16 %v1177_v55, %v1176_v57 }
 0x6be   :  { %5900 = vmatmul.msk.bf16.vlgmr.msra.gmra.mxu3 %vm108_vm0, %v1180_v54 }
 0x6d6   :  { %v1124_v7 = vpop.xlane.xlu1 %1123 }
 0x6d7   :  { %v1130_v21 = vmul.f32 %v1124_v7, %v6710_v30 }
 0x6d9   :  { %v1134_v56 = vadd.f32 1e-06, %v1130_v21 }
 0x6db   :  { %6335 = vrsqrt.f32 %v1134_v56  ;;  %vm1162_vm9 = vweird.f32 %v1134_v56 }
 0x6de   :  { %v1127_v63 = vpop.xlane.xlu2 %1126 }
 0x6df   :  { %v1131_v2 = vmul.f32 %v1127_v63, %v6710_v30 }
 0x6e1   :  { %v6336_v5 = vpop.eup %6335  ;;  %v1135_v16 = vadd.f32 1e-06, %v1131_v2 }
 0x6e2   :  { %v1157_v39 = vmul.f32 %v6336_v5, %v1134_v56  ;;  %vm1163_vm8 = vweird.f32 %v6336_v5 }
 0x6e3   :  { %6337 = vrsqrt.f32 %v1135_v16  ;;  %vm1164_vm11 = vmor %vm1162_vm9, %vm1163_vm8  ;;  %vm1172_vm12 = vweird.f32 %v1135_v16 }
 0x6e4   :  { %v1158_v15 = vmul.f32 %v6336_v5, %v1157_v39 }
 0x6e6   :  { %v1159_v8 = vmul.f32 0.5, %v1158_v15 }
 0x6e8   :  { %v1160_v25 = vsub.f32 1.5, %v1159_v8 }
 0x6e9   :  { %v6338_v19 = vpop.eup %6337 }
 0x6ea   :  { %v1167_v52 = vmul.f32 %v6338_v19, %v1135_v16  ;;  %v1161_v24 = vmul.f32 %v6336_v5, %v1160_v25  ;;  %vm1173_vm10 = vweird.f32 %v6338_v19 }
 0x6eb   :  { %vm1174_vm13 = vmor %vm1172_vm12, %vm1173_vm10  ;;  %vm1357_vm10 = vcmask 523264  }
 0x6ec   :  { %v1168_v18 = vmul.f32 %v6338_v19, %v1167_v52  ;;  %v1165_v26 = vsel %vm1164_vm11, %v6336_v5, %v1161_v24 }
 0x6ed   :  { %v1178_v59 = vmul.f32 %v1165_v26, %v7227_v28 }
 0x6ee   :  { %v1169_v11 = vmul.f32 0.5, %v1168_v18 }
 0x6f0   :  { %v1170_v9 = vsub.f32 1.5, %v1169_v11 }
 0x6f2   :  { %v1171_v50 = vmul.f32 %v6338_v19, %v1170_v9 }
 0x6f4   :  { %v1175_v40 = vsel %vm1174_vm13, %v6338_v19, %v1171_v50 }
 0x6f5   :  { %v1179_v1 = vmul.f32 %v1175_v40, %v7235_v29 }
 0x6f7   :  { %v1181_v41 = vpack.c.bf16 %v1179_v1, %v1178_v59 }
 0x6f9   :  { %5901 = vmatmul.msk.bf16.gmra.mxu3 %vm108_vm0, %v1181_v41 }
 0x741   :  { %v1213_v44 = vpop.f32.mrf.mxu3 }
 0x742   :  { %1307 = vrot.lane.b32.xlu2 %v1213_v44, %s6551_s1  ;;  %v5902_v46 = vmul.f32 -1.442695, %v1213_v44 }
 0x744   :  { %6339 = vpow2.f32 %v5902_v46 }
 0x749   :  { %v1215_v14 = vpop.f32.mrf.mxu3 }
 0x74a   :  { %1309 = vrot.lane.b32.xlu0 %v1215_v14, %s6551_s1  ;;  %v5903_v48 = vmul.f32 -1.442695, %v1215_v14  ;;  %v6340_v53 = vpop.eup %6339 }
 0x74b   :  { %v1235_v61 = vadd.f32 1.0, %v6340_v53 }
 0x74c   :  { %6341 = vpow2.f32 %v5903_v48 }
 0x74d   :  { %6343 = vrcp.f32 %v1235_v61  ;;  %vm1244_vm4 = vweird.f32 %v1235_v61  ;;  %v1250_v42 = vand.u32 2147483648, %v1235_v61  ;;  %v1248_v55 = vand.u32 2147483647, %v1235_v61 }
 0x74f   :  { %v1251_v56 = vor.u32 1.1754944e-38, %v1250_v42  ;;  %vm1249_vm8 = vcmp.eq.f32.partialorder %v1248_v55, 8.507059e+37 }
 0x752   :  { %v6342_v60 = vpop.eup %6341 }
 0x753   :  { %v1236_v49 = vadd.f32 1.0, %v6342_v60  ;;  %v6344_v6 = vpop.eup %6343 }
 0x754   :  { %v1240_v10 = vmul.f32 %v6344_v6, %v1235_v61  ;;  %vm1245_vm2 = vweird.f32 %v6344_v6 }
 0x755   :  { %6345 = vrcp.f32 %v1236_v49  ;;  %v1265_v57 = vand.u32 2147483648, %v1236_v49  ;;  %vm1246_vm5 = vmor %vm1244_vm4, %vm1245_vm2  ;;  %vm1259_vm6 = vweird.f32 %v1236_v49  ;;  %v1263_v54 = vand.u32 2147483647, %v1236_v49 }
 0x756   :  { %v1241_v51 = vsub.f32 1.0, %v1240_v10 }
 0x757   :  { %v1266_v63 = vor.u32 1.1754944e-38, %v1265_v57  ;;  %vm1264_vm9 = vcmp.eq.f32.partialorder %v1263_v54, 8.507059e+37 }
 0x758   :  { %v1242_v62 = vmul.f32 %v6344_v6, %v1241_v51 }
 0x75a   :  { %v1243_v45 = vadd.f32 %v6344_v6, %v1242_v62 }
 0x75b   :  { %v6346_v23 = vpop.eup %6345 }
 0x75c   :  { %v1255_v36 = vmul.f32 %v6346_v23, %v1236_v49  ;;  %vm1260_vm3 = vweird.f32 %v6346_v23  ;;  %v1247_v7 = vsel %vm1246_vm5, %v6344_v6, %v1243_v45 }
 0x75d   :  { %vm1261_vm7 = vmor %vm1259_vm6, %vm1260_vm3  ;;  %v1252_v2 = vsel %vm1249_vm8, %v1251_v56, %v1247_v7 }
 0x75e   :  { %v1256_v20 = vsub.f32 1.0, %v1255_v36  ;;  %v1299_v39 = vmul.f32 %v1252_v2, %v1213_v44 }
 0x760   :  { %v1257_v4 = vmul.f32 %v6346_v23, %v1256_v20 }
 0x762   :  { %v1258_v43 = vadd.f32 %v6346_v23, %v1257_v4 }
 0x764   :  { %v1262_v21 = vsel %vm1261_vm7, %v6346_v23, %v1258_v43 }
 0x765   :  { %v1267_v5 = vsel %vm1264_vm9, %v1266_v63, %v1262_v21 }
 0x766   :  { %v1300_v15 = vmul.f32 %v1267_v5, %v1215_v14 }
 0x77c   :  { %v7258_v27 = vpop.f32.mrf.mxu3 }
 0x77d   :  { %1311 = vrot.lane.b32.xlu1 %v7258_v27, %s6551_s1  ;;  %v5904_v18 = vmul.f32 -1.442695, %v7258_v27 }
 0x77f   :  { %6347 = vpow2.f32 %v5904_v18  ;;  %v5930_v18 = vld [vmem:[%s10043_s4 + $0x20] sm:$0xf] }
 0x784   :  { %v7271_v47 = vpop.f32.mrf.mxu3 }
 0x785   :  { %1313 = vrot.lane.b32.xlu0 %v7271_v47, %s6551_s1  ;;  %v5905_v11 = vmul.f32 -1.442695, %v7271_v47  ;;  %v6348_v24 = vpop.eup %6347 }
 0x786   :  { %v1237_v26 = vadd.f32 1.0, %v6348_v24  ;;  %v6166_v24 = vld [vmem:[%s10043_s4 + $0x24] sm:$0xf] }
 0x787   :  { %6349 = vpow2.f32 %v5905_v11  ;;  %v6167_v11 = vld [vmem:[%s10043_s4 + $0x24] sm:$0xf0] }
 0x788   :  { %6351 = vrcp.f32 %v1237_v26  ;;  %vm1274_vm13 = vweird.f32 %v1237_v26  ;;  %v1280_v48 = vand.u32 2147483648, %v1237_v26  ;;  %v1278_v60 = vand.u32 2147483647, %v1237_v26 }
 0x78a   :  { %v1281_v6 = vor.u32 1.1754944e-38, %v1280_v48  ;;  %vm1279_vm5 = vcmp.eq.f32.partialorder %v1278_v60, 8.507059e+37 }
 0x78d   :  { %v6350_v9 = vpop.eup %6349 }
 0x78e   :  { %v1238_v50 = vadd.f32 1.0, %v6350_v9  ;;  %v6352_v40 = vpop.eup %6351  ;;  %v5931_v9 = vor.u32 %v6167_v11, %v5930_v18 }
 0x78f   :  { %v1270_v1 = vmul.f32 %v6352_v40, %v1237_v26  ;;  %vm1275_vm11 = vweird.f32 %v6352_v40  ;;  %v5932_v26 = vld [vmem:[%s10043_s4 + $0x28] sm:$0xf0] }
 0x790   :  { %6353 = vrcp.f32 %v1238_v50  ;;  %v1295_v53 = vand.u32 2147483648, %v1238_v50  ;;  %vm1276_vm2 = vmor %vm1274_vm13, %vm1275_vm11  ;;  %vm1289_vm3 = vweird.f32 %v1238_v50  ;;  %v1293_v61 = vand.u32 2147483647, %v1238_v50 }
 0x791   :  { %v1271_v44 = vsub.f32 1.0, %v1270_v1 }
 0x792   :  { %v1296_v23 = vor.u32 1.1754944e-38, %v1295_v53  ;;  %vm1294_vm6 = vcmp.eq.f32.partialorder %v1293_v61, 8.507059e+37 }
 0x793   :  { %v1272_v38 = vmul.f32 %v6352_v40, %v1271_v44 }
 0x795   :  { %v1273_v13 = vadd.f32 %v6352_v40, %v1272_v38 }
 0x796   :  { %v6354_v59 = vpop.eup %6353 }
 0x797   :  { %v1285_v41 = vmul.f32 %v6354_v59, %v1238_v50  ;;  %vm1290_vm12 = vweird.f32 %v6354_v59  ;;  %v1277_v49 = vsel %vm1276_vm2, %v6352_v40, %v1273_v13  ;;  %v5935_v40 = vor.u32 %v6166_v24, %v5932_v26  ;;  %v6467_v24 = vld [vmem:[%s10041_s2] sm:$0xff] }
 0x798   :  { %vm1291_vm4 = vmor %vm1289_vm3, %vm1290_vm12  ;;  %v1282_v10 = vsel %vm1279_vm5, %v1281_v6, %v1277_v49 }
 0x799   :  { %v1286_v14 = vsub.f32 1.0, %v1285_v41  ;;  %v1301_v20 = vmul.f32 %v1282_v10, %v7258_v27 }
 0x79b   :  { %v1287_v35 = vmul.f32 %v6354_v59, %v1286_v14 }
 0x79c   :  { %v1308_v16 = vpop.permute.xlu2 %1307 }
 0x79d   :  { %v1319_v19 = vmul.f32 %v1308_v16, %v1299_v39  ;;  %v1288_v46 = vadd.f32 %v6354_v59, %v1287_v35 }
 0x79f   :  { %v1292_v22 = vsel %vm1291_vm4, %v6354_v59, %v1288_v46 }
 0x7a0   :  { %v1297_v36 = vsel %vm1294_vm6, %v1296_v23, %v1292_v22 }
 0x7a1   :  { %v1302_v62 = vmul.f32 %v1297_v36, %v7271_v47 }
 0x7bc   :  { %v1310_v8 = vpop.permute.xlu0 %1309 }
 0x7bd   :  { %v1320_v25 = vmul.f32 %v1310_v8, %v1300_v15  ;;  %v6169_v8 = vld [vmem:[%s10043_s4 + $0x34] sm:$0xf0] }
 0x7bf   :  { %v1323_v52 = vpack.c.bf16 %v1320_v25, %v1319_v19  ;;  %v6168_v19 = vld [vmem:[%s10043_s4 + $0x34] sm:$0xf]  ;;  %v5940_v25 = vld [vmem:[%s10043_s4 + $0x38] sm:$0xf0] }
 0x7c1   :  { %5922 = vmatmul.msk.bf16.vlgmr.msrb.gmra.mxu0 %vm1357_vm10, %v1323_v52  ;;  %v5943_v52 = vor.u32 %v6168_v19, %v5940_v25 }
 0x7c3   :  { %1513 = vmatpush.bf16.msrb.mxu2 %v5943_v52 }
 0x7c7   :  { %1514 = vmatpush.bf16.msrb.mxu2 %v5935_v40  ;;  %v6468_v40 = vld [vmem:[%s10041_s2 + $0x10] sm:$0xff] }
 0x7ef   :  { %v1312_v51 = vpop.permute.xlu1 %1311 }
 0x7f0   :  { %v1321_v45 = vmul.f32 %v1312_v51, %v1301_v20 }
 0x7f7   :  { %v1314_v4 = vpop.permute.xlu0 %1313 }
 0x7f8   :  { %v1322_v43 = vmul.f32 %v1314_v4, %v1302_v62 }
 0x7fa   :  { %v1324_v42 = vpack.c.bf16 %v1322_v43, %v1321_v45 }
 0x7fc   :  { %5923 = vmatmul.msk.bf16.gmra.mxu0 %vm1357_vm10, %v1324_v42 }
 0x83e   :  { %v1373_v57 = vpop.f32.mrf.mxu0 }
 0x83f   :  { %v7285_v55 = vadd.f32 %v1373_v57, %v7211_v12 }
 0x841   :  { %v1387_v54 = vmul.f32 %v7285_v55, %v7285_v55 }
 0x843   :  { %v1391_v7 = vsel %vm108_vm0, %v1387_v54, 0.0 }
 0x844   :  { %1392 = vadd.xlane.f32.xlu2 %v1391_v7 }
 0x846   :  { %v1375_v21 = vpop.f32.mrf.mxu0 }
 0x847   :  { %v7291_v27 = vadd.f32 %v1375_v21, %v7219_v17 }
 0x849   :  { %v1388_v47 = vmul.f32 %v7291_v27, %v7291_v27 }
 0x84b   :  { %v1394_v56 = vsel %vm108_vm0, %v1388_v47, 0.0 }
 0x84c   :  { %1395 = vadd.xlane.f32.xlu1 %v1394_v56 }
 0x879   :  { %v1378_v63 = vpop.f32.mrf.mxu0 }
 0x87a   :  { %v7297_v12 = vadd.f32 %v1378_v63, %v7227_v28  ;;  %v5938_v28 = vld [vmem:[%s10043_s4 + $0x30] sm:$0xf]  ;;  %s10073_s4 = smov 24  }
 0x87c   :  { %v1389_v2 = vmul.f32 %v7297_v12, %v7297_v12 }
 0x87e   :  { %v1397_v5 = vsel %vm108_vm0, %v1389_v2, 0.0 }
 0x87f   :  { %1398 = vadd.xlane.f32.xlu0 %v1397_v5 }
 0x881   :  { %v1380_v16 = vpop.f32.mrf.mxu0 }
 0x882   :  { %v7303_v17 = vadd.f32 %v1380_v16, %v7235_v29  ;;  %v5939_v29 = vor.u32 %v6169_v8, %v5938_v28 }
 0x884   :  { %v1390_v39 = vmul.f32 %v7303_v17, %v7303_v17  ;;  %1494 = vmatpush.bf16.msrb.mxu1 %v5939_v29 }
 0x886   :  { %v1400_v15 = vsel %vm108_vm0, %v1390_v39, 0.0 }
 0x887   :  { %1401 = vadd.xlane.f32.xlu2 %v1400_v15 }
 0x888   :  { %1495 = vmatpush.bf16.msrb.mxu1 %v5931_v9 }
 0x8b7   :  { %v1393_v50 = vpop.xlane.xlu2 %1392 }
 0x8b8   :  { %v1403_v59 = vmul.f32 %v1393_v50, %v6710_v30 }
 0x8ba   :  { %v1407_v1 = vadd.f32 1e-06, %v1403_v59 }
 0x8bc   :  { %6355 = vrsqrt.f32 %v1407_v1  ;;  %vm1417_vm8 = vweird.f32 %v1407_v1 }
 0x8bf   :  { %v1396_v41 = vpop.xlane.xlu1 %1395 }
 0x8c0   :  { %v1404_v44 = vmul.f32 %v1396_v41, %v6710_v30  ;;  %v6469_v41 = vld [vmem:[%s10041_s2 + $0x18] sm:$0xff] }
 0x8c2   :  { %v6356_v14 = vpop.eup %6355  ;;  %v1408_v38 = vadd.f32 1e-06, %v1404_v44 }
 0x8c3   :  { %v1412_v35 = vmul.f32 %v6356_v14, %v1407_v1  ;;  %vm1418_vm7 = vweird.f32 %v6356_v14 }
 0x8c4   :  { %6357 = vrsqrt.f32 %v1408_v38  ;;  %vm1419_vm11 = vmor %vm1417_vm8, %vm1418_vm7  ;;  %vm1427_vm12 = vweird.f32 %v1408_v38 }
 0x8c5   :  { %v1413_v13 = vmul.f32 %v6356_v14, %v1412_v35 }
 0x8c7   :  { %v1414_v46 = vmul.f32 0.5, %v1413_v13 }
 0x8c9   :  { %v1415_v53 = vsub.f32 1.5, %v1414_v46 }
 0x8ca   :  { %v6358_v48 = vpop.eup %6357 }
 0x8cb   :  { %v1422_v60 = vmul.f32 %v6358_v48, %v1408_v38  ;;  %v1416_v49 = vmul.f32 %v6356_v14, %v1415_v53  ;;  %vm1428_vm9 = vweird.f32 %v6358_v48 }
 0x8cc   :  { %vm1429_vm13 = vmor %vm1427_vm12, %vm1428_vm9 }
 0x8cd   :  { %v1423_v61 = vmul.f32 %v6358_v48, %v1422_v60  ;;  %v1420_v23 = vsel %vm1419_vm11, %v6356_v14, %v1416_v49  ;;  %v6470_v14 = vld [vmem:[%s10041_s2 + $0x8] sm:$0xff] }
 0x8ce   :  { %v1451_v51 = vmul.f32 %v1420_v23, %v7285_v55 }
 0x8cf   :  { %v1424_v22 = vmul.f32 0.5, %v1423_v61 }
 0x8d1   :  { %v1425_v6 = vsub.f32 1.5, %v1424_v22 }
 0x8d3   :  { %v1426_v10 = vmul.f32 %v6358_v48, %v1425_v6 }
 0x8d5   :  { %v1430_v36 = vsel %vm1429_vm13, %v6358_v48, %v1426_v10 }
 0x8d6   :  { %v1452_v20 = vmul.f32 %v1430_v36, %v7291_v27 }
 0x8d8   :  { %v1455_v62 = vpack.c.bf16 %v1452_v20, %v1451_v51 }
 0x8da   :  { %5944 = vmatmul.msk.bf16.vlgmr.msrb.gmra.mxu1 %vm108_vm0, %v1455_v62  ;;  %5946 = vmatmul.msk.bf16.vlgmr.msrb.gmra.mxu2 %vm108_vm0, %v1455_v62 }
 0x8f2   :  { %v1399_v4 = vpop.xlane.xlu0 %1398 }
 0x8f3   :  { %v1405_v45 = vmul.f32 %v1399_v4, %v6710_v30 }
 0x8f5   :  { %v1409_v43 = vadd.f32 1e-06, %v1405_v45 }
 0x8f7   :  { %6359 = vrsqrt.f32 %v1409_v43  ;;  %vm1437_vm3 = vweird.f32 %v1409_v43 }
 0x8fa   :  { %v1402_v42 = vpop.xlane.xlu2 %1401 }
 0x8fb   :  { %v1406_v57 = vmul.f32 %v1402_v42, %v6710_v30 }
 0x8fd   :  { %v6360_v54 = vpop.eup %6359  ;;  %v1410_v7 = vadd.f32 1e-06, %v1406_v57 }
 0x8fe   :  { %v1432_v21 = vmul.f32 %v6360_v54, %v1409_v43  ;;  %vm1438_vm2 = vweird.f32 %v6360_v54 }
 0x8ff   :  { %6361 = vrsqrt.f32 %v1410_v7  ;;  %vm1439_vm5 = vmor %vm1437_vm3, %vm1438_vm2  ;;  %vm1447_vm6 = vweird.f32 %v1410_v7 }
 0x900   :  { %v1433_v47 = vmul.f32 %v6360_v54, %v1432_v21 }
 0x902   :  { %v1434_v56 = vmul.f32 0.5, %v1433_v47 }
 0x904   :  { %v1435_v2 = vsub.f32 1.5, %v1434_v56 }
 0x905   :  { %v6362_v63 = vpop.eup %6361 }
 0x906   :  { %v1442_v5 = vmul.f32 %v6362_v63, %v1410_v7  ;;  %v1436_v15 = vmul.f32 %v6360_v54, %v1435_v2  ;;  %vm1448_vm4 = vweird.f32 %v6362_v63 }
 0x907   :  { %vm1449_vm7 = vmor %vm1447_vm6, %vm1448_vm4 }
 0x908   :  { %v1443_v16 = vmul.f32 %v6362_v63, %v1442_v5  ;;  %v1440_v8 = vsel %vm1439_vm5, %v6360_v54, %v1436_v15 }
 0x909   :  { %v1453_v25 = vmul.f32 %v1440_v8, %v7297_v12 }
 0x90a   :  { %v1444_v39 = vmul.f32 0.5, %v1443_v16 }
 0x90c   :  { %v1445_v28 = vsub.f32 1.5, %v1444_v39 }
 0x90e   :  { %v1446_v19 = vmul.f32 %v6362_v63, %v1445_v28 }
 0x910   :  { %v1450_v29 = vsel %vm1449_vm7, %v6362_v63, %v1446_v19 }
 0x911   :  { %v1454_v52 = vmul.f32 %v1450_v29, %v7303_v17 }
 0x913   :  { %v1456_v18 = vpack.c.bf16 %v1454_v52, %v1453_v25 }
 0x915   :  { %5945 = vmatmul.msk.bf16.gmra.mxu1 %vm108_vm0, %v1456_v18  ;;  %5947 = vmatmul.msk.bf16.gmra.mxu2 %vm108_vm0, %v1456_v18 }
 0x957   :  { %v7360_v35 = vpop.f32.mrf.mxu1 }
 0x958   :  { %v1530_v13 = vmul.f32 %v7360_v35, %v6782_v37  ;;  %v1554_v46 = vmul.f32 %v7360_v35, %v6776_v33 }
 0x95d   :  { %v1516_v11 = vpop.f32.mrf.mxu2 }
 0x95e   :  { %v1558_v9 = vmul.f32 %v6467_v24, %v1516_v11 }
 0x95f   :  { %v7373_v61 = vpop.f32.mrf.mxu1 }
 0x960   :  { %1566 = vrot.lane.b32.xlu2 %v1558_v9, %s6545_s18  ;;  %v1531_v47 = vmul.f32 %v7373_v61, %v6806_v58  ;;  %v6472_v9 = vld [vmem:[%s10070_s28 + $0x8] sm:$0xff] }
 0x965   :  { %v1518_v26 = vpop.f32.mrf.mxu2 }
 0x966   :  { %v1559_v38 = vmul.f32 %v6470_v14, %v1518_v26  ;;  %v1527_v26 = vmul.f32 %v6472_v9, %v7373_v61 }
 0x992   :  { %v7375_v49 = vpop.f32.mrf.mxu1 }
 0x993   :  { %v1556_v37 = vmul.f32 %v7375_v49, %v6772_v31  ;;  %v1555_v31 = vmul.f32 %v7373_v61, %v6778_v34  ;;  %v6471_v34 = vld [vmem:[%s10070_s28] sm:$0xff] }
 0x994   :  { %v1526_v7 = vmul.f32 %v6471_v34, %v7360_v35 }
 0x998   :  { %v1521_v50 = vpop.f32.mrf.mxu2 }
 0x999   :  { %v1560_v59 = vmul.f32 %v6468_v40, %v1521_v50 }
 0x99a   :  { %v7379_v23 = vpop.f32.mrf.mxu1 }
 0x99b   :  { %1570 = vrot.lane.b32.xlu1 %v1560_v59, %s6545_s18  ;;  %v1557_v10 = vmul.f32 %v7379_v23, %v6774_v32  ;;  %v1532_v32 = vmul.f32 %v7375_v49, %v6830_v0  ;;  %v1533_v0 = vmul.f32 %v7379_v23, %v6832_v3 }
 0x9a0   :  { %v1523_v1 = vpop.f32.mrf.mxu2 }
 0x9a1   :  { %v1561_v44 = vmul.f32 %v6469_v41, %v1523_v1  ;;  %v6473_v41 = vld [vmem:[%s10070_s28 + $0x10] sm:$0xff] }
 0x9a3   :  { %1572 = vrot.lane.b32.xlu0 %v1561_v44, %s6545_s18  ;;  %v1528_v44 = vmul.f32 %v6473_v41, %v7375_v49 }
 0x9ab   :  { %1568 = vrot.lane.b32.xlu0 %v1559_v38, %s6545_s18 }
 0x9b3   :  { %1538 = vrot.lane.b32.xlu0 %v1530_v13, %s6545_s18 }
 0x9ba   :  { %v1567_v48 = vpop.permute.xlu2 %1566 }
 0x9bb   :  { %v1578_v53 = vadd.f32 %v1567_v48, %v1554_v46 }
 0x9bd   :  { %v7367_v60 = vpack.c.bf16 %v1578_v53, %v1578_v53 }
 0x9bf   :  { %1626 = vrot.lane.b32.xlu2 %v7367_v60, %s6548_s0  ;;  %1642 = vrot.lane.b32.xlu0 %v7367_v60, %s6550_s19 }
 0xa0d   :  { %v1571_v22 = vpop.permute.xlu1 %1570 }
 0xa0e   :  { %v1580_v6 = vadd.f32 %v1571_v22, %v1556_v37 }
 0xa10   :  { %v1588_v33 = vpack.c.bf16 %v1580_v6, %v1580_v6 }
 0xa12   :  { %1630 = vrot.lane.b32.xlu2 %v1588_v33, %s6548_s0  ;;  %v1686_v62 = vunpack.c.l.b16 %v1588_v33 }
 0xa15   :  { %v1573_v36 = vpop.permute.xlu0 %1572 }
 0xa16   :  { %v1581_v51 = vadd.f32 %v1573_v36, %v1557_v10  ;;  %v6474_v36 = vld [vmem:[%s10070_s28 + $0x18] sm:$0xff] }
 0xa18   :  { %v1589_v20 = vpack.c.bf16 %v1581_v51, %v1581_v51  ;;  %v1529_v51 = vmul.f32 %v6474_v36, %v7379_v23 }
 0xa19   :  { %v1627_v2 = vpop.permute.xlu2 %1626 }
 0xa1a   :  { %1648 = vrot.lane.b32.xlu2 %v1589_v20, %s6550_s19  ;;  %1632 = vrot.lane.b32.xlu0 %v1589_v20, %s6548_s0  ;;  %v1687_v4 = vunpack.c.l.b16 %v1589_v20  ;;  %v1731_v8 = vunpack.c.l.b16 %v1627_v2 }
 0xa1c   :  { %v7388_v45 = vpack.c.b16 %v1687_v4, %v1686_v62 }
 0xa1d   :  { %v1569_v43 = vpop.permute.xlu0 %1568 }
 0xa1e   :  { %v1579_v42 = vadd.f32 %v1569_v43, %v1555_v31 }
 0xa20   :  { %v7390_v57 = vpack.c.bf16 %v1579_v42, %v1579_v42 }
 0xa22   :  { %1644 = vrot.lane.b32.xlu1 %v7390_v57, %s6550_s19  ;;  %1636 = vrot.lane.b32.xlu2 %v7390_v57, %s6549_s30 }
 0xa23   :  { %1628 = vrot.lane.b32.xlu0 %v7390_v57, %s6548_s0 }
 0xa25   :  { %v1539_v54 = vpop.permute.xlu0 %1538 }
 0xa26   :  { %v1550_v21 = vadd.f32 %v1539_v54, %v1526_v7 }
 0xa28   :  { %v7409_v56 = vpack.c.bf16 %v1550_v21, %v1550_v21 }
 0xa2a   :  { %1646 = vrot.lane.b32.xlu1 %v1588_v33, %s6550_s19  ;;  %1640 = vrot.lane.b32.xlu2 %v1589_v20, %s6549_s30 }
 0xa2b   :  { %1542 = vrot.lane.b32.xlu0 %v1532_v32, %s6545_s18  ;;  %v7456_v32 = vpack.c.bf16 %v7379_v23, %v7379_v23  ;;  %v1685_v23 = vunpack.c.l.b16 %v7390_v57 }
 0xa31   :  { %v1643_v63 = vpop.permute.xlu0 %1642 }
 0xa32   :  { %1540 = vrot.lane.b32.xlu1 %v1531_v47, %s6545_s18  ;;  %v1825_v39 = vunpack.c.l.b16 %v1643_v63  ;;  %v1684_v47 = vunpack.c.l.b16 %v7367_v60  ;;  %v7479_v63 = vpack.c.bf16 %v7373_v61, %v7373_v61 }
 0xa33   :  { %1614 = vrot.lane.b32.xlu0 %v7409_v56, %s6550_s19 }
 0xa3a   :  { %1638 = vrot.lane.b32.xlu1 %v1588_v33, %s6549_s30 }
 0xa42   :  { %1634 = vrot.lane.b32.xlu1 %v7367_v60, %s6549_s30  ;;  %v7489_v60 = vpack.c.bf16 %v7360_v35, %v7360_v35 }
 0xa4a   :  { %1544 = vrot.lane.b32.xlu1 %v1533_v0, %s6545_s18  ;;  %v1688_v0 = vpack.c.b16 %v1685_v23, %v1684_v47 }
 0xa6c   :  { %v1631_v5 = vpop.permute.xlu2 %1630 }
 0xa6d   :  { %v1733_v46 = vunpack.c.l.b16 %v1631_v5 }
 0xa74   :  { %v1649_v52 = vpop.permute.xlu2 %1648 }
 0xa75   :  { %v1828_v18 = vunpack.c.l.b16 %v1649_v52 }
 0xa7c   :  { %v1637_v37 = vpop.permute.xlu2 %1636 }
 0xa7d   :  { %v1779_v6 = vunpack.c.l.b16 %v1637_v37 }
 0xa84   :  { %v1641_v54 = vpop.permute.xlu2 %1640 }
 0xa85   :  { %v1781_v7 = vunpack.c.l.b16 %v1641_v54 }
 0xa8c   :  { %v1633_v58 = vpop.permute.xlu0 %1632 }
 0xa8d   :  { %v1734_v14 = vunpack.c.l.b16 %v1633_v58 }
 0xa8f   :  { %v1736_v48 = vpack.c.b16 %v1734_v14, %v1733_v46 }
 0xa94   :  { %v1645_v16 = vpop.permute.xlu1 %1644 }
 0xa95   :  { %v1826_v15 = vunpack.c.l.b16 %v1645_v16  ;;  %v1629_v28 = vpop.permute.xlu0 %1628 }
 0xa96   :  { %v1732_v19 = vunpack.c.l.b16 %v1629_v28 }
 0xa97   :  { %v1829_v29 = vpack.c.b16 %v1826_v15, %v1825_v39 }
 0xa98   :  { %v1735_v25 = vpack.c.b16 %v1732_v19, %v1731_v8 }
 0xa99   :  { %1831 = vrot.lane.b32.xlu0 %v1829_v29, %s6547_s22 }
 0xa9a   :  { %1737 = vrot.lane.b32.xlu2 %v1735_v25, %s6547_s22 }
 0xa9c   :  { %v1647_v3 = vpop.permute.xlu1 %1646 }
 0xa9d   :  { %v1827_v11 = vunpack.c.l.b16 %v1647_v3  ;;  %v1543_v1 = vpop.permute.xlu0 %1542 }
 0xa9e   :  { %v1552_v38 = vadd.f32 %v1543_v1, %v1528_v44 }
 0xa9f   :  { %v1830_v24 = vpack.c.b16 %v1828_v18, %v1827_v11 }
 0xaa0   :  { %v1584_v53 = vpack.c.bf16 %v1552_v38, %v1552_v38 }
 0xaa2   :  { %1833 = vrot.lane.b32.xlu2 %v1830_v24, %s6547_s22  ;;  %v1680_v31 = vunpack.c.l.b16 %v1584_v53 }
 0xaa4   :  { %v1541_v50 = vpop.permute.xlu1 %1540 }
 0xaa5   :  { %v1551_v40 = vadd.f32 %v1541_v50, %v1527_v26  ;;  %v1615_v35 = vpop.permute.xlu0 %1614 }
 0xaa6   :  { %v1819_v28 = vunpack.c.l.b16 %v1615_v35  ;;  %v6476_v35 = vld [vmem:[%s10042_s3 + $0x48] sm:$0xff] }
 0xaa7   :  { %v7427_v59 = vpack.c.bf16 %v1551_v40, %v1551_v40 }
 0xaa9   :  { %1616 = vrot.lane.b32.xlu1 %v7427_v59, %s6550_s19 }
 0xaaa   :  { %1600 = vrot.lane.b32.xlu2 %v7427_v59, %s6548_s0 }
 0xaac   :  { %v1639_v13 = vpop.permute.xlu1 %1638 }
 0xaad   :  { %v1780_v34 = vunpack.c.l.b16 %v1639_v13 }
 0xaaf   :  { %v1783_v21 = vpack.c.b16 %v1781_v7, %v1780_v34  ;;  %v1679_v7 = vunpack.c.l.b16 %v7427_v59 }
 0xab1   :  { %1739 = vrot.lane.b32.xlu1 %v1736_v48, %s6547_s22 }
 0xab2   :  { %1618 = vrot.lane.b32.xlu2 %v1584_v53, %s6550_s19 }
 0xab4   :  { %v1635_v22 = vpop.permute.xlu1 %1634 }
 0xab5   :  { %v1778_v33 = vunpack.c.l.b16 %v1635_v22 }
 0xab7   :  { %v1782_v10 = vpack.c.b16 %v1779_v6, %v1778_v33 }
 0xab9   :  { %1784 = vrot.lane.b32.xlu0 %v1782_v10, %s6547_s22  ;;  %1598 = vrot.lane.b32.xlu1 %v7409_v56, %s6548_s0 }
 0xaba   :  { %1602 = vrot.lane.b32.xlu2 %v1584_v53, %s6548_s0 }
 0xabc   :  { %v1545_v20 = vpop.permute.xlu1 %1544 }
 0xabd   :  { %v1553_v62 = vadd.f32 %v1545_v20, %v1529_v51 }
 0xabf   :  { %v1585_v4 = vpack.c.bf16 %v1553_v62, %v1553_v62 }
 0xac1   :  { %1606 = vrot.lane.b32.xlu0 %v7409_v56, %s6549_s30  ;;  %1608 = vrot.lane.b32.xlu1 %v7427_v59, %s6549_s30  ;;  %v1681_v43 = vunpack.c.l.b16 %v1585_v4 }
 0xac2   :  { %1612 = vrot.lane.b32.xlu2 %v1585_v4, %s6549_s30 }
 0xac3   :  { %v7452_v42 = vpack.c.b16 %v1681_v43, %v1680_v31 }
 0xac9   :  { %1620 = vrot.lane.b32.xlu0 %v1585_v4, %s6550_s19  ;;  %1692 = vrot.lane.b32.xlu1 %v7388_v45, %s6547_s22  ;;  %v7475_v45 = vpack.c.bf16 %v7375_v49, %v7375_v49 }
 0xaca   :  { %1660 = vrot.lane.b32.xlu2 %v7456_v32, %s6548_s0 }
 0xad1   :  { %1604 = vrot.lane.b32.xlu0 %v1585_v4, %s6548_s0  ;;  %1610 = vrot.lane.b32.xlu1 %v1584_v53, %s6549_s30 }
 0xad2   :  { %1786 = vrot.lane.b32.xlu2 %v1783_v21, %s6547_s22  ;;  %v1678_v21 = vunpack.c.l.b16 %v7409_v56 }
 0xad4   :  { %v1682_v23 = vpack.c.b16 %v1679_v7, %v1678_v21  ;;  %v6486_v7 = vld [vmem:[%s10042_s3 + $0x70] sm:$0xff] }
 0xad9   :  { %1676 = vrot.lane.b32.xlu1 %v7456_v32, %s6550_s19  ;;  %1690 = vrot.lane.b32.xlu0 %v1688_v0, %s6547_s22  ;;  %v6475_v0 = vld [vmem:[%s10042_s3 + $0x20] sm:$0xff] }
 0xada   :  { %1668 = vrot.lane.b32.xlu2 %v7456_v32, %s6549_s30 }
 0xae1   :  { %1658 = vrot.lane.b32.xlu1 %v7475_v45, %s6548_s0  ;;  %1674 = vrot.lane.b32.xlu0 %v7475_v45, %s6550_s19 }
 0xae2   :  { %1656 = vrot.lane.b32.xlu2 %v7479_v63, %s6548_s0 }
 0xae9   :  { %1670 = vrot.lane.b32.xlu1 %v7489_v60, %s6550_s19  ;;  %1662 = vrot.lane.b32.xlu0 %v7489_v60, %s6549_s30 }
 0xaf1   :  { %1672 = vrot.lane.b32.xlu1 %v7479_v63, %s6550_s19 }
 0xaf4   :  { %v1738_v61 = vpop.permute.xlu2 %1737 }
 0xaf5   :  { %v1748_v9 = vsel %vm450_vm14, %v1738_v61, 0 }
 0xaf9   :  { %1666 = vrot.lane.b32.xlu1 %v7475_v45, %s6549_s30 }
 0xafc   :  { %v1834_v49 = vpop.permute.xlu2 %1833 }
 0xafd   :  { %v1845_v57 = vsel %vm450_vm14, %v1834_v49, 0 }
 0xafe   :  { %1853 = vmatpush.bf16.xpose.msra.mxu2 %v1845_v57 }
 0xb01   :  { %1654 = vrot.lane.b32.xlu1 %v7489_v60, %s6548_s0 }
 0xb04   :  { %v1601_v2 = vpop.permute.xlu2 %1600 }
 0xb05   :  { %v1726_v40 = vunpack.c.l.b16 %v1601_v2 }
 0xb09   :  { %1664 = vrot.lane.b32.xlu1 %v7479_v63, %s6549_s30 }
 0xb0b   :  { %v1832_v58 = vpop.permute.xlu0 %1831 }
 0xb0c   :  { %v1619_v5 = vpop.permute.xlu2 %1618  ;;  %v1842_v16 = vsel %vm450_vm14, %v1832_v58, 0 }
 0xb0d   :  { %1854 = vmatpush.bf16.xpose.msra.mxu2 %v1842_v16  ;;  %v1821_v37 = vunpack.c.l.b16 %v1619_v5  ;;  %v6477_v16 = vld [vmem:[%s10042_s3 + $0x50] sm:$0xff] }
 0xb14   :  { %v1603_v39 = vpop.permute.xlu2 %1602 }
 0xb15   :  { %v1727_v36 = vunpack.c.l.b16 %v1603_v39 }
 0xb1b   :  { %v1617_v15 = vpop.permute.xlu1 %1616 }
 0xb1c   :  { %v1820_v8 = vunpack.c.l.b16 %v1617_v15  ;;  %v1613_v19 = vpop.permute.xlu2 %1612 }
 0xb1d   :  { %v1775_v31 = vunpack.c.l.b16 %v1613_v19  ;;  %v6478_v19 = vld [vmem:[%s10042_s3] sm:$0xff] }
 0xb1e   :  { %v1823_v29 = vpack.c.b16 %v1820_v8, %v1819_v28 }
 0xb20   :  { %5954 = vmatmul.msk.bf16.vlgmr.msra.gmra.mxu2 %vm450_vm14, %v1823_v29 }
 0xb23   :  { %v1740_v25 = vpop.permute.xlu1 %1739 }
 0xb24   :  { %v1751_v52 = vsel %vm450_vm14, %v1740_v25, 0  ;;  %v7507_v3 = vpop.permute.xlu2 %1660 }
 0xb25   :  { %1759 = vmatpush.bf16.xpose.msra.mxu0 %v1751_v52 }
 0xb2b   :  { %v1599_v18 = vpop.permute.xlu1 %1598  ;;  %v1785_v11 = vpop.permute.xlu0 %1784 }
 0xb2c   :  { %v1787_v24 = vpop.permute.xlu2 %1786  ;;  %v1725_v50 = vunpack.c.l.b16 %v1599_v18  ;;  %v1795_v14 = vsel %vm450_vm14, %v1785_v11, 0 }
 0xb2d   :  { %v1798_v26 = vsel %vm450_vm14, %v1787_v24, 0  ;;  %1760 = vmatpush.bf16.xpose.msra.mxu0 %v1748_v9 }
 0xb2e   :  { %1806 = vmatpush.bf16.xpose.msra.mxu1 %v1798_v26  ;;  %v1729_v1 = vpack.c.b16 %v1726_v40, %v1725_v50  ;;  %v6479_v26 = vld [vmem:[%s10042_s3 + $0x8] sm:$0xff] }
 0xb33   :  { %v1609_v41 = vpop.permute.xlu1 %1608  ;;  %v1607_v44 = vpop.permute.xlu0 %1606 }
 0xb34   :  { %5950 = vmatmul.msk.bf16.vlgmr.msra.gmra.mxu0 %vm450_vm14, %v1729_v1  ;;  %v1773_v38 = vunpack.c.l.b16 %v1609_v41  ;;  %v1772_v13 = vunpack.c.l.b16 %v1607_v44  ;;  %v6480_v41 = vld [vmem:[%s10042_s3 + $0x10] sm:$0xff] }
 0xb36   :  { %1807 = vmatpush.bf16.xpose.msra.mxu1 %v1795_v14  ;;  %v1776_v46 = vpack.c.b16 %v1773_v38, %v1772_v13  ;;  %v6481_v13 = vld [vmem:[%s10042_s3 + $0x60] sm:$0xff] }
 0xb3b   :  { %v1693_v48 = vpop.permute.xlu1 %1692  ;;  %v1621_v53 = vpop.permute.xlu0 %1620 }
 0xb3c   :  { %v1704_v22 = vsel %vm450_vm14, %v1693_v48, 0  ;;  %v1822_v6 = vunpack.c.l.b16 %v1621_v53  ;;  %v6482_v53 = vld [vmem:[%s10042_s3 + $0x18] sm:$0xff] }
 0xb3d   :  { %5952 = vmatmul.msk.bf16.vlgmr.msra.gmra.mxu1 %vm450_vm14, %v1776_v46  ;;  %1712 = vmatpush.bf16.xpose.msrb.mxu3 %v1704_v22 }
 0xb3e   :  { %v1824_v33 = vpack.c.b16 %v1822_v6, %v1821_v37 }
 0xb40   :  { %5955 = vmatmul.msk.bf16.gmra.mxu2 %vm450_vm14, %v1824_v33 }
 0xb43   :  { %v1605_v10 = vpop.permute.xlu0 %1604  ;;  %v1611_v51 = vpop.permute.xlu1 %1610 }
 0xb44   :  { %v1728_v20 = vunpack.c.l.b16 %v1605_v10  ;;  %v1774_v4 = vunpack.c.l.b16 %v1611_v51 }
 0xb46   :  { %v1730_v62 = vpack.c.b16 %v1728_v20, %v1727_v36  ;;  %v1777_v43 = vpack.c.b16 %v1775_v31, %v1774_v4  ;;  %v6483_v36 = vld [vmem:[%s10042_s3 + $0x28] sm:$0xff]  ;;  %v6484_v20 = vld [vmem:[%s10042_s3 + $0x40] sm:$0xff] }
 0xb48   :  { %5951 = vmatmul.msk.bf16.gmra.mxu0 %vm450_vm14, %v1730_v62 }
 0xb4b   :  { %v1691_v54 = vpop.permute.xlu0 %1690  ;;  %v7531_v57 = vpop.permute.xlu1 %1676 }
 0xb4c   :  { %v1701_v34 = vsel %vm450_vm14, %v1691_v54, 0  ;;  %v6485_v54 = vld [vmem:[%s10042_s3 + $0x68] sm:$0xff] }
 0xb4d   :  { %5953 = vmatmul.msk.bf16.gmra.mxu1 %vm450_vm14, %v1777_v43  ;;  %1713 = vmatpush.bf16.xpose.msrb.mxu3 %v1701_v34 }
 0xb53   :  { %v7538_v2 = vpop.permute.xlu1 %1658 }
 0xb54   :  { %5948 = vmatmul.msk.bf16.vlgmr.msrb.gmra.mxu3 %vm450_vm14, %v1682_v23 }
 0xb5b   :  { %v1671_v28 = vpop.permute.xlu1 %1670 }
 0xb5c   :  { %v2209_v11 = vunpack.c.l.b16 %v1671_v28  ;;  %v2118_v28 = vunpack.c.l.b16 %v7507_v3 }
 0xb63   :  { %v1673_v25 = vpop.permute.xlu1 %1672 }
 0xb64   :  { %5949 = vmatmul.msk.bf16.gmra.mxu3 %vm450_vm14, %v7452_v42  ;;  %v2210_v18 = vunpack.c.l.b16 %v1673_v25 }
 0xb66   :  { %v2213_v9 = vpack.c.b16 %v2210_v18, %v2209_v11 }
 0xba3   :  { %v1856_v14 = vpop.f32.mrf.mxu2 }
 0xba4   :  { %v7574_v46 = vadd.f32 %v6481_v13, %v1856_v14 }
 0xba6   :  { %v1902_v22 = vsel %vm108_vm0, %v7574_v46, -inf }
 0xbab   :  { %v1858_v33 = vpop.f32.mrf.mxu2 }
 0xbac   :  { %v7602_v34 = vadd.f32 %v6485_v54, %v1858_v33 }
 0xbb1   :  { %v1762_v47 = vpop.f32.mrf.mxu0 }
 0xbb2   :  { %v7527_v61 = vadd.f32 %v6475_v0, %v1762_v47  ;;  %v1905_v47 = vsel %vm108_vm0, %v7602_v34, -inf }
 0xbb4   :  { %v1878_v49 = vsel %vm108_vm0, %v7527_v61, -inf }
 0xbb5   :  { %1879 = vmax.xlane.f32.xlu0 %v1878_v49  ;;  %v6487_v49 = vld [vmem:[%s10042_s3 + $0x30] sm:$0xff] }
 0xbb9   :  { %v1764_v10 = vpop.f32.mrf.mxu0 }
 0xbba   :  { %v1809_v59 = vpop.f32.mrf.mxu1  ;;  %v7588_v51 = vadd.f32 %v6483_v36, %v1764_v10 }
 0xbbb   :  { %v7593_v62 = vadd.f32 %v6484_v20, %v1809_v59  ;;  %v6489_v20 = vld [vmem:[%s10042_s3 + $0x58] sm:$0xff] }
 0xbbc   :  { %v1881_v4 = vsel %vm108_vm0, %v7588_v51, -inf }
 0xbbd   :  { %v1890_v31 = vsel %vm108_vm0, %v7593_v62, -inf }
 0xbc2   :  { %v1811_v56 = vpop.f32.mrf.mxu1 }
 0xbc3   :  { %v7536_v42 = vadd.f32 %v6476_v35, %v1811_v56  ;;  %v1861_v43 = vpop.f32.mrf.mxu2  ;;  %v1675_v35 = vpop.permute.xlu0 %1674 }
 0xbc4   :  { %v7607_v21 = vadd.f32 %v6486_v7, %v1861_v43 }
 0xbc5   :  { %v1893_v58 = vsel %vm108_vm0, %v7536_v42, -inf  ;;  %v1767_v0 = vpop.f32.mrf.mxu0 }
 0xbc6   :  { %1894 = vmax.xlane.f32.xlu0 %v1893_v58  ;;  %v1908_v23 = vsel %vm108_vm0, %v7607_v21, -inf  ;;  %v7616_v59 = vadd.f32 %v6487_v49, %v1767_v0  ;;  %v2211_v58 = vunpack.c.l.b16 %v1675_v35 }
 0xbc8   :  { %v1884_v56 = vsel %vm108_vm0, %v7616_v59, -inf }
 0xbca   :  { %v1814_v5 = vpop.f32.mrf.mxu1 }
 0xbcb   :  { %v7545_v39 = vadd.f32 %v6477_v16, %v1814_v5  ;;  %v2212_v5 = vunpack.c.l.b16 %v7531_v57  ;;  %v1863_v54 = vpop.f32.mrf.mxu2 }
 0xbcd   :  { %v1896_v15 = vsel %vm108_vm0, %v7545_v39, -inf  ;;  %v2214_v16 = vpack.c.b16 %v2212_v5, %v2211_v58 }
 0xbce   :  { %1897 = vmax.xlane.f32.xlu0 %v1896_v15  ;;  %v2117_v15 = vunpack.c.l.b16 %v7538_v2 }
 0xbd0   :  { %v2120_v25 = vpack.c.b16 %v2118_v28, %v2117_v15 }
 0xbd2   :  { %v1816_v33 = vpop.f32.mrf.mxu1 }
 0xbd7   :  { %v1715_v8 = vpop.f32.mrf.mxu3 }
 0xbd8   :  { %v7552_v29 = vadd.f32 %v6478_v19, %v1715_v8  ;;  %v7624_v8 = vpop.permute.xlu0 %1662  ;;  %v1667_v19 = vpop.permute.xlu1 %1666 }
 0xbd9   :  { %v2164_v18 = vunpack.c.l.b16 %v1667_v19 }
 0xbda   :  { %v1866_v52 = vsel %vm108_vm0, %v7552_v29, -inf }
 0xbdb   :  { %1867 = vmax.xlane.f32.xlu2 %v1866_v52  ;;  %v1669_v52 = vpop.permute.xlu2 %1668 }
 0xbdc   :  { %v2165_v11 = vunpack.c.l.b16 %v1669_v52 }
 0xbdf   :  { %v1717_v24 = vpop.f32.mrf.mxu3 }
 0xbe0   :  { %v7559_v50 = vadd.f32 %v6479_v26, %v1717_v24  ;;  %v1655_v26 = vpop.permute.xlu1 %1654 }
 0xbe2   :  { %2215 = vrot.lane.b32.xlu0 %v2213_v9, %s6551_s1  ;;  %v1869_v40 = vsel %vm108_vm0, %v7559_v50, -inf  ;;  %v2167_v9 = vpack.c.b16 %v2165_v11, %v2164_v18 }
 0xbe3   :  { %1870 = vmax.xlane.f32.xlu1 %v1869_v40  ;;  %v1657_v2 = vpop.permute.xlu2 %1656 }
 0xbe4   :  { %v2116_v3 = vunpack.c.l.b16 %v1657_v2 }
 0xbe7   :  { %v1720_v1 = vpop.f32.mrf.mxu3 }
 0xbe8   :  { %v7567_v44 = vadd.f32 %v6480_v41, %v1720_v1  ;;  %v2115_v1 = vunpack.c.l.b16 %v1655_v26  ;;  %v7634_v13 = vpop.permute.xlu1 %1664 }
 0xbea   :  { %v1872_v38 = vsel %vm108_vm0, %v7567_v44, -inf  ;;  %v2119_v41 = vpack.c.b16 %v2116_v3, %v2115_v1 }
 0xbeb   :  { %1873 = vmax.xlane.f32.xlu1 %v1872_v38 }
 0xbef   :  { %v1722_v48 = vpop.f32.mrf.mxu3 }
 0xbf0   :  { %v7579_v37 = vadd.f32 %v6482_v53, %v1722_v48  ;;  %v6488_v53 = vld [vmem:[%s10042_s3 + $0x38] sm:$0xff] }
 0xbf2   :  { %v1875_v6 = vsel %vm108_vm0, %v7579_v37, -inf }
 0xbf3   :  { %1903 = vmax.xlane.f32.xlu1 %v1902_v22  ;;  %1876 = vmax.xlane.f32.xlu2 %v1875_v6 }
 0xbfb   :  { %1882 = vmax.xlane.f32.xlu1 %v1881_v4  ;;  %1891 = vmax.xlane.f32.xlu2 %v1890_v31  ;;  %v7650_v4 = vadd.f32 %v6489_v20, %v1816_v33 }
 0xbfd   :  { %v1899_v43 = vsel %vm108_vm0, %v7650_v4, -inf }
 0xc03   :  { %1909 = vmax.xlane.f32.xlu1 %v1908_v23  ;;  %1906 = vmax.xlane.f32.xlu2 %v1905_v47  ;;  %v6490_v47 = vld [vmem:[%s10042_s3 + $0x78] sm:$0xff]  ;;  %s10071_s3 = smov 8  }
 0xc04   :  { %v7659_v0 = vadd.f32 %v6490_v47, %v1863_v54 }
 0xc06   :  { %v1911_v58 = vsel %vm108_vm0, %v7659_v0, -inf }
 0xc0b   :  { %1885 = vmax.xlane.f32.xlu2 %v1884_v56 }
 0xc1c   :  { %2217 = vrot.lane.b32.xlu1 %v2214_v16, %s6551_s1 }
 0xc23   :  { %2123 = vrot.lane.b32.xlu2 %v2120_v25, %s6551_s1 }
 0xc28   :  { %v1880_v24 = vpop.xlane.xlu0 %1879 }
 0xc29   :  { %v1918_v57 = vsub.f32 %v7527_v61, %v1880_v24  ;;  %v1769_v61 = vpop.f32.mrf.mxu0 }
 0xc2a   :  { %v7641_v22 = vadd.f32 %v6488_v53, %v1769_v61 }
 0xc2b   :  { %v1938_v40 = vmul.f32 1.442695, %v1918_v57  ;;  %2170 = vrot.lane.b32.xlu2 %v2167_v9, %s6551_s1 }
 0xc2c   :  { %v1887_v6 = vsel %vm108_vm0, %v7641_v22, -inf }
 0xc2d   :  { %6363 = vpow2.f32 %v1938_v40 }
 0xc33   :  { %v7629_v14 = vpop.eup %6363  ;;  %2121 = vrot.lane.b32.xlu2 %v2119_v41, %s6551_s1 }
 0xc34   :  { %v1974_v38 = vsel %vm108_vm0, %v7629_v14, 0.0 }
 0xc35   :  { %1975 = vadd.xlane.f32.xlu0 %v1974_v38 }
 0xc39   :  { %v1895_v31 = vpop.xlane.xlu0 %1894 }
 0xc3a   :  { %v1923_v56 = vsub.f32 %v7536_v42, %v1895_v31 }
 0xc3c   :  { %v1948_v5 = vmul.f32 1.442695, %v1923_v56  ;;  %v2163_v56 = vunpack.c.l.b16 %v7634_v13 }
 0xc41   :  { %v1898_v16 = vpop.xlane.xlu0 %1897 }
 0xc4e   :  { %v1868_v10 = vpop.xlane.xlu2 %1867 }
 0xc56   :  { %v7636_v48 = vpop.xlane.xlu1 %1870 }
 0xc5c   :  { %1888 = vmax.xlane.f32.xlu2 %v1887_v6 }
 0xc5e   :  { %v7645_v36 = vpop.xlane.xlu1 %1873 }
 0xc64   :  { %1900 = vmax.xlane.f32.xlu2 %v1899_v43 }
 0xc66   :  { %v1904_v7 = vpop.xlane.xlu1 %1903  ;;  %v7654_v23 = vpop.xlane.xlu2 %1876 }
 0xc67   :  { %v1926_v49 = vsub.f32 %v7574_v46, %v1904_v7  ;;  %v1924_v46 = vsub.f32 %v7545_v39, %v1898_v16  ;;  %v1914_v39 = vsub.f32 %v7552_v29, %v1868_v10 }
 0xc69   :  { %v1954_v35 = vmul.f32 1.442695, %v1926_v49  ;;  %v1950_v24 = vmul.f32 1.442695, %v1924_v46  ;;  %v2216_v49 = vpop.permute.xlu0 %2215 }
 0xc6b   :  { %6365 = vpow2.f32 %v1954_v35 }
 0xc6c   :  { %1912 = vmax.xlane.f32.xlu2 %v1911_v58  ;;  %6367 = vpow2.f32 %v1948_v5  ;;  %v2162_v58 = vunpack.c.l.b16 %v7624_v8  ;;  %v2069_v8 = vunpack.c.l.b16 %v7479_v63 }
 0xc6e   :  { %v1883_v15 = vpop.xlane.xlu1 %1882  ;;  %v1892_v28 = vpop.xlane.xlu2 %1891  ;;  %v2166_v5 = vpack.c.b16 %v2163_v56, %v2162_v58 }
 0xc6f   :  { %v1919_v19 = vsub.f32 %v7588_v51, %v1883_v15  ;;  %v1922_v25 = vsub.f32 %v7593_v62, %v1892_v28 }
 0xc71   :  { %v7667_v52 = vpop.eup %6365  ;;  %v1940_v42 = vmul.f32 1.442695, %v1919_v19  ;;  %v1946_v18 = vmul.f32 1.442695, %v1922_v25 }
 0xc72   :  { %v1998_v11 = vsel %vm108_vm0, %v7667_v52, 0.0  ;;  %v7672_v26 = vpop.eup %6367 }
 0xc73   :  { %6369 = vpow2.f32 %v1940_v42  ;;  %1999 = vadd.xlane.f32.xlu0 %v1998_v11  ;;  %v1989_v38 = vsel %vm108_vm0, %v7672_v26, 0.0 }
 0xc74   :  { %6371 = vpow2.f32 %v1946_v18 }
 0xc75   :  { %6373 = vpow2.f32 %v1950_v24  ;;  %v1915_v24 = vsub.f32 %v7559_v50, %v7636_v48  ;;  %v1916_v50 = vsub.f32 %v7567_v44, %v7645_v36 }
 0xc76   :  { %v1910_v9 = vpop.xlane.xlu1 %1909  ;;  %v1907_v57 = vpop.xlane.xlu2 %1906 }
 0xc77   :  { %v1928_v51 = vsub.f32 %v7607_v21, %v1910_v9  ;;  %v1927_v62 = vsub.f32 %v7602_v34, %v1907_v57  ;;  %v1930_v34 = vmul.f32 1.442695, %v1914_v39 }
 0xc79   :  { %v7676_v40 = vpop.eup %6369  ;;  %v1958_v2 = vmul.f32 1.442695, %v1928_v51  ;;  %v1956_v1 = vmul.f32 1.442695, %v1927_v62 }
 0xc7a   :  { %v7679_v3 = vpop.eup %6371  ;;  %v1977_v41 = vsel %vm108_vm0, %v7676_v40, 0.0 }
 0xc7b   :  { %6375 = vpow2.f32 %v1958_v2  ;;  %v1986_v21 = vsel %vm108_vm0, %v7679_v3, 0.0  ;;  %1978 = vadd.xlane.f32.xlu1 %v1977_v41  ;;  %1990 = vadd.xlane.f32.xlu0 %v1989_v38  ;;  %v7687_v61 = vpop.eup %6373  ;;  %v1934_v2 = vmul.f32 1.442695, %v1916_v50 }
 0xc7c   :  { %6377 = vpow2.f32 %v1956_v1  ;;  %1987 = vadd.xlane.f32.xlu2 %v1986_v21  ;;  %v1992_v10 = vsel %vm108_vm0, %v7687_v61, 0.0  ;;  %v1917_v1 = vsub.f32 %v7579_v37, %v7654_v23 }
 0xc7d   :  { %6379 = vpow2.f32 %v1930_v34 }
 0xc7e   :  { %v1886_v29 = vpop.xlane.xlu2 %1885  ;;  %v1936_v21 = vmul.f32 1.442695, %v1917_v1 }
 0xc7f   :  { %v1920_v16 = vsub.f32 %v7616_v59, %v1886_v29  ;;  %v2068_v59 = vunpack.c.l.b16 %v7489_v60 }
 0xc81   :  { %v7689_v53 = vpop.eup %6375  ;;  %v1942_v15 = vmul.f32 1.442695, %v1920_v16  ;;  %v2072_v51 = vpack.c.b16 %v2069_v8, %v2068_v59 }
 0xc82   :  { %v7691_v6 = vpop.eup %6377  ;;  %v2004_v33 = vsel %vm108_vm0, %v7689_v53, 0.0 }
 0xc83   :  { %v2001_v20 = vsel %vm108_vm0, %v7691_v6, 0.0  ;;  %2005 = vadd.xlane.f32.xlu1 %v2004_v33  ;;  %1993 = vadd.xlane.f32.xlu0 %v1992_v10  ;;  %v7699_v43 = vpop.eup %6379  ;;  %6381 = vpow2.f32 %v1942_v15 }
 0xc84   :  { %2002 = vadd.xlane.f32.xlu2 %v2001_v20  ;;  %v1962_v54 = vsel %vm108_vm0, %v7699_v43, 0.0 }
 0xc86   :  { %v2124_v31 = vpop.permute.xlu2 %2123 }
 0xc87   :  { %2139 = vmatpush.bf16.msrb.mxu0 %v2124_v31 }
 0xc89   :  { %v7707_v28 = vpop.eup %6381 }
 0xc8a   :  { %v1980_v19 = vsel %vm108_vm0, %v7707_v28, 0.0 }
 0xc8b   :  { %1963 = vadd.xlane.f32.xlu0 %v1962_v54 }
 0xc8e   :  { %v2171_v7 = vpop.permute.xlu2 %2170  ;;  %v2218_v47 = vpop.permute.xlu1 %2217 }
 0xc8f   :  { %2186 = vmatpush.bf16.msrb.mxu1 %v2171_v7  ;;  %2233 = vmatpush.bf16.msrb.mxu2 %v2218_v47 }
 0xc93   :  { %2234 = vmatpush.bf16.msrb.mxu2 %v2216_v49 }
 0xc96   :  { %v2122_v35 = vpop.permute.xlu2 %2121 }
 0xc97   :  { %2140 = vmatpush.bf16.msrb.mxu0 %v2122_v35 }
 0xc9c   :  { %2168 = vrot.lane.b32.xlu2 %v2166_v5, %s6551_s1 }
 0xca8   :  { %v1976_v63 = vpop.xlane.xlu0 %1975 }
 0xcc5   :  { %1981 = vadd.xlane.f32.xlu2 %v1980_v19 }
 0xccf   :  { %v1889_v25 = vpop.xlane.xlu2 %1888 }
 0xcd0   :  { %v1921_v13 = vsub.f32 %v7641_v22, %v1889_v25  ;;  %v1932_v22 = vmul.f32 1.442695, %v1915_v24 }
 0xcd2   :  { %v1944_v46 = vmul.f32 1.442695, %v1921_v13 }
 0xcd4   :  { %6383 = vpow2.f32 %v1944_v46  ;;  %v2071_v46 = vunpack.c.l.b16 %v7456_v32 }
 0xcd7   :  { %v1901_v42 = vpop.xlane.xlu2 %1900 }
 0xcd8   :  { %v1925_v18 = vsub.f32 %v7650_v4, %v1901_v42 }
 0xcda   :  { %v7715_v11 = vpop.eup %6383  ;;  %v1952_v9 = vmul.f32 1.442695, %v1925_v18 }
 0xcdb   :  { %v1983_v57 = vsel %vm108_vm0, %v7715_v11, 0.0 }
 0xcdc   :  { %6385 = vpow2.f32 %v1952_v9  ;;  %1984 = vadd.xlane.f32.xlu1 %v1983_v57 }
 0xcdd   :  { %2074 = vrot.lane.b32.xlu2 %v2072_v51, %s6551_s1  ;;  %6387 = vpow2.f32 %v1932_v22 }
 0xcdf   :  { %v1913_v62 = vpop.xlane.xlu2 %1912 }
 0xce0   :  { %v1929_v4 = vsub.f32 %v7659_v0, %v1913_v62 }
 0xce2   :  { %v7723_v60 = vpop.eup %6385  ;;  %v1960_v48 = vmul.f32 1.442695, %v1929_v4 }
 0xce3   :  { %v1995_v39 = vsel %vm108_vm0, %v7723_v60, 0.0  ;;  %v7731_v38 = vpop.eup %6387 }
 0xce4   :  { %6389 = vpow2.f32 %v1960_v48  ;;  %1996 = vadd.xlane.f32.xlu1 %v1995_v39  ;;  %v1965_v44 = vsel %vm108_vm0, %v7731_v38, 0.0 }
 0xce5   :  { %6391 = vrcp.f32 %v1976_v63 }
 0xce6   :  { %v2000_v41 = vpop.xlane.xlu0 %1999  ;;  %6393 = vpow2.f32 %v1934_v2 }
 0xce7   :  { %6395 = vpow2.f32 %v1936_v21 }
 0xcea   :  { %v7733_v0 = vpop.eup %6389 }
 0xceb   :  { %v2007_v36 = vsel %vm108_vm0, %v7733_v0, 0.0  ;;  %v6392_v37 = vpop.eup %6391 }
 0xcec   :  { %1966 = vadd.xlane.f32.xlu1 %v1965_v44  ;;  %2008 = vadd.xlane.f32.xlu0 %v2007_v36  ;;  %v7739_v33 = vpop.eup %6393  ;;  %v2030_v10 = vmul.f32 %v6392_v37, %v7629_v14 }
 0xced   :  { %v1968_v20 = vsel %vm108_vm0, %v7739_v33, 0.0  ;;  %v7744_v31 = vpop.eup %6395 }
 0xcee   :  { %v1979_v34 = vpop.xlane.xlu1 %1978  ;;  %v1991_v29 = vpop.xlane.xlu0 %1990  ;;  %v2046_v47 = vpack.c.bf16 %v2030_v10, %v2030_v10 }
 0xcef   :  { %v1988_v23 = vpop.xlane.xlu2 %1987  ;;  %6397 = vrcp.f32 %v1979_v34 }
 0xcf0   :  { %6399 = vrcp.f32 %v1988_v23  ;;  %v2109_v19 = vunpack.c.l.b16 %v2046_v47 }
 0xcf1   :  { %6401 = vrcp.f32 %v1991_v29 }
 0xcf2   :  { %6403 = vrcp.f32 %v2000_v41 }
 0xcf4   :  { %1969 = vadd.xlane.f32.xlu1 %v1968_v20 }
 0xcf5   :  { %v6398_v54 = vpop.eup %6397 }
 0xcf6   :  { %v6400_v7 = vpop.eup %6399  ;;  %v2031_v49 = vmul.f32 %v6398_v54, %v7676_v40  ;;  %v1971_v40 = vsel %vm108_vm0, %v7744_v31, 0.0  ;;  %v2006_v62 = vpop.xlane.xlu1 %2005 }
 0xcf7   :  { %v6402_v56 = vpop.eup %6401  ;;  %v2034_v35 = vmul.f32 %v6400_v7, %v7679_v3  ;;  %v2003_v58 = vpop.xlane.xlu2 %2002  ;;  %v2070_v3 = vunpack.c.l.b16 %v7475_v45 }
 0xcf8   :  { %v6404_v5 = vpop.eup %6403  ;;  %v2047_v16 = vpack.c.bf16 %v2031_v49, %v2031_v49  ;;  %v2035_v14 = vmul.f32 %v6402_v56, %v7672_v26  ;;  %6405 = vrcp.f32 %v2003_v58  ;;  %v1994_v50 = vpop.xlane.xlu0 %1993 }
 0xcf9   :  { %v2050_v15 = vpack.c.bf16 %v2034_v35, %v2034_v35  ;;  %v2038_v42 = vmul.f32 %v6404_v5, %v7667_v52  ;;  %v2073_v26 = vpack.c.b16 %v2071_v46, %v2070_v3 }
 0xcfa   :  { %v2110_v25 = vunpack.c.l.b16 %v2047_v16  ;;  %v2051_v13 = vpack.c.bf16 %v2035_v14, %v2035_v14 }
 0xcfb   :  { %v2156_v18 = vunpack.c.l.b16 %v2050_v15  ;;  %v2054_v9 = vpack.c.bf16 %v2038_v42, %v2038_v42 }
 0xcfc   :  { %v2113_v8 = vpack.c.b16 %v2110_v25, %v2109_v19  ;;  %1972 = vadd.xlane.f32.xlu1 %v1971_v40  ;;  %v2157_v59 = vunpack.c.l.b16 %v2051_v13 }
 0xcfd   :  { %v2203_v22 = vunpack.c.l.b16 %v2054_v9 }
 0xcfe   :  { %v6406_v24 = vpop.eup %6405  ;;  %5958 = vmatmul.msk.bf16.vlgmr.msrb.gmra.mxu0 %vm108_vm0, %v2113_v8  ;;  %v2160_v32 = vpack.c.b16 %v2157_v59, %v2156_v18 }
 0xcff   :  { %v2039_v57 = vmul.f32 %v6406_v24, %v7691_v6  ;;  %v2169_v51 = vpop.permute.xlu2 %2168 }
 0xd00   :  { %2187 = vmatpush.bf16.msrb.mxu1 %v2169_v51  ;;  %2076 = vrot.lane.b32.xlu0 %v2073_v26, %s6551_s1  ;;  %v1964_v1 = vpop.xlane.xlu0 %1963 }
 0xd01   :  { %v2055_v52 = vpack.c.bf16 %v2039_v57, %v2039_v57 }
 0xd03   :  { %v2204_v63 = vunpack.c.l.b16 %v2055_v52  ;;  %5960 = vmatmul.msk.bf16.vlgmr.msrb.gmra.mxu1 %vm108_vm0, %v2160_v32 }
 0xd05   :  { %v2207_v45 = vpack.c.b16 %v2204_v63, %v2203_v22 }
 0xd07   :  { %5962 = vmatmul.msk.bf16.vlgmr.msrb.gmra.mxu2 %vm108_vm0, %v2207_v45 }
 0xd38   :  { %v1982_v4 = vpop.xlane.xlu2 %1981 }
 0xd39   :  { %6407 = vrcp.f32 %v1982_v4 }
 0xd3f   :  { %v6408_v39 = vpop.eup %6407 }
 0xd40   :  { %v2032_v6 = vmul.f32 %v6408_v39, %v7707_v28  ;;  %v2075_v26 = vpop.permute.xlu2 %2074 }
 0xd42   :  { %v2048_v44 = vpack.c.bf16 %v2032_v6, %v2032_v6 }
 0xd44   :  { %v2111_v29 = vunpack.c.l.b16 %v2048_v44 }
 0xd4f   :  { %v1985_v48 = vpop.xlane.xlu1 %1984 }
 0xd50   :  { %6409 = vrcp.f32 %v1985_v48 }
 0xd51   :  { %6411 = vrcp.f32 %v1994_v50 }
 0xd56   :  { %v6410_v2 = vpop.eup %6409 }
 0xd57   :  { %v1997_v41 = vpop.xlane.xlu1 %1996  ;;  %v2033_v21 = vmul.f32 %v6410_v2, %v7715_v11  ;;  %v6412_v36 = vpop.eup %6411 }
 0xd58   :  { %6413 = vrcp.f32 %v1997_v41  ;;  %v2036_v23 = vmul.f32 %v6412_v36, %v7687_v61  ;;  %v6171_v36 = vld [vmem:[%s10044_s5 + $0x18] sm:$0xff] }
 0xd59   :  { %v2049_v34 = vpack.c.bf16 %v2033_v21, %v2033_v21  ;;  %6415 = vrcp.f32 %v2006_v62 }
 0xd5a   :  { %v2052_v47 = vpack.c.bf16 %v2036_v23, %v2036_v23 }
 0xd5b   :  { %v2112_v37 = vunpack.c.l.b16 %v2049_v34  ;;  %v6170_v34 = vld [vmem:[%s10044_s5 + $0x10] sm:$0xff] }
 0xd5c   :  { %v2158_v56 = vunpack.c.l.b16 %v2052_v47 }
 0xd5d   :  { %v2114_v10 = vpack.c.b16 %v2112_v37, %v2111_v29 }
 0xd5e   :  { %v6414_v20 = vpop.eup %6413 }
 0xd5f   :  { %v1967_v54 = vpop.xlane.xlu1 %1966  ;;  %5959 = vmatmul.msk.bf16.gmra.mxu0 %vm108_vm0, %v2114_v10  ;;  %v2009_v28 = vpop.xlane.xlu0 %2008  ;;  %v2037_v7 = vmul.f32 %v6414_v20, %v7723_v60 }
 0xd60   :  { %v6416_v49 = vpop.eup %6415  ;;  %6417 = vrcp.f32 %v2009_v28 }
 0xd61   :  { %v2053_v11 = vpack.c.bf16 %v2037_v7, %v2037_v7  ;;  %6419 = vrcp.f32 %v1967_v54  ;;  %v2040_v58 = vmul.f32 %v6416_v49, %v7689_v53 }
 0xd62   :  { %6421 = vrcp.f32 %v1964_v1 }
 0xd63   :  { %v2159_v35 = vunpack.c.l.b16 %v2053_v11  ;;  %v2056_v15 = vpack.c.bf16 %v2040_v58, %v2040_v58 }
 0xd65   :  { %v2161_v5 = vpack.c.b16 %v2159_v35, %v2158_v56  ;;  %v2205_v46 = vunpack.c.l.b16 %v2056_v15 }
 0xd66   :  { %v6418_v61 = vpop.eup %6417 }
 0xd67   :  { %v1970_v16 = vpop.xlane.xlu1 %1969  ;;  %5961 = vmatmul.msk.bf16.gmra.mxu1 %vm108_vm0, %v2161_v5  ;;  %v2041_v14 = vmul.f32 %v6418_v61, %v7733_v0  ;;  %v6420_v19 = vpop.eup %6419 }
 0xd68   :  { %v6422_v25 = vpop.eup %6421  ;;  %v2027_v13 = vmul.f32 %v6420_v19, %v7731_v38 }
 0xd69   :  { %v2057_v60 = vpack.c.bf16 %v2041_v14, %v2041_v14  ;;  %v2026_v40 = vmul.f32 %v6422_v25, %v7699_v43 }
 0xd6a   :  { %v2043_v53 = vpack.c.bf16 %v2027_v13, %v2027_v13 }
 0xd6b   :  { %v2206_v42 = vunpack.c.l.b16 %v2057_v60  ;;  %v2042_v18 = vpack.c.bf16 %v2026_v40, %v2026_v40 }
 0xd6c   :  { %v2063_v0 = vunpack.c.l.b16 %v2043_v53 }
 0xd6d   :  { %v2208_v8 = vpack.c.b16 %v2206_v42, %v2205_v46  ;;  %v2062_v24 = vunpack.c.l.b16 %v2042_v18 }
 0xd6f   :  { %v1973_v3 = vpop.xlane.xlu1 %1972  ;;  %5963 = vmatmul.msk.bf16.gmra.mxu2 %vm108_vm0, %v2208_v8  ;;  %v2066_v9 = vpack.c.b16 %v2063_v0, %v2062_v24 }
 0xd70   :  { %6423 = vrcp.f32 %v1973_v3 }
 0xd71   :  { %6425 = vrcp.f32 %v1970_v16 }
 0xd72   :  { %v2077_v59 = vpop.permute.xlu0 %2076 }
 0xd73   :  { %2092 = vmatpush.bf16.msra.mxu3 %v2077_v59 }
 0xd76   :  { %v6424_v38 = vpop.eup %6423 }
 0xd77   :  { %2093 = vmatpush.bf16.msra.mxu3 %v2075_v26  ;;  %v6426_v57 = vpop.eup %6425  ;;  %v2029_v51 = vmul.f32 %v6424_v38, %v7744_v31 }
 0xd78   :  { %v2028_v32 = vmul.f32 %v6426_v57, %v7739_v33 }
 0xd79   :  { %v2045_v22 = vpack.c.bf16 %v2029_v51, %v2029_v51 }
 0xd7a   :  { %5956 = vmatmul.msk.bf16.vlgmr.msra.gmra.mxu3 %vm108_vm0, %v2066_v9  ;;  %v2044_v63 = vpack.c.bf16 %v2028_v32, %v2028_v32 }
 0xd7b   :  { %v2142_v43 = vpop.f32.mrf.mxu0  ;;  %v2065_v4 = vunpack.c.l.b16 %v2045_v22  ;;  %2337 = vmatpush.bf16.msrb.mxu3 %v6171_v36 }
 0xd7c   :  { %v2064_v50 = vunpack.c.l.b16 %v2044_v63 }
 0xd7e   :  { %v2067_v39 = vpack.c.b16 %v2065_v4, %v2064_v50 }
 0xd7f   :  { %2338 = vmatpush.bf16.msrb.mxu3 %v6170_v34 }
 0xd80   :  { %v2189_v52 = vpop.f32.mrf.mxu1 }
 0xd83   :  { %v2144_v45 = vpop.f32.mrf.mxu0 }
 0xd84   :  { %v6224_v62 = vpack.i.bf16 %v2144_v45, %v2142_v43 }
 0xd86   :  { %6225 = vrot.lane.b32.xlu0 %v6224_v62, %s10071_s3 }
 0xd88   :  { %v2191_v48 = vpop.f32.mrf.mxu1 }
 0xd89   :  { %v6229_v6 = vpack.i.bf16 %v2191_v48, %v2189_v52 }
 0xd8a   :  { %v2236_v2 = vpop.f32.mrf.mxu2  ;;  %5957 = vmatmul.msk.bf16.gmra.mxu3 %vm108_vm0, %v2067_v39 }
 0xd8b   :  { %6230 = vrot.lane.b32.xlu1 %v6229_v6, %s10072_s13 }
 0xd92   :  { %v2238_v31 = vpop.f32.mrf.mxu2 }
 0xd93   :  { %v6234_v1 = vpack.i.bf16 %v2238_v31, %v2236_v2 }
 0xd95   :  { %6235 = vrot.lane.b32.xlu0 %v6234_v1, %s10073_s4 }
 0xddc   :  { %v2147_v33 = vpop.f32.mrf.mxu0 }
 0xde4   :  { %v2149_v41 = vpop.f32.mrf.mxu0  ;;  %v2194_v21 = vpop.f32.mrf.mxu1 }
 0xde5   :  { %v6239_v44 = vpack.i.bf16 %v2149_v41, %v2147_v33 }
 0xde7   :  { %6240 = vrot.lane.b32.xlu2 %v6239_v44, %s10071_s3 }
 0xdec   :  { %v2196_v29 = vpop.f32.mrf.mxu1 }
 0xded   :  { %v6244_v37 = vpack.i.bf16 %v2196_v29, %v2194_v21  ;;  %v6172_v21 = vld [vmem:[%s10045_s6 + $0x10] sm:$0xff] }
 0xdef   :  { %6245 = vrot.lane.b32.xlu0 %v6244_v37, %s10072_s13 }
 0xdf2   :  { %v2241_v23 = vpop.f32.mrf.mxu2 }
 0xdf8   :  { %v6226_v28 = vpop.permute.xlu0 %6225 }
 0xdf9   :  { %v6228_v47 = vunpack.i.h.bf16 %v6226_v28  ;;  %v6227_v49 = vunpack.i.l.bf16 %v6226_v28 }
 0xdfa   :  { %v2243_v10 = vpop.f32.mrf.mxu2 }
 0xdfb   :  { %v6249_v20 = vpack.i.bf16 %v2243_v10, %v2241_v23 }
 0xdfd   :  { %v2095_v54 = vpop.f32.mrf.mxu3  ;;  %6250 = vrot.lane.b32.xlu2 %v6249_v20, %s10073_s4  ;;  %v6231_v7 = vpop.permute.xlu1 %6230 }
 0xdfe   :  { %v6233_v11 = vunpack.i.h.bf16 %v6231_v7  ;;  %v6232_v56 = vunpack.i.l.bf16 %v6231_v7  ;;  %v2294_v58 = vsel %vm450_vm14, %v2095_v54, %v6227_v49 }
 0xe00   :  { %v2298_v19 = vsel %vm1055_vm15, %v2294_v58, %v6232_v56 }
 0xe05   :  { %v2097_v35 = vpop.f32.mrf.mxu3 }
 0xe06   :  { %v2295_v5 = vsel %vm450_vm14, %v2097_v35, %v6228_v47 }
 0xe07   :  { %v2299_v61 = vsel %vm1055_vm15, %v2295_v5, %v6233_v11  ;;  %v6236_v16 = vpop.permute.xlu0 %6235 }
 0xe08   :  { %v6238_v14 = vunpack.i.h.bf16 %v6236_v16  ;;  %v6237_v15 = vunpack.i.l.bf16 %v6236_v16 }
 0xe0a   :  { %v2302_v60 = vsel %vm1060_vm1, %v2298_v19, %v6237_v15  ;;  %v2303_v25 = vsel %vm1060_vm1, %v2299_v61, %v6238_v14 }
 0xe0b   :  { %v2306_v13 = vpack.c.bf16 %v2303_v25, %v2302_v60 }
 0xe0d   :  { %5976 = vmatmul.msk.bf16.vlgmr.msrb.gmra.mxu3 %vm108_vm0, %v2306_v13  ;;  %v2100_v46 = vpop.f32.mrf.mxu3 }
 0xe15   :  { %v2102_v18 = vpop.f32.mrf.mxu3 }
 0xe41   :  { %v6241_v42 = vpop.permute.xlu2 %6240 }
 0xe42   :  { %v6243_v40 = vunpack.i.h.bf16 %v6241_v42  ;;  %v6242_v8 = vunpack.i.l.bf16 %v6241_v42 }
 0xe44   :  { %v2296_v24 = vsel %vm450_vm14, %v2100_v46, %v6242_v8  ;;  %v2297_v26 = vsel %vm450_vm14, %v2102_v18, %v6243_v40 }
 0xe57   :  { %v6251_v53 = vpop.permute.xlu2 %6250 }
 0xe58   :  { %v6253_v9 = vunpack.i.h.bf16 %v6251_v53  ;;  %v6252_v38 = vunpack.i.l.bf16 %v6251_v53 }
 0xe61   :  { %v6246_v3 = vpop.permute.xlu0 %6245 }
 0xe62   :  { %v6248_v59 = vunpack.i.h.bf16 %v6246_v3  ;;  %v6247_v0 = vunpack.i.l.bf16 %v6246_v3 }
 0xe64   :  { %v2301_v57 = vsel %vm1055_vm15, %v2297_v26, %v6248_v59  ;;  %v2300_v43 = vsel %vm1055_vm15, %v2296_v24, %v6247_v0 }
 0xe65   :  { %v2304_v51 = vsel %vm1060_vm1, %v2300_v43, %v6252_v38  ;;  %v2305_v32 = vsel %vm1060_vm1, %v2301_v57, %v6253_v9 }
 0xe66   :  { %v2307_v52 = vpack.c.bf16 %v2305_v32, %v2304_v51 }
 0xe68   :  { %5977 = vmatmul.msk.bf16.gmra.mxu3 %vm108_vm0, %v2307_v52 }
 0xe90   :  { %v2340_v22 = vpop.f32.mrf.mxu3 }
 0xe91   :  { %v7801_v63 = vadd.f32 %v2340_v22, %v7285_v55 }
 0xe93   :  { %v2354_v45 = vmul.f32 %v7801_v63, %v7801_v63 }
 0xe95   :  { %v2358_v62 = vsel %vm108_vm0, %v2354_v45, 0.0 }
 0xe96   :  { %2359 = vadd.xlane.f32.xlu0 %v2358_v62 }
 0xe98   :  { %v2342_v4 = vpop.f32.mrf.mxu3 }
 0xe99   :  { %v7807_v50 = vadd.f32 %v2342_v4, %v7291_v27 }
 0xe9b   :  { %v2355_v48 = vmul.f32 %v7807_v50, %v7807_v50 }
 0xe9d   :  { %v2361_v39 = vsel %vm108_vm0, %v2355_v48, 0.0 }
 0xe9e   :  { %2362 = vadd.xlane.f32.xlu2 %v2361_v39  ;;  %v6177_v39 = vld [vmem:[%s10046_s7 + $0x38] sm:$0xff] }
 0xe9f   :  { %2611 = vmatpush.bf16.msra.mxu1 %v6177_v39 }
 0xeeb   :  { %v2345_v6 = vpop.f32.mrf.mxu3 }
 0xeec   :  { %v7813_v55 = vadd.f32 %v2345_v6, %v7297_v12  ;;  %v6173_v12 = vld [vmem:[%s10045_s6 + $0x18] sm:$0xff]  ;;  %v6176_v6 = vld [vmem:[%s10046_s7 + $0x30] sm:$0xff] }
 0xeed   :  { %2453 = vmatpush.bf16.msra.mxu0 %v6173_v12  ;;  %2612 = vmatpush.bf16.msra.mxu1 %v6176_v6 }
 0xeee   :  { %v2356_v2 = vmul.f32 %v7813_v55, %v7813_v55 }
 0xef0   :  { %v2364_v31 = vsel %vm108_vm0, %v2356_v2, 0.0 }
 0xef1   :  { %2365 = vadd.xlane.f32.xlu1 %v2364_v31  ;;  %2454 = vmatpush.bf16.msra.mxu0 %v6172_v21  ;;  %v6174_v21 = vld [vmem:[%s10046_s7 + $0x20] sm:$0xff] }
 0xef3   :  { %v2347_v1 = vpop.f32.mrf.mxu3 }
 0xef4   :  { %v7819_v27 = vadd.f32 %v2347_v1, %v7303_v17  ;;  %v6175_v1 = vld [vmem:[%s10046_s7 + $0x28] sm:$0xff] }
 0xef5   :  { %2613 = vmatpush.bf16.msra.mxu1 %v6175_v1 }
 0xef6   :  { %v2357_v33 = vmul.f32 %v7819_v27, %v7819_v27 }
 0xef8   :  { %v2367_v41 = vsel %vm108_vm0, %v2357_v33, 0.0 }
 0xef9   :  { %2368 = vadd.xlane.f32.xlu0 %v2367_v41  ;;  %2614 = vmatpush.bf16.msra.mxu1 %v6174_v21 }
 0xf09   :  { %v2360_v44 = vpop.xlane.xlu0 %2359 }
 0xf0a   :  { %v2370_v36 = vmul.f32 %v2360_v44, %v6710_v30 }
 0xf0c   :  { %v2374_v17 = vadd.f32 1e-06, %v2370_v36 }
 0xf0e   :  { %6427 = vrsqrt.f32 %v2374_v17  ;;  %vm2384_vm1 = vweird.f32 %v2374_v17 }
 0xf11   :  { %v2363_v34 = vpop.xlane.xlu2 %2362 }
 0xf12   :  { %v2371_v29 = vmul.f32 %v2363_v34, %v6710_v30 }
 0xf14   :  { %v6428_v37 = vpop.eup %6427  ;;  %v2375_v23 = vadd.f32 1e-06, %v2371_v29 }
 0xf15   :  { %v2379_v10 = vmul.f32 %v6428_v37, %v2374_v17  ;;  %vm2385_vm15 = vweird.f32 %v6428_v37 }
 0xf16   :  { %6429 = vrsqrt.f32 %v2375_v23  ;;  %vm2386_vm9 = vmor %vm2384_vm1, %vm2385_vm15  ;;  %vm2394_vm11 = vweird.f32 %v2375_v23 }
 0xf17   :  { %v2380_v20 = vmul.f32 %v6428_v37, %v2379_v10 }
 0xf19   :  { %v2381_v54 = vmul.f32 0.5, %v2380_v20 }
 0xf1b   :  { %v2382_v7 = vsub.f32 1.5, %v2381_v54 }
 0xf1c   :  { %v6430_v28 = vpop.eup %6429 }
 0xf1d   :  { %v2389_v47 = vmul.f32 %v6430_v28, %v2375_v23  ;;  %v2383_v11 = vmul.f32 %v6428_v37, %v2382_v7  ;;  %vm2395_vm8 = vweird.f32 %v6430_v28 }
 0xf1e   :  { %vm2396_vm12 = vmor %vm2394_vm11, %vm2395_vm8 }
 0xf1f   :  { %v2390_v49 = vmul.f32 %v6430_v28, %v2389_v47  ;;  %v2387_v58 = vsel %vm2386_vm9, %v6428_v37, %v2383_v11 }
 0xf20   :  { %v2418_v16 = vmul.f32 %v2387_v58, %v7801_v63 }
 0xf21   :  { %v2391_v56 = vmul.f32 0.5, %v2390_v49 }
 0xf23   :  { %v2392_v35 = vsub.f32 1.5, %v2391_v56 }
 0xf25   :  { %v2393_v5 = vmul.f32 %v6430_v28, %v2392_v35 }
 0xf27   :  { %v2397_v61 = vsel %vm2396_vm12, %v6430_v28, %v2393_v5 }
 0xf28   :  { %v2419_v14 = vmul.f32 %v2397_v61, %v7807_v50 }
 0xf2a   :  { %v2422_v15 = vpack.c.bf16 %v2419_v14, %v2418_v16 }
 0xf2c   :  { %5990 = vmatmul.msk.bf16.vlgmr.msra.gmra.mxu0 %vm108_vm0, %v2422_v15 }
 0xf64   :  { %v2366_v19 = vpop.xlane.xlu1 %2365 }
 0xf65   :  { %v2372_v60 = vmul.f32 %v2366_v19, %v6710_v30 }
 0xf67   :  { %v2376_v25 = vadd.f32 1e-06, %v2372_v60 }
 0xf69   :  { %6431 = vrsqrt.f32 %v2376_v25  ;;  %vm2404_vm2 = vweird.f32 %v2376_v25 }
 0xf6c   :  { %v2369_v13 = vpop.xlane.xlu0 %2368 }
 0xf6d   :  { %v2373_v46 = vmul.f32 %v2369_v13, %v6710_v30 }
 0xf6f   :  { %v6432_v42 = vpop.eup %6431  ;;  %v2377_v40 = vadd.f32 1e-06, %v2373_v46 }
 0xf70   :  { %v2399_v8 = vmul.f32 %v6432_v42, %v2376_v25  ;;  %vm2405_vm13 = vweird.f32 %v6432_v42 }
 0xf71   :  { %6433 = vrsqrt.f32 %v2377_v40  ;;  %vm2406_vm4 = vmor %vm2404_vm2, %vm2405_vm13  ;;  %vm2414_vm5 = vweird.f32 %v2377_v40 }
 0xf72   :  { %v2400_v53 = vmul.f32 %v6432_v42, %v2399_v8 }
 0xf74   :  { %v2401_v3 = vmul.f32 0.5, %v2400_v53 }
 0xf76   :  { %v2402_v59 = vsub.f32 1.5, %v2401_v3 }
 0xf77   :  { %v6434_v18 = vpop.eup %6433 }
 0xf78   :  { %v2409_v0 = vmul.f32 %v6434_v18, %v2377_v40  ;;  %v2403_v26 = vmul.f32 %v6432_v42, %v2402_v59  ;;  %vm2415_vm3 = vweird.f32 %v6434_v18 }
 0xf79   :  { %vm2416_vm6 = vmor %vm2414_vm5, %vm2415_vm3 }
 0xf7a   :  { %v2410_v24 = vmul.f32 %v6434_v18, %v2409_v0  ;;  %v2407_v57 = vsel %vm2406_vm4, %v6432_v42, %v2403_v26 }
 0xf7b   :  { %v2420_v32 = vmul.f32 %v2407_v57, %v7813_v55 }
 0xf7c   :  { %v2411_v9 = vmul.f32 0.5, %v2410_v24 }
 0xf7e   :  { %v2412_v38 = vsub.f32 1.5, %v2411_v9 }
 0xf80   :  { %v2413_v43 = vmul.f32 %v6434_v18, %v2412_v38 }
 0xf82   :  { %v2417_v51 = vsel %vm2416_vm6, %v6434_v18, %v2413_v43 }
 0xf83   :  { %v2421_v52 = vmul.f32 %v2417_v51, %v7819_v27 }
 0xf85   :  { %v2423_v22 = vpack.c.bf16 %v2421_v52, %v2420_v32 }
 0xf87   :  { %5991 = vmatmul.msk.bf16.gmra.mxu0 %vm108_vm0, %v2423_v22 }
 0xfa9   :  { %v2456_v45 = vpop.f32.mrf.mxu0 }
 0xfaa   :  { %2550 = vrot.lane.b32.xlu2 %v2456_v45, %s6551_s1  ;;  %v5992_v4 = vmul.f32 -1.442695, %v2456_v45 }
 0xfac   :  { %6435 = vpow2.f32 %v5992_v4 }
 0xfb1   :  { %v2458_v62 = vpop.f32.mrf.mxu0 }
 0xfb2   :  { %2552 = vrot.lane.b32.xlu1 %v2458_v62, %s6551_s1  ;;  %v5993_v48 = vmul.f32 -1.442695, %v2458_v62  ;;  %v6436_v2 = vpop.eup %6435 }
 0xfb3   :  { %v2478_v33 = vadd.f32 1.0, %v6436_v2 }
 0xfb4   :  { %6437 = vpow2.f32 %v5993_v48 }
 0xfb5   :  { %6439 = vrcp.f32 %v2478_v33  ;;  %vm2487_vm1 = vweird.f32 %v2478_v33  ;;  %v2493_v7 = vand.u32 2147483648, %v2478_v33  ;;  %v2491_v49 = vand.u32 2147483647, %v2478_v33 }
 0xfb7   :  { %v2494_v58 = vor.u32 1.1754944e-38, %v2493_v7  ;;  %vm2492_vm12 = vcmp.eq.f32.partialorder %v2491_v49, 8.507059e+37 }
 0xfba   :  { %v6438_v31 = vpop.eup %6437 }
 0xfbb   :  { %v2479_v41 = vadd.f32 1.0, %v6438_v31  ;;  %v6440_v44 = vpop.eup %6439 }
 0xfbc   :  { %v2483_v34 = vmul.f32 %v6440_v44, %v2478_v33  ;;  %vm2488_vm7 = vweird.f32 %v6440_v44 }
 0xfbd   :  { %6441 = vrcp.f32 %v2479_v41  ;;  %v2508_v47 = vand.u32 2147483648, %v2479_v41  ;;  %vm2489_vm8 = vmor %vm2487_vm1, %vm2488_vm7  ;;  %vm2502_vm9 = vweird.f32 %v2479_v41  ;;  %v2506_v11 = vand.u32 2147483647, %v2479_v41 }
 0xfbe   :  { %v2484_v37 = vsub.f32 1.0, %v2483_v34 }
 0xfbf   :  { %v2509_v5 = vor.u32 1.1754944e-38, %v2508_v47  ;;  %vm2507_vm13 = vcmp.eq.f32.partialorder %v2506_v11, 8.507059e+37 }
 0xfc0   :  { %v2485_v10 = vmul.f32 %v6440_v44, %v2484_v37 }
 0xfc2   :  { %v2486_v54 = vadd.f32 %v6440_v44, %v2485_v10 }
 0xfc3   :  { %v6442_v36 = vpop.eup %6441 }
 0xfc4   :  { %v2498_v29 = vmul.f32 %v6442_v36, %v2479_v41  ;;  %vm2503_vm15 = vweird.f32 %v6442_v36  ;;  %v2490_v56 = vsel %vm2489_vm8, %v6440_v44, %v2486_v54 }
 0xfc5   :  { %vm2504_vm11 = vmor %vm2502_vm9, %vm2503_vm15  ;;  %v2495_v61 = vsel %vm2492_vm12, %v2494_v58, %v2490_v56  ;;  %v3690_v58 = vld [vmem:[%s10051_s12 + $0xf8] sm:$0xff] }
 0xfc6   :  { %v2499_v23 = vsub.f32 1.0, %v2498_v29  ;;  %v2542_v15 = vmul.f32 %v2495_v61, %v2456_v45  ;;  %v3721_v61 = vld [vmem:[%s10051_s12 + $0x1f0] sm:$0xff] }
 0xfc8   :  { %v2500_v20 = vmul.f32 %v6442_v36, %v2499_v23 }
 0xfca   :  { %v2501_v28 = vadd.f32 %v6442_v36, %v2500_v20 }
 0xfcc   :  { %v2505_v35 = vsel %vm2504_vm11, %v6442_v36, %v2501_v28 }
 0xfcd   :  { %v2510_v16 = vsel %vm2507_vm13, %v2509_v5, %v2505_v35  ;;  %v6555_v35 = vmov 0   ;;  %v3674_v5 = vld [vmem:[%s10051_s12 + $0x78] sm:$0xff] }
 0xfce   :  { %v2543_v19 = vmul.f32 %v2510_v16, %v2458_v62  ;;  %6254 = vset.pattern.permute.xlu1 %v6555_v35  ;;  %6255 = vset.pattern.permute.xlu2 %v6555_v35  ;;  %v3673_v16 = vld [vmem:[%s10051_s12 + $0x70] sm:$0xff] }
 0xfcf   :  { %6256 = vset.pattern.permute.xlu0 %v6555_v35 }
0x1004   :  { %v7851_v12 = vpop.f32.mrf.mxu0  ;;  %v2551_v14 = vpop.permute.xlu2 %2550 }
0x1005   :  { %2554 = vrot.lane.b32.xlu0 %v7851_v12, %s6551_s1  ;;  %v2562_v25 = vmul.f32 %v2551_v14, %v2542_v15  ;;  %v5994_v42 = vmul.f32 -1.442695, %v7851_v12  ;;  %v3703_v14 = vld [vmem:[%s10051_s12 + $0x160] sm:$0xff] }
0x1007   :  { %6443 = vpow2.f32 %v5994_v42 }
0x100c   :  { %v7858_v17 = vpop.f32.mrf.mxu0 }
0x100d   :  { %2556 = vrot.lane.b32.xlu2 %v7858_v17, %s6551_s1  ;;  %v5995_v40 = vmul.f32 -1.442695, %v7858_v17  ;;  %v6444_v8 = vpop.eup %6443 }
0x100e   :  { %v2480_v3 = vadd.f32 1.0, %v6444_v8 }
0x100f   :  { %6445 = vpow2.f32 %v5995_v40 }
0x1010   :  { %6447 = vrcp.f32 %v2480_v3  ;;  %vm2517_vm4 = vweird.f32 %v2480_v3  ;;  %v2523_v22 = vand.u32 2147483648, %v2480_v3  ;;  %v2521_v62 = vand.u32 2147483647, %v2480_v3 }
0x1012   :  { %v2524_v6 = vor.u32 1.1754944e-38, %v2523_v22  ;;  %vm2522_vm1 = vcmp.eq.f32.partialorder %v2521_v62, 8.507059e+37 }
0x1015   :  { %v6446_v53 = vpop.eup %6445 }
0x1016   :  { %v2481_v18 = vadd.f32 1.0, %v6446_v53  ;;  %v6448_v59 = vpop.eup %6447  ;;  %v3672_v53 = vld [vmem:[%s10051_s12 + $0x68] sm:$0xff] }
0x1017   :  { %v2513_v26 = vmul.f32 %v6448_v59, %v2480_v3  ;;  %vm2518_vm2 = vweird.f32 %v6448_v59  ;;  %v3670_v3 = vld [vmem:[%s10051_s12 + $0x58] sm:$0xff] }
0x1018   :  { %6449 = vrcp.f32 %v2481_v18  ;;  %v2538_v52 = vand.u32 2147483648, %v2481_v18  ;;  %vm2532_vm5 = vweird.f32 %v2481_v18  ;;  %v2536_v45 = vand.u32 2147483647, %v2481_v18  ;;  %vm2519_vm6 = vmor %vm2517_vm4, %vm2518_vm2 }
0x1019   :  { %v2514_v38 = vsub.f32 1.0, %v2513_v26 }
0x101a   :  { %v2539_v39 = vor.u32 1.1754944e-38, %v2538_v52  ;;  %vm2537_vm15 = vcmp.eq.f32.partialorder %v2536_v45, 8.507059e+37 }
0x101b   :  { %v2515_v43 = vmul.f32 %v6448_v59, %v2514_v38  ;;  %v3720_v38 = vld [vmem:[%s10051_s12 + $0x1e8] sm:$0xff] }
0x101d   :  { %v2516_v32 = vadd.f32 %v6448_v59, %v2515_v43 }
0x101e   :  { %v6450_v0 = vpop.eup %6449 }
0x101f   :  { %v2528_v24 = vmul.f32 %v6450_v0, %v2481_v18  ;;  %vm2533_vm3 = vweird.f32 %v6450_v0  ;;  %v2520_v48 = vsel %vm2519_vm6, %v6448_v59, %v2516_v32  ;;  %v3689_v18 = vld [vmem:[%s10051_s12 + $0xf0] sm:$0xff]  ;;  %v3671_v32 = vld [vmem:[%s10051_s12 + $0x60] sm:$0xff] }
0x1020   :  { %vm2534_vm7 = vmor %vm2532_vm5, %vm2533_vm3  ;;  %v2525_v31 = vsel %vm2522_vm1, %v2524_v6, %v2520_v48  ;;  %v3702_v6 = vld [vmem:[%s10051_s12 + $0x158] sm:$0xff]  ;;  %vm5827_vm1 = vcmask 24576  }
0x1021   :  { %v2529_v9 = vsub.f32 1.0, %v2528_v24  ;;  %v2544_v41 = vmul.f32 %v2525_v31, %v7851_v12 }
0x1023   :  { %v2530_v57 = vmul.f32 %v6450_v0, %v2529_v9 }
0x1024   :  { %v2553_v60 = vpop.permute.xlu1 %2552 }
0x1025   :  { %v2563_v13 = vmul.f32 %v2553_v60, %v2543_v19  ;;  %v2531_v51 = vadd.f32 %v6450_v0, %v2530_v57  ;;  %v3704_v60 = vld [vmem:[%s10051_s12 + $0x168] sm:$0xff]  ;;  %v3718_v57 = vld [vmem:[%s10051_s12 + $0x1d8] sm:$0xff] }
0x1027   :  { %v2566_v46 = vpack.c.bf16 %v2563_v13, %v2562_v25  ;;  %v2535_v4 = vsel %vm2534_vm7, %v6450_v0, %v2531_v51  ;;  %v3688_v25 = vld [vmem:[%s10051_s12 + $0xe8] sm:$0xff] }
0x1028   :  { %v2540_v2 = vsel %vm2537_vm15, %v2539_v39, %v2535_v4 }
0x1029   :  { %6020 = vmatmul.msk.bf16.vlgmr.msra.gmra.mxu1 %vm1357_vm10, %v2566_v46  ;;  %v2545_v33 = vmul.f32 %v2540_v2, %v7858_v17  ;;  %v3705_v46 = vld [vmem:[%s10051_s12 + $0x170] sm:$0xff]  ;;  %v3700_v2 = vld [vmem:[%s10051_s12 + $0x148] sm:$0xff] }
0x1067   :  { %v2557_v1 = vpop.permute.xlu2 %2556 }
0x1068   :  { %v2565_v44 = vmul.f32 %v2557_v1, %v2545_v33  ;;  %v3719_v33 = vld [vmem:[%s10051_s12 + $0x1e0] sm:$0xff] }
0x1077   :  { %v2555_v21 = vpop.permute.xlu0 %2554 }
0x1078   :  { %v2564_v36 = vmul.f32 %v2555_v21, %v2544_v41 }
0x107a   :  { %v2567_v34 = vpack.c.bf16 %v2565_v44, %v2564_v36 }
0x107c   :  { %6021 = vmatmul.msk.bf16.gmra.mxu1 %vm1357_vm10, %v2567_v34 }
0x10a6   :  { %v2616_v29 = vpop.f32.mrf.mxu1 }
0x10a7   :  { %v7886_v49 = vadd.f32 %v2616_v29, %v7801_v63  ;;  %v3722_v63 = vld [vmem:[%s10051_s12 + $0x1f8] sm:$0xff] }
0x10ae   :  { %v2618_v37 = vpop.f32.mrf.mxu1 }
0x10af   :  { %v7869_v23 = vadd.f32 %v2618_v37, %v7807_v50  ;;  %v3687_v37 = vld [vmem:[%s10051_s12 + $0xe0] sm:$0xff] }
0x10b1   :  { %v2631_v10 = vmul.f32 %v7869_v23, %v7869_v23 }
0x10b3   :  { %v2637_v20 = vsel %vm108_vm0, %v2631_v10, 0.0  ;;  %v3685_v10 = vld [vmem:[%s10051_s12 + $0xd0] sm:$0xff] }
0x10b4   :  { %2638 = vadd.xlane.f32.xlu2 %v2637_v20  ;;  %v2815_v20 = vld [vmem:[%s10050_s11 + $0xe8] sm:$0xff] }
0x10cc   :  { %3800 = vperm.xlu2 %6255, %v3674_v5  }
0x10d4   :  { %3795 = vperm.xlu2 %6255, %v3673_v16  }
0x10dc   :  { %3950 = vperm.xlu2 %6255, %v3704_v60   ;;  %v3715_v60 = vld [vmem:[%s10051_s12 + $0x1c0] sm:$0xff] }
0x10e4   :  { %3790 = vperm.xlu2 %6255, %v3672_v53   ;;  %v3666_v53 = vld [vmem:[%s10051_s12 + $0x38] sm:$0xff] }
0x10ec   :  { %4030 = vperm.xlu2 %6255, %v3720_v38   ;;  %v3696_v38 = vld [vmem:[%s10051_s12 + $0x128] sm:$0xff] }
0x10f4   :  { %3940 = vperm.xlu2 %6255, %v3702_v6   ;;  %v3693_v6 = vld [vmem:[%s10051_s12 + $0x110] sm:$0xff] }
0x10f9   :  { %v2621_v17 = vpop.f32.mrf.mxu1 }
0x10fa   :  { %v7875_v12 = vadd.f32 %v2621_v17, %v7813_v55  ;;  %v2630_v55 = vmul.f32 %v7886_v49, %v7886_v49 }
0x10fc   :  { %v2632_v54 = vmul.f32 %v7875_v12, %v7875_v12  ;;  %v2634_v56 = vsel %vm108_vm0, %v2630_v55, 0.0  ;;  %3865 = vperm.xlu2 %6255, %v3687_v37   ;;  %v4440_v37 = vld [vmem:[%s10053_s14 + $0x68] sm:$0xff] }
0x10fe   :  { %v2640_v28 = vsel %vm108_vm0, %v2632_v54, 0.0 }
0x10ff   :  { %2641 = vadd.xlane.f32.xlu1 %v2640_v28 }
0x1101   :  { %v2623_v7 = vpop.f32.mrf.mxu1 }
0x1102   :  { %v7881_v50 = vadd.f32 %v2623_v7, %v7819_v27  ;;  %v3706_v27 = vld [vmem:[%s10051_s12 + $0x178] sm:$0xff]  ;;  %v3701_v7 = vld [vmem:[%s10051_s12 + $0x150] sm:$0xff] }
0x1104   :  { %v2633_v47 = vmul.f32 %v7881_v50, %v7881_v50 }
0x1106   :  { %v2643_v11 = vsel %vm108_vm0, %v2633_v47, 0.0 }
0x1107   :  { %2644 = vadd.xlane.f32.xlu0 %v2643_v11 }
0x110f   :  { %2635 = vadd.xlane.f32.xlu0 %v2634_v56 }
0x1118   :  { %3960 = vperm.xlu1 %6254, %v3706_v27  }
0x1120   :  { %4040 = vperm.xlu1 %6254, %v3722_v63  }
0x1123   :  { %3955 = vperm.xlu0 %6256, %v3705_v46   ;;  %v3716_v46 = vld [vmem:[%s10051_s12 + $0x1c8] sm:$0xff] }
0x1127   :  { %v2639_v15 = vpop.xlane.xlu2 %2638 }
0x1128   :  { %3880 = vperm.xlu1 %6254, %v3690_v58   ;;  %v2647_v19 = vmul.f32 %v2639_v15, %v6710_v30  ;;  %v2698_v15 = vld [vmem:[%s10047_s8] sm:$0xf] }
0x112a   :  { %v7920_v13 = vadd.f32 1e-06, %v2647_v19  ;;  %v3717_v19 = vld [vmem:[%s10051_s12 + $0x1d0] sm:$0xff] }
0x112b   :  { %3875 = vperm.xlu0 %6256, %v3689_v18   ;;  %v3683_v18 = vld [vmem:[%s10051_s12 + $0xc0] sm:$0xff] }
0x112c   :  { %6451 = vrsqrt.f32 %v7920_v13  ;;  %vm2670_vm3 = vweird.f32 %v7920_v13 }
0x1130   :  { %4035 = vperm.xlu1 %6254, %v3721_v61   ;;  %v3669_v61 = vld [vmem:[%s10051_s12 + $0x50] sm:$0xff] }
0x1131   :  { %3775 = vperm.xlu2 %6255, %v3669_v61   ;;  %v2790_v61 = vld [vmem:[%s10050_s11 + $0x20] sm:$0xff] }
0x1132   :  { %v7936_v0 = vpop.eup %6451 }
0x1133   :  { %v2665_v43 = vmul.f32 %v7936_v0, %v7920_v13  ;;  %3785 = vperm.xlu0 %6256, %v3671_v32   ;;  %vm2671_vm9 = vweird.f32 %v7936_v0  ;;  %v3697_v13 = vld [vmem:[%s10051_s12 + $0x130] sm:$0xff]  ;;  %v3679_v32 = vld [vmem:[%s10051_s12 + $0xa0] sm:$0xff] }
0x1134   :  { %vm2672_vm4 = vmor %vm2670_vm3, %vm2671_vm9 }
0x1135   :  { %v2666_v22 = vmul.f32 %v7936_v0, %v2665_v43  ;;  %v3713_v43 = vld [vmem:[%s10051_s12 + $0x1b0] sm:$0xff] }
0x1137   :  { %v2667_v31 = vmul.f32 0.5, %v2666_v22  ;;  %v3663_v22 = vld [vmem:[%s10051_s12 + $0x20] sm:$0xff] }
0x1138   :  { %3945 = vperm.xlu1 %6254, %v3703_v14  }
0x1139   :  { %v2668_v21 = vsub.f32 1.5, %v2667_v31  ;;  %4015 = vperm.xlu2 %6255, %v3717_v19   ;;  %v3710_v31 = vld [vmem:[%s10051_s12 + $0x198] sm:$0xff]  ;;  %v4453_v19 = vld [vmem:[%s10053_s14 + $0xd0] sm:$0xff] }
0x113b   :  { %4025 = vperm.xlu0 %6256, %v3719_v33   ;;  %v2669_v28 = vmul.f32 %v7936_v0, %v2668_v21  ;;  %v3676_v33 = vld [vmem:[%s10051_s12 + $0x88] sm:$0xff]  ;;  %v4442_v21 = vld [vmem:[%s10053_s14 + $0x78] sm:$0xff] }
0x113d   :  { %v2673_v27 = vsel %vm2672_vm4, %v7936_v0, %v2669_v28  ;;  %v2813_v0 = vld [vmem:[%s10050_s11 + $0xd8] sm:$0xff]  ;;  %v4456_v28 = vld [vmem:[%s10053_s14 + $0xe8] sm:$0xff] }
0x113e   :  { %v2695_v5 = vmul.f32 %v2673_v27, %v7869_v23  ;;  %v2817_v27 = vld [vmem:[%s10050_s11 + $0xf8] sm:$0xff] }
0x1140   :  { %3870 = vperm.xlu1 %6254, %v3688_v25   ;;  %v3699_v25 = vld [vmem:[%s10051_s12 + $0x140] sm:$0xff] }
0x1141   :  { %3925 = vperm.xlu2 %6255, %v3699_v25   ;;  %v4455_v25 = vld [vmem:[%s10053_s14 + $0xe0] sm:$0xff] }
0x1143   :  { %3935 = vperm.xlu0 %6256, %v3701_v7   ;;  %v2788_v7 = vld [vmem:[%s10050_s11 + $0x10] sm:$0xff] }
0x1148   :  { %3780 = vperm.xlu1 %6254, %v3670_v3   ;;  %v3664_v3 = vld [vmem:[%s10051_s12 + $0x28] sm:$0xff] }
0x1150   :  { %4020 = vperm.xlu1 %6254, %v3718_v57   ;;  %v3694_v57 = vld [vmem:[%s10051_s12 + $0x118] sm:$0xff] }
0x1158   :  { %3930 = vperm.xlu1 %6254, %v3700_v2   ;;  %v3691_v2 = vld [vmem:[%s10051_s12 + $0x100] sm:$0xff] }
0x1160   :  { %3855 = vperm.xlu1 %6254, %v3685_v10   ;;  %v2787_v10 = vld [vmem:[%s10050_s11 + $0x8] sm:$0xff] }
0x1172   :  { %v2642_v42 = vpop.xlane.xlu1 %2641 }
0x1173   :  { %v2648_v40 = vmul.f32 %v2642_v42, %v6710_v30  ;;  %v3684_v42 = vld [vmem:[%s10051_s12 + $0xc8] sm:$0xff] }
0x1174   :  { %3850 = vperm.xlu2 %6255, %v3684_v42   ;;  %v4437_v42 = vld [vmem:[%s10053_s14 + $0x50] sm:$0xff] }
0x1175   :  { %v2652_v8 = vadd.f32 1e-06, %v2648_v40  ;;  %v3682_v40 = vld [vmem:[%s10051_s12 + $0xb8] sm:$0xff] }
0x1177   :  { %6453 = vrsqrt.f32 %v2652_v8  ;;  %vm2680_vm11 = vweird.f32 %v2652_v8 }
0x117a   :  { %v2645_v59 = vpop.xlane.xlu0 %2644 }
0x117b   :  { %v2649_v24 = vmul.f32 %v2645_v59, %v6710_v30  ;;  %v2850_v59 = vld [vmem:[%s10048_s9] sm:$0xf] }
0x117c   :  { %3760 = vperm.xlu2 %6255, %v3666_v53   ;;  %6178 = vmatpush.xpose.msk.msra.mxu3 %vm450_vm14, %v2850_v59  ;;  %v2820_v53 = vld [vmem:[%s10050_s11 + $0x110] sm:$0xff] }
0x117d   :  { %v6454_v26 = vpop.eup %6453  ;;  %v2653_v9 = vadd.f32 1e-06, %v2649_v24  ;;  %v3714_v24 = vld [vmem:[%s10051_s12 + $0x1b8] sm:$0xff] }
0x117e   :  { %v2675_v51 = vmul.f32 %v6454_v26, %v2652_v8  ;;  %vm2681_vm10 = vweird.f32 %v6454_v26  ;;  %v3698_v8 = vld [vmem:[%s10051_s12 + $0x138] sm:$0xff] }
0x117f   :  { %6455 = vrsqrt.f32 %v2653_v9  ;;  %vm7968_vm12 = vmor %vm2680_vm11, %vm2681_vm10  ;;  %vm2690_vm13 = vweird.f32 %v2653_v9  ;;  %6051 = vmatmul.msk.f32.vlgmr.msra.gmra.mxu3 %vm450_vm14, %v2813_v0  ;;  %v4490_v0 = vld [vmem:[%s10053_s14 + $0x1f8] sm:$0xff] }
0x1180   :  { %v2676_v52 = vmul.f32 %v6454_v26, %v2675_v51  ;;  %v3681_v51 = vld [vmem:[%s10051_s12 + $0xb0] sm:$0xff] }
0x1182   :  { %v2636_v45 = vpop.xlane.xlu0 %2635  ;;  %v2677_v4 = vmul.f32 0.5, %v2676_v52  ;;  %v3695_v52 = vld [vmem:[%s10051_s12 + $0x120] sm:$0xff] }
0x1183   :  { %v2646_v62 = vmul.f32 %v2636_v45, %v6710_v30  ;;  %v3661_v45 = vld [vmem:[%s10051_s12 + $0x10] sm:$0xff] }
0x1184   :  { %v2678_v41 = vsub.f32 1.5, %v2677_v4  ;;  %4000 = vperm.xlu2 %6255, %v3714_v24   ;;  %v3711_v4 = vld [vmem:[%s10051_s12 + $0x1a0] sm:$0xff]  ;;  %v4488_v24 = vld [vmem:[%s10053_s14 + $0x1e8] sm:$0xff] }
0x1185   :  { %v6456_v48 = vpop.eup %6455  ;;  %v2650_v39 = vadd.f32 1e-06, %v2646_v62  ;;  %v3680_v62 = vld [vmem:[%s10051_s12 + $0xa8] sm:$0xff] }
0x1186   :  { %v2685_v1 = vmul.f32 %v6456_v48, %v2653_v9  ;;  %vm2691_vm8 = vweird.f32 %v6456_v48  ;;  %v2679_v34 = vmul.f32 %v6454_v26, %v2678_v41  ;;  %v3665_v9 = vld [vmem:[%s10051_s12 + $0x30] sm:$0xff]  ;;  %v3692_v41 = vld [vmem:[%s10051_s12 + $0x108] sm:$0xff] }
0x1187   :  { %6457 = vrsqrt.f32 %v2650_v39  ;;  %vm2692_vm2 = vmor %vm2690_vm13, %vm2691_vm8  ;;  %vm2660_vm6 = vweird.f32 %v2650_v39 }
0x1188   :  { %v2686_v30 = vmul.f32 %v6456_v48, %v2685_v1  ;;  %v2683_v55 = vsel %vm7968_vm12, %v6454_v26, %v2679_v34  ;;  %v3712_v26 = vld [vmem:[%s10051_s12 + $0x1a8] sm:$0xff]  ;;  %v3678_v1 = vld [vmem:[%s10051_s12 + $0x98] sm:$0xff]  ;;  %v2814_v34 = vld [vmem:[%s10050_s11 + $0xe0] sm:$0xff] }
0x1189   :  { %v2696_v63 = vmul.f32 %v2683_v55, %v7875_v12  ;;  %v3686_v12 = vld [vmem:[%s10051_s12 + $0xd8] sm:$0xff]  ;;  %6052 = vmatmul.msk.f32.gmra.mxu3 %vm450_vm14, %v2814_v34  ;;  %v4441_v55 = vld [vmem:[%s10053_s14 + $0x70] sm:$0xff] }
0x118a   :  { %v2687_v44 = vmul.f32 0.5, %v2686_v30  ;;  %3860 = vperm.xlu0 %6256, %v3686_v12   ;;  %v3660_v30 = vld [vmem:[%s10051_s12 + $0x8] sm:$0xff]  ;;  %v4439_v12 = vld [vmem:[%s10053_s14 + $0x60] sm:$0xff]  ;;  %v2728_v34 = vld [vmem:[%s10049_s10 + $0x30] sm:$0xff] }
0x118c   :  { %v2688_v36 = vsub.f32 1.5, %v2687_v44  ;;  %3910 = vperm.xlu2 %6255, %v3696_v38   ;;  %v3677_v44 = vld [vmem:[%s10051_s12 + $0x90] sm:$0xff]  ;;  %v4436_v38 = vld [vmem:[%s10053_s14 + $0x48] sm:$0xff] }
0x118d   :  { %v6458_v29 = vpop.eup %6457 }
0x118e   :  { %v2689_v17 = vmul.f32 %v6456_v48, %v2688_v36  ;;  %v2655_v54 = vmul.f32 %v6458_v29, %v2650_v39  ;;  %vm2661_vm5 = vweird.f32 %v6458_v29  ;;  %v3662_v39 = vld [vmem:[%s10051_s12 + $0x18] sm:$0xff]  ;;  %v2786_v36 = vld [vmem:[%s10050_s11] sm:$0xff] }
0x118f   :  { %vm2662_vm7 = vmor %vm2660_vm6, %vm2661_vm5 }
0x1190   :  { %v2656_v47 = vmul.f32 %v6458_v29, %v2655_v54  ;;  %v2693_v11 = vsel %vm2692_vm2, %v6456_v48, %v2689_v17  ;;  %v3709_v48 = vld [vmem:[%s10051_s12 + $0x190] sm:$0xff]  ;;  %v3659_v17 = vld [vmem:[%s10051_s12] sm:$0xff] }
0x1191   :  { %v2697_v56 = vmul.f32 %v2693_v11, %v7881_v50  ;;  %v3667_v50 = vld [vmem:[%s10051_s12 + $0x40] sm:$0xff]  ;;  %6053 = vmatmul.msk.f32.gmra.mxu3 %vm450_vm14, %v2815_v20  ;;  %v2797_v20 = vld [vmem:[%s10050_s11 + $0x58] sm:$0xff] }
0x1192   :  { %v2657_v35 = vmul.f32 0.5, %v2656_v47  ;;  %3765 = vperm.xlu1 %6254, %v3667_v50   ;;  %v3707_v54 = vld [vmem:[%s10051_s12 + $0x180] sm:$0xff]  ;;  %v2816_v47 = vld [vmem:[%s10050_s11 + $0xf0] sm:$0xff] }
0x1193   :  { %2714 = vmatpush.msrb.mxu1 %v2697_v56  ;;  %v3675_v11 = vld [vmem:[%s10051_s12 + $0x80] sm:$0xff]  ;;  %v4474_v56 = vld [vmem:[%s10053_s14 + $0x178] sm:$0xff] }
0x1194   :  { %v2658_v58 = vsub.f32 1.5, %v2657_v35  ;;  %3835 = vperm.xlu2 %6255, %v3681_v51   ;;  %v2789_v35 = vld [vmem:[%s10050_s11 + $0x18] sm:$0xff]  ;;  %v2818_v50 = vld [vmem:[%s10050_s11 + $0x100] sm:$0xff]  ;;  %v4472_v51 = vld [vmem:[%s10053_s14 + $0x168] sm:$0xff] }
0x1195   :  { %2715 = vmatpush.msrb.mxu1 %v2696_v63  ;;  %v4458_v63 = vld [vmem:[%s10053_s14 + $0xf8] sm:$0xff] }
0x1196   :  { %v2659_v16 = vmul.f32 %v6458_v29, %v2658_v58  ;;  %v4457_v58 = vld [vmem:[%s10053_s14 + $0xf0] sm:$0xff] }
0x1197   :  { %2716 = vmatpush.msrb.mxu1 %v2695_v5  ;;  %v4473_v5 = vld [vmem:[%s10053_s14 + $0x170] sm:$0xff] }
0x1198   :  { %v2663_v14 = vsel %vm2662_vm7, %v6458_v29, %v2659_v16  ;;  %v3708_v29 = vld [vmem:[%s10051_s12 + $0x188] sm:$0xff] }
0x1199   :  { %v2694_v23 = vmul.f32 %v2663_v14, %v7886_v49  ;;  %v3668_v49 = vld [vmem:[%s10051_s12 + $0x48] sm:$0xff]  ;;  %6054 = vmatmul.msk.f32.gmra.mxu3 %vm450_vm14, %v2816_v47  ;;  %v2722_v14 = vld [vmem:[%s10049_s10] sm:$0xff]  ;;  %v4469_v47 = vld [vmem:[%s10053_s14 + $0x150] sm:$0xff] }
0x119a   :  { %4005 = vperm.xlu1 %6254, %v3715_v60   ;;  %3770 = vperm.xlu0 %6256, %v3668_v49   ;;  %v2791_v60 = vld [vmem:[%s10050_s11 + $0x28] sm:$0xff] }
0x119b   :  { %2717 = vmatpush.msrb.mxu1 %v2694_v23  ;;  %v2750_v23 = vld [vmem:[%s10049_s10 + $0xe0] sm:$0xff]  ;;  %v2819_v49 = vld [vmem:[%s10050_s11 + $0x108] sm:$0xff] }
0x119c   :  { %6022 = vmatmul.msk.f32.vlgmr.msrb.gmra.mxu1 %vm108_vm0, %v2698_v15  ;;  %3745 = vperm.xlu2 %6255, %v3663_v22   ;;  %v4438_v15 = vld [vmem:[%s10053_s14 + $0x58] sm:$0xff]  ;;  %v2822_v22 = vld [vmem:[%s10050_s11 + $0x120] sm:$0xff] }
0x119d   :  { %6023 = vmatpush.xpose.msk.msra.mxu1 %vm450_vm14, %v2850_v59  ;;  %v2752_v59 = vld [vmem:[%s10049_s10 + $0xf0] sm:$0xff] }
0x11a1   :  { %6055 = vmatmul.msk.f32.gmra.mxu3 %vm450_vm14, %v2817_v27  ;;  %v2730_v27 = vld [vmem:[%s10049_s10 + $0x40] sm:$0xff] }
0x11a2   :  { %3915 = vperm.xlu1 %6254, %v3697_v13   ;;  %4010 = vperm.xlu0 %6256, %v3716_v46   ;;  %v2723_v13 = vld [vmem:[%s10049_s10 + $0x8] sm:$0xff] }
0x11a3   :  { %v2751_v46 = vld [vmem:[%s10049_s10 + $0xe8] sm:$0xff] }
0x11a4   :  { %3985 = vperm.xlu2 %6255, %v3711_v4   ;;  %6024 = vmatmul.msk.f32.vlgmr.msra.gmra.mxu1 %vm450_vm14, %v2786_v36  ;;  %v2754_v4 = vld [vmem:[%s10049_s10 + $0x100] sm:$0xff] }
0x11a5   :  { %v4451_v36 = vld [vmem:[%s10053_s14 + $0xc0] sm:$0xff] }
0x11a9   :  { %6056 = vmatmul.msk.f32.gmra.mxu3 %vm450_vm14, %v2818_v50  ;;  %v2827_v50 = vld [vmem:[%s10050_s11 + $0x148] sm:$0xff] }
0x11aa   :  { %3840 = vperm.xlu1 %6254, %v3682_v40   ;;  %3920 = vperm.xlu0 %6256, %v3698_v8   ;;  %v4435_v40 = vld [vmem:[%s10053_s14 + $0x40] sm:$0xff]  ;;  %v2792_v8 = vld [vmem:[%s10050_s11 + $0x30] sm:$0xff] }
0x11ac   :  { %3895 = vperm.xlu2 %6255, %v3693_v6   ;;  %6025 = vmatmul.msk.f32.gmra.mxu1 %vm450_vm14, %v2787_v10  ;;  %v2795_v6 = vld [vmem:[%s10050_s11 + $0x48] sm:$0xff]  ;;  %v4485_v10 = vld [vmem:[%s10053_s14 + $0x1d0] sm:$0xff] }
0x11b1   :  { %6057 = vmatmul.msk.f32.gmra.mxu3 %vm450_vm14, %v2819_v49  ;;  %v4448_v49 = vld [vmem:[%s10053_s14 + $0xa8] sm:$0xff] }
0x11b2   :  { %3750 = vperm.xlu1 %6254, %v3664_v3   ;;  %3845 = vperm.xlu0 %6256, %v3683_v18   ;;  %v4454_v3 = vld [vmem:[%s10053_s14 + $0xd8] sm:$0xff]  ;;  %v2724_v18 = vld [vmem:[%s10049_s10 + $0x10] sm:$0xff] }
0x11b4   :  { %3820 = vperm.xlu2 %6255, %v3678_v1   ;;  %6026 = vmatmul.msk.f32.gmra.mxu1 %vm450_vm14, %v2788_v7  ;;  %v2727_v1 = vld [vmem:[%s10049_s10 + $0x28] sm:$0xff]  ;;  %v2757_v7 = vld [vmem:[%s10049_s10 + $0x118] sm:$0xff] }
0x11b9   :  { %6058 = vmatmul.msk.f32.gmra.mxu3 %vm450_vm14, %v2820_v53  ;;  %v2829_v53 = vld [vmem:[%s10050_s11 + $0x158] sm:$0xff] }
0x11ba   :  { %3990 = vperm.xlu1 %6254, %v3712_v26   ;;  %3755 = vperm.xlu0 %6256, %v3665_v9   ;;  %v2793_v26 = vld [vmem:[%s10050_s11 + $0x38] sm:$0xff] }
0x11bb   :  { %v2821_v9 = vld [vmem:[%s10050_s11 + $0x118] sm:$0xff] }
0x11bc   :  { %3730 = vperm.xlu2 %6255, %v3660_v30   ;;  %6027 = vmatmul.msk.f32.gmra.mxu1 %vm450_vm14, %v2789_v35  ;;  %v4432_v30 = vld [vmem:[%s10053_s14 + $0x28] sm:$0xff]  ;;  %v4486_v35 = vld [vmem:[%s10053_s14 + $0x1d8] sm:$0xff] }
0x11c1   :  { %6059 = vmatmul.msk.f32.gmra.mxu3 %vm450_vm14, %v2821_v9  ;;  %v8487_v9 = vpop.permute.xlu1 %3960 }
0x11c2   :  { %3900 = vperm.xlu1 %6254, %v3694_v57   ;;  %3995 = vperm.xlu0 %6256, %v3713_v43   ;;  %v2725_v57 = vld [vmem:[%s10049_s10 + $0x18] sm:$0xff] }
0x11c3   :  { %v2753_v43 = vld [vmem:[%s10049_s10 + $0xf8] sm:$0xff] }
0x11c4   :  { %3970 = vperm.xlu2 %6255, %v3708_v29   ;;  %6028 = vmatmul.msk.f32.gmra.mxu1 %vm450_vm14, %v2790_v61  ;;  %v2756_v29 = vld [vmem:[%s10049_s10 + $0x110] sm:$0xff]  ;;  %v2799_v61 = vld [vmem:[%s10050_s11 + $0x68] sm:$0xff] }
0x11c9   :  { %6060 = vmatmul.msk.f32.gmra.mxu3 %vm450_vm14, %v2822_v22  ;;  %v4483_v22 = vld [vmem:[%s10053_s14 + $0x1c0] sm:$0xff] }
0x11ca   :  { %3825 = vperm.xlu1 %6254, %v3679_v32   ;;  %3905 = vperm.xlu0 %6256, %v3695_v52   ;;  %v4470_v32 = vld [vmem:[%s10053_s14 + $0x158] sm:$0xff]  ;;  %v2794_v52 = vld [vmem:[%s10050_s11 + $0x40] sm:$0xff] }
0x11cc   :  { %3965 = vperm.xlu2 %6255, %v3707_v54   ;;  %6029 = vmatmul.msk.f32.gmra.mxu1 %vm450_vm14, %v2791_v60  ;;  %v4433_v54 = vld [vmem:[%s10053_s14 + $0x30] sm:$0xff] }
0x11cd   :  { %v2828_v60 = vld [vmem:[%s10050_s11 + $0x150] sm:$0xff] }
0x11d2   :  { %3735 = vperm.xlu1 %6254, %v3661_v45   ;;  %3830 = vperm.xlu0 %6256, %v3680_v62   ;;  %v4489_v45 = vld [vmem:[%s10053_s14 + $0x1f0] sm:$0xff]  ;;  %v2726_v62 = vld [vmem:[%s10049_s10 + $0x20] sm:$0xff] }
0x11d4   :  { %4563 = vperm.xlu2 %6255, %v4441_v55   ;;  %6030 = vmatmul.msk.f32.gmra.mxu1 %vm450_vm14, %v2792_v8  ;;  %v2798_v55 = vld [vmem:[%s10050_s11 + $0x60] sm:$0xff]  ;;  %v2801_v8 = vld [vmem:[%s10050_s11 + $0x78] sm:$0xff] }
0x11da   :  { %3975 = vperm.xlu1 %6254, %v3709_v48   ;;  %3740 = vperm.xlu0 %6256, %v3662_v39   ;;  %v4452_v48 = vld [vmem:[%s10053_s14 + $0xc8] sm:$0xff]  ;;  %v4450_v39 = vld [vmem:[%s10053_s14 + $0xb8] sm:$0xff] }
0x11dc   :  { %4643 = vperm.xlu2 %6255, %v4457_v58   ;;  %6031 = vmatmul.msk.f32.gmra.mxu1 %vm450_vm14, %v2793_v26  ;;  %v4449_v58 = vld [vmem:[%s10053_s14 + $0xb0] sm:$0xff]  ;;  %v4464_v26 = vld [vmem:[%s10053_s14 + $0x128] sm:$0xff] }
0x11e2   :  { %3885 = vperm.xlu1 %6254, %v3691_v2   ;;  %3980 = vperm.xlu0 %6256, %v3710_v31   ;;  %v2823_v2 = vld [vmem:[%s10050_s11 + $0x128] sm:$0xff]  ;;  %v4471_v31 = vld [vmem:[%s10053_s14 + $0x160] sm:$0xff] }
0x11e3   :  { %6061 = vmatmul.msk.f32.gmra.mxu3 %vm450_vm14, %v2823_v2  ;;  %v2763_v2 = vld [vmem:[%s10049_s10 + $0x148] sm:$0xff] }
0x11e4   :  { %4548 = vperm.xlu2 %6255, %v4438_v15   ;;  %6032 = vmatmul.msk.f32.gmra.mxu1 %vm450_vm14, %v2794_v52  ;;  %v4429_v15 = vld [vmem:[%s10053_s14 + $0x10] sm:$0xff]  ;;  %v2830_v52 = vld [vmem:[%s10050_s11 + $0x160] sm:$0xff] }
0x11ea   :  { %3810 = vperm.xlu1 %6254, %v3676_v33   ;;  %3890 = vperm.xlu0 %6256, %v3692_v41   ;;  %v2755_v33 = vld [vmem:[%s10049_s10 + $0x108] sm:$0xff]  ;;  %v4434_v41 = vld [vmem:[%s10053_s14 + $0x38] sm:$0xff] }
0x11ec   :  { %4543 = vperm.xlu2 %6255, %v4437_v42   ;;  %6033 = vmatmul.msk.f32.gmra.mxu1 %vm450_vm14, %v2795_v6  ;;  %v4482_v42 = vld [vmem:[%s10053_s14 + $0x1b8] sm:$0xff]  ;;  %v2735_v6 = vld [vmem:[%s10049_s10 + $0x68] sm:$0xff] }
0x11f2   :  { %4568 = vperm.xlu1 %6254, %v4442_v21   ;;  %3815 = vperm.xlu0 %6256, %v3677_v44   ;;  %v2796_v21 = vld [vmem:[%s10050_s11 + $0x50] sm:$0xff] }
0x11f3   :  { %v2824_v44 = vld [vmem:[%s10050_s11 + $0x130] sm:$0xff] }
0x11f4   :  { %4808 = vperm.xlu2 %6255, %v4490_v0   ;;  %6034 = vmatmul.msk.f32.gmra.mxu1 %vm450_vm14, %v2796_v21 }
0x11f5   :  { %6062 = vmatmul.msk.f32.gmra.mxu3 %vm450_vm14, %v2824_v44 }
0x11fa   :  { %4558 = vperm.xlu1 %6254, %v4440_v37   ;;  %3725 = vperm.xlu0 %6256, %v3659_v17   ;;  %v4487_v37 = vld [vmem:[%s10053_s14 + $0x1e0] sm:$0xff]  ;;  %v2825_v17 = vld [vmem:[%s10050_s11 + $0x138] sm:$0xff] }
0x11fc   :  { %4718 = vperm.xlu2 %6255, %v4472_v51   ;;  %6035 = vmatmul.msk.f32.gmra.mxu1 %vm450_vm14, %v2797_v20  ;;  %v2762_v51 = vld [vmem:[%s10049_s10 + $0x140] sm:$0xff] }
0x11fd   :  { %6063 = vmatmul.msk.f32.gmra.mxu3 %vm450_vm14, %v2825_v17  ;;  %v4445_v17 = vld [vmem:[%s10053_s14 + $0x90] sm:$0xff] }
0x1202   :  { %4638 = vperm.xlu1 %6254, %v4456_v28   ;;  %3805 = vperm.xlu0 %6256, %v3675_v11   ;;  %v2729_v28 = vld [vmem:[%s10049_s10 + $0x38] sm:$0xff]  ;;  %v4467_v11 = vld [vmem:[%s10053_s14 + $0x140] sm:$0xff]  ;;  %v8479_v0 = vpop.f32.mrf.mxu3 }
0x1203   :  { %10076 = vst [vmem:[#allocation9_spill] sm:$0xff] %v8479_v0 }
0x1204   :  { %4618 = vperm.xlu2 %6255, %v4452_v48   ;;  %6036 = vmatmul.msk.f32.gmra.mxu1 %vm450_vm14, %v2798_v55  ;;  %v4444_v48 = vld [vmem:[%s10053_s14 + $0x88] sm:$0xff]  ;;  %v4461_v55 = vld [vmem:[%s10053_s14 + $0x110] sm:$0xff] }
0x120a   :  { %4728 = vperm.xlu1 %6254, %v4474_v56   ;;  %4648 = vperm.xlu0 %6256, %v4458_v63   ;;  %v2826_v56 = vld [vmem:[%s10050_s11 + $0x140] sm:$0xff] }
0x120b   :  { %v2758_v63 = vld [vmem:[%s10049_s10 + $0x120] sm:$0xff]  ;;  %6064 = vmatmul.msk.f32.gmra.mxu3 %vm450_vm14, %v2826_v56 }
0x120c   :  { %4528 = vperm.xlu2 %6255, %v4434_v41   ;;  %6037 = vmatmul.msk.f32.gmra.mxu1 %vm450_vm14, %v2799_v61  ;;  %v2803_v41 = vld [vmem:[%s10050_s11 + $0x88] sm:$0xff]  ;;  %v2833_v61 = vld [vmem:[%s10050_s11 + $0x178] sm:$0xff] }
0x1212   :  { %4723 = vperm.xlu1 %6254, %v4473_v5   ;;  %4553 = vperm.xlu0 %6256, %v4439_v12   ;;  %v4447_v5 = vld [vmem:[%s10053_s14 + $0xa0] sm:$0xff]  ;;  %v2731_v12 = vld [vmem:[%s10049_s10 + $0x48] sm:$0xff] }
0x1213   :  { %6065 = vmatmul.msk.f32.gmra.mxu3 %vm450_vm14, %v2827_v50 }
0x1214   :  { %4793 = vperm.xlu2 %6255, %v4487_v37   ;;  %v2764_v37 = vld [vmem:[%s10049_s10 + $0x150] sm:$0xff] }
0x1219   :  { %v2719_v16 = vpop.f32.mrf.mxu1 }
0x121a   :  { %6088 = vmatpush.xpose.msk.msrb.mxu0 %vm108_vm0, %v2719_v16  ;;  %6179 = vmatpush.xpose.msk.msra.mxu2 %vm108_vm0, %v2719_v16  ;;  %v4468_v16 = vld [vmem:[%s10053_s14 + $0x148] sm:$0xff] }
0x121b   :  { %4623 = vperm.xlu1 %6254, %v4453_v19   ;;  %4633 = vperm.xlu0 %6256, %v4455_v25   ;;  %v2800_v19 = vld [vmem:[%s10050_s11 + $0x70] sm:$0xff] }
0x121c   :  { %4703 = vperm.xlu2 %6255, %v4469_v47   ;;  %v2732_v25 = vld [vmem:[%s10049_s10 + $0x50] sm:$0xff]  ;;  %6038 = vmatmul.msk.f32.gmra.mxu1 %vm450_vm14, %v2800_v19 }
0x121d   :  { %6089 = vmatmul.msk.f32.vlgmr.msrb.gmra.mxu0 %vm108_vm0, %v2722_v14  ;;  %6117 = vmatmul.msk.f32.vlgmr.msra.gmra.mxu2 %vm108_vm0, %v2750_v23  ;;  %v2759_v14 = vld [vmem:[%s10049_s10 + $0x128] sm:$0xff]  ;;  %v4431_v23 = vld [vmem:[%s10053_s14 + $0x20] sm:$0xff] }
0x121e   :  { %6066 = vmatmul.msk.f32.gmra.mxu3 %vm450_vm14, %v2828_v60  ;;  %v2738_v60 = vld [vmem:[%s10049_s10 + $0x80] sm:$0xff] }
0x1223   :  { %4533 = vperm.xlu1 %6254, %v4435_v40   ;;  %4628 = vperm.xlu0 %6256, %v4454_v3   ;;  %v8458_v40 = vpop.permute.xlu2 %3800  ;;  %v4430_v3 = vld [vmem:[%s10053_s14 + $0x18] sm:$0xff] }
0x1224   :  { %4603 = vperm.xlu2 %6255, %v4449_v58   ;;  %6039 = vmatmul.msk.f32.gmra.mxu1 %vm450_vm14, %v2801_v8  ;;  %v4427_v58 = vld [vmem:[%s10053_s14] sm:$0xff] }
0x1225   :  { %6090 = vmatmul.msk.f32.gmra.mxu0 %vm108_vm0, %v2723_v13  ;;  %6118 = vmatmul.msk.f32.gmra.mxu2 %vm108_vm0, %v2751_v46  ;;  %v2760_v13 = vld [vmem:[%s10049_s10 + $0x130] sm:$0xff]  ;;  %v4484_v46 = vld [vmem:[%s10053_s14 + $0x1c8] sm:$0xff] }
0x1226   :  { %6067 = vmatmul.msk.f32.gmra.mxu3 %vm450_vm14, %v2829_v53  ;;  %v4462_v53 = vld [vmem:[%s10053_s14 + $0x118] sm:$0xff] }
0x122b   :  { %4798 = vperm.xlu1 %6254, %v4488_v24   ;;  %4538 = vperm.xlu0 %6256, %v4436_v38   ;;  %v4466_v24 = vld [vmem:[%s10053_s14 + $0x138] sm:$0xff]  ;;  %v8489_v38 = vpop.f32.mrf.mxu1 }
0x122c   :  { %4513 = vperm.xlu2 %6255, %v4431_v23  }
0x122d   :  { %6091 = vmatmul.msk.f32.gmra.mxu0 %vm108_vm0, %v2724_v18  ;;  %6119 = vmatmul.msk.f32.gmra.mxu2 %vm108_vm0, %v2752_v59  ;;  %v2733_v18 = vld [vmem:[%s10049_s10 + $0x58] sm:$0xff] }
0x122e   :  { %v2761_v59 = vld [vmem:[%s10049_s10 + $0x138] sm:$0xff]  ;;  %6068 = vmatmul.msk.f32.gmra.mxu3 %vm450_vm14, %v2830_v52 }
0x1233   :  { %4708 = vperm.xlu1 %6254, %v4470_v32   ;;  %4803 = vperm.xlu0 %6256, %v4489_v45   ;;  %v2802_v32 = vld [vmem:[%s10050_s11 + $0x80] sm:$0xff]  ;;  %v8508_v45 = vpop.permute.xlu0 %3955 }
0x1234   :  { %4778 = vperm.xlu2 %6255, %v4484_v46   ;;  %6040 = vmatmul.msk.f32.gmra.mxu1 %vm450_vm14, %v2802_v32  ;;  %v2806_v46 = vld [vmem:[%s10050_s11 + $0xa0] sm:$0xff] }
0x1235   :  { %6092 = vmatmul.msk.f32.gmra.mxu0 %vm108_vm0, %v2725_v57  ;;  %6120 = vmatmul.msk.f32.gmra.mxu2 %vm108_vm0, %v2753_v43  ;;  %v8491_v57 = vpop.permute.xlu2 %3795  ;;  %v2734_v43 = vld [vmem:[%s10049_s10 + $0x60] sm:$0xff] }
0x123b   :  { %4608 = vperm.xlu1 %6254, %v4450_v39   ;;  %4713 = vperm.xlu0 %6256, %v4471_v31   ;;  %v8522_v39 = vpop.permute.xlu1 %4040  ;;  %v8530_v31 = vpop.f32.mrf.mxu1 }
0x123c   :  { %4688 = vperm.xlu2 %6255, %v4466_v24   ;;  %10077 = vst [vmem:[#allocation10_spill] sm:$0xff] %v8522_v39  ;;  %v8545_v21 = vpop.permute.xlu0 %3875  ;;  %6041 = vmatmul.msk.f32.gmra.mxu1 %vm450_vm14, %v2803_v41 }
0x123d   :  { %6093 = vmatmul.msk.f32.gmra.mxu0 %vm108_vm0, %v2726_v62  ;;  %6121 = vmatmul.msk.f32.gmra.mxu2 %vm108_vm0, %v2754_v4  ;;  %v8514_v62 = vpop.f32.mrf.mxu3  ;;  %v4446_v4 = vld [vmem:[%s10053_s14 + $0x98] sm:$0xff] }
0x1243   :  { %4518 = vperm.xlu1 %6254, %v4432_v30   ;;  %4613 = vperm.xlu0 %6256, %v4451_v36   ;;  %v2831_v30 = vld [vmem:[%s10050_s11 + $0x168] sm:$0xff]  ;;  %v8565_v20 = vpop.permute.xlu1 %3880 }
0x1244   :  { %4588 = vperm.xlu2 %6255, %v4446_v4   ;;  %6069 = vmatmul.msk.f32.gmra.mxu3 %vm450_vm14, %v2831_v30  ;;  %v4428_v36 = vld [vmem:[%s10053_s14 + $0x8] sm:$0xff]  ;;  %v8590_v56 = vpop.permute.xlu0 %3785 }
0x1245   :  { %6094 = vmatmul.msk.f32.gmra.mxu0 %vm108_vm0, %v2727_v1  ;;  %6122 = vmatmul.msk.f32.gmra.mxu2 %vm108_vm0, %v2755_v33  ;;  %v8532_v1 = vpop.permute.xlu2 %3950  ;;  %v4465_v33 = vld [vmem:[%s10053_s14 + $0x130] sm:$0xff]  ;;  %v8549_v44 = vpop.f32.mrf.mxu3  ;;  %v2807_v4 = vld [vmem:[%s10050_s11 + $0xa8] sm:$0xff] }
0x124b   :  { %4783 = vperm.xlu1 %6254, %v4485_v10   ;;  %4523 = vperm.xlu0 %6256, %v4433_v54   ;;  %v8563_v10 = vpop.f32.mrf.mxu1  ;;  %v2804_v54 = vld [vmem:[%s10050_s11 + $0x90] sm:$0xff]  ;;  %v8611_v50 = vpop.permute.xlu1 %4035 }
0x124c   :  { %4498 = vperm.xlu2 %6255, %v4428_v36   ;;  %6042 = vmatmul.msk.f32.gmra.mxu1 %vm450_vm14, %v2804_v54  ;;  %10078 = vst [vmem:[#allocation11_spill] sm:$0xff] %v8611_v50  ;;  %v2740_v36 = vld [vmem:[%s10049_s10 + $0x90] sm:$0xff] }
0x124d   :  { %6095 = vmatmul.msk.f32.gmra.mxu0 %vm108_vm0, %v2728_v34  ;;  %6123 = vmatmul.msk.f32.gmra.mxu2 %vm108_vm0, %v2756_v29  ;;  %v4443_v34 = vld [vmem:[%s10053_s14 + $0x80] sm:$0xff]  ;;  %v2736_v29 = vld [vmem:[%s10049_s10 + $0x70] sm:$0xff]  ;;  %v8582_v47 = vpop.f32.mrf.mxu3 }
0x124e   :  { %v2808_v54 = vld [vmem:[%s10050_s11 + $0xb0] sm:$0xff] }
0x1253   :  { %4693 = vperm.xlu1 %6254, %v4467_v11   ;;  %4788 = vperm.xlu0 %6256, %v4486_v35   ;;  %v4481_v11 = vld [vmem:[%s10053_s14 + $0x1b0] sm:$0xff]  ;;  %v2737_v35 = vld [vmem:[%s10049_s10 + $0x78] sm:$0xff] }
0x1254   :  { %4763 = vperm.xlu2 %6255, %v4481_v11  }
0x1255   :  { %6096 = vmatmul.msk.f32.gmra.mxu0 %vm108_vm0, %v2729_v28  ;;  %6124 = vmatmul.msk.f32.gmra.mxu2 %vm108_vm0, %v2757_v7  ;;  %v2832_v28 = vld [vmem:[%s10050_s11 + $0x170] sm:$0xff]  ;;  %v8578_v7 = vpop.permute.xlu2 %3790 }
0x1256   :  { %6070 = vmatmul.msk.f32.gmra.mxu3 %vm450_vm14, %v2832_v28  ;;  %v2836_v28 = vld [vmem:[%s10050_s11 + $0x190] sm:$0xff] }
0x125b   :  { %4593 = vperm.xlu1 %6254, %v4447_v5   ;;  %4698 = vperm.xlu0 %6256, %v4468_v16   ;;  %v2805_v5 = vld [vmem:[%s10050_s11 + $0x98] sm:$0xff]  ;;  %v8615_v16 = vpop.f32.mrf.mxu3 }
0x125c   :  { %6043 = vmatmul.msk.f32.gmra.mxu1 %vm450_vm14, %v2805_v5  ;;  %v2741_v5 = vld [vmem:[%s10049_s10 + $0x98] sm:$0xff] }
0x125d   :  { %6097 = vmatmul.msk.f32.gmra.mxu0 %vm108_vm0, %v2730_v27  ;;  %6125 = vmatmul.msk.f32.gmra.mxu2 %vm108_vm0, %v2758_v63  ;;  %v2765_v27 = vld [vmem:[%s10049_s10 + $0x158] sm:$0xff]  ;;  %v8598_v63 = vpop.f32.mrf.mxu1  ;;  %v8623_v23 = vpop.permute.xlu2 %4030 }
0x125e   :  { %6071 = vmatmul.msk.f32.gmra.mxu3 %vm450_vm14, %v2833_v61  ;;  %10079 = vst [vmem:[#allocation12_spill] sm:$0xff] %v8623_v23  ;;  %v2769_v61 = vld [vmem:[%s10049_s10 + $0x178] sm:$0xff] }
0x1263   :  { %4503 = vperm.xlu1 %6254, %v4429_v15   ;;  %4598 = vperm.xlu0 %6256, %v4448_v49   ;;  %v8625_v15 = vpop.permute.xlu0 %4025  ;;  %v2766_v49 = vld [vmem:[%s10049_s10 + $0x160] sm:$0xff]  ;;  %v8650_v8 = vpop.f32.mrf.mxu3 }
0x1264   :  { %10080 = vst [vmem:[#allocation13_spill] sm:$0xff] %v8625_v15  ;;  %6044 = vmatmul.msk.f32.gmra.mxu1 %vm450_vm14, %v2806_v46 }
0x1265   :  { %6098 = vmatmul.msk.f32.gmra.mxu0 %vm108_vm0, %v2731_v12  ;;  %6126 = vmatmul.msk.f32.gmra.mxu2 %vm108_vm0, %v2759_v14  ;;  %v4463_v12 = vld [vmem:[%s10053_s14 + $0x120] sm:$0xff]  ;;  %v4477_v14 = vld [vmem:[%s10053_s14 + $0x190] sm:$0xff]  ;;  %v8662_v24 = vpop.permute.xlu2 %3940 }
0x1266   :  { %4673 = vperm.xlu2 %6255, %v4463_v12   ;;  %10081 = vst [vmem:[#allocation14_spill] sm:$0xff] %v8662_v24 }
0x126b   :  { %4768 = vperm.xlu1 %6254, %v4482_v42   ;;  %4508 = vperm.xlu0 %6256, %v4430_v3   ;;  %v2834_v42 = vld [vmem:[%s10050_s11 + $0x180] sm:$0xff]  ;;  %v8672_v32 = vpop.permute.xlu0 %3935 }
0x126c   :  { %6072 = vmatmul.msk.f32.gmra.mxu3 %vm450_vm14, %v2834_v42  ;;  %v4475_v3 = vld [vmem:[%s10053_s14 + $0x180] sm:$0xff]  ;;  %10082 = vst [vmem:[#allocation15_spill] sm:$0xff] %v8672_v32  ;;  %6045 = vmatmul.msk.f32.gmra.mxu1 %vm450_vm14, %v2807_v4 }
0x126d   :  { %6099 = vmatmul.msk.f32.gmra.mxu0 %vm108_vm0, %v2732_v25  ;;  %6127 = vmatmul.msk.f32.gmra.mxu2 %vm108_vm0, %v2760_v13  ;;  %v8635_v25 = vpop.f32.mrf.mxu1  ;;  %v4480_v13 = vld [vmem:[%s10053_s14 + $0x1a8] sm:$0xff] }
0x126e   :  { %4668 = vperm.xlu2 %6255, %v4462_v53  }
0x1273   :  { %4678 = vperm.xlu1 %6254, %v4464_v26   ;;  %4773 = vperm.xlu0 %6256, %v4483_v22   ;;  %v4479_v22 = vld [vmem:[%s10053_s14 + $0x1a0] sm:$0xff]  ;;  %v8715_v11 = vpop.permute.xlu0 %3860 }
0x1274   :  { %10083 = vst [vmem:[#allocation16_spill] sm:$0xff] %v8715_v11  ;;  %6046 = vmatmul.msk.f32.gmra.mxu1 %vm450_vm14, %v2808_v54  ;;  %v2810_v54 = vld [vmem:[%s10050_s11 + $0xc0] sm:$0xff] }
0x1275   :  { %6100 = vmatmul.msk.f32.gmra.mxu0 %vm108_vm0, %v2733_v18  ;;  %6128 = vmatmul.msk.f32.gmra.mxu2 %vm108_vm0, %v2761_v59  ;;  %v8658_v18 = vpop.permute.xlu1 %3945  ;;  %v8674_v52 = vpop.f32.mrf.mxu1 }
0x127b   :  { %4578 = vperm.xlu1 %6254, %v4444_v48   ;;  %4683 = vperm.xlu0 %6256, %v4465_v33   ;;  %v2835_v48 = vld [vmem:[%s10050_s11 + $0x188] sm:$0xff] }
0x127c   :  { %6073 = vmatmul.msk.f32.gmra.mxu3 %vm450_vm14, %v2835_v48 }
0x127d   :  { %6101 = vmatmul.msk.f32.gmra.mxu0 %vm108_vm0, %v2734_v43  ;;  %6129 = vmatmul.msk.f32.gmra.mxu2 %vm108_vm0, %v2762_v51  ;;  %v2739_v43 = vld [vmem:[%s10049_s10 + $0x88] sm:$0xff]  ;;  %v3871_v41 = vpop.permute.xlu1 %3870 }
0x127e   :  { %v2767_v51 = vld [vmem:[%s10049_s10 + $0x168] sm:$0xff] }
0x1283   :  { %4573 = vperm.xlu1 %6254, %v4443_v34   ;;  %4583 = vperm.xlu0 %6256, %v4445_v17   ;;  %v2768_v34 = vld [vmem:[%s10049_s10 + $0x170] sm:$0xff]  ;;  %v4460_v17 = vld [vmem:[%s10053_s14 + $0x108] sm:$0xff] }
0x1284   :  { %6074 = vmatmul.msk.f32.gmra.mxu3 %vm450_vm14, %v2836_v28 }
0x1285   :  { %6102 = vmatmul.msk.f32.gmra.mxu0 %vm108_vm0, %v2735_v6  ;;  %6130 = vmatmul.msk.f32.gmra.mxu2 %vm108_vm0, %v2763_v2  ;;  %v8689_v6 = vpop.f32.mrf.mxu3  ;;  %v4478_v2 = vld [vmem:[%s10053_s14 + $0x198] sm:$0xff]  ;;  %v8732_v12 = vpop.permute.xlu1 %3780 }
0x1286   :  { %4748 = vperm.xlu2 %6255, %v4478_v2   ;;  %v2742_v2 = vld [vmem:[%s10049_s10 + $0xa0] sm:$0xff] }
0x128b   :  { %4663 = vperm.xlu1 %6254, %v4461_v55   ;;  %4493 = vperm.xlu0 %6256, %v4427_v58  }
0x128d   :  { %6103 = vmatmul.msk.f32.gmra.mxu0 %vm108_vm0, %v2736_v29  ;;  %6131 = vmatmul.msk.f32.gmra.mxu2 %vm108_vm0, %v2764_v37  ;;  %v3866_v29 = vpop.permute.xlu2 %3865  ;;  %v8702_v37 = vpop.f32.mrf.mxu1 }
0x128e   :  { %v8719_v55 = vpop.f32.mrf.mxu3 }
0x1293   :  { %4743 = vperm.xlu1 %6254, %v4477_v14   ;;  %4758 = vperm.xlu0 %6256, %v4480_v13   ;;  %v2837_v13 = vld [vmem:[%s10050_s11 + $0x198] sm:$0xff] }
0x1294   :  { %6075 = vmatmul.msk.f32.gmra.mxu3 %vm450_vm14, %v2837_v13  ;;  %v2771_v13 = vld [vmem:[%s10049_s10 + $0x188] sm:$0xff] }
0x1295   :  { %6104 = vmatmul.msk.f32.gmra.mxu0 %vm108_vm0, %v2737_v35  ;;  %6132 = vmatmul.msk.f32.gmra.mxu2 %vm108_vm0, %v2765_v27  ;;  %v4459_v35 = vld [vmem:[%s10053_s14 + $0x100] sm:$0xff]  ;;  %v8734_v14 = vpop.f32.mrf.mxu1  ;;  %v8747_v46 = vpop.permute.xlu2 %3775 }
0x1296   :  { %4653 = vperm.xlu2 %6255, %v4459_v35   ;;  %v8752_v53 = vpop.f32.mrf.mxu3 }
0x129a   :  { %v8627_v19 = vpop.f32.mrf.mxu0 }
0x129b   :  { %4733 = vperm.xlu1 %6254, %v4475_v3   ;;  %4753 = vperm.xlu0 %6256, %v4479_v22   ;;  %v5712_v3 = vld [vmem:[#allocation2] sm:$0x1] }
0x129d   :  { %6105 = vmatmul.msk.f32.gmra.mxu0 %vm108_vm0, %v2738_v60  ;;  %6133 = vmatmul.msk.f32.gmra.mxu2 %vm108_vm0, %v2766_v49  ;;  %v4476_v60 = vld [vmem:[%s10053_s14 + $0x188] sm:$0xff]  ;;  %v2809_v49 = vld [vmem:[%s10050_s11 + $0xb8] sm:$0xff]  ;;  %s5836_s14 = sshll.u32 %s10056_s17, 4  ;;  %s5837_s14 = int_to_ptr.hbm [resolvable:$true] %s5836_s14 }
0x129e   :  { %6047 = vmatmul.msk.f32.gmra.mxu1 %vm450_vm14, %v2809_v49  ;;  %5715 = vperm.xlu2 %6255, %v5712_v3   ;;  %v2743_v49 = vld [vmem:[%s10049_s10 + $0xa8] sm:$0xff] }
0x129f   :  { %v2839_v3 = vld [vmem:[%s10050_s11 + $0x1a8] sm:$0xff] }
0x12a0   :  { %v8660_v59 = vpop.f32.mrf.mxu2 }
0x12a2   :  { %v8664_v26 = vpop.f32.mrf.mxu0 }
0x12a3   :  { %4658 = vperm.xlu0 %6256, %v4460_v17   ;;  %v3552_v17 = vadd.f32 %v8660_v59, %v8514_v62  ;;  %v8784_v59 = vpop.f32.mrf.mxu3 }
0x12a5   :  { %6106 = vmatmul.msk.f32.gmra.mxu0 %vm108_vm0, %v2739_v43  ;;  %6134 = vmatmul.msk.f32.gmra.mxu2 %vm108_vm0, %v2767_v51  ;;  %v8754_v43 = vpop.permute.xlu0 %3770  ;;  %v4071_v28 = vadd.f32 %v3866_v29, %v3552_v17  ;;  %v2772_v17 = vld [vmem:[%s10049_s10 + $0x190] sm:$0xff] }
0x12a6   :  { %6048 = vmatmul.msk.f32.gmra.mxu1 %vm450_vm14, %v2810_v54 }
0x12a7   :  { %v4135_v29 = vmax.f32 %v4071_v28, 0.0 }
0x12a8   :  { %v3554_v33 = vpop.f32.mrf.mxu2 }
0x12a9   :  { %v3555_v22 = vadd.f32 %v3554_v33, %v8549_v44  ;;  %v8770_v44 = vpop.f32.mrf.mxu1 }
0x12aa   :  { %v8694_v30 = vpop.f32.mrf.mxu0 }
0x12ab   :  { %4738 = vperm.xlu0 %6256, %v4476_v60  }
0x12ad   :  { %6107 = vmatmul.msk.f32.gmra.mxu0 %vm108_vm0, %v2740_v36  ;;  %6135 = vmatmul.msk.f32.gmra.mxu2 %vm108_vm0, %v2768_v34 }
0x12b0   :  { %v3557_v27 = vpop.f32.mrf.mxu2 }
0x12b1   :  { %v3558_v42 = vadd.f32 %v3557_v27, %v8582_v47  ;;  %v2770_v47 = vld [vmem:[%s10049_s10 + $0x180] sm:$0xff] }
0x12b2   :  { %v8724_v58 = vpop.f32.mrf.mxu0 }
0x12b3   :  { %v4073_v36 = vadd.f32 %v8545_v21, %v3558_v42  ;;  %v2838_v21 = vld [vmem:[%s10050_s11 + $0x1a0] sm:$0xff]  ;;  %v8801_v42 = vpop.f32.mrf.mxu1 }
0x12b4   :  { %6076 = vmatmul.msk.f32.gmra.mxu3 %vm450_vm14, %v2838_v21 }
0x12b5   :  { %6108 = vmatmul.msk.f32.gmra.mxu0 %vm108_vm0, %v2741_v5  ;;  %6136 = vmatmul.msk.f32.gmra.mxu2 %vm108_vm0, %v2769_v61  ;;  %v4137_v62 = vmax.f32 %v4073_v36, 0.0  ;;  %v8791_v61 = vpop.permute.xlu0 %4010 }
0x12b6   :  { %10087 = vst [vmem:[#allocation20_spill] sm:$0xff] %v8791_v61 }
0x12b8   :  { %v3560_v51 = vpop.f32.mrf.mxu2 }
0x12b9   :  { %v3561_v4 = vadd.f32 %v3560_v51, %v8615_v16  ;;  %v4072_v16 = vadd.f32 %v3871_v41, %v3555_v22  ;;  %v8786_v41 = vpop.permute.xlu2 %4015  ;;  %v3174_v51 = vpop.f32.mrf.mxu3 }
0x12ba   :  { %v8758_v48 = vpop.f32.mrf.mxu0  ;;  %10085 = vst [vmem:[#allocation18_spill] sm:$0xff] %v8786_v41 }
0x12bb   :  { %v4074_v34 = vadd.f32 %v8565_v20, %v3561_v4  ;;  %v8780_v20 = vpop.permute.xlu1 %4020  ;;  %v4136_v5 = vmax.f32 %v4072_v16, 0.0  ;;  %v8838_v54 = vpop.f32.mrf.mxu1 }
0x12bc   :  { %10084 = vst [vmem:[#allocation17_spill] sm:$0xff] %v8780_v20  ;;  %6077 = vmatmul.msk.f32.gmra.mxu3 %vm450_vm14, %v2839_v3 }
0x12bd   :  { %v4138_v33 = vmax.f32 %v4074_v34, 0.0  ;;  %6109 = vmatmul.msk.f32.gmra.mxu0 %vm108_vm0, %v2742_v2  ;;  %6137 = vmatmul.msk.f32.gmra.mxu2 %vm108_vm0, %v2770_v47  ;;  %v2744_v34 = vld [vmem:[%s10049_s10 + $0xb0] sm:$0xff]  ;;  %v8828_v16 = vpop.permute.xlu0 %3920 }
0x12be   :  { %10091 = vst [vmem:[#allocation24_spill] sm:$0xff] %v8828_v16  ;;  %v2780_v16 = vld [vmem:[%s10049_s10 + $0x1d0] sm:$0xff] }
0x12bf   :  { %5020 = vmatpush.msrb.mxu1 %v4138_v33  ;;  %v2840_v33 = vld [vmem:[%s10050_s11 + $0x1b0] sm:$0xff] }
0x12c0   :  { %v3563_v35 = vpop.f32.mrf.mxu2 }
0x12c1   :  { %v8789_v27 = vadd.f32 %v3563_v35, %v8650_v8  ;;  %5021 = vmatpush.msrb.mxu1 %v4137_v62  ;;  %v2811_v8 = vld [vmem:[%s10050_s11 + $0xc8] sm:$0xff]  ;;  %v8818_v47 = vpop.permute.xlu2 %3925  ;;  %v3177_v21 = vpop.f32.mrf.mxu3 }
0x12c2   :  { %v8793_v60 = vpop.f32.mrf.mxu0  ;;  %6049 = vmatmul.msk.f32.gmra.mxu1 %vm450_vm14, %v2811_v8  ;;  %10090 = vst [vmem:[#allocation23_spill] sm:$0xff] %v8818_v47 }
0x12c3   :  { %10086 = vst [vmem:[#allocation19_spill] sm:$0xff] %v8789_v27  ;;  %5022 = vmatpush.msrb.mxu1 %v4136_v5  ;;  %v8813_v22 = vpop.permute.xlu1 %3930 }
0x12c4   :  { %10088 = vst [vmem:[#allocation21_spill] sm:$0xff] %v8813_v22  ;;  %6078 = vmatmul.msk.f32.gmra.mxu3 %vm450_vm14, %v2840_v33  ;;  %v2746_v33 = vld [vmem:[%s10049_s10 + $0xc0] sm:$0xff] }
0x12c5   :  { %6110 = vmatmul.msk.f32.gmra.mxu0 %vm108_vm0, %v2743_v49  ;;  %6138 = vmatmul.msk.f32.gmra.mxu2 %vm108_vm0, %v2771_v13  ;;  %v2745_v49 = vld [vmem:[%s10049_s10 + $0xb8] sm:$0xff]  ;;  %v8862_v8 = vpop.permute.xlu0 %3845 }
0x12c6   :  { %5023 = vmatpush.msrb.mxu1 %v4135_v29  ;;  %v2773_v13 = vld [vmem:[%s10049_s10 + $0x198] sm:$0xff]  ;;  %10095 = vst [vmem:[#allocation28_spill] sm:$0xff] %v8862_v8 }
0x12c8   :  { %v3566_v4 = vpop.f32.mrf.mxu2 }
0x12c9   :  { %v8816_v2 = vadd.f32 %v3566_v4, %v8689_v6  ;;  %v2812_v6 = vld [vmem:[%s10050_s11 + $0xd0] sm:$0xff]  ;;  %v8855_v29 = vpop.permute.xlu2 %3850  ;;  %v3180_v3 = vpop.f32.mrf.mxu3 }
0x12ca   :  { %v8820_v36 = vpop.f32.mrf.mxu0  ;;  %6050 = vmatmul.msk.f32.gmra.mxu1 %vm450_vm14, %v2812_v6  ;;  %10094 = vst [vmem:[#allocation27_spill] sm:$0xff] %v8855_v29 }
0x12cb   :  { %10089 = vst [vmem:[#allocation22_spill] sm:$0xff] %v8816_v2  ;;  %v8845_v35 = vpop.permute.xlu1 %3855 }
0x12cc   :  { %10093 = vst [vmem:[#allocation26_spill] sm:$0xff] %v8845_v35 }
0x12cd   :  { %6111 = vmatmul.msk.f32.gmra.mxu0 %vm108_vm0, %v2744_v34  ;;  %6139 = vmatmul.msk.f32.gmra.mxu2 %vm108_vm0, %v2772_v17  ;;  %v8865_v34 = vpop.f32.mrf.mxu1 }
0x12d0   :  { %v3569_v62 = vpop.f32.mrf.mxu2 }
0x12d1   :  { %v8843_v28 = vadd.f32 %v3569_v62, %v8719_v55  ;;  %v2841_v55 = vld [vmem:[%s10050_s11 + $0x1b8] sm:$0xff]  ;;  %v2774_v62 = vld [vmem:[%s10049_s10 + $0x1a0] sm:$0xff] }
0x12d2   :  { %v8847_v5 = vpop.f32.mrf.mxu0  ;;  %6079 = vmatmul.msk.f32.gmra.mxu3 %vm450_vm14, %v2841_v55  ;;  %v8888_v55 = vpop.f32.mrf.mxu3 }
0x12d3   :  { %10092 = vst [vmem:[#allocation25_spill] sm:$0xff] %v8843_v28 }
0x12d4   :  { %10097 = vst [vmem:[#allocation30_spill] sm:$0xff] %v8888_v55 }
0x12d5   :  { %6112 = vmatmul.msk.f32.gmra.mxu0 %vm108_vm0, %v2745_v49  ;;  %6140 = vmatmul.msk.f32.gmra.mxu2 %vm108_vm0, %v2773_v13  ;;  %v8878_v49 = vpop.permute.xlu1 %3765  ;;  %v8885_v13 = vpop.permute.xlu2 %3760 }
0x12d6   :  { %v8903_v15 = vpop.f32.mrf.mxu1 }
0x12d8   :  { %v3572_v4 = vpop.f32.mrf.mxu2 }
0x12d9   :  { %v8868_v17 = vadd.f32 %v3572_v4, %v8752_v53  ;;  %v2842_v53 = vld [vmem:[%s10050_s11 + $0x1c0] sm:$0xff]  ;;  %v8890_v4 = vpop.permute.xlu0 %3755 }
0x12da   :  { %v8870_v6 = vpop.f32.mrf.mxu0  ;;  %6080 = vmatmul.msk.f32.gmra.mxu3 %vm450_vm14, %v2842_v53  ;;  %v8913_v53 = vpop.f32.mrf.mxu3 }
0x12db   :  { %10096 = vst [vmem:[#allocation29_spill] sm:$0xff] %v8868_v17 }
0x12dd   :  { %6113 = vmatmul.msk.f32.gmra.mxu0 %vm108_vm0, %v2746_v33  ;;  %6141 = vmatmul.msk.f32.gmra.mxu2 %vm108_vm0, %v2774_v62  ;;  %v2747_v33 = vld [vmem:[%s10049_s10 + $0xc8] sm:$0xff]  ;;  %v8915_v23 = vpop.permute.xlu2 %4000 }
0x12de   :  { %v2775_v62 = vld [vmem:[%s10049_s10 + $0x1a8] sm:$0xff]  ;;  %10100 = vst [vmem:[#allocation33_spill] sm:$0xff] %v8915_v23 }
0x12e0   :  { %v3575_v61 = vpop.f32.mrf.mxu2 }
0x12e1   :  { %v8893_v41 = vadd.f32 %v3575_v61, %v8784_v59  ;;  %v2843_v59 = vld [vmem:[%s10050_s11 + $0x1c8] sm:$0xff]  ;;  %v8910_v61 = vpop.permute.xlu1 %4005  ;;  %v8919_v8 = vpop.permute.xlu0 %3995 }
0x12e2   :  { %v8895_v20 = vpop.f32.mrf.mxu0  ;;  %10099 = vst [vmem:[#allocation32_spill] sm:$0xff] %v8910_v61  ;;  %6081 = vmatmul.msk.f32.gmra.mxu3 %vm450_vm14, %v2843_v59  ;;  %v2776_v61 = vld [vmem:[%s10049_s10 + $0x1b0] sm:$0xff]  ;;  %v3102_v59 = vpop.f32.mrf.mxu1 }
0x12e3   :  { %10098 = vst [vmem:[#allocation31_spill] sm:$0xff] %v8893_v41 }
0x12e4   :  { %10102 = vst [vmem:[#allocation35_spill] sm:$0xff] %v8919_v8 }
0x12e5   :  { %6114 = vmatmul.msk.f32.gmra.mxu0 %vm108_vm0, %v2747_v33  ;;  %6142 = vmatmul.msk.f32.gmra.mxu2 %vm108_vm0, %v2775_v62  ;;  %v2748_v62 = vld [vmem:[%s10049_s10 + $0xd0] sm:$0xff]  ;;  %v8941_v11 = vpop.permute.xlu2 %3910 }
0x12e6   :  { %10105 = vst [vmem:[#allocation38_spill] sm:$0xff] %v8941_v11 }
0x12e8   :  { %v3578_v39 = vpop.f32.mrf.mxu2 }
0x12e9   :  { %v8917_v50 = vadd.f32 %v3578_v39, %v3174_v51  ;;  %v2844_v39 = vld [vmem:[%s10050_s11 + $0x1d0] sm:$0xff]  ;;  %v8935_v51 = vpop.f32.mrf.mxu3  ;;  %v8937_v8 = vpop.permute.xlu1 %3915 }
0x12ea   :  { %v8921_v33 = vpop.f32.mrf.mxu0  ;;  %6082 = vmatmul.msk.f32.gmra.mxu3 %vm450_vm14, %v2844_v39  ;;  %10103 = vst [vmem:[#allocation36_spill] sm:$0xff] %v8937_v8  ;;  %v8949_v0 = vpop.permute.xlu0 %3905 }
0x12eb   :  { %10101 = vst [vmem:[#allocation34_spill] sm:$0xff] %v8917_v50  ;;  %v3105_v39 = vpop.f32.mrf.mxu1 }
0x12ec   :  { %10106 = vst [vmem:[#allocation39_spill] sm:$0xff] %v8949_v0 }
0x12ed   :  { %6115 = vmatmul.msk.f32.gmra.mxu0 %vm108_vm0, %v2748_v62  ;;  %6143 = vmatmul.msk.f32.gmra.mxu2 %vm108_vm0, %v2776_v61  ;;  %v2749_v61 = vld [vmem:[%s10049_s10 + $0xd8] sm:$0xff] }
0x12ee   :  { %v2777_v62 = vld [vmem:[%s10049_s10 + $0x1b8] sm:$0xff] }
0x12f0   :  { %v3581_v23 = vpop.f32.mrf.mxu2 }
0x12f1   :  { %v8939_v29 = vadd.f32 %v3581_v23, %v3177_v21  ;;  %v2845_v23 = vld [vmem:[%s10050_s11 + $0x1d8] sm:$0xff]  ;;  %v8957_v21 = vpop.f32.mrf.mxu3  ;;  %v8961_v28 = vpop.permute.xlu1 %3840 }
0x12f2   :  { %v3500_v35 = vpop.f32.mrf.mxu0  ;;  %6083 = vmatmul.msk.f32.gmra.mxu3 %vm450_vm14, %v2845_v23  ;;  %10108 = vst [vmem:[#allocation41_spill] sm:$0xff] %v8961_v28  ;;  %v2846_v23 = vld [vmem:[%s10050_s11 + $0x1e0] sm:$0xff]  ;;  %v8972_v0 = vpop.permute.xlu0 %3830 }
0x12f3   :  { %10104 = vst [vmem:[#allocation37_spill] sm:$0xff] %v8939_v29  ;;  %v3108_v28 = vpop.f32.mrf.mxu1 }
0x12f4   :  { %10110 = vst [vmem:[#allocation43_spill] sm:$0xff] %v8972_v0 }
0x12f5   :  { %6116 = vmatmul.msk.f32.gmra.mxu0 %vm108_vm0, %v2749_v61  ;;  %6144 = vmatmul.msk.f32.gmra.mxu2 %vm108_vm0, %v2777_v62  ;;  %v2778_v61 = vld [vmem:[%s10049_s10 + $0x1c0] sm:$0xff]  ;;  %v8966_v62 = vpop.permute.xlu2 %3835 }
0x12f6   :  { %10109 = vst [vmem:[#allocation42_spill] sm:$0xff] %v8966_v62  ;;  %v2779_v62 = vld [vmem:[%s10049_s10 + $0x1c8] sm:$0xff] }
0x12f8   :  { %v3584_v27 = vpop.f32.mrf.mxu2 }
0x12f9   :  { %v8959_v2 = vadd.f32 %v3584_v27, %v3180_v3  ;;  %v8975_v27 = vpop.f32.mrf.mxu3  ;;  %v8982_v11 = vpop.permute.xlu1 %3750 }
0x12fa   :  { %v3503_v17 = vpop.f32.mrf.mxu0  ;;  %6084 = vmatmul.msk.f32.gmra.mxu3 %vm450_vm14, %v2846_v23  ;;  %v8991_v23 = vpop.permute.xlu0 %3740 }
0x12fb   :  { %10107 = vst [vmem:[#allocation40_spill] sm:$0xff] %v8959_v2  ;;  %v2848_v2 = vld [vmem:[%s10050_s11 + $0x1f0] sm:$0xff] }
0x12fd   :  { %6145 = vmatmul.msk.f32.gmra.mxu2 %vm108_vm0, %v2778_v61  ;;  %v2847_v61 = vld [vmem:[%s10050_s11 + $0x1e8] sm:$0xff]  ;;  %v8988_v0 = vpop.permute.xlu2 %3745 }
0x1300   :  { %v8977_v3 = vpop.f32.mrf.mxu2 }
0x1301   :  { %10111 = vst [vmem:[#allocation44_spill] sm:$0xff] %v8977_v3  ;;  %v8995_v8 = vpop.f32.mrf.mxu3 }
0x1302   :  { %v3506_v41 = vpop.f32.mrf.mxu0  ;;  %6085 = vmatmul.msk.f32.gmra.mxu3 %vm450_vm14, %v2847_v61  ;;  %v9006_v61 = vpop.permute.xlu1 %3990 }
0x1303   :  { %v3507_v3 = vadd.f32 %v3506_v41, %v3102_v59  ;;  %v9015_v24 = vpop.permute.xlu0 %3980 }
0x1304   :  { %10115 = vst [vmem:[#allocation48_spill] sm:$0xff] %v9015_v24  ;;  %v2849_v24 = vld [vmem:[%s10050_s11 + $0x1f8] sm:$0xff] }
0x1305   :  { %6146 = vmatmul.msk.f32.gmra.mxu2 %vm108_vm0, %v2779_v62  ;;  %v9000_v62 = vpop.f32.mrf.mxu1  ;;  %v9009_v22 = vpop.permute.xlu2 %3985  ;;  %v4056_v41 = vadd.f32 %v8578_v7, %v3507_v3 }
0x1306   :  { %10113 = vst [vmem:[#allocation46_spill] sm:$0xff] %v9000_v62 }
0x1307   :  { %10114 = vst [vmem:[#allocation47_spill] sm:$0xff] %v9009_v22  ;;  %v3501_v22 = vadd.f32 %v3500_v35, %v8865_v34 }
0x1308   :  { %v8993_v50 = vpop.f32.mrf.mxu2 }
0x1309   :  { %10112 = vst [vmem:[#allocation45_spill] sm:$0xff] %v8993_v50  ;;  %v9013_v55 = vpop.f32.mrf.mxu3  ;;  %v3504_v50 = vadd.f32 %v3503_v17, %v8903_v15  ;;  %v3498_v15 = vadd.f32 %v8921_v33, %v8838_v54  ;;  %v4054_v34 = vadd.f32 %v8732_v12, %v3501_v22  ;;  %v4120_v17 = vmax.f32 %v4056_v41, 0.0 }
0x130a   :  { %v3509_v29 = vpop.f32.mrf.mxu0  ;;  %6086 = vmatmul.msk.f32.gmra.mxu3 %vm450_vm14, %v2848_v2  ;;  %v9035_v35 = vpop.permute.xlu1 %3900 }
0x130b   :  { %v3510_v47 = vadd.f32 %v3509_v29, %v3105_v39  ;;  %v4053_v33 = vadd.f32 %v8747_v46, %v3498_v15  ;;  %v9054_v12 = vpop.permute.xlu0 %3890 }
0x130d   :  { %6147 = vmatmul.msk.f32.gmra.mxu2 %vm108_vm0, %v2780_v16  ;;  %v2781_v16 = vld [vmem:[%s10049_s10 + $0x1d8] sm:$0xff]  ;;  %v4057_v29 = vadd.f32 %v8491_v57, %v3510_v47  ;;  %v9022_v2 = vpop.f32.mrf.mxu1  ;;  %v4055_v57 = vadd.f32 %v8590_v56, %v3504_v50  ;;  %v9044_v54 = vpop.permute.xlu2 %3895  ;;  %v2782_v50 = vld [vmem:[%s10049_s10 + $0x1e0] sm:$0xff] }
0x1310   :  { %v9011_v32 = vpop.f32.mrf.mxu2 }
0x1311   :  { %v9042_v3 = vpop.f32.mrf.mxu3 }
0x1312   :  { %v3512_v62 = vpop.f32.mrf.mxu0  ;;  %6087 = vmatmul.msk.f32.gmra.mxu3 %vm450_vm14, %v2849_v24  ;;  %v3492_v24 = vadd.f32 %v8870_v6, %v8770_v44  ;;  %v4117_v44 = vmax.f32 %v4053_v33, 0.0  ;;  %v3486_v6 = vadd.f32 %v8820_v36, %v8702_v37  ;;  %v3480_v36 = vadd.f32 %v8758_v48, %v8635_v25 }
0x1313   :  { %v3513_v39 = vadd.f32 %v3512_v62, %v3108_v28  ;;  %v4121_v28 = vmax.f32 %v4057_v29, 0.0  ;;  %v4118_v62 = vmax.f32 %v4054_v34, 0.0  ;;  %v3474_v25 = vadd.f32 %v8694_v30, %v8563_v10 }
0x1314   :  { %v4051_v29 = vadd.f32 %v8878_v49, %v3492_v24  ;;  %v2783_v49 = vld [vmem:[%s10049_s10 + $0x1e8] sm:$0xff]  ;;  %v4047_v48 = vadd.f32 %v8988_v0, %v3480_v36  ;;  %v3468_v0 = vadd.f32 %v8627_v19, %v8489_v38  ;;  %v2785_v38 = vld [vmem:[%s10049_s10 + $0x1f8] sm:$0xff] }
0x1315   :  { %v4058_v59 = vadd.f32 %v8458_v40, %v3513_v39  ;;  %6148 = vmatmul.msk.f32.gmra.mxu2 %vm108_vm0, %v2781_v16  ;;  %v3495_v40 = vadd.f32 %v8895_v20, %v8801_v42  ;;  %v4119_v20 = vmax.f32 %v4055_v57, 0.0  ;;  %v3489_v42 = vadd.f32 %v8847_v5, %v8734_v14  ;;  %v9060_v16 = vpop.f32.mrf.mxu1  ;;  %v9070_v5 = vpop.permute.xlu1 %3825 }
0x1316   :  { %v4115_v15 = vmax.f32 %v4051_v29, 0.0  ;;  %v9079_v37 = vpop.permute.xlu2 %3820  ;;  %v4111_v24 = vmax.f32 %v4047_v48, 0.0 }
0x1317   :  { %v4122_v47 = vmax.f32 %v4058_v59, 0.0  ;;  %v4052_v22 = vadd.f32 %v8754_v43, %v3495_v40  ;;  %v4050_v39 = vadd.f32 %v8885_v13, %v3489_v42  ;;  %v3483_v59 = vadd.f32 %v8793_v60, %v8674_v52 }
0x1318   :  { %v9037_v7 = vpop.f32.mrf.mxu2  ;;  %v4049_v13 = vadd.f32 %v8890_v4, %v3486_v6 }
0x1319   :  { %4811 = vmatpush.msra.mxu0 %v4122_v47  ;;  %v4116_v14 = vmax.f32 %v4052_v22, 0.0  ;;  %v9068_v43 = vpop.f32.mrf.mxu3  ;;  %v4114_v57 = vmax.f32 %v4050_v39, 0.0  ;;  %v9085_v47 = vpop.permute.xlu0 %3815  ;;  %v4048_v52 = vadd.f32 %v8982_v11, %v3483_v59  ;;  %v3471_v11 = vadd.f32 %v8664_v26, %v8530_v31  ;;  %v4171_v39 = vld [vmem:[#allocation3] sm:$0xff] }
0x131a   :  { %v9046_v56 = vpop.f32.mrf.mxu0  ;;  %v4113_v4 = vmax.f32 %v4049_v13, 0.0 }
0x131b   :  { %4812 = vmatpush.msra.mxu0 %v4121_v28  ;;  %v3477_v28 = vadd.f32 %v8724_v58, %v8598_v63 }
0x131d   :  { %6149 = vmatmul.msk.f32.gmra.mxu2 %vm108_vm0, %v2782_v50  ;;  %4813 = vmatpush.msra.mxu0 %v4120_v17  ;;  %v9090_v40 = vpop.f32.mrf.mxu1  ;;  %v2784_v17 = vld [vmem:[%s10049_s10 + $0x1f0] sm:$0xff]  ;;  %v4046_v58 = vadd.f32 %v8991_v23, %v3477_v28  ;;  %v4112_v50 = vmax.f32 %v4048_v52, 0.0  ;;  %v3736_v10 = vpop.permute.xlu1 %3735 }
0x131e   :  { %v4045_v30 = vadd.f32 %v3736_v10, %v3474_v25  ;;  %v3731_v33 = vpop.permute.xlu2 %3730  ;;  %v10121_v10 = vld [vmem:[#allocation21_spill] sm:$0xff] }
0x131f   :  { %4814 = vmatpush.msra.mxu0 %v4119_v20  ;;  %v4044_v20 = vadd.f32 %v3731_v33, %v3471_v11  ;;  %v4110_v42 = vmax.f32 %v4046_v58, 0.0  ;;  %v10118_v11 = vld [vmem:[#allocation30_spill] sm:$0xff]  ;;  %v10119_v58 = vld [vmem:[#allocation44_spill] sm:$0xff] }
0x1320   :  { %v9063_v46 = vpop.f32.mrf.mxu2  ;;  %v4109_v26 = vmax.f32 %v4045_v30, 0.0 }
0x1321   :  { %4815 = vmatpush.msra.mxu0 %v4118_v62  ;;  %v9100_v63 = vpop.f32.mrf.mxu3  ;;  %v3726_v22 = vpop.permute.xlu0 %3725  ;;  %v4108_v29 = vmax.f32 %v4044_v20, 0.0  ;;  %v3600_v13 = vadd.f32 %v9063_v46, %v8975_v27 }
0x1322   :  { %v9072_v41 = vpop.f32.mrf.mxu0  ;;  %v4043_v31 = vadd.f32 %v3726_v22, %v3468_v0 }
0x1323   :  { %4816 = vmatpush.msra.mxu0 %v4117_v44  ;;  %v4087_v27 = vadd.f32 %v8658_v18, %v3600_v13  ;;  %v10127_v13 = vld [vmem:[#allocation34_spill] sm:$0xff] }
0x1324   :  { %v4107_v6 = vmax.f32 %v4043_v31, 0.0  ;;  %v10123_v31 = vld [vmem:[#allocation40_spill] sm:$0xff] }
0x1325   :  { %6150 = vmatmul.msk.f32.gmra.mxu2 %vm108_vm0, %v2783_v49  ;;  %4817 = vmatpush.msra.mxu0 %v4116_v14  ;;  %v9113_v19 = vpop.f32.mrf.mxu1  ;;  %v4151_v18 = vmax.f32 %v4087_v27, 0.0 }
0x1327   :  { %4818 = vmatpush.msra.mxu0 %v4115_v15 }
0x1328   :  { %v3602_v60 = vpop.f32.mrf.mxu2 }
0x1329   :  { %4819 = vmatpush.msra.mxu0 %v4114_v57  ;;  %v9115_v44 = vpop.f32.mrf.mxu3  ;;  %v3603_v59 = vadd.f32 %v3602_v60, %v8995_v8  ;;  %v4175_v8 = vld [vmem:[#allocation3 + $0x20] sm:$0xff] }
0x132a   :  { %v9095_v34 = vpop.f32.mrf.mxu0 }
0x132b   :  { %4820 = vmatpush.msra.mxu0 %v4113_v4  ;;  %v4088_v25 = vadd.f32 %v8532_v1, %v3603_v59 }
0x132d   :  { %6151 = vmatmul.msk.f32.gmra.mxu2 %vm108_vm0, %v2784_v17  ;;  %4821 = vmatpush.msra.mxu0 %v4112_v50  ;;  %v9127_v52 = vpop.f32.mrf.mxu1  ;;  %v4152_v1 = vmax.f32 %v4088_v25, 0.0  ;;  %v3588_v50 = vadd.f32 %v10119_v58, %v10118_v11  ;;  %v4183_v25 = vld [vmem:[#allocation3 + $0x60] sm:$0xff] }
0x132e   :  { %v10132_v58 = vld [vmem:[#allocation25_spill] sm:$0xff] }
0x132f   :  { %4822 = vmatpush.msra.mxu0 %v4111_v24  ;;  %v4179_v24 = vld [vmem:[#allocation3 + $0x40] sm:$0xff] }
0x1330   :  { %v3605_v62 = vpop.f32.mrf.mxu2 }
0x1331   :  { %4823 = vmatpush.msra.mxu0 %v4110_v42  ;;  %v3606_v14 = vadd.f32 %v3605_v62, %v9013_v55  ;;  %v3597_v55 = vadd.f32 %v9037_v7, %v8957_v21  ;;  %v9132_v60 = vpop.f32.mrf.mxu3  ;;  %v10117_v21 = vld [vmem:[#allocation14_spill] sm:$0xff] }
0x1332   :  { %v9108_v23 = vpop.f32.mrf.mxu0 }
0x1333   :  { %4824 = vmatpush.msra.mxu0 %v4109_v26  ;;  %v4089_v57 = vadd.f32 %v8508_v45, %v3606_v14  ;;  %v4086_v7 = vadd.f32 %v10117_v21, %v3597_v55  ;;  %v10124_v26 = vld [vmem:[#allocation24_spill] sm:$0xff] }
0x1334   :  { %v10126_v14 = vld [vmem:[#allocation36_spill] sm:$0xff] }
0x1335   :  { %6152 = vmatmul.msk.f32.gmra.mxu2 %vm108_vm0, %v2785_v38  ;;  %4825 = vmatpush.msra.mxu0 %v4108_v29  ;;  %v4153_v45 = vmax.f32 %v4089_v57, 0.0  ;;  %v4150_v30 = vmax.f32 %v4086_v7, 0.0  ;;  %v9148_v33 = vpop.f32.mrf.mxu1  ;;  %v4082_v38 = vadd.f32 %v10124_v26, %v10123_v31  ;;  %v10128_v57 = vld [vmem:[#allocation38_spill] sm:$0xff] }
0x1337   :  { %4826 = vmatpush.msra.mxu0 %v4107_v6  ;;  %v4146_v55 = vmax.f32 %v4082_v38, 0.0 }
0x1338   :  { %v3608_v49 = vpop.f32.mrf.mxu2  ;;  %4827 = vmatmul.f32.vlgmr.msra.gmra.mxu0 %v4171_v39  ;;  %v10125_v39 = vld [vmem:[#allocation37_spill] sm:$0xff] }
0x1339   :  { %v3609_v15 = vadd.f32 %v3608_v49, %v9042_v3  ;;  %v3594_v3 = vadd.f32 %v9011_v32, %v8935_v51  ;;  %v10120_v32 = vld [vmem:[#allocation15_spill] sm:$0xff]  ;;  %v9153_v62 = vpop.f32.mrf.mxu3  ;;  %v4081_v49 = vadd.f32 %v10126_v14, %v10125_v39 }
0x133a   :  { %v9121_v36 = vpop.f32.mrf.mxu0 }
0x133b   :  { %v4090_v28 = vadd.f32 %v8487_v9, %v3609_v15  ;;  %v10116_v9 = vld [vmem:[#allocation45_spill] sm:$0xff]  ;;  %v4085_v51 = vadd.f32 %v10120_v32, %v3594_v3  ;;  %v9161_v15 = vpop.permute.xlu1 %3975  ;;  %v4145_v27 = vmax.f32 %v4081_v49, 0.0 }
0x133c   :  { %v3591_v4 = vadd.f32 %v10116_v9, %v8913_v53  ;;  %v10122_v53 = vld [vmem:[#allocation23_spill] sm:$0xff]  ;;  %v4195_v49 = vld [vmem:[#allocation3 + $0xc0] sm:$0xff] }
0x133d   :  { %v4154_v48 = vmax.f32 %v4090_v28, 0.0  ;;  %v4083_v20 = vadd.f32 %v10122_v53, %v3588_v50  ;;  %v4149_v42 = vmax.f32 %v4085_v51, 0.0  ;;  %v4080_v28 = vadd.f32 %v10128_v57, %v10127_v13  ;;  %v3132_v9 = vpop.f32.mrf.mxu1  ;;  %v10133_v51 = vld [vmem:[#allocation22_spill] sm:$0xff] }
0x133e   :  { %v4084_v0 = vadd.f32 %v10121_v10, %v3591_v4  ;;  %v10131_v4 = vld [vmem:[#allocation29_spill] sm:$0xff]  ;;  %v4077_v50 = vadd.f32 %v9044_v54, %v10132_v58  ;;  %v4177_v58 = vld [vmem:[#allocation3 + $0x30] sm:$0xff] }
0x133f   :  { %5229 = vmatpush.msrb.mxu3 %v4154_v48  ;;  %v4147_v59 = vmax.f32 %v4083_v20, 0.0  ;;  %v10129_v48 = vld [vmem:[#allocation31_spill] sm:$0xff]  ;;  %v4078_v21 = vadd.f32 %v9035_v35, %v10131_v4  ;;  %v4144_v7 = vmax.f32 %v4080_v28, 0.0 }
0x1340   :  { %v9137_v46 = vpop.f32.mrf.mxu2  ;;  %4830 = vmatmul.f32.gmra.mxu0 %v4175_v8  ;;  %v4148_v29 = vmax.f32 %v4084_v0, 0.0  ;;  %v10130_v8 = vld [vmem:[#allocation39_spill] sm:$0xff]  ;;  %v4187_v0 = vld [vmem:[#allocation3 + $0x80] sm:$0xff]  ;;  %v4141_v35 = vmax.f32 %v4077_v50, 0.0 }
0x1341   :  { %5230 = vmatpush.msrb.mxu3 %v4153_v45  ;;  %v4079_v3 = vadd.f32 %v10130_v8, %v10129_v48  ;;  %v9171_v11 = vpop.f32.mrf.mxu3  ;;  %v4142_v10 = vmax.f32 %v4078_v21, 0.0  ;;  %v4173_v28 = vld [vmem:[#allocation3 + $0x10] sm:$0xff]  ;;  %v10135_v21 = vld [vmem:[#allocation9_spill] sm:$0xff] }
0x1342   :  { %v9142_v17 = vpop.f32.mrf.mxu0 }
0x1343   :  { %5231 = vmatpush.msrb.mxu3 %v4152_v1  ;;  %v4143_v32 = vmax.f32 %v4079_v3, 0.0 }
0x1345   :  { %5232 = vmatpush.msrb.mxu3 %v4151_v18  ;;  %v4076_v18 = vadd.f32 %v9054_v12, %v10133_v51  ;;  %v3135_v31 = vpop.f32.mrf.mxu1  ;;  %v4191_v12 = vld [vmem:[#allocation3 + $0xa0] sm:$0xff] }
0x1347   :  { %5233 = vmatpush.msrb.mxu3 %v4150_v30  ;;  %v3886_v30 = vpop.permute.xlu1 %3885 }
0x1348   :  { %v9151_v22 = vpop.f32.mrf.mxu2  ;;  %4833 = vmatmul.f32.gmra.mxu0 %v4179_v24  ;;  %v10134_v24 = vld [vmem:[#allocation19_spill] sm:$0xff] }
0x1349   :  { %5234 = vmatpush.msrb.mxu3 %v4149_v42  ;;  %v4075_v53 = vadd.f32 %v3886_v30, %v10134_v24  ;;  %v4140_v42 = vmax.f32 %v4076_v18, 0.0  ;;  %v9180_v38 = vpop.f32.mrf.mxu3  ;;  %v10137_v18 = vld [vmem:[#allocation16_spill] sm:$0xff]  ;;  %v10138_v24 = vld [vmem:[#allocation27_spill] sm:$0xff] }
0x134a   :  { %v9157_v6 = vpop.f32.mrf.mxu0 }
0x134b   :  { %5235 = vmatpush.msrb.mxu3 %v4148_v29  ;;  %v4139_v26 = vmax.f32 %v4075_v53, 0.0 }
0x134d   :  { %5236 = vmatpush.msrb.mxu3 %v4147_v59  ;;  %v3138_v14 = vpop.f32.mrf.mxu1 }
0x134f   :  { %5237 = vmatpush.msrb.mxu3 %v4146_v55  ;;  %v4199_v55 = vld [vmem:[#allocation3 + $0xe0] sm:$0xff] }
0x1350   :  { %v9167_v45 = vpop.f32.mrf.mxu2  ;;  %4836 = vmatmul.f32.gmra.mxu0 %v4183_v25 }
0x1351   :  { %5238 = vmatpush.msrb.mxu3 %v4145_v27 }
0x1352   :  { %v3536_v1 = vpop.f32.mrf.mxu0 }
0x1353   :  { %5239 = vmatpush.msrb.mxu3 %v4144_v7  ;;  %v3537_v30 = vadd.f32 %v3536_v1, %v3132_v9 }
0x1355   :  { %5240 = vmatpush.msrb.mxu3 %v4143_v32  ;;  %v9184_v59 = vpop.f32.mrf.mxu3  ;;  %v3141_v25 = vpop.f32.mrf.mxu1  ;;  %v10136_v32 = vld [vmem:[#allocation26_spill] sm:$0xff] }
0x1357   :  { %5241 = vmatpush.msrb.mxu3 %v4142_v10 }
0x1358   :  { %v9178_v20 = vpop.f32.mrf.mxu2  ;;  %4839 = vmatmul.f32.gmra.mxu0 %v4187_v0  ;;  %v4203_v0 = vld [vmem:[#allocation3 + $0x100] sm:$0xff] }
0x1359   :  { %5242 = vmatpush.msrb.mxu3 %v4141_v35 }
0x135a   :  { %v3539_v54 = vpop.f32.mrf.mxu0 }
0x135b   :  { %5243 = vmatpush.msrb.mxu3 %v4140_v42  ;;  %v3540_v50 = vadd.f32 %v3539_v54, %v3135_v31  ;;  %v3531_v54 = vadd.f32 %v9142_v17, %v9127_v52 }
0x135d   :  { %5244 = vmatpush.msrb.mxu3 %v4139_v26  ;;  %v9190_v8 = vpop.f32.mrf.mxu3  ;;  %v3534_v26 = vadd.f32 %v9157_v6, %v9148_v33 }
0x135e   :  { %5245 = vmatmul.f32.vlgmr.msrb.gmra.mxu3 %v4173_v28  ;;  %v3528_v28 = vadd.f32 %v9121_v36, %v9113_v19 }
0x1360   :  { %v9182_v29 = vpop.f32.mrf.mxu2  ;;  %4842 = vmatmul.f32.gmra.mxu0 %v4191_v12  ;;  %v10139_v12 = vld [vmem:[#allocation28_spill] sm:$0xff]  ;;  %v4063_v19 = vadd.f32 %v9070_v5, %v3528_v28  ;;  %v4197_v28 = vld [vmem:[#allocation3 + $0xd0] sm:$0xff] }
0x1362   :  { %v3542_v39 = vpop.f32.mrf.mxu0  ;;  %v4127_v5 = vmax.f32 %v4063_v19, 0.0  ;;  %v4188_v19 = vld [vmem:[#allocation3 + $0x88] sm:$0xff] }
0x1363   :  { %v3543_v4 = vadd.f32 %v3542_v39, %v3138_v14  ;;  %v4067_v39 = vadd.f32 %v10139_v12, %v3540_v50 }
0x1365   :  { %v4068_v53 = vadd.f32 %v10138_v24, %v3543_v4  ;;  %v9201_v31 = vpop.f32.mrf.mxu3  ;;  %v4131_v6 = vmax.f32 %v4067_v39, 0.0  ;;  %v4193_v39 = vld [vmem:[#allocation3 + $0xb0] sm:$0xff] }
0x1366   :  { %5248 = vmatmul.f32.gmra.mxu3 %v4177_v58 }
0x1367   :  { %v4132_v1 = vmax.f32 %v4068_v53, 0.0  ;;  %v4189_v53 = vld [vmem:[#allocation3 + $0x90] sm:$0xff] }
0x1368   :  { %v9186_v13 = vpop.f32.mrf.mxu2  ;;  %4845 = vmatmul.f32.gmra.mxu0 %v4195_v49  ;;  %v10140_v49 = vld [vmem:[#allocation41_spill] sm:$0xff] }
0x1369   :  { %v4066_v9 = vadd.f32 %v10140_v49, %v3537_v30 }
0x136a   :  { %v3545_v57 = vpop.f32.mrf.mxu0 }
0x136b   :  { %v3546_v3 = vadd.f32 %v3545_v57, %v3141_v25  ;;  %v4181_v57 = vld [vmem:[#allocation3 + $0x50] sm:$0xff]  ;;  %v4207_v25 = vld [vmem:[#allocation3 + $0x120] sm:$0xff]  ;;  %v4130_v52 = vmax.f32 %v4066_v9, 0.0 }
0x136d   :  { %v4069_v51 = vadd.f32 %v10136_v32, %v3546_v3  ;;  %v3525_v3 = vadd.f32 %v9108_v23, %v9090_v40  ;;  %v4185_v23 = vld [vmem:[#allocation3 + $0x70] sm:$0xff]  ;;  %v9220_v50 = vpop.f32.mrf.mxu3 }
0x136e   :  { %5251 = vmatmul.f32.gmra.mxu3 %v4181_v57  ;;  %v10143_v32 = vld [vmem:[#allocation46_spill] sm:$0xff] }
0x136f   :  { %v4133_v14 = vmax.f32 %v4069_v51, 0.0  ;;  %v4062_v58 = vadd.f32 %v9079_v37, %v3525_v3  ;;  %v3516_v51 = vadd.f32 %v9046_v56, %v10143_v32  ;;  %v4180_v57 = vld [vmem:[#allocation3 + $0x48] sm:$0xff]  ;;  %v9229_v32 = vpop.permute.xlu2 %3970 }
0x1370   :  { %v9188_v48 = vpop.f32.mrf.mxu2  ;;  %4848 = vmatmul.f32.gmra.mxu0 %v4199_v55  ;;  %v10141_v55 = vld [vmem:[#allocation42_spill] sm:$0xff] }
0x1371   :  { %v4065_v33 = vadd.f32 %v10141_v55, %v3534_v26  ;;  %v4184_v3 = vld [vmem:[#allocation3 + $0x68] sm:$0xff] }
0x1372   :  { %v3548_v27 = vpop.f32.mrf.mxu0 }
0x1373   :  { %v3549_v7 = vadd.f32 %v3548_v27, %v10135_v21  ;;  %v10142_v27 = vld [vmem:[#allocation43_spill] sm:$0xff]  ;;  %v3522_v21 = vadd.f32 %v9095_v34, %v9060_v16  ;;  %v4129_v36 = vmax.f32 %v4065_v33, 0.0  ;;  %v4211_v34 = vld [vmem:[#allocation3 + $0x140] sm:$0xff] }
0x1374   :  { %v4064_v4 = vadd.f32 %v10142_v27, %v3531_v54  ;;  %v4176_v54 = vld [vmem:[#allocation3 + $0x28] sm:$0xff] }
0x1375   :  { %v4070_v10 = vadd.f32 %v10137_v18, %v3549_v7  ;;  %v3519_v7 = vadd.f32 %v9072_v41, %v9022_v2  ;;  %v4061_v16 = vadd.f32 %v9085_v47, %v3522_v21  ;;  %v3811_v18 = vpop.permute.xlu1 %3810  ;;  %v4126_v2 = vmax.f32 %v4062_v58, 0.0  ;;  %v3806_v41 = vpop.permute.xlu0 %3805  ;;  %v4215_v47 = vld [vmem:[#allocation3 + $0x160] sm:$0xff] }
0x1376   :  { %v4128_v40 = vmax.f32 %v4064_v4, 0.0  ;;  %5254 = vmatmul.f32.gmra.mxu3 %v4185_v23  ;;  %v3240_v26 = vpop.f32.mrf.mxu3  ;;  %v4205_v4 = vld [vmem:[#allocation3 + $0x110] sm:$0xff]  ;;  %v4231_v21 = vld [vmem:[#allocation3 + $0x1e0] sm:$0xff]  ;;  %v4192_v23 = vld [vmem:[#allocation3 + $0xa8] sm:$0xff] }
0x1377   :  { %v4134_v35 = vmax.f32 %v4070_v10, 0.0  ;;  %v4060_v10 = vadd.f32 %v3811_v18, %v3519_v7  ;;  %v4125_v30 = vmax.f32 %v4061_v16, 0.0  ;;  %v4209_v7 = vld [vmem:[#allocation3 + $0x130] sm:$0xff] }
0x1378   :  { %v9196_v42 = vpop.f32.mrf.mxu2  ;;  %4851 = vmatmul.f32.gmra.mxu0 %v4203_v0  ;;  %v4059_v0 = vadd.f32 %v3806_v41, %v3516_v51  ;;  %v10145_v41 = vld [vmem:[#allocation11_spill] sm:$0xff] }
0x1379   :  { %5024 = vmatpush.msrb.mxu1 %v4134_v35  ;;  %v4124_v24 = vmax.f32 %v4060_v10, 0.0  ;;  %v4172_v35 = vld [vmem:[#allocation3 + $0x8] sm:$0xff] }
0x137a   :  { %v4123_v56 = vmax.f32 %v4059_v0, 0.0 }
0x137b   :  { %5025 = vmatpush.msrb.mxu1 %v4133_v14  ;;  %v4219_v14 = vld [vmem:[#allocation3 + $0x180] sm:$0xff] }
0x137d   :  { %5026 = vmatpush.msrb.mxu1 %v4132_v1  ;;  %v4223_v1 = vld [vmem:[#allocation3 + $0x1a0] sm:$0xff] }
0x137e   :  { %5257 = vmatmul.f32.gmra.mxu3 %v4189_v53  ;;  %v3243_v9 = vpop.f32.mrf.mxu3  ;;  %v4213_v53 = vld [vmem:[#allocation3 + $0x150] sm:$0xff] }
0x137f   :  { %5027 = vmatpush.msrb.mxu1 %v4131_v6  ;;  %v4201_v6 = vld [vmem:[#allocation3 + $0xf0] sm:$0xff] }
0x1380   :  { %v9212_v17 = vpop.f32.mrf.mxu2  ;;  %4854 = vmatmul.f32.gmra.mxu0 %v4207_v25  ;;  %v4227_v25 = vld [vmem:[#allocation3 + $0x1c0] sm:$0xff] }
0x1381   :  { %5028 = vmatpush.msrb.mxu1 %v4130_v52 }
0x1383   :  { %5029 = vmatpush.msrb.mxu1 %v4129_v36 }
0x1385   :  { %5030 = vmatpush.msrb.mxu1 %v4128_v40  ;;  %v4235_v40 = vld [vmem:[#allocation3 + $0x200] sm:$0xff] }
0x1386   :  { %5260 = vmatmul.f32.gmra.mxu3 %v4193_v39  ;;  %v3246_v33 = vpop.f32.mrf.mxu3 }
0x1387   :  { %5031 = vmatpush.msrb.mxu1 %v4127_v5  ;;  %v9231_v5 = vpop.permute.xlu0 %4648 }
0x1388   :  { %v9225_v37 = vpop.f32.mrf.mxu2  ;;  %4857 = vmatmul.f32.gmra.mxu0 %v4211_v34  ;;  %10144 = vst [vmem:[#allocation45_spill] sm:$0xff] %v9231_v5  ;;  %v4264_v5 = vld [vmem:[#allocation3 + $0x2e8] sm:$0xff] }
0x1389   :  { %5032 = vmatpush.msrb.mxu1 %v4126_v2 }
0x138b   :  { %5033 = vmatpush.msrb.mxu1 %v4125_v30  ;;  %v10146_v30 = vld [vmem:[#allocation10_spill] sm:$0xff] }
0x138d   :  { %5034 = vmatpush.msrb.mxu1 %v4124_v24 }
0x138e   :  { %5263 = vmatmul.f32.gmra.mxu3 %v4197_v28  ;;  %v3249_v52 = vpop.f32.mrf.mxu3  ;;  %v10148_v28 = vld [vmem:[#allocation13_spill] sm:$0xff] }
0x138f   :  { %5035 = vmatpush.msrb.mxu1 %v4123_v56 }
0x1390   :  { %v3641_v12 = vpop.f32.mrf.mxu2  ;;  %4860 = vmatmul.f32.gmra.mxu0 %v4215_v47  ;;  %5036 = vmatmul.f32.vlgmr.msrb.gmra.mxu1 %v4172_v35  ;;  %v10147_v47 = vld [vmem:[#allocation12_spill] sm:$0xff] }
0x1396   :  { %5266 = vmatmul.f32.gmra.mxu3 %v4201_v6  ;;  %v3252_v51 = vpop.f32.mrf.mxu3 }
0x1398   :  { %v3644_v49 = vpop.f32.mrf.mxu2  ;;  %4863 = vmatmul.f32.gmra.mxu0 %v4219_v14  ;;  %5039 = vmatmul.f32.gmra.mxu1 %v4176_v54  ;;  %v4239_v54 = vld [vmem:[#allocation3 + $0x220] sm:$0xff] }
0x1399   :  { %v3645_v56 = vadd.f32 %v3644_v49, %v3240_v26  ;;  %v3639_v26 = vadd.f32 %v9225_v37, %v9201_v31  ;;  %v10149_v49 = vld [vmem:[#allocation17_spill] sm:$0xff] }
0x139b   :  { %v4102_v6 = vadd.f32 %v10149_v49, %v3645_v56  ;;  %v4204_v56 = vld [vmem:[#allocation3 + $0x108] sm:$0xff] }
0x139d   :  { %v4166_v37 = vmax.f32 %v4102_v6, 0.0  ;;  %v4229_v6 = vld [vmem:[#allocation3 + $0x1d0] sm:$0xff] }
0x139e   :  { %5269 = vmatmul.f32.gmra.mxu3 %v4205_v4 }
0x13a0   :  { %v3647_v55 = vpop.f32.mrf.mxu2  ;;  %4866 = vmatmul.f32.gmra.mxu0 %v4223_v1  ;;  %5042 = vmatmul.f32.gmra.mxu1 %v4180_v57  ;;  %v4196_v1 = vld [vmem:[#allocation3 + $0xc8] sm:$0xff]  ;;  %v3642_v57 = vadd.f32 %v3641_v12, %v9220_v50  ;;  %v3636_v50 = vadd.f32 %v9212_v17, %v9190_v8  ;;  %v3630_v8 = vadd.f32 %v9188_v48, %v9180_v38  ;;  %v10152_v17 = vld [vmem:[#allocation32_spill] sm:$0xff] }
0x13a1   :  { %v3648_v2 = vadd.f32 %v3647_v55, %v3243_v9  ;;  %v9240_v55 = vpop.permute.xlu2 %3965  ;;  %v10150_v12 = vld [vmem:[#allocation18_spill] sm:$0xff] }
0x13a6   :  { %5272 = vmatmul.f32.gmra.mxu3 %v4209_v7  ;;  %v4243_v7 = vld [vmem:[#allocation3 + $0x240] sm:$0xff] }
0x13a8   :  { %v3650_v27 = vpop.f32.mrf.mxu2  ;;  %4869 = vmatmul.f32.gmra.mxu0 %v4227_v25  ;;  %5045 = vmatmul.f32.gmra.mxu1 %v4184_v3  ;;  %v9245_v3 = vpop.permute.xlu0 %4553 }
0x13a9   :  { %v3651_v18 = vadd.f32 %v3650_v27, %v3246_v33  ;;  %v4103_v33 = vadd.f32 %v10148_v28, %v3648_v2  ;;  %v4101_v27 = vadd.f32 %v10150_v12, %v3642_v57  ;;  %v10154_v2 = vld [vmem:[#allocation35_spill] sm:$0xff]  ;;  %v4255_v12 = vld [vmem:[#allocation3 + $0x2a0] sm:$0xff] }
0x13aa   :  { %v4097_v38 = vadd.f32 %v10154_v2, %v3630_v8  ;;  %v4186_v2 = vld [vmem:[#allocation3 + $0x78] sm:$0xff] }
0x13ab   :  { %v4104_v35 = vadd.f32 %v10147_v47, %v3651_v18  ;;  %v4167_v4 = vmax.f32 %v4103_v33, 0.0  ;;  %v9261_v18 = vpop.permute.xlu2 %4563 }
0x13ad   :  { %v4168_v25 = vmax.f32 %v4104_v35, 0.0  ;;  %v4161_v35 = vmax.f32 %v4097_v38, 0.0  ;;  %v4241_v38 = vld [vmem:[#allocation3 + $0x230] sm:$0xff] }
0x13ae   :  { %5275 = vmatmul.f32.gmra.mxu3 %v4213_v53  ;;  %v4247_v53 = vld [vmem:[#allocation3 + $0x260] sm:$0xff] }
0x13b0   :  { %v3653_v36 = vpop.f32.mrf.mxu2  ;;  %4872 = vmatmul.f32.gmra.mxu0 %v4231_v21  ;;  %5048 = vmatmul.f32.gmra.mxu1 %v4188_v19  ;;  %v3633_v21 = vadd.f32 %v9196_v42, %v9184_v59  ;;  %v10151_v19 = vld [vmem:[#allocation20_spill] sm:$0xff]  ;;  %v3627_v59 = vadd.f32 %v9186_v13, %v9171_v11  ;;  %v10153_v42 = vld [vmem:[#allocation33_spill] sm:$0xff] }
0x13b1   :  { %v3654_v16 = vadd.f32 %v3653_v36, %v3249_v52  ;;  %v4217_v52 = vld [vmem:[#allocation3 + $0x170] sm:$0xff]  ;;  %v4100_v36 = vadd.f32 %v10151_v19, %v3639_v26 }
0x13b2   :  { %v4096_v11 = vadd.f32 %v9006_v61, %v3627_v59  ;;  %v10157_v61 = vld [vmem:[#allocation48_spill] sm:$0xff] }
0x13b3   :  { %v4105_v0 = vadd.f32 %v10145_v41, %v3654_v16  ;;  %v4098_v16 = vadd.f32 %v10153_v42, %v3633_v21  ;;  %v4221_v41 = vld [vmem:[#allocation3 + $0x190] sm:$0xff]  ;;  %v9282_v57 = vpop.permute.xlu2 %4643  ;;  %v4263_v59 = vld [vmem:[#allocation3 + $0x2e0] sm:$0xff]  ;;  %v4220_v42 = vld [vmem:[#allocation3 + $0x188] sm:$0xff] }
0x13b4   :  { %10158 = vst [vmem:[#allocation30_spill] sm:$0xff] %v9282_v57  ;;  %v4233_v21 = vld [vmem:[#allocation3 + $0x1f0] sm:$0xff]  ;;  %v4307_v57 = vld [vmem:[#allocation3 + $0x440] sm:$0xff] }
0x13b5   :  { %v9227_v58 = vpop.f32.mrf.mxu0  ;;  %v4169_v9 = vmax.f32 %v4105_v0, 0.0  ;;  %v9266_v0 = vpop.permute.xlu0 %4633 }
0x13b6   :  { %5278 = vmatmul.f32.gmra.mxu3 %v4217_v52  ;;  %10155 = vst [vmem:[#allocation14_spill] sm:$0xff] %v9266_v0  ;;  %v4178_v52 = vld [vmem:[#allocation3 + $0x38] sm:$0xff] }
0x13b8   :  { %v3656_v34 = vpop.f32.mrf.mxu2  ;;  %4875 = vmatmul.f32.gmra.mxu0 %v4235_v40  ;;  %5051 = vmatmul.f32.gmra.mxu1 %v4192_v23  ;;  %v4200_v40 = vld [vmem:[#allocation3 + $0xe8] sm:$0xff]  ;;  %v4099_v23 = vadd.f32 %v10152_v17, %v3636_v50  ;;  %v4182_v17 = vld [vmem:[#allocation3 + $0x58] sm:$0xff] }
0x13b9   :  { %v3657_v10 = vadd.f32 %v3656_v34, %v3252_v51  ;;  %v4165_v51 = vmax.f32 %v4101_v27, 0.0  ;;  %v4164_v34 = vmax.f32 %v4100_v36, 0.0  ;;  %v4212_v27 = vld [vmem:[#allocation3 + $0x148] sm:$0xff]  ;;  %v4259_v36 = vld [vmem:[#allocation3 + $0x2c0] sm:$0xff] }
0x13ba   :  { %v4163_v48 = vmax.f32 %v4099_v23, 0.0  ;;  %v4237_v23 = vld [vmem:[#allocation3 + $0x210] sm:$0xff] }
0x13bb   :  { %v4106_v24 = vadd.f32 %v10146_v30, %v3657_v10  ;;  %v3624_v10 = vadd.f32 %v9182_v29, %v9153_v62  ;;  %v3621_v30 = vadd.f32 %v9178_v20, %v9132_v60  ;;  %v3618_v62 = vadd.f32 %v9167_v45, %v9115_v44  ;;  %v10156_v29 = vld [vmem:[#allocation47_spill] sm:$0xff] }
0x13bc   :  { %v3615_v60 = vadd.f32 %v9151_v22, %v9100_v63  ;;  %v4225_v45 = vld [vmem:[#allocation3 + $0x1b0] sm:$0xff]  ;;  %v4251_v22 = vld [vmem:[#allocation3 + $0x280] sm:$0xff] }
0x13bd   :  { %v4170_v39 = vmax.f32 %v4106_v24, 0.0  ;;  %v9236_v14 = vpop.f32.mrf.mxu0  ;;  %v4162_v24 = vmax.f32 %v4098_v16, 0.0  ;;  %v4095_v47 = vadd.f32 %v10156_v29, %v3624_v10  ;;  %v4094_v20 = vadd.f32 %v10157_v61, %v3621_v30  ;;  %v9287_v26 = vpop.permute.xlu0 %4628  ;;  %v4267_v30 = vld [vmem:[#allocation3 + $0x300] sm:$0xff] }
0x13be   :  { %5281 = vmatmul.f32.gmra.mxu3 %v4221_v41  ;;  %v4092_v28 = vadd.f32 %v9229_v32, %v3615_v60  ;;  %10159 = vst [vmem:[#allocation44_spill] sm:$0xff] %v9287_v26  ;;  %v4174_v32 = vld [vmem:[#allocation3 + $0x18] sm:$0xff]  ;;  %v4228_v60 = vld [vmem:[#allocation3 + $0x1c8] sm:$0xff] }
0x13bf   :  { %5438 = vmatpush.msrb.mxu2 %v4170_v39  ;;  %v4160_v39 = vmax.f32 %v4096_v11, 0.0  ;;  %v4159_v44 = vmax.f32 %v4095_v47, 0.0  ;;  %v4158_v63 = vmax.f32 %v4094_v20, 0.0  ;;  %v4224_v11 = vld [vmem:[#allocation3 + $0x1a8] sm:$0xff]  ;;  %v4226_v26 = vld [vmem:[#allocation3 + $0x1b8] sm:$0xff] }
0x13c0   :  { %4878 = vmatmul.f32.gmra.mxu0 %v4239_v54  ;;  %5054 = vmatmul.f32.gmra.mxu1 %v4196_v1  ;;  %v3612_v54 = vadd.f32 %v9137_v46, %v9068_v43  ;;  %v4093_v1 = vadd.f32 %v9161_v15, %v3618_v62  ;;  %v4156_v15 = vmax.f32 %v4092_v28, 0.0  ;;  %v4245_v62 = vld [vmem:[#allocation3 + $0x250] sm:$0xff]  ;;  %v4232_v28 = vld [vmem:[#allocation3 + $0x1e8] sm:$0xff] }
0x13c1   :  { %5439 = vmatpush.msrb.mxu2 %v4169_v9  ;;  %v4208_v9 = vld [vmem:[#allocation3 + $0x128] sm:$0xff] }
0x13c2   :  { %v4091_v43 = vadd.f32 %v9240_v55, %v3612_v54  ;;  %v4157_v46 = vmax.f32 %v4093_v1, 0.0  ;;  %v4249_v54 = vld [vmem:[#allocation3 + $0x270] sm:$0xff] }
0x13c3   :  { %5440 = vmatpush.msrb.mxu2 %v4168_v25  ;;  %v9290_v25 = vpop.permute.xlu1 %4568 }
0x13c4   :  { %v4155_v49 = vmax.f32 %v4091_v43, 0.0  ;;  %v4198_v43 = vld [vmem:[#allocation3 + $0xd8] sm:$0xff] }
0x13c5   :  { %v9253_v31 = vpop.f32.mrf.mxu0  ;;  %5441 = vmatpush.msrb.mxu2 %v4167_v4  ;;  %v9294_v4 = vpop.permute.xlu2 %4548 }
0x13c6   :  { %5284 = vmatmul.f32.gmra.mxu3 %v4225_v45  ;;  %v9296_v55 = vpop.permute.xlu0 %4538  ;;  %v4275_v45 = vld [vmem:[#allocation3 + $0x340] sm:$0xff] }
0x13c7   :  { %5442 = vmatpush.msrb.mxu2 %v4166_v37  ;;  %v4216_v37 = vld [vmem:[#allocation3 + $0x168] sm:$0xff] }
0x13c8   :  { %4881 = vmatmul.f32.gmra.mxu0 %v4243_v7  ;;  %5057 = vmatmul.f32.gmra.mxu1 %v4200_v40 }
0x13c9   :  { %5443 = vmatpush.msrb.mxu2 %v4165_v51 }
0x13cb   :  { %5444 = vmatpush.msrb.mxu2 %v4164_v34  ;;  %v9300_v7 = vpop.permute.xlu1 %4558 }
0x13cd   :  { %v9271_v13 = vpop.f32.mrf.mxu0  ;;  %5445 = vmatpush.msrb.mxu2 %v4163_v48  ;;  %v9302_v40 = vpop.permute.xlu2 %4543 }
0x13ce   :  { %5287 = vmatmul.f32.gmra.mxu3 %v4229_v6  ;;  %v9304_v8 = vpop.permute.xlu0 %4803  ;;  %v4236_v6 = vld [vmem:[#allocation3 + $0x208] sm:$0xff] }
0x13cf   :  { %5446 = vmatpush.msrb.mxu2 %v4162_v24  ;;  %10160 = vst [vmem:[#allocation15_spill] sm:$0xff] %v9304_v8 }
0x13d0   :  { %4884 = vmatmul.f32.gmra.mxu0 %v4247_v53  ;;  %5060 = vmatmul.f32.gmra.mxu1 %v4204_v56  ;;  %v4190_v56 = vld [vmem:[#allocation3 + $0x98] sm:$0xff] }
0x13d1   :  { %5447 = vmatpush.msrb.mxu2 %v4161_v35  ;;  %v4271_v35 = vld [vmem:[#allocation3 + $0x320] sm:$0xff] }
0x13d3   :  { %5448 = vmatpush.msrb.mxu2 %v4160_v39  ;;  %v9310_v34 = vpop.permute.xlu1 %4638  ;;  %v4194_v39 = vld [vmem:[#allocation3 + $0xb8] sm:$0xff] }
0x13d4   :  { %10161 = vst [vmem:[#allocation21_spill] sm:$0xff] %v9310_v34 }
0x13d5   :  { %v9285_v33 = vpop.f32.mrf.mxu0  ;;  %5449 = vmatpush.msrb.mxu2 %v4159_v44  ;;  %v9312_v10 = vpop.permute.xlu2 %4808 }
0x13d6   :  { %5290 = vmatmul.f32.gmra.mxu3 %v4233_v21  ;;  %10162 = vst [vmem:[#allocation23_spill] sm:$0xff] %v9312_v10  ;;  %v9314_v48 = vpop.permute.xlu0 %4713 }
0x13d7   :  { %5450 = vmatpush.msrb.mxu2 %v4158_v63  ;;  %10163 = vst [vmem:[#allocation40_spill] sm:$0xff] %v9314_v48 }
0x13d8   :  { %4887 = vmatmul.f32.gmra.mxu0 %v4251_v22  ;;  %5063 = vmatmul.f32.gmra.mxu1 %v4208_v9 }
0x13d9   :  { %5451 = vmatpush.msrb.mxu2 %v4157_v46  ;;  %v4253_v46 = vld [vmem:[#allocation3 + $0x290] sm:$0xff] }
0x13db   :  { %5452 = vmatpush.msrb.mxu2 %v4156_v15  ;;  %v9320_v53 = vpop.permute.xlu1 %4728 }
0x13dc   :  { %10164 = vst [vmem:[#allocation24_spill] sm:$0xff] %v9320_v53  ;;  %v4277_v53 = vld [vmem:[#allocation3 + $0x350] sm:$0xff] }
0x13dd   :  { %v9292_v50 = vpop.f32.mrf.mxu0  ;;  %5453 = vmatpush.msrb.mxu2 %v4155_v49  ;;  %v9322_v29 = vpop.permute.xlu2 %4718 }
0x13de   :  { %5454 = vmatmul.f32.vlgmr.msrb.gmra.mxu2 %v4174_v32  ;;  %5293 = vmatmul.f32.gmra.mxu3 %v4237_v23  ;;  %10165 = vst [vmem:[#allocation37_spill] sm:$0xff] %v9322_v29  ;;  %v9326_v61 = vpop.permute.xlu0 %4613  ;;  %v4279_v32 = vld [vmem:[#allocation3 + $0x360] sm:$0xff] }
0x13df   :  { %10166 = vst [vmem:[#allocation36_spill] sm:$0xff] %v9326_v61  ;;  %v4285_v61 = vld [vmem:[#allocation3 + $0x390] sm:$0xff] }
0x13e0   :  { %4890 = vmatmul.f32.gmra.mxu0 %v4255_v12  ;;  %5066 = vmatmul.f32.gmra.mxu1 %v4212_v27 }
0x13e1   :  { %v9308_v16 = vpop.f32.mrf.mxu3 }
0x13e3   :  { %v9330_v1 = vpop.permute.xlu1 %4723 }
0x13e4   :  { %10167 = vst [vmem:[#allocation34_spill] sm:$0xff] %v9330_v1 }
0x13e5   :  { %v9298_v19 = vpop.f32.mrf.mxu0  ;;  %v9334_v63 = vpop.permute.xlu2 %4618 }
0x13e6   :  { %5457 = vmatmul.f32.gmra.mxu2 %v4178_v52  ;;  %5296 = vmatmul.f32.gmra.mxu3 %v4241_v38  ;;  %10168 = vst [vmem:[#allocation38_spill] sm:$0xff] %v9334_v63  ;;  %v9338_v9 = vpop.permute.xlu0 %4523  ;;  %v4303_v63 = vld [vmem:[#allocation3 + $0x420] sm:$0xff] }
0x13e8   :  { %4893 = vmatmul.f32.gmra.mxu0 %v4259_v36  ;;  %5069 = vmatmul.f32.gmra.mxu1 %v4216_v37  ;;  %v4202_v36 = vld [vmem:[#allocation3 + $0xf8] sm:$0xff]  ;;  %v4257_v37 = vld [vmem:[#allocation3 + $0x2b0] sm:$0xff] }
0x13e9   :  { %v9318_v24 = vpop.f32.mrf.mxu3 }
0x13eb   :  { %v9344_v12 = vpop.permute.xlu1 %4623 }
0x13ec   :  { %10169 = vst [vmem:[#allocation31_spill] sm:$0xff] %v9344_v12  ;;  %v4260_v12 = vld [vmem:[#allocation3 + $0x2c8] sm:$0xff] }
0x13ed   :  { %v9306_v51 = vpop.f32.mrf.mxu0  ;;  %v9348_v52 = vpop.permute.xlu2 %4528 }
0x13ee   :  { %5460 = vmatmul.f32.gmra.mxu2 %v4182_v17  ;;  %5299 = vmatmul.f32.gmra.mxu3 %v4245_v62  ;;  %v9350_v21 = vpop.permute.xlu0 %4788 }
0x13ef   :  { %10170 = vst [vmem:[#allocation39_spill] sm:$0xff] %v9350_v21 }
0x13f0   :  { %4896 = vmatmul.f32.gmra.mxu0 %v4263_v59  ;;  %5072 = vmatmul.f32.gmra.mxu1 %v4220_v42  ;;  %v4283_v59 = vld [vmem:[#allocation3 + $0x380] sm:$0xff]  ;;  %v4240_v42 = vld [vmem:[#allocation3 + $0x228] sm:$0xff] }
0x13f1   :  { %v9328_v20 = vpop.f32.mrf.mxu3 }
0x13f3   :  { %v9358_v38 = vpop.permute.xlu1 %4533 }
0x13f5   :  { %v9316_v41 = vpop.f32.mrf.mxu0 }
0x13f6   :  { %5463 = vmatmul.f32.gmra.mxu2 %v4186_v2  ;;  %5302 = vmatmul.f32.gmra.mxu3 %v4249_v54  ;;  %v9362_v62 = vpop.permute.xlu0 %4698  ;;  %v4244_v54 = vld [vmem:[#allocation3 + $0x248] sm:$0xff] }
0x13f7   :  { %10172 = vst [vmem:[#allocation25_spill] sm:$0xff] %v9362_v62 }
0x13f8   :  { %4899 = vmatmul.f32.gmra.mxu0 %v4267_v30  ;;  %5075 = vmatmul.f32.gmra.mxu1 %v4224_v11  ;;  %v9360_v30 = vpop.permute.xlu2 %4793  ;;  %v4206_v11 = vld [vmem:[#allocation3 + $0x118] sm:$0xff] }
0x13f9   :  { %v9336_v22 = vpop.f32.mrf.mxu3  ;;  %10171 = vst [vmem:[#allocation29_spill] sm:$0xff] %v9360_v30  ;;  %v4295_v30 = vld [vmem:[#allocation3 + $0x3e0] sm:$0xff] }
0x13fd   :  { %v9324_v47 = vpop.f32.mrf.mxu0 }
0x13fe   :  { %5466 = vmatmul.f32.gmra.mxu2 %v4190_v56  ;;  %5305 = vmatmul.f32.gmra.mxu3 %v4253_v46  ;;  %v4261_v56 = vld [vmem:[#allocation3 + $0x2d0] sm:$0xff] }
0x13ff   :  { %v4265_v46 = vld [vmem:[#allocation3 + $0x2f0] sm:$0xff] }
0x1400   :  { %4902 = vmatmul.f32.gmra.mxu0 %v4271_v35  ;;  %5078 = vmatmul.f32.gmra.mxu1 %v4228_v60 }
0x1401   :  { %v9346_v27 = vpop.f32.mrf.mxu3 }
0x1405   :  { %v9332_v44 = vpop.f32.mrf.mxu0 }
0x1406   :  { %5469 = vmatmul.f32.gmra.mxu2 %v4194_v39  ;;  %5308 = vmatmul.f32.gmra.mxu3 %v4257_v37  ;;  %v4287_v39 = vld [vmem:[#allocation3 + $0x3a0] sm:$0xff] }
0x1407   :  { %v4291_v37 = vld [vmem:[#allocation3 + $0x3c0] sm:$0xff] }
0x1408   :  { %4905 = vmatmul.f32.gmra.mxu0 %v4275_v45  ;;  %5081 = vmatmul.f32.gmra.mxu1 %v4232_v28  ;;  %v9370_v28 = vpop.permute.xlu1 %4798 }
0x1409   :  { %v9356_v2 = vpop.f32.mrf.mxu3  ;;  %10173 = vst [vmem:[#allocation22_spill] sm:$0xff] %v9370_v28  ;;  %v4252_v28 = vld [vmem:[#allocation3 + $0x288] sm:$0xff] }
0x140d   :  { %v9340_v15 = vpop.f32.mrf.mxu0  ;;  %v9342_v49 = vpop.f32.mrf.mxu1 }
0x140e   :  { %5472 = vmatmul.f32.gmra.mxu2 %v4198_v43  ;;  %5311 = vmatmul.f32.gmra.mxu3 %v4261_v56  ;;  %v4210_v43 = vld [vmem:[#allocation3 + $0x138] sm:$0xff] }
0x140f   :  { %v4214_v56 = vld [vmem:[#allocation3 + $0x158] sm:$0xff] }
0x1410   :  { %4908 = vmatmul.f32.gmra.mxu0 %v4279_v32  ;;  %5084 = vmatmul.f32.gmra.mxu1 %v4236_v6  ;;  %v9372_v32 = vpop.permute.xlu2 %4703 }
0x1411   :  { %v9368_v45 = vpop.f32.mrf.mxu3  ;;  %10174 = vst [vmem:[#allocation19_spill] sm:$0xff] %v9372_v32  ;;  %v4299_v32 = vld [vmem:[#allocation3 + $0x400] sm:$0xff] }
0x1415   :  { %v9352_v17 = vpop.f32.mrf.mxu0  ;;  %v9354_v23 = vpop.f32.mrf.mxu1 }
0x1416   :  { %5475 = vmatmul.f32.gmra.mxu2 %v4202_v36  ;;  %5314 = vmatmul.f32.gmra.mxu3 %v4265_v46 }
0x1418   :  { %4911 = vmatmul.f32.gmra.mxu0 %v4283_v59  ;;  %5087 = vmatmul.f32.gmra.mxu1 %v4240_v42  ;;  %v4248_v59 = vld [vmem:[#allocation3 + $0x268] sm:$0xff]  ;;  %v9378_v42 = vpop.permute.xlu0 %4598  ;;  %v9386_v10 = vpop.permute.xlu2 %4603 }
0x1419   :  { %10175 = vst [vmem:[#allocation9_spill] sm:$0xff] %v9378_v42  ;;  %v4315_v42 = vld [vmem:[#allocation3 + $0x480] sm:$0xff] }
0x141a   :  { %10177 = vst [vmem:[#allocation16_spill] sm:$0xff] %v9386_v10  ;;  %v4268_v10 = vld [vmem:[#allocation3 + $0x308] sm:$0xff] }
0x141d   :  { %v9364_v35 = vpop.f32.mrf.mxu0  ;;  %v9366_v60 = vpop.f32.mrf.mxu1 }
0x141e   :  { %5478 = vmatmul.f32.gmra.mxu2 %v4206_v11  ;;  %v9380_v11 = vpop.f32.mrf.mxu3 }
0x1420   :  { %4914 = vmatmul.f32.gmra.mxu0 %v4287_v39  ;;  %5090 = vmatmul.f32.gmra.mxu1 %v4244_v54  ;;  %v4269_v39 = vld [vmem:[#allocation3 + $0x310] sm:$0xff]  ;;  %v9382_v54 = vpop.permute.xlu1 %4708  ;;  %v9398_v29 = vpop.permute.xlu2 %4513 }
0x1421   :  { %10176 = vst [vmem:[#allocation26_spill] sm:$0xff] %v9382_v54  ;;  %5317 = vmatmul.f32.gmra.mxu3 %v4269_v39  ;;  %v4256_v54 = vld [vmem:[#allocation3 + $0x2a8] sm:$0xff]  ;;  %v4222_v39 = vld [vmem:[#allocation3 + $0x198] sm:$0xff] }
0x1425   :  { %v9374_v6 = vpop.f32.mrf.mxu0  ;;  %v9376_v36 = vpop.f32.mrf.mxu1 }
0x1426   :  { %5481 = vmatmul.f32.gmra.mxu2 %v4210_v43  ;;  %v9390_v43 = vpop.permute.xlu0 %4508  ;;  %v9392_v46 = vpop.f32.mrf.mxu3 }
0x1428   :  { %4917 = vmatmul.f32.gmra.mxu0 %v4291_v37  ;;  %5093 = vmatmul.f32.gmra.mxu1 %v4248_v59  ;;  %v4218_v37 = vld [vmem:[#allocation3 + $0x178] sm:$0xff]  ;;  %v4273_v59 = vld [vmem:[#allocation3 + $0x330] sm:$0xff]  ;;  %v9396_v48 = vpop.permute.xlu1 %4608 }
0x1429   :  { %10178 = vst [vmem:[#allocation27_spill] sm:$0xff] %v9396_v48  ;;  %5320 = vmatmul.f32.gmra.mxu3 %v4273_v59 }
0x142d   :  { %v9384_v21 = vpop.f32.mrf.mxu1  ;;  %v9388_v8 = vpop.f32.mrf.mxu0 }
0x142e   :  { %5484 = vmatmul.f32.gmra.mxu2 %v4214_v56 }
0x1430   :  { %4920 = vmatmul.f32.gmra.mxu0 %v4295_v30  ;;  %5096 = vmatmul.f32.gmra.mxu1 %v4252_v28  ;;  %v9402_v30 = vpop.f32.mrf.mxu3  ;;  %v9404_v28 = vpop.permute.xlu0 %4773 }
0x1431   :  { %10179 = vst [vmem:[#allocation28_spill] sm:$0xff] %v9402_v30  ;;  %5323 = vmatmul.f32.gmra.mxu3 %v4277_v53 }
0x1432   :  { %10180 = vst [vmem:[#allocation41_spill] sm:$0xff] %v9404_v28  ;;  %v4281_v28 = vld [vmem:[#allocation3 + $0x370] sm:$0xff] }
0x1435   :  { %v9394_v62 = vpop.f32.mrf.mxu1  ;;  %v9400_v56 = vpop.f32.mrf.mxu0 }
0x1436   :  { %5487 = vmatmul.f32.gmra.mxu2 %v4218_v37  ;;  %v9408_v37 = vpop.permute.xlu1 %4518 }
0x1438   :  { %4923 = vmatmul.f32.gmra.mxu0 %v4299_v32  ;;  %5099 = vmatmul.f32.gmra.mxu1 %v4256_v54  ;;  %v9410_v59 = vpop.f32.mrf.mxu3  ;;  %v9412_v32 = vpop.permute.xlu2 %4778 }
0x1439   :  { %10181 = vst [vmem:[#allocation42_spill] sm:$0xff] %v9410_v59  ;;  %v9416_v0 = vpop.permute.xlu0 %4683  ;;  %5326 = vmatmul.f32.gmra.mxu3 %v4281_v28 }
0x143a   :  { %10182 = vst [vmem:[#allocation43_spill] sm:$0xff] %v9412_v32 }
0x143b   :  { %10184 = vst [vmem:[#allocation11_spill] sm:$0xff] %v9416_v0  ;;  %v4311_v0 = vld [vmem:[#allocation3 + $0x460] sm:$0xff] }
0x143d   :  { %v9406_v1 = vpop.f32.mrf.mxu1  ;;  %v9414_v54 = vpop.f32.mrf.mxu0 }
0x143e   :  { %5490 = vmatmul.f32.gmra.mxu2 %v4222_v39  ;;  %10183 = vst [vmem:[#allocation46_spill] sm:$0xff] %v9414_v54 }
0x1440   :  { %4926 = vmatmul.f32.gmra.mxu0 %v4303_v63  ;;  %5102 = vmatmul.f32.gmra.mxu1 %v4260_v12  ;;  %v9420_v53 = vpop.f32.mrf.mxu3  ;;  %v9422_v63 = vpop.permute.xlu1 %4783  ;;  %v4230_v12 = vld [vmem:[#allocation3 + $0x1d8] sm:$0xff] }
0x1441   :  { %10185 = vst [vmem:[#allocation10_spill] sm:$0xff] %v9420_v53  ;;  %v9424_v39 = vpop.permute.xlu2 %4688  ;;  %5329 = vmatmul.f32.gmra.mxu3 %v4285_v61  ;;  %v4319_v53 = vld [vmem:[#allocation3 + $0x4a0] sm:$0xff] }
0x1442   :  { %10186 = vst [vmem:[#allocation12_spill] sm:$0xff] %v9422_v63  ;;  %v4289_v63 = vld [vmem:[#allocation3 + $0x3b0] sm:$0xff] }
0x1443   :  { %10187 = vst [vmem:[#allocation13_spill] sm:$0xff] %v9424_v39 }
0x1445   :  { %v9418_v34 = vpop.f32.mrf.mxu1  ;;  %v9426_v32 = vpop.f32.mrf.mxu0 }
0x1446   :  { %5493 = vmatmul.f32.gmra.mxu2 %v4226_v26  ;;  %10188 = vst [vmem:[#allocation17_spill] sm:$0xff] %v9426_v32  ;;  %v9430_v26 = vpop.permute.xlu0 %4583  ;;  %v4272_v32 = vld [vmem:[#allocation3 + $0x328] sm:$0xff] }
0x1447   :  { %10189 = vst [vmem:[#allocation18_spill] sm:$0xff] %v9430_v26  ;;  %v4293_v26 = vld [vmem:[#allocation3 + $0x3d0] sm:$0xff] }
0x1448   :  { %4929 = vmatmul.f32.gmra.mxu0 %v4307_v57  ;;  %5105 = vmatmul.f32.gmra.mxu1 %v4264_v5  ;;  %v9432_v5 = vpop.f32.mrf.mxu3  ;;  %v4234_v57 = vld [vmem:[#allocation3 + $0x1f8] sm:$0xff]  ;;  %v9434_v28 = vpop.permute.xlu1 %4693 }
0x1449   :  { %10190 = vst [vmem:[#allocation20_spill] sm:$0xff] %v9432_v5  ;;  %v9438_v30 = vpop.permute.xlu2 %4588  ;;  %5332 = vmatmul.f32.gmra.mxu3 %v4289_v63  ;;  %v4280_v5 = vld [vmem:[#allocation3 + $0x368] sm:$0xff] }
0x144a   :  { %10191 = vst [vmem:[#allocation32_spill] sm:$0xff] %v9434_v28 }
0x144b   :  { %10193 = vst [vmem:[#allocation35_spill] sm:$0xff] %v9438_v30 }
0x144d   :  { %v9428_v48 = vpop.f32.mrf.mxu1  ;;  %v9440_v54 = vpop.f32.mrf.mxu0 }
0x144e   :  { %5496 = vmatmul.f32.gmra.mxu2 %v4230_v12  ;;  %10194 = vst [vmem:[#allocation47_spill] sm:$0xff] %v9440_v54  ;;  %v4238_v12 = vld [vmem:[#allocation3 + $0x218] sm:$0xff] }
0x1450   :  { %4932 = vmatmul.f32.gmra.mxu0 %v4311_v0  ;;  %5108 = vmatmul.f32.gmra.mxu1 %v4268_v10  ;;  %v4494_v0 = vpop.permute.xlu0 %4493  ;;  %v9442_v10 = vpop.f32.mrf.mxu3 }
0x1451   :  { %v4829_v61 = vadd.f32 %v9227_v58, %v4494_v0  ;;  %v9448_v30 = vpop.permute.xlu1 %4593  ;;  %5335 = vmatmul.f32.gmra.mxu3 %v4293_v26  ;;  %v4499_v63 = vpop.permute.xlu2 %4498  ;;  %v4323_v26 = vld [vmem:[#allocation3 + $0x4c0] sm:$0xff] }
0x1452   :  { %10195 = vst [vmem:[#allocation48_spill] sm:$0xff] %v9448_v30  ;;  %v4297_v30 = vld [vmem:[#allocation3 + $0x3f0] sm:$0xff] }
0x1453   :  { %v5038_v28 = vadd.f32 %v9342_v49, %v4829_v61  ;;  %v4832_v49 = vadd.f32 %v9236_v14, %v4499_v63  ;;  %v4242_v61 = vld [vmem:[#allocation3 + $0x238] sm:$0xff] }
0x1455   :  { %v9436_v39 = vpop.f32.mrf.mxu1  ;;  %v5041_v54 = vadd.f32 %v9354_v23, %v4832_v49  ;;  %v4301_v49 = vld [vmem:[#allocation3 + $0x410] sm:$0xff] }
0x1456   :  { %10192 = vst [vmem:[#allocation33_spill] sm:$0xff] %v9436_v39  ;;  %5499 = vmatmul.f32.gmra.mxu2 %v4234_v57  ;;  %v4276_v39 = vld [vmem:[#allocation3 + $0x348] sm:$0xff] }
0x1458   :  { %4935 = vmatmul.f32.gmra.mxu0 %v4315_v42  ;;  %5111 = vmatmul.f32.gmra.mxu1 %v4272_v32  ;;  %v5247_v42 = vadd.f32 %v9308_v16, %v5038_v28  ;;  %v9451_v32 = vpop.f32.mrf.mxu0  ;;  %v9453_v57 = vpop.f32.mrf.mxu3 }
0x1459   :  { %5338 = vmatmul.f32.gmra.mxu3 %v4297_v30  ;;  %v4504_v16 = vpop.permute.xlu1 %4503  ;;  %v4327_v30 = vld [vmem:[#allocation3 + $0x4e0] sm:$0xff] }
0x145a   :  { %v4835_v14 = vadd.f32 %v9253_v31, %v4504_v16 }
0x145d   :  { %v9446_v59 = vpop.f32.mrf.mxu1 }
0x145e   :  { %5502 = vmatmul.f32.gmra.mxu2 %v4238_v12 }
0x1460   :  { %4938 = vmatmul.f32.gmra.mxu0 %v4319_v53  ;;  %5114 = vmatmul.f32.gmra.mxu1 %v4276_v39  ;;  %v5250_v53 = vadd.f32 %v9318_v24, %v5041_v54  ;;  %v9462_v28 = vpop.f32.mrf.mxu3  ;;  %v9465_v63 = vpop.f32.mrf.mxu0 }
0x1461   :  { %v5455_v58 = vpop.f32.mrf.mxu2  ;;  %5341 = vmatmul.f32.gmra.mxu3 %v4301_v49  ;;  %v4254_v49 = vld [vmem:[#allocation3 + $0x298] sm:$0xff] }
0x1462   :  { %v9456_v0 = vadd.f32 %v5455_v58, %v5247_v42  ;;  %v4246_v42 = vld [vmem:[#allocation3 + $0x258] sm:$0xff]  ;;  %v5044_v58 = vadd.f32 %v9366_v60, %v4835_v14 }
0x1463   :  { %v4250_v60 = vld [vmem:[#allocation3 + $0x278] sm:$0xff] }
0x1464   :  { %10196 = vst [vmem:[#allocation49_spill] sm:$0xff] %v9456_v0  ;;  %v4284_v0 = vld [vmem:[#allocation3 + $0x388] sm:$0xff]  ;;  %v5253_v24 = vadd.f32 %v9328_v20, %v5044_v58 }
0x1465   :  { %v9459_v12 = vpop.f32.mrf.mxu1  ;;  %v4288_v20 = vld [vmem:[#allocation3 + $0x3a8] sm:$0xff] }
0x1466   :  { %5505 = vmatmul.f32.gmra.mxu2 %v4242_v61 }
0x1468   :  { %4941 = vmatmul.f32.gmra.mxu0 %v4323_v26  ;;  %5117 = vmatmul.f32.gmra.mxu1 %v4280_v5  ;;  %v9473_v31 = vpop.f32.mrf.mxu3  ;;  %v4838_v5 = vadd.f32 %v9271_v13, %v9390_v43  ;;  %v4841_v43 = vadd.f32 %v9285_v33, %v9398_v29  ;;  %v4844_v29 = vadd.f32 %v9292_v50, %v9408_v37 }
0x1469   :  { %v5458_v39 = vpop.f32.mrf.mxu2  ;;  %v4847_v37 = vadd.f32 %v9298_v19, %v9338_v9  ;;  %v4850_v19 = vadd.f32 %v9306_v51, %v9348_v52  ;;  %v4853_v52 = vadd.f32 %v9316_v41, %v9358_v38 }
0x146a   :  { %v9467_v23 = vadd.f32 %v5458_v39, %v5250_v53  ;;  %v5047_v16 = vadd.f32 %v9376_v36, %v4838_v5  ;;  %v9480_v53 = vpop.f32.mrf.mxu0  ;;  %v4305_v39 = vld [vmem:[#allocation3 + $0x430] sm:$0xff]  ;;  %v4335_v5 = vld [vmem:[#allocation3 + $0x520] sm:$0xff] }
0x146b   :  { %10197 = vst [vmem:[#allocation50_spill] sm:$0xff] %v9480_v53  ;;  %5344 = vmatmul.f32.gmra.mxu3 %v4305_v39 }
0x146d   :  { %v9470_v61 = vpop.f32.mrf.mxu1 }
0x146e   :  { %5508 = vmatmul.f32.gmra.mxu2 %v4246_v42  ;;  %v4331_v42 = vld [vmem:[#allocation3 + $0x500] sm:$0xff] }
0x1470   :  { %4944 = vmatmul.f32.gmra.mxu0 %v4327_v30  ;;  %5120 = vmatmul.f32.gmra.mxu1 %v4284_v0  ;;  %v5256_v0 = vadd.f32 %v9336_v22, %v5047_v16  ;;  %v9485_v13 = vpop.f32.mrf.mxu3  ;;  %v5050_v30 = vadd.f32 %v9384_v21, %v4841_v43  ;;  %v4339_v43 = vld [vmem:[#allocation3 + $0x540] sm:$0xff] }
0x1471   :  { %v5461_v54 = vpop.f32.mrf.mxu2 }
0x1472   :  { %v9477_v26 = vadd.f32 %v5461_v54, %v5253_v24  ;;  %v4309_v24 = vld [vmem:[#allocation3 + $0x450] sm:$0xff]  ;;  %v9494_v39 = vpop.f32.mrf.mxu0  ;;  %v5259_v22 = vadd.f32 %v9346_v27, %v5050_v30 }
0x1473   :  { %10198 = vst [vmem:[#allocation51_spill] sm:$0xff] %v9494_v39  ;;  %5347 = vmatmul.f32.gmra.mxu3 %v4309_v24  ;;  %v4371_v39 = vld [vmem:[#allocation3 + $0x640] sm:$0xff] }
0x1475   :  { %v9482_v14 = vpop.f32.mrf.mxu1 }
0x1476   :  { %5511 = vmatmul.f32.gmra.mxu2 %v4250_v60  ;;  %v4292_v60 = vld [vmem:[#allocation3 + $0x3c8] sm:$0xff] }
0x1478   :  { %4947 = vmatmul.f32.gmra.mxu0 %v4331_v42  ;;  %5123 = vmatmul.f32.gmra.mxu1 %v4288_v20  ;;  %v9497_v33 = vpop.f32.mrf.mxu3  ;;  %v4258_v42 = vld [vmem:[#allocation3 + $0x2b8] sm:$0xff]  ;;  %v5053_v20 = vadd.f32 %v9394_v62, %v4844_v29  ;;  %v4343_v29 = vld [vmem:[#allocation3 + $0x560] sm:$0xff] }
0x1479   :  { %v5464_v58 = vpop.f32.mrf.mxu2 }
0x147a   :  { %v9489_v36 = vadd.f32 %v5464_v58, %v5256_v0  ;;  %v4313_v0 = vld [vmem:[#allocation3 + $0x470] sm:$0xff]  ;;  %v5262_v27 = vadd.f32 %v9356_v2, %v5053_v20  ;;  %v9507_v30 = vpop.f32.mrf.mxu0  ;;  %v4300_v2 = vld [vmem:[#allocation3 + $0x408] sm:$0xff] }
0x147b   :  { %5350 = vmatmul.f32.gmra.mxu3 %v4313_v0  ;;  %10199 = vst [vmem:[#allocation52_spill] sm:$0xff] %v9507_v30  ;;  %v4367_v30 = vld [vmem:[#allocation3 + $0x620] sm:$0xff] }
0x147d   :  { %v9492_v54 = vpop.f32.mrf.mxu1 }
0x147e   :  { %5514 = vmatmul.f32.gmra.mxu2 %v4254_v49  ;;  %v4296_v49 = vld [vmem:[#allocation3 + $0x3e8] sm:$0xff] }
0x1480   :  { %4950 = vmatmul.f32.gmra.mxu0 %v4335_v5  ;;  %5126 = vmatmul.f32.gmra.mxu1 %v4292_v60  ;;  %v9509_v50 = vpop.f32.mrf.mxu3  ;;  %v4262_v5 = vld [vmem:[#allocation3 + $0x2d8] sm:$0xff]  ;;  %v5056_v60 = vadd.f32 %v9406_v1, %v4847_v37  ;;  %v4347_v37 = vld [vmem:[#allocation3 + $0x580] sm:$0xff] }
0x1481   :  { %v5467_v16 = vpop.f32.mrf.mxu2 }
0x1482   :  { %v9501_v21 = vadd.f32 %v5467_v16, %v5259_v22  ;;  %v4317_v22 = vld [vmem:[#allocation3 + $0x490] sm:$0xff]  ;;  %v9523_v9 = vpop.f32.mrf.mxu0 }
0x1483   :  { %5353 = vmatmul.f32.gmra.mxu3 %v4317_v22  ;;  %10200 = vst [vmem:[#allocation53_spill] sm:$0xff] %v9523_v9  ;;  %v4363_v9 = vld [vmem:[#allocation3 + $0x600] sm:$0xff] }
0x1485   :  { %v9504_v58 = vpop.f32.mrf.mxu1 }
0x1486   :  { %5517 = vmatmul.f32.gmra.mxu2 %v4258_v42  ;;  %v5265_v42 = vadd.f32 %v9368_v45, %v5056_v60  ;;  %v4304_v45 = vld [vmem:[#allocation3 + $0x428] sm:$0xff] }
0x1488   :  { %4953 = vmatmul.f32.gmra.mxu0 %v4339_v43  ;;  %5129 = vmatmul.f32.gmra.mxu1 %v4296_v49  ;;  %v9519_v0 = vpop.f32.mrf.mxu3  ;;  %v4266_v43 = vld [vmem:[#allocation3 + $0x2f8] sm:$0xff]  ;;  %v5059_v49 = vadd.f32 %v9418_v34, %v4850_v19  ;;  %v4351_v19 = vld [vmem:[#allocation3 + $0x5a0] sm:$0xff] }
0x1489   :  { %v5470_v24 = vpop.f32.mrf.mxu2  ;;  %v4270_v34 = vld [vmem:[#allocation3 + $0x318] sm:$0xff] }
0x148a   :  { %v9513_v62 = vadd.f32 %v5470_v24, %v5262_v27  ;;  %v4321_v27 = vld [vmem:[#allocation3 + $0x4b0] sm:$0xff] }
0x148b   :  { %5356 = vmatmul.f32.gmra.mxu3 %v4321_v27  ;;  %v4274_v27 = vld [vmem:[#allocation3 + $0x338] sm:$0xff] }
0x148d   :  { %v9516_v16 = vpop.f32.mrf.mxu1 }
0x148e   :  { %5520 = vmatmul.f32.gmra.mxu2 %v4262_v5  ;;  %v5268_v5 = vadd.f32 %v9380_v11, %v5059_v49  ;;  %v4308_v11 = vld [vmem:[#allocation3 + $0x448] sm:$0xff] }
0x1490   :  { %4956 = vmatmul.f32.gmra.mxu0 %v4343_v29  ;;  %5132 = vmatmul.f32.gmra.mxu1 %v4300_v2  ;;  %v9531_v51 = vpop.f32.mrf.mxu3  ;;  %v5062_v29 = vadd.f32 %v9428_v48, %v4853_v52  ;;  %v9538_v2 = vpop.f32.mrf.mxu0  ;;  %v4329_v48 = vld [vmem:[#allocation3 + $0x4f0] sm:$0xff] }
0x1491   :  { %v5473_v20 = vpop.f32.mrf.mxu2  ;;  %10201 = vst [vmem:[#allocation54_spill] sm:$0xff] %v9538_v2  ;;  %v4320_v2 = vld [vmem:[#allocation3 + $0x4a8] sm:$0xff] }
0x1492   :  { %v9525_v1 = vadd.f32 %v5473_v20, %v5265_v42  ;;  %v4325_v42 = vld [vmem:[#allocation3 + $0x4d0] sm:$0xff] }
0x1493   :  { %5359 = vmatmul.f32.gmra.mxu3 %v4325_v42 }
0x1495   :  { %v9528_v24 = vpop.f32.mrf.mxu1 }
0x1496   :  { %5523 = vmatmul.f32.gmra.mxu2 %v4266_v43  ;;  %v5271_v43 = vadd.f32 %v9392_v46, %v5062_v29  ;;  %v4333_v29 = vld [vmem:[#allocation3 + $0x510] sm:$0xff] }
0x1498   :  { %4959 = vmatmul.f32.gmra.mxu0 %v4347_v37  ;;  %5135 = vmatmul.f32.gmra.mxu1 %v4304_v45  ;;  %v9543_v41 = vpop.f32.mrf.mxu3  ;;  %v4355_v45 = vld [vmem:[#allocation3 + $0x5c0] sm:$0xff] }
0x1499   :  { %v5476_v60 = vpop.f32.mrf.mxu2  ;;  %10202 = vst [vmem:[#allocation55_spill] sm:$0xff] %v9543_v41  ;;  %v4328_v41 = vld [vmem:[#allocation3 + $0x4e8] sm:$0xff] }
0x149a   :  { %v9535_v22 = vadd.f32 %v5476_v60, %v5268_v5  ;;  %v4312_v5 = vld [vmem:[#allocation3 + $0x468] sm:$0xff]  ;;  %v9549_v60 = vpop.f32.mrf.mxu0 }
0x149b   :  { %10203 = vst [vmem:[#allocation56_spill] sm:$0xff] %v9549_v60  ;;  %5362 = vmatmul.f32.gmra.mxu3 %v4329_v48  ;;  %v4282_v48 = vld [vmem:[#allocation3 + $0x378] sm:$0xff] }
0x149c   :  { %v4286_v60 = vld [vmem:[#allocation3 + $0x398] sm:$0xff] }
0x149d   :  { %v9540_v20 = vpop.f32.mrf.mxu1 }
0x149e   :  { %5526 = vmatmul.f32.gmra.mxu2 %v4270_v34  ;;  %v4278_v34 = vld [vmem:[#allocation3 + $0x358] sm:$0xff] }
0x14a0   :  { %4962 = vmatmul.f32.gmra.mxu0 %v4351_v19  ;;  %5138 = vmatmul.f32.gmra.mxu1 %v4308_v11  ;;  %v9553_v52 = vpop.f32.mrf.mxu3  ;;  %v4359_v19 = vld [vmem:[#allocation3 + $0x5e0] sm:$0xff]  ;;  %v4316_v11 = vld [vmem:[#allocation3 + $0x488] sm:$0xff] }
0x14a1   :  { %v5479_v49 = vpop.f32.mrf.mxu2  ;;  %10204 = vst [vmem:[#allocation57_spill] sm:$0xff] %v9553_v52  ;;  %v4324_v52 = vld [vmem:[#allocation3 + $0x4c8] sm:$0xff] }
0x14a2   :  { %v9545_v38 = vadd.f32 %v5479_v49, %v5271_v43  ;;  %v9557_v43 = vpop.f32.mrf.mxu0 }
0x14a3   :  { %5365 = vmatmul.f32.gmra.mxu3 %v4333_v29  ;;  %10205 = vst [vmem:[#allocation58_spill] sm:$0xff] %v9557_v43  ;;  %v4341_v43 = vld [vmem:[#allocation3 + $0x550] sm:$0xff] }
0x14a5   :  { %v9547_v37 = vpop.f32.mrf.mxu1 }
0x14a6   :  { %5529 = vmatmul.f32.gmra.mxu2 %v4274_v27 }
0x14a8   :  { %4965 = vmatmul.f32.gmra.mxu0 %v4355_v45  ;;  %5141 = vmatmul.f32.gmra.mxu1 %v4312_v5  ;;  %v9561_v27 = vpop.f32.mrf.mxu3  ;;  %v4337_v45 = vld [vmem:[#allocation3 + $0x530] sm:$0xff] }
0x14a9   :  { %v9551_v46 = vpop.f32.mrf.mxu2  ;;  %10206 = vst [vmem:[#allocation59_spill] sm:$0xff] %v9561_v27 }
0x14ab   :  { %5368 = vmatmul.f32.gmra.mxu3 %v4337_v45 }
0x14ad   :  { %v9555_v42 = vpop.f32.mrf.mxu1 }
0x14ae   :  { %5532 = vmatmul.f32.gmra.mxu2 %v4278_v34 }
0x14b0   :  { %4968 = vmatmul.f32.gmra.mxu0 %v4359_v19  ;;  %5144 = vmatmul.f32.gmra.mxu1 %v4316_v11  ;;  %v9567_v29 = vpop.f32.mrf.mxu3  ;;  %v9569_v19 = vpop.permute.xlu1 %4768 }
0x14b1   :  { %v9559_v49 = vpop.f32.mrf.mxu2  ;;  %10207 = vst [vmem:[#allocation60_spill] sm:$0xff] %v9567_v29  ;;  %v9571_v11 = vpop.f32.mrf.mxu0  ;;  %v4345_v29 = vld [vmem:[#allocation3 + $0x570] sm:$0xff] }
0x14b2   :  { %10208 = vst [vmem:[#allocation61_spill] sm:$0xff] %v9569_v19 }
0x14b3   :  { %10209 = vst [vmem:[#allocation62_spill] sm:$0xff] %v9571_v11  ;;  %5371 = vmatmul.f32.gmra.mxu3 %v4341_v43  ;;  %v4349_v43 = vld [vmem:[#allocation3 + $0x590] sm:$0xff] }
0x14b5   :  { %v9563_v5 = vpop.f32.mrf.mxu1 }
0x14b6   :  { %5535 = vmatmul.f32.gmra.mxu2 %v4282_v48  ;;  %v4290_v48 = vld [vmem:[#allocation3 + $0x3b8] sm:$0xff] }
0x14b8   :  { %4971 = vmatmul.f32.gmra.mxu0 %v4363_v9  ;;  %5147 = vmatmul.f32.gmra.mxu1 %v4320_v2  ;;  %v9577_v2 = vpop.f32.mrf.mxu3  ;;  %v9579_v45 = vpop.permute.xlu1 %4678 }
0x14b9   :  { %v9565_v34 = vpop.f32.mrf.mxu2  ;;  %10211 = vst [vmem:[#allocation64_spill] sm:$0xff] %v9577_v2  ;;  %v9581_v19 = vpop.f32.mrf.mxu0 }
0x14ba   :  { %10212 = vst [vmem:[#allocation65_spill] sm:$0xff] %v9579_v45  ;;  %v4332_v45 = vld [vmem:[#allocation3 + $0x508] sm:$0xff] }
0x14bb   :  { %10213 = vst [vmem:[#allocation66_spill] sm:$0xff] %v9581_v19  ;;  %5374 = vmatmul.f32.gmra.mxu3 %v4345_v29 }
0x14bd   :  { %v9573_v27 = vpop.f32.mrf.mxu1 }
0x14be   :  { %10210 = vst [vmem:[#allocation63_spill] sm:$0xff] %v9573_v27  ;;  %5538 = vmatmul.f32.gmra.mxu2 %v4286_v60  ;;  %v4375_v27 = vld [vmem:[#allocation3 + $0x660] sm:$0xff] }
0x14c0   :  { %4974 = vmatmul.f32.gmra.mxu0 %v4367_v30  ;;  %5150 = vmatmul.f32.gmra.mxu1 %v4324_v52  ;;  %v9585_v60 = vpop.f32.mrf.mxu3  ;;  %v4294_v52 = vld [vmem:[#allocation3 + $0x3d8] sm:$0xff]  ;;  %v9589_v53 = vpop.permute.xlu1 %4578 }
0x14c1   :  { %v9575_v9 = vpop.f32.mrf.mxu2  ;;  %10215 = vst [vmem:[#allocation68_spill] sm:$0xff] %v9585_v60  ;;  %v9591_v19 = vpop.f32.mrf.mxu0  ;;  %v4298_v60 = vld [vmem:[#allocation3 + $0x3f8] sm:$0xff] }
0x14c2   :  { %10217 = vst [vmem:[#allocation70_spill] sm:$0xff] %v9591_v19  ;;  %v4868_v19 = vadd.f32 %v9364_v35, %v9300_v7  ;;  %v4862_v7 = vadd.f32 %v9340_v15, %v9294_v4 }
0x14c3   :  { %5377 = vmatmul.f32.gmra.mxu3 %v4349_v43  ;;  %v4336_v43 = vld [vmem:[#allocation3 + $0x528] sm:$0xff] }
0x14c5   :  { %v9583_v11 = vpop.f32.mrf.mxu1 }
0x14c6   :  { %10214 = vst [vmem:[#allocation67_spill] sm:$0xff] %v9583_v11  ;;  %5541 = vmatmul.f32.gmra.mxu2 %v4290_v48  ;;  %v4871_v48 = vadd.f32 %v9374_v6, %v9261_v18  ;;  %v4353_v11 = vld [vmem:[#allocation3 + $0x5b0] sm:$0xff]  ;;  %v5077_v18 = vadd.f32 %v9482_v14, %v4868_v19  ;;  %v5071_v14 = vadd.f32 %v9459_v12, %v4862_v7 }
0x14c8   :  { %4977 = vmatmul.f32.gmra.mxu0 %v4371_v39  ;;  %5153 = vmatmul.f32.gmra.mxu1 %v4328_v41  ;;  %v9593_v39 = vpop.f32.mrf.mxu3  ;;  %v4874_v41 = vadd.f32 %v9388_v8, %v9290_v25  ;;  %v4865_v25 = vadd.f32 %v9352_v17, %v9245_v3  ;;  %v4574_v8 = vpop.permute.xlu1 %4573  ;;  %v5286_v19 = vadd.f32 %v9442_v10, %v5077_v18  ;;  %v10219_v10 = vld [vmem:[#allocation33_spill] sm:$0xff] }
0x14c9   :  { %v5494_v30 = vpop.f32.mrf.mxu2  ;;  %v4877_v3 = vadd.f32 %v9400_v56, %v4574_v8  ;;  %v10218_v56 = vld [vmem:[#allocation20_spill] sm:$0xff] }
0x14ca   :  { %v5074_v35 = vadd.f32 %v9470_v61, %v4865_v25  ;;  %v4357_v61 = vld [vmem:[#allocation3 + $0x5d0] sm:$0xff] }
0x14cb   :  { %5380 = vmatmul.f32.gmra.mxu3 %v4353_v11  ;;  %v5086_v4 = vadd.f32 %v9516_v16, %v4877_v3  ;;  %v10223_v3 = vld [vmem:[#allocation28_spill] sm:$0xff] }
0x14cd   :  { %v9587_v2 = vpop.f32.mrf.mxu1 }
0x14ce   :  { %10216 = vst [vmem:[#allocation69_spill] sm:$0xff] %v9587_v2  ;;  %5544 = vmatmul.f32.gmra.mxu2 %v4294_v52  ;;  %v5083_v2 = vadd.f32 %v9504_v58, %v4874_v41  ;;  %v5080_v52 = vadd.f32 %v9492_v54, %v4871_v48  ;;  %v9609_v58 = vpop.f32.mrf.mxu0  ;;  %v4302_v41 = vld [vmem:[#allocation3 + $0x418] sm:$0xff] }
0x14d0   :  { %4980 = vmatmul.f32.gmra.mxu0 %v4375_v27  ;;  %5156 = vmatmul.f32.gmra.mxu1 %v4332_v45  ;;  %v4379_v45 = vld [vmem:[#allocation3 + $0x680] sm:$0xff]  ;;  %v5292_v6 = vadd.f32 %v9462_v28, %v5083_v2  ;;  %v5289_v54 = vadd.f32 %v9453_v57, %v5080_v52  ;;  %v4859_v28 = vadd.f32 %v9332_v44, %v9302_v40  ;;  %v4340_v44 = vld [vmem:[#allocation3 + $0x548] sm:$0xff] }
0x14d1   :  { %v5497_v29 = vpop.f32.mrf.mxu2  ;;  %v4856_v57 = vadd.f32 %v9324_v47, %v9296_v55  ;;  %v5283_v52 = vadd.f32 %v10218_v56, %v5074_v35  ;;  %v4383_v40 = vld [vmem:[#allocation3 + $0x6a0] sm:$0xff]  ;;  %v5295_v55 = vadd.f32 %v9473_v31, %v5086_v4  ;;  %v10221_v47 = vld [vmem:[#allocation42_spill] sm:$0xff] }
0x14d2   :  { %v5498_v2 = vadd.f32 %v5497_v29, %v5289_v54  ;;  %v5068_v48 = vadd.f32 %v9446_v59, %v4859_v28  ;;  %v10220_v29 = vld [vmem:[#allocation10_spill] sm:$0xff]  ;;  %v10225_v56 = vld [vmem:[#allocation17_spill] sm:$0xff] }
0x14d3   :  { %v5065_v12 = vadd.f32 %v10219_v10, %v4856_v57  ;;  %v5280_v16 = vadd.f32 %v10220_v29, %v5071_v14  ;;  %v5492_v25 = vadd.f32 %v9575_v9, %v5283_v52  ;;  %5383 = vmatmul.f32.gmra.mxu3 %v4357_v61  ;;  %v10222_v35 = vld [vmem:[#allocation46_spill] sm:$0xff]  ;;  %v4306_v14 = vld [vmem:[#allocation3 + $0x438] sm:$0xff]  ;;  %v5654_v29 = vmax.f32 %v9535_v22, 0.0 }
0x14d4   :  { %v5661_v18 = vmax.f32 %v5498_v2, 0.0  ;;  %v5277_v59 = vadd.f32 %v10221_v47, %v5068_v48  ;;  %v4880_v54 = vadd.f32 %v10222_v35, %v9589_v53  ;;  %v4387_v53 = vld [vmem:[#allocation3 + $0x6c0] sm:$0xff]  ;;  %v10226_v22 = vld [vmem:[#allocation35_spill] sm:$0xff]  ;;  %v5651_v35 = vmax.f32 %v9501_v21, 0.0 }
0x14d5   :  { %v9603_v27 = vpop.f32.mrf.mxu1  ;;  %v5274_v31 = vadd.f32 %v10223_v3, %v5065_v12  ;;  %v5659_v28 = vmax.f32 %v5492_v25, 0.0  ;;  %v4391_v25 = vld [vmem:[#allocation3 + $0x6e0] sm:$0xff]  ;;  %v5650_v3 = vmax.f32 %v9489_v36, 0.0 }
0x14d6   :  { %5547 = vmatmul.f32.gmra.mxu2 %v4298_v60  ;;  %v9615_v60 = vpop.f32.mrf.mxu3 }
0x14d7   :  { %v5483_v2 = vadd.f32 %v9551_v46, %v5274_v31  ;;  %v10224_v46 = vld [vmem:[#allocation18_spill] sm:$0xff]  ;;  %v4395_v31 = vld [vmem:[#allocation3 + $0x700] sm:$0xff] }
0x14d8   :  { %4983 = vmatmul.f32.gmra.mxu0 %v4379_v45  ;;  %5159 = vmatmul.f32.gmra.mxu1 %v4336_v43  ;;  %v5495_v45 = vadd.f32 %v5494_v30, %v5286_v19  ;;  %v5489_v30 = vadd.f32 %v9565_v34, %v5280_v16  ;;  %v5089_v34 = vadd.f32 %v9528_v24, %v4880_v54  ;;  %v4361_v19 = vld [vmem:[#allocation3 + $0x5f0] sm:$0xff] }
0x14d9   :  { %v5500_v11 = vpop.f32.mrf.mxu2  ;;  %v5656_v57 = vmax.f32 %v5483_v2, 0.0  ;;  %v4883_v52 = vadd.f32 %v10225_v56, %v10224_v46 }
0x14da   :  { %v5501_v17 = vadd.f32 %v5500_v11, %v5292_v6  ;;  %v5660_v8 = vmax.f32 %v5495_v45, 0.0  ;;  %v9639_v11 = vpop.f32.mrf.mxu0 }
0x14db   :  { %5386 = vmatmul.f32.gmra.mxu3 %v4361_v19  ;;  %v5092_v10 = vadd.f32 %v9540_v20, %v4883_v52  ;;  %v5652_v20 = vmax.f32 %v9513_v62, 0.0  ;;  %v10228_v19 = vld [vmem:[#allocation48_spill] sm:$0xff]  ;;  %v10230_v52 = vld [vmem:[#allocation9_spill] sm:$0xff] }
0x14dc   :  { %v5662_v15 = vmax.f32 %v5501_v17, 0.0  ;;  %v5486_v17 = vadd.f32 %v9559_v49, %v5277_v59  ;;  %v5298_v49 = vadd.f32 %v9485_v13, %v5089_v34  ;;  %v4365_v13 = vld [vmem:[#allocation3 + $0x610] sm:$0xff]  ;;  %v4889_v2 = vadd.f32 %v9451_v32, %v10228_v19 }
0x14dd   :  { %v9627_v43 = vpop.f32.mrf.mxu1 }
0x14de   :  { %5550 = vmatmul.f32.gmra.mxu2 %v4302_v41  ;;  %5728 = vmatpush.msrb.mxu0 %v5662_v15  ;;  %v9635_v7 = vpop.f32.mrf.mxu3  ;;  %v5658_v41 = vmax.f32 %v5489_v30, 0.0  ;;  %v4344_v15 = vld [vmem:[#allocation3 + $0x568] sm:$0xff]  ;;  %v5657_v61 = vmax.f32 %v5486_v17, 0.0  ;;  %v10227_v30 = vld [vmem:[#allocation47_spill] sm:$0xff] }
0x14df   :  { %v4352_v17 = vld [vmem:[#allocation3 + $0x5a8] sm:$0xff] }
0x14e0   :  { %4986 = vmatmul.f32.gmra.mxu0 %v4383_v40  ;;  %5162 = vmatmul.f32.gmra.mxu1 %v4340_v44  ;;  %v5655_v40 = vmax.f32 %v9545_v38, 0.0  ;;  %v4310_v44 = vld [vmem:[#allocation3 + $0x458] sm:$0xff]  ;;  %v5301_v38 = vadd.f32 %v9497_v33, %v5092_v10  ;;  %v4369_v33 = vld [vmem:[#allocation3 + $0x630] sm:$0xff] }
0x14e1   :  { %5729 = vmatpush.msrb.mxu0 %v5661_v18  ;;  %v5503_v6 = vpop.f32.mrf.mxu2  ;;  %v4348_v18 = vld [vmem:[#allocation3 + $0x588] sm:$0xff] }
0x14e2   :  { %v9641_v9 = vadd.f32 %v5503_v6, %v5295_v55  ;;  %v9658_v12 = vpop.f32.mrf.mxu0  ;;  %v5653_v55 = vmax.f32 %v9525_v1, 0.0  ;;  %v4314_v1 = vld [vmem:[#allocation3 + $0x478] sm:$0xff] }
0x14e3   :  { %5730 = vmatpush.msrb.mxu0 %v5660_v8  ;;  %5389 = vmatmul.f32.gmra.mxu3 %v4365_v13  ;;  %v4886_v8 = vadd.f32 %v10227_v30, %v10226_v22  ;;  %v4377_v13 = vld [vmem:[#allocation3 + $0x670] sm:$0xff]  ;;  %v4326_v30 = vld [vmem:[#allocation3 + $0x4d8] sm:$0xff] }
0x14e5   :  { %5731 = vmatpush.msrb.mxu0 %v5659_v28  ;;  %v9647_v4 = vpop.f32.mrf.mxu1  ;;  %v5095_v54 = vadd.f32 %v9547_v37, %v4886_v8  ;;  %v5648_v37 = vmax.f32 %v9467_v23, 0.0  ;;  %v4399_v23 = vld [vmem:[#allocation3 + $0x720] sm:$0xff]  ;;  %v10233_v8 = vld [vmem:[#allocation63_spill] sm:$0xff] }
0x14e6   :  { %5553 = vmatmul.f32.gmra.mxu2 %v4306_v14  ;;  %v9650_v48 = vpop.f32.mrf.mxu3  ;;  %v5649_v14 = vmax.f32 %v9477_v26, 0.0  ;;  %v4318_v26 = vld [vmem:[#allocation3 + $0x498] sm:$0xff] }
0x14e7   :  { %5732 = vmatpush.msrb.mxu0 %v5658_v41  ;;  %v5304_v21 = vadd.f32 %v9509_v50, %v5095_v54  ;;  %v4373_v50 = vld [vmem:[#allocation3 + $0x650] sm:$0xff] }
0x14e8   :  { %4989 = vmatmul.f32.gmra.mxu0 %v4387_v53  ;;  %5165 = vmatmul.f32.gmra.mxu1 %v4344_v15  ;;  %v10229_v53 = vld [vmem:[#allocation49_spill] sm:$0xff] }
0x14e9   :  { %5733 = vmatpush.msrb.mxu0 %v5657_v61  ;;  %v5506_v24 = vpop.f32.mrf.mxu2  ;;  %v5647_v15 = vmax.f32 %v10229_v53, 0.0  ;;  %v5098_v61 = vadd.f32 %v9555_v42, %v4889_v2  ;;  %v4892_v42 = vadd.f32 %v9465_v63, %v10230_v52  ;;  %v10231_v63 = vld [vmem:[#allocation16_spill] sm:$0xff]  ;;  %v10237_v53 = vld [vmem:[#allocation67_spill] sm:$0xff] }
0x14ea   :  { %v9654_v45 = vadd.f32 %v5506_v24, %v5298_v49  ;;  %v9677_v28 = vpop.f32.mrf.mxu0  ;;  %v4330_v2 = vld [vmem:[#allocation3 + $0x4f8] sm:$0xff] }
0x14eb   :  { %5734 = vmatpush.msrb.mxu0 %v5656_v57  ;;  %5392 = vmatmul.f32.gmra.mxu3 %v4369_v33  ;;  %v4356_v57 = vld [vmem:[#allocation3 + $0x5c8] sm:$0xff]  ;;  %v5307_v24 = vadd.f32 %v9519_v0, %v5098_v61  ;;  %v5101_v10 = vadd.f32 %v9563_v5, %v4892_v42  ;;  %v4407_v33 = vld [vmem:[#allocation3 + $0x760] sm:$0xff]  ;;  %v4385_v61 = vld [vmem:[#allocation3 + $0x6b0] sm:$0xff] }
0x14ec   :  { %v4360_v0 = vld [vmem:[#allocation3 + $0x5e8] sm:$0xff] }
0x14ed   :  { %5735 = vmatpush.msrb.mxu0 %v5655_v40  ;;  %v9661_v16 = vpop.f32.mrf.mxu1 }
0x14ee   :  { %5556 = vmatmul.f32.gmra.mxu2 %v4310_v44  ;;  %v9666_v59 = vpop.f32.mrf.mxu3  ;;  %v4322_v44 = vld [vmem:[#allocation3 + $0x4b8] sm:$0xff] }
0x14ef   :  { %5736 = vmatpush.msrb.mxu0 %v5654_v29 }
0x14f0   :  { %4992 = vmatmul.f32.gmra.mxu0 %v4391_v25  ;;  %5168 = vmatmul.f32.gmra.mxu1 %v4348_v18  ;;  %v4403_v25 = vld [vmem:[#allocation3 + $0x740] sm:$0xff]  ;;  %v5310_v18 = vadd.f32 %v9531_v51, %v5101_v10  ;;  %v4364_v51 = vld [vmem:[#allocation3 + $0x608] sm:$0xff] }
0x14f1   :  { %5737 = vmatpush.msrb.mxu0 %v5653_v55  ;;  %v5509_v47 = vpop.f32.mrf.mxu2  ;;  %v10241_v10 = vld [vmem:[#allocation52_spill] sm:$0xff] }
0x14f2   :  { %v9670_v6 = vadd.f32 %v5509_v47, %v5301_v38  ;;  %v9693_v46 = vpop.f32.mrf.mxu0 }
0x14f3   :  { %5738 = vmatpush.msrb.mxu0 %v5652_v20  ;;  %5395 = vmatmul.f32.gmra.mxu3 %v4373_v50  ;;  %v10232_v20 = vld [vmem:[#allocation50_spill] sm:$0xff] }
0x14f4   :  { %v4895_v47 = vadd.f32 %v10232_v20, %v10231_v63  ;;  %v4389_v63 = vld [vmem:[#allocation3 + $0x6d0] sm:$0xff] }
0x14f5   :  { %5739 = vmatpush.msrb.mxu0 %v5651_v35  ;;  %v9675_v62 = vpop.f32.mrf.mxu1 }
0x14f6   :  { %5559 = vmatmul.f32.gmra.mxu2 %v4314_v1  ;;  %v9682_v34 = vpop.f32.mrf.mxu3  ;;  %v5104_v35 = vadd.f32 %v10233_v8, %v4895_v47  ;;  %v4381_v1 = vld [vmem:[#allocation3 + $0x690] sm:$0xff]  ;;  %v4415_v47 = vld [vmem:[#allocation3 + $0x7a0] sm:$0xff] }
0x14f7   :  { %5740 = vmatpush.msrb.mxu0 %v5650_v3  ;;  %v10234_v3 = vld [vmem:[#allocation55_spill] sm:$0xff] }
0x14f8   :  { %4995 = vmatmul.f32.gmra.mxu0 %v4395_v31  ;;  %5171 = vmatmul.f32.gmra.mxu1 %v4352_v17  ;;  %v5313_v31 = vadd.f32 %v10234_v3, %v5104_v35  ;;  %v10244_v35 = vld [vmem:[#allocation59_spill] sm:$0xff] }
0x14f9   :  { %5741 = vmatpush.msrb.mxu0 %v5649_v14  ;;  %v5512_v36 = vpop.f32.mrf.mxu2 }
0x14fa   :  { %v9686_v41 = vadd.f32 %v5512_v36, %v5304_v21  ;;  %v9709_v22 = vpop.f32.mrf.mxu0  ;;  %v10235_v21 = vld [vmem:[#allocation27_spill] sm:$0xff] }
0x14fb   :  { %5742 = vmatpush.msrb.mxu0 %v5648_v37  ;;  %5398 = vmatmul.f32.gmra.mxu3 %v4377_v13  ;;  %v10236_v37 = vld [vmem:[#allocation51_spill] sm:$0xff] }
0x14fc   :  { %v4898_v36 = vadd.f32 %v10236_v37, %v10235_v21  ;;  %v4419_v37 = vld [vmem:[#allocation3 + $0x7c0] sm:$0xff] }
0x14fd   :  { %5743 = vmatpush.msrb.mxu0 %v5647_v15  ;;  %v9690_v49 = vpop.f32.mrf.mxu1 }
0x14fe   :  { %5562 = vmatmul.f32.gmra.mxu2 %v4318_v26  ;;  %v9695_v56 = vpop.f32.mrf.mxu3  ;;  %v5107_v15 = vadd.f32 %v10237_v53, %v4898_v36  ;;  %v4376_v36 = vld [vmem:[#allocation3 + $0x668] sm:$0xff] }
0x1500   :  { %4998 = vmatmul.f32.gmra.mxu0 %v4399_v23  ;;  %5174 = vmatmul.f32.gmra.mxu1 %v4356_v57  ;;  %v4411_v23 = vld [vmem:[#allocation3 + $0x780] sm:$0xff]  ;;  %v4368_v57 = vld [vmem:[#allocation3 + $0x628] sm:$0xff] }
0x1501   :  { %v5515_v32 = vpop.f32.mrf.mxu2 }
0x1502   :  { %v9699_v40 = vadd.f32 %v5515_v32, %v5307_v24  ;;  %v9724_v26 = vpop.f32.mrf.mxu0  ;;  %v10239_v24 = vld [vmem:[#allocation57_spill] sm:$0xff] }
0x1503   :  { %5401 = vmatmul.f32.gmra.mxu3 %v4381_v1  ;;  %10238 = vst [vmem:[#allocation20_spill] sm:$0xff] %v9724_v26  ;;  %v5316_v32 = vadd.f32 %v10239_v24, %v5107_v15  ;;  %v4423_v24 = vld [vmem:[#allocation3 + $0x7e0] sm:$0xff]  ;;  %v10276_v26 = vld [vmem:[#allocation31_spill] sm:$0xff] }
0x1505   :  { %v9702_v29 = vpop.f32.mrf.mxu1 }
0x1506   :  { %5565 = vmatmul.f32.gmra.mxu2 %v4322_v44  ;;  %v9705_v38 = vpop.f32.mrf.mxu3  ;;  %v10240_v44 = vld [vmem:[#allocation36_spill] sm:$0xff] }
0x1507   :  { %v4901_v13 = vadd.f32 %v10241_v10, %v10240_v44  ;;  %v9762_v10 = vld [vmem:[%s10054_s15] sm:$0xf]  ;;  %s6556_s15 = smov [#allocation6]  }
0x1508   :  { %5001 = vmatmul.f32.gmra.mxu0 %v4403_v25  ;;  %5177 = vmatmul.f32.gmra.mxu1 %v4360_v0  ;;  %v4334_v0 = vld [vmem:[#allocation3 + $0x518] sm:$0xff]  ;;  %10249 = vst [vmem:[#allocation18_spill] sm:$0xff] %v9762_v10  ;;  %s5834_s3 = sshll.u32 %s6556_s15, 4  ;;  %s5835_s3 = int_to_ptr.vmem [resolvable:$true] %s5834_s3 }
0x1509   :  { %v5518_v55 = vpop.f32.mrf.mxu2 }
0x150a   :  { %v9711_v5 = vadd.f32 %v5518_v55, %v5310_v18  ;;  %v10242_v18 = vld [vmem:[#allocation69_spill] sm:$0xff]  ;;  %v9738_v8 = vpop.f32.mrf.mxu0 }
0x150b   :  { %5404 = vmatmul.f32.gmra.mxu3 %v4385_v61  ;;  %v5110_v55 = vadd.f32 %v10242_v18, %v4901_v13  ;;  %10243 = vst [vmem:[#allocation33_spill] sm:$0xff] %v9738_v8  ;;  %v4342_v61 = vld [vmem:[#allocation3 + $0x558] sm:$0xff] }
0x150c   :  { %v4346_v18 = vld [vmem:[#allocation3 + $0x578] sm:$0xff] }
0x150d   :  { %v9714_v54 = vpop.f32.mrf.mxu1  ;;  %v5319_v1 = vadd.f32 %v10244_v35, %v5110_v55  ;;  %v5720_v55 = vperm.slane %v9762_v10, 0  ;;  %v4362_v8 = vld [vmem:[#allocation3 + $0x5f8] sm:$0xff]  ;;  %v10268_v10 = vld [vmem:[#allocation62_spill] sm:$0xff] }
0x150e   :  { %5568 = vmatmul.f32.gmra.mxu2 %v4326_v30  ;;  %v9717_v14 = vpop.f32.mrf.mxu3  ;;  %v4372_v30 = vld [vmem:[#allocation3 + $0x648] sm:$0xff] }
0x1510   :  { %5004 = vmatmul.f32.gmra.mxu0 %v4407_v33  ;;  %5180 = vmatmul.f32.gmra.mxu1 %v4364_v51 }
0x1511   :  { %v5521_v17 = vpop.f32.mrf.mxu2 }
0x1512   :  { %v9721_v19 = vadd.f32 %v5521_v17, %v5313_v31  ;;  %v4338_v31 = vld [vmem:[#allocation3 + $0x538] sm:$0xff]  ;;  %v4393_v17 = vld [vmem:[#allocation3 + $0x6f0] sm:$0xff] }
0x1513   :  { %5407 = vmatmul.f32.gmra.mxu3 %v4389_v63  ;;  %v4401_v63 = vld [vmem:[#allocation3 + $0x730] sm:$0xff] }
0x1515   :  { %v9726_v50 = vpop.f32.mrf.mxu1 }
0x1516   :  { %5571 = vmatmul.f32.gmra.mxu2 %v4330_v2  ;;  %v9729_v42 = vpop.f32.mrf.mxu3  ;;  %v9747_v2 = vpop.f32.mrf.mxu0 }
0x1517   :  { %10246 = vst [vmem:[#allocation42_spill] sm:$0xff] %v9747_v2 }
0x1518   :  { %5007 = vmatmul.f32.gmra.mxu0 %v4411_v23  ;;  %5183 = vmatmul.f32.gmra.mxu1 %v4368_v57  ;;  %v4397_v23 = vld [vmem:[#allocation3 + $0x710] sm:$0xff] }
0x1519   :  { %v5524_v52 = vpop.f32.mrf.mxu2 }
0x151a   :  { %v9733_v25 = vadd.f32 %v5524_v52, %v5316_v32  ;;  %v4380_v32 = vld [vmem:[#allocation3 + $0x688] sm:$0xff]  ;;  %v9755_v52 = vpop.permute.xlu2 %4763 }
0x151b   :  { %5410 = vmatmul.f32.gmra.mxu3 %v4393_v17  ;;  %10248 = vst [vmem:[#allocation28_spill] sm:$0xff] %v9755_v52  ;;  %v4405_v17 = vld [vmem:[#allocation3 + $0x750] sm:$0xff]  ;;  %v4396_v52 = vld [vmem:[#allocation3 + $0x708] sm:$0xff] }
0x151d   :  { %v9736_v20 = vpop.f32.mrf.mxu1 }
0x151e   :  { %5574 = vmatmul.f32.gmra.mxu2 %v4334_v0  ;;  %v9741_v51 = vpop.f32.mrf.mxu3  ;;  %v9766_v0 = vpop.f32.mrf.mxu0 }
0x151f   :  { %10245 = vst [vmem:[#allocation10_spill] sm:$0xff] %v9741_v51  ;;  %v4417_v51 = vld [vmem:[#allocation3 + $0x7b0] sm:$0xff] }
0x1520   :  { %5010 = vmatmul.f32.gmra.mxu0 %v4415_v47  ;;  %5186 = vmatmul.f32.gmra.mxu1 %v4372_v30  ;;  %10251 = vst [vmem:[#allocation35_spill] sm:$0xff] %v9766_v0  ;;  %v4384_v30 = vld [vmem:[#allocation3 + $0x6a8] sm:$0xff] }
0x1521   :  { %v5527_v33 = vpop.f32.mrf.mxu2 }
0x1522   :  { %v9743_v3 = vadd.f32 %v5527_v33, %v5319_v1  ;;  %v9775_v33 = vpop.permute.xlu2 %4673 }
0x1523   :  { %5413 = vmatmul.f32.gmra.mxu3 %v4397_v23 }
0x1525   :  { %v9745_v21 = vpop.f32.mrf.mxu1 }
0x1526   :  { %5577 = vmatmul.f32.gmra.mxu2 %v4338_v31  ;;  %v9751_v15 = vpop.f32.mrf.mxu3  ;;  %v4350_v31 = vld [vmem:[#allocation3 + $0x598] sm:$0xff] }
0x1527   :  { %10247 = vst [vmem:[#allocation46_spill] sm:$0xff] %v9751_v15  ;;  %v10265_v15 = vld [vmem:[#allocation30_spill] sm:$0xff] }
0x1528   :  { %5013 = vmatmul.f32.gmra.mxu0 %v4419_v37  ;;  %5189 = vmatmul.f32.gmra.mxu1 %v4376_v36  ;;  %v9777_v37 = vpop.f32.mrf.mxu0 }
0x1529   :  { %v9749_v53 = vpop.f32.mrf.mxu2  ;;  %10253 = vst [vmem:[#allocation48_spill] sm:$0xff] %v9777_v37  ;;  %v9793_v37 = vpop.permute.xlu0 %4758 }
0x152a   :  { %10259 = vst [vmem:[#allocation55_spill] sm:$0xff] %v9793_v37 }
0x152b   :  { %5416 = vmatmul.f32.gmra.mxu3 %v4401_v63 }
0x152d   :  { %v9753_v57 = vpop.f32.mrf.mxu1 }
0x152e   :  { %5580 = vmatmul.f32.gmra.mxu2 %v4342_v61  ;;  %v9764_v13 = vpop.f32.mrf.mxu3  ;;  %v4388_v61 = vld [vmem:[#allocation3 + $0x6c8] sm:$0xff] }
0x152f   :  { %10250 = vst [vmem:[#allocation17_spill] sm:$0xff] %v9764_v13 }
0x1530   :  { %5016 = vmatmul.f32.gmra.mxu0 %v4423_v24  ;;  %5192 = vmatmul.f32.gmra.mxu1 %v4380_v32  ;;  %v4354_v32 = vld [vmem:[#allocation3 + $0x5b8] sm:$0xff] }
0x1531   :  { %v9757_v44 = vpop.f32.mrf.mxu2 }
0x1533   :  { %5419 = vmatmul.f32.gmra.mxu3 %v4405_v17 }
0x1535   :  { %v9769_v47 = vpop.f32.mrf.mxu1 }
0x1536   :  { %5583 = vmatmul.f32.gmra.mxu2 %v4346_v18  ;;  %v9773_v1 = vpop.f32.mrf.mxu3  ;;  %v4409_v18 = vld [vmem:[#allocation3 + $0x770] sm:$0xff] }
0x1537   :  { %10252 = vst [vmem:[#allocation47_spill] sm:$0xff] %v9773_v1  ;;  %v9789_v1 = vpop.f32.mrf.mxu0 }
0x1538   :  { %5195 = vmatmul.f32.gmra.mxu1 %v4384_v30  ;;  %5744 = vmatmul.f32.vlgmr.msrb.gmra.mxu0 %v5720_v55  ;;  %v9785_v55 = vpop.permute.xlu2 %4668  ;;  %v4392_v30 = vld [vmem:[#allocation3 + $0x6e8] sm:$0xff]  ;;  %10257 = vst [vmem:[#allocation50_spill] sm:$0xff] %v9789_v1 }
0x1539   :  { %v9771_v35 = vpop.f32.mrf.mxu2 }
0x153b   :  { %5422 = vmatmul.f32.gmra.mxu3 %v4409_v18  ;;  %v10263_v18 = vld [vmem:[#allocation45_spill] sm:$0xff] }
0x153d   :  { %v9779_v36 = vpop.f32.mrf.mxu1 }
0x153e   :  { %10254 = vst [vmem:[#allocation49_spill] sm:$0xff] %v9779_v36  ;;  %5586 = vmatmul.f32.gmra.mxu2 %v4350_v31  ;;  %v9783_v24 = vpop.f32.mrf.mxu3  ;;  %v4358_v31 = vld [vmem:[#allocation3 + $0x5d8] sm:$0xff]  ;;  %v9813_v36 = vpop.permute.xlu0 %4753 }
0x153f   :  { %10255 = vst [vmem:[#allocation9_spill] sm:$0xff] %v9783_v24 }
0x1540   :  { %5198 = vmatmul.f32.gmra.mxu1 %v4388_v61  ;;  %v4413_v61 = vld [vmem:[#allocation3 + $0x790] sm:$0xff]  ;;  %v9797_v13 = vpop.permute.xlu2 %4748  ;;  %10271 = vst [vmem:[#allocation52_spill] sm:$0xff] %v9813_v36 }
0x1541   :  { %v9781_v23 = vpop.f32.mrf.mxu2  ;;  %10261 = vst [vmem:[#allocation51_spill] sm:$0xff] %v9797_v13 }
0x1543   :  { %5425 = vmatmul.f32.gmra.mxu3 %v4413_v61 }
0x1545   :  { %v9787_v63 = vpop.f32.mrf.mxu1 }
0x1546   :  { %10256 = vst [vmem:[#allocation16_spill] sm:$0xff] %v9787_v63  ;;  %5589 = vmatmul.f32.gmra.mxu2 %v4354_v32  ;;  %v9791_v17 = vpop.f32.mrf.mxu3  ;;  %v9799_v32 = vpop.f32.mrf.mxu0  ;;  %v10266_v63 = vld [vmem:[#allocation66_spill] sm:$0xff] }
0x1547   :  { %10258 = vst [vmem:[#allocation63_spill] sm:$0xff] %v9791_v17  ;;  %v4919_v17 = vadd.f32 %v10266_v63, %v10265_v15 }
0x1548   :  { %5201 = vmatmul.f32.gmra.mxu1 %v4392_v30  ;;  %10262 = vst [vmem:[#allocation67_spill] sm:$0xff] %v9799_v32  ;;  %v10264_v30 = vld [vmem:[#allocation70_spill] sm:$0xff] }
0x1549   :  { %v5542_v0 = vpop.f32.mrf.mxu2  ;;  %v4922_v2 = vadd.f32 %v10264_v30, %v10263_v18  ;;  %v5128_v13 = vadd.f32 %v9690_v49, %v4919_v17  ;;  %v10272_v18 = vld [vmem:[#allocation14_spill] sm:$0xff]  ;;  %v10275_v49 = vld [vmem:[#allocation56_spill] sm:$0xff] }
0x154a   :  { %v10273_v30 = vld [vmem:[#allocation58_spill] sm:$0xff] }
0x154b   :  { %v5131_v37 = vadd.f32 %v9702_v29, %v4922_v2  ;;  %v4913_v15 = vadd.f32 %v10273_v30, %v10272_v18  ;;  %5428 = vmatmul.f32.gmra.mxu3 %v4417_v51  ;;  %v4654_v2 = vpop.permute.xlu2 %4653  ;;  %v10277_v18 = vld [vmem:[#allocation54_spill] sm:$0xff] }
0x154c   :  { %v4907_v30 = vadd.f32 %v10277_v18, %v10276_v26 }
0x154d   :  { %v9795_v24 = vpop.f32.mrf.mxu1  ;;  %v5340_v29 = vadd.f32 %v9650_v48, %v5131_v37  ;;  %v5122_v17 = vadd.f32 %v9661_v16, %v4913_v15  ;;  %v4421_v15 = vld [vmem:[#allocation3 + $0x7d0] sm:$0xff] }
0x154e   :  { %10260 = vst [vmem:[#allocation27_spill] sm:$0xff] %v9795_v24  ;;  %5592 = vmatmul.f32.gmra.mxu2 %v4358_v31  ;;  %v10267_v24 = vld [vmem:[#allocation21_spill] sm:$0xff]  ;;  %v9811_v32 = vpop.f32.mrf.mxu3  ;;  %v9828_v51 = vpop.f32.mrf.mxu0 }
0x154f   :  { %v4916_v31 = vadd.f32 %v10268_v10, %v10267_v24  ;;  %10270 = vst [vmem:[#allocation36_spill] sm:$0xff] %v9811_v32  ;;  %v10274_v10 = vld [vmem:[#allocation44_spill] sm:$0xff]  ;;  %v4925_v32 = vadd.f32 %v9609_v58, %v4654_v2  ;;  %v5116_v58 = vadd.f32 %v9627_v43, %v4907_v30 }
0x1550   :  { %5204 = vmatmul.f32.gmra.mxu1 %v4396_v52  ;;  %v4400_v52 = vld [vmem:[#allocation3 + $0x728] sm:$0xff]  ;;  %v4910_v24 = vadd.f32 %v10275_v49, %v10274_v10 }
0x1551   :  { %v5545_v1 = vpop.f32.mrf.mxu2  ;;  %v5125_v63 = vadd.f32 %v9675_v62, %v4916_v31  ;;  %v4366_v31 = vld [vmem:[#allocation3 + $0x618] sm:$0xff] }
0x1552   :  { %v5119_v62 = vadd.f32 %v9647_v4, %v4910_v24  ;;  %v4404_v4 = vld [vmem:[#allocation3 + $0x748] sm:$0xff] }
0x1553   :  { %v5334_v48 = vadd.f32 %v9615_v60, %v5125_v63  ;;  %5431 = vmatmul.f32.gmra.mxu3 %v4421_v15 }
0x1555   :  { %v9809_v61 = vpop.f32.mrf.mxu1  ;;  %v5543_v26 = vadd.f32 %v5542_v0, %v5334_v48  ;;  %v10281_v0 = vld [vmem:[#allocation64_spill] sm:$0xff] }
0x1556   :  { %10269 = vst [vmem:[#allocation57_spill] sm:$0xff] %v9809_v61  ;;  %5595 = vmatmul.f32.gmra.mxu2 %v4362_v8  ;;  %v5337_v61 = vadd.f32 %v9635_v7, %v5128_v13  ;;  %v10278_v7 = vld [vmem:[#allocation38_spill] sm:$0xff]  ;;  %v10279_v13 = vld [vmem:[#allocation53_spill] sm:$0xff]  ;;  %v5325_v63 = vadd.f32 %v10281_v0, %v5116_v58 }
0x1557   :  { %v4904_v10 = vadd.f32 %v10279_v13, %v10278_v7  ;;  %v5676_v24 = vmax.f32 %v5543_v26, 0.0  ;;  %v4374_v26 = vld [vmem:[#allocation3 + $0x658] sm:$0xff] }
0x1558   :  { %5207 = vmatmul.f32.gmra.mxu1 %v4400_v52  ;;  %v5546_v37 = vadd.f32 %v5545_v1, %v5337_v61  ;;  %v5134_v52 = vadd.f32 %v9714_v54, %v4925_v32  ;;  %v10280_v1 = vld [vmem:[#allocation68_spill] sm:$0xff]  ;;  %v9840_v32 = vpop.f32.mrf.mxu3  ;;  %v5534_v30 = vadd.f32 %v9757_v44, %v5325_v63  ;;  %v4664_v44 = vpop.permute.xlu1 %4663 }
0x1559   :  { %v5548_v8 = vpop.f32.mrf.mxu2  ;;  %v5113_v60 = vadd.f32 %v9603_v27, %v4904_v10  ;;  %v5328_v61 = vadd.f32 %v10280_v1, %v5119_v62  ;;  %v4412_v1 = vld [vmem:[#allocation3 + $0x788] sm:$0xff] }
0x155a   :  { %v5549_v36 = vadd.f32 %v5548_v8, %v5340_v29  ;;  %v5331_v29 = vadd.f32 %v9593_v39, %v5122_v17  ;;  %v5343_v43 = vadd.f32 %v9666_v59, %v5134_v52  ;;  %v4659_v39 = vpop.permute.xlu0 %4658  ;;  %v4370_v59 = vld [vmem:[#allocation3 + $0x638] sm:$0xff]  ;;  %v5673_v15 = vmax.f32 %v5534_v30, 0.0 }
0x155b   :  { %v5537_v49 = vadd.f32 %v9771_v35, %v5328_v61  ;;  %v4928_v27 = vadd.f32 %v9639_v11, %v4659_v39  ;;  %v4408_v11 = vld [vmem:[#allocation3 + $0x768] sm:$0xff]  ;;  %v5669_v61 = vmax.f32 %v9721_v19, 0.0  ;;  %v4378_v39 = vld [vmem:[#allocation3 + $0x678] sm:$0xff] }
0x155c   :  { %v5678_v16 = vmax.f32 %v5549_v36, 0.0  ;;  %v5540_v54 = vadd.f32 %v9781_v23, %v5331_v29  ;;  %v5677_v36 = vmax.f32 %v5546_v37, 0.0  ;;  %v10282_v23 = vld [vmem:[#allocation60_spill] sm:$0xff]  ;;  %v4425_v37 = vld [vmem:[#allocation3 + $0x7f0] sm:$0xff]  ;;  %v5671_v29 = vmax.f32 %v9743_v3, 0.0 }
0x155d   :  { %v9835_v2 = vpop.f32.mrf.mxu1  ;;  %v5322_v18 = vadd.f32 %v10282_v23, %v5113_v60  ;;  %v5137_v48 = vadd.f32 %v9726_v50, %v4928_v27  ;;  %v5674_v52 = vmax.f32 %v5537_v49, 0.0  ;;  %5434 = vmatmul.f32.gmra.mxu3 %v4425_v37  ;;  %v5670_v60 = vmax.f32 %v9733_v25, 0.0  ;;  %v4382_v27 = vld [vmem:[#allocation3 + $0x698] sm:$0xff] }
0x155e   :  { %5598 = vmatmul.f32.gmra.mxu2 %v4366_v31  ;;  %5748 = vmatpush.msra.mxu1 %v5678_v16  ;;  %v5675_v62 = vmax.f32 %v5540_v54, 0.0  ;;  %v9851_v31 = vpop.f32.mrf.mxu0  ;;  %v5668_v3 = vmax.f32 %v9711_v5, 0.0  ;;  %v4934_v25 = vadd.f32 %v9677_v28, %v9785_v55  ;;  %v4416_v5 = vld [vmem:[#allocation3 + $0x7a8] sm:$0xff]  ;;  %v5665_v49 = vmax.f32 %v9670_v6, 0.0 }
0x155f   :  { %v5531_v35 = vadd.f32 %v9749_v53, %v5322_v18  ;;  %v5346_v7 = vadd.f32 %v9682_v34, %v5137_v48  ;;  %v4931_v53 = vadd.f32 %v9658_v12, %v4664_v44  ;;  %v4386_v48 = vld [vmem:[#allocation3 + $0x6b8] sm:$0xff] }
0x1560   :  { %5210 = vmatmul.f32.gmra.mxu1 %v4404_v4  ;;  %v9857_v10 = vpop.f32.mrf.mxu3  ;;  %v5143_v0 = vadd.f32 %v9745_v21, %v4934_v25  ;;  %v4937_v21 = vadd.f32 %v9693_v46, %v9775_v33  ;;  %v4744_v30 = vpop.permute.xlu1 %4743  ;;  %v10283_v46 = vld [vmem:[#allocation65_spill] sm:$0xff]  ;;  %v10285_v44 = vld [vmem:[#allocation20_spill] sm:$0xff] }
0x1561   :  { %5749 = vmatpush.msra.mxu1 %v5677_v36  ;;  %v5551_v17 = vpop.f32.mrf.mxu2  ;;  %v5672_v13 = vmax.f32 %v5531_v35, 0.0  ;;  %v5140_v4 = vadd.f32 %v9736_v20, %v4931_v53  ;;  %v4940_v33 = vadd.f32 %v9709_v22, %v10283_v46  ;;  %v4424_v35 = vld [vmem:[#allocation3 + $0x7e8] sm:$0xff] }
0x1562   :  { %v9846_v8 = vadd.f32 %v5551_v17, %v5343_v43  ;;  %v5667_v43 = vmax.f32 %v9699_v40, 0.0  ;;  %v5352_v28 = vadd.f32 %v9705_v38, %v5143_v0  ;;  %v5664_v40 = vmax.f32 %v9654_v45, 0.0  ;;  %v4420_v38 = vld [vmem:[#allocation3 + $0x7c8] sm:$0xff] }
0x1563   :  { %5750 = vmatpush.msra.mxu1 %v5676_v24  ;;  %v5349_v12 = vadd.f32 %v9695_v56, %v5140_v4  ;;  %v5666_v56 = vmax.f32 %v9686_v41, 0.0  ;;  %v5663_v17 = vmax.f32 %v9641_v9, 0.0  ;;  %v5146_v6 = vadd.f32 %v9753_v57, %v4937_v21 }
0x1564   :  { %v5149_v57 = vadd.f32 %v9769_v47, %v4940_v33  ;;  %v10287_v47 = vld [vmem:[#allocation18_spill] sm:$0xff] }
0x1565   :  { %5751 = vmatpush.msra.mxu1 %v5675_v62  ;;  %v9854_v16 = vpop.f32.mrf.mxu1  ;;  %v5355_v45 = vadd.f32 %v9717_v14, %v5146_v6  ;;  %v5721_v4 = vperm.slane %v10287_v47, 1 }
0x1566   :  { %5601 = vmatmul.f32.gmra.mxu2 %v4370_v59  ;;  %v9868_v54 = vpop.f32.mrf.mxu0 }
0x1567   :  { %5752 = vmatpush.msra.mxu1 %v5674_v52 }
0x1568   :  { %5213 = vmatmul.f32.gmra.mxu1 %v4408_v11  ;;  %v9877_v19 = vpop.f32.mrf.mxu3  ;;  %v5358_v11 = vadd.f32 %v9729_v42, %v5149_v57  ;;  %v4734_v22 = vpop.permute.xlu1 %4733 }
0x1569   :  { %5753 = vmatpush.msra.mxu1 %v5673_v15  ;;  %v5554_v50 = vpop.f32.mrf.mxu2  ;;  %v10284_v15 = vld [vmem:[#allocation11_spill] sm:$0xff] }
0x156a   :  { %v9860_v58 = vadd.f32 %v5554_v50, %v5346_v7  ;;  %v4943_v7 = vadd.f32 %v10285_v44, %v10284_v15  ;;  %v4390_v50 = vld [vmem:[#allocation3 + $0x6d8] sm:$0xff]  ;;  %v10296_v44 = vld [vmem:[#allocation17_spill] sm:$0xff] }
0x156b   :  { %5754 = vmatpush.msra.mxu1 %v5672_v13 }
0x156d   :  { %5755 = vmatpush.msra.mxu1 %v5671_v29  ;;  %v9865_v34 = vpop.f32.mrf.mxu1  ;;  %v10286_v29 = vld [vmem:[#allocation49_spill] sm:$0xff] }
0x156e   :  { %5604 = vmatmul.f32.gmra.mxu2 %v4374_v26  ;;  %v4972_v55 = vpop.f32.mrf.mxu0  ;;  %v5152_v26 = vadd.f32 %v10286_v29, %v4943_v7  ;;  %v4402_v29 = vld [vmem:[#allocation3 + $0x738] sm:$0xff] }
0x156f   :  { %5756 = vmatpush.msra.mxu1 %v5670_v60  ;;  %v4973_v53 = vadd.f32 %v4972_v55, %v4734_v22 }
0x1570   :  { %5216 = vmatmul.f32.gmra.mxu1 %v4412_v1  ;;  %v5390_v18 = vpop.f32.mrf.mxu3 }
0x1571   :  { %5757 = vmatpush.msra.mxu1 %v5669_v61  ;;  %v5557_v36 = vpop.f32.mrf.mxu2 }
0x1572   :  { %v9874_v20 = vadd.f32 %v5557_v36, %v5349_v12  ;;  %v10288_v12 = vld [vmem:[#allocation10_spill] sm:$0xff] }
0x1573   :  { %5758 = vmatpush.msra.mxu1 %v5668_v3  ;;  %v5361_v42 = vadd.f32 %v10288_v12, %v5152_v26  ;;  %v10297_v26 = vld [vmem:[#allocation51_spill] sm:$0xff] }
0x1575   :  { %5759 = vmatpush.msra.mxu1 %v5667_v43  ;;  %v9881_v63 = vpop.f32.mrf.mxu1  ;;  %v10289_v43 = vld [vmem:[#allocation13_spill] sm:$0xff] }
0x1576   :  { %5607 = vmatmul.f32.gmra.mxu2 %v4378_v39  ;;  %v4975_v9 = vpop.f32.mrf.mxu0  ;;  %v10290_v39 = vld [vmem:[#allocation33_spill] sm:$0xff] }
0x1577   :  { %5760 = vmatpush.msra.mxu1 %v5666_v56  ;;  %v4946_v0 = vadd.f32 %v10290_v39, %v10289_v43  ;;  %v10298_v43 = vld [vmem:[#allocation52_spill] sm:$0xff] }
0x1578   :  { %5219 = vmatmul.f32.gmra.mxu1 %v4416_v5  ;;  %v5393_v52 = vpop.f32.mrf.mxu3  ;;  %v4739_v5 = vpop.permute.xlu0 %4738 }
0x1579   :  { %5761 = vmatpush.msra.mxu1 %v5665_v49  ;;  %v5560_v24 = vpop.f32.mrf.mxu2  ;;  %v4394_v49 = vld [vmem:[#allocation3 + $0x6f8] sm:$0xff] }
0x157a   :  { %v9888_v41 = vadd.f32 %v5560_v24, %v5352_v28  ;;  %v4976_v28 = vadd.f32 %v4975_v9, %v4739_v5  ;;  %v10295_v9 = vld [vmem:[#allocation27_spill] sm:$0xff] }
0x157b   :  { %5762 = vmatpush.msra.mxu1 %v5664_v40  ;;  %v10291_v40 = vld [vmem:[#allocation16_spill] sm:$0xff] }
0x157c   :  { %v5155_v55 = vadd.f32 %v10291_v40, %v4946_v0  ;;  %v4410_v40 = vld [vmem:[#allocation3 + $0x778] sm:$0xff] }
0x157d   :  { %5763 = vmatpush.msra.mxu1 %v5663_v17  ;;  %v9892_v23 = vpop.f32.mrf.mxu1 }
0x157e   :  { %5610 = vmatmul.f32.gmra.mxu2 %v4382_v27  ;;  %v4978_v60 = vpop.f32.mrf.mxu0  ;;  %v10292_v27 = vld [vmem:[#allocation46_spill] sm:$0xff] }
0x157f   :  { %v5364_v6 = vadd.f32 %v10292_v27, %v5155_v55  ;;  %v10299_v55 = vld [vmem:[#allocation55_spill] sm:$0xff] }
0x1580   :  { %5222 = vmatmul.f32.gmra.mxu1 %v4420_v38  ;;  %v5396_v25 = vpop.f32.mrf.mxu3 }
0x1581   :  { %v5563_v62 = vpop.f32.mrf.mxu2 }
0x1582   :  { %v9897_v59 = vadd.f32 %v5563_v62, %v5355_v45  ;;  %v10293_v45 = vld [vmem:[#allocation32_spill] sm:$0xff]  ;;  %v10294_v62 = vld [vmem:[#allocation42_spill] sm:$0xff] }
0x1583   :  { %v4949_v46 = vadd.f32 %v10294_v62, %v10293_v45  ;;  %v4414_v62 = vld [vmem:[#allocation3 + $0x798] sm:$0xff] }
0x1585   :  { %v9900_v37 = vpop.f32.mrf.mxu1 }
0x1586   :  { %5613 = vmatmul.f32.gmra.mxu2 %v4386_v48  ;;  %v4981_v17 = vpop.f32.mrf.mxu0  ;;  %v4398_v48 = vld [vmem:[#allocation3 + $0x718] sm:$0xff] }
0x1588   :  { %5225 = vmatmul.f32.gmra.mxu1 %v4424_v35  ;;  %v5399_v57 = vpop.f32.mrf.mxu3  ;;  %v4979_v35 = vadd.f32 %v4978_v60, %v4744_v30 }
0x1589   :  { %v5566_v14 = vpop.f32.mrf.mxu2 }
0x158a   :  { %v9905_v13 = vadd.f32 %v5566_v14, %v5358_v11  ;;  %v5158_v11 = vadd.f32 %v10295_v9, %v4949_v46  ;;  %v10300_v46 = vld [vmem:[#allocation28_spill] sm:$0xff] }
0x158c   :  { %v5367_v7 = vadd.f32 %v10296_v44, %v5158_v11 }
0x158d   :  { %v5181_v1 = vpop.f32.mrf.mxu1 }
0x158e   :  { %v5182_v61 = vadd.f32 %v5181_v1, %v4973_v53  ;;  %5616 = vmatmul.f32.gmra.mxu2 %v4390_v50 }
0x1590   :  { %v9910_v3 = vadd.f32 %v5390_v18, %v5182_v61  ;;  %5764 = vmatmul.f32.vlgmr.msra.gmra.mxu1 %v5721_v4  ;;  %v4982_v4 = vadd.f32 %v4981_v17, %v10297_v26  ;;  %v5402_v61 = vpop.f32.mrf.mxu3 }
0x1591   :  { %v5569_v36 = vpop.f32.mrf.mxu2 }
0x1592   :  { %v9914_v56 = vadd.f32 %v5569_v36, %v5361_v42  ;;  %v4406_v36 = vld [vmem:[#allocation3 + $0x758] sm:$0xff] }
0x1595   :  { %v5184_v24 = vpop.f32.mrf.mxu1 }
0x1596   :  { %v5185_v21 = vadd.f32 %v5184_v24, %v4976_v28  ;;  %5619 = vmatmul.f32.gmra.mxu2 %v4394_v49 }
0x1598   :  { %v9918_v38 = vadd.f32 %v5393_v52, %v5185_v21  ;;  %v4984_v52 = vpop.f32.mrf.mxu0  ;;  %v5405_v5 = vpop.f32.mrf.mxu3 }
0x1599   :  { %v5572_v18 = vpop.f32.mrf.mxu2 }
0x159a   :  { %v9922_v33 = vadd.f32 %v5572_v18, %v5364_v6 }
0x159d   :  { %v5187_v14 = vpop.f32.mrf.mxu1 }
0x159e   :  { %v5188_v15 = vadd.f32 %v5187_v14, %v4979_v35  ;;  %5622 = vmatmul.f32.gmra.mxu2 %v4398_v48 }
0x15a0   :  { %v9926_v22 = vadd.f32 %v5396_v25, %v5188_v15  ;;  %v4987_v42 = vpop.f32.mrf.mxu0  ;;  %v4985_v25 = vadd.f32 %v4984_v52, %v10298_v43  ;;  %v5408_v45 = vpop.f32.mrf.mxu3  ;;  %v4418_v15 = vld [vmem:[#allocation3 + $0x7b8] sm:$0xff] }
0x15a1   :  { %v5575_v50 = vpop.f32.mrf.mxu2  ;;  %v4988_v24 = vadd.f32 %v4987_v42, %v10299_v55  ;;  %v10304_v55 = vld [vmem:[#allocation24_spill] sm:$0xff] }
0x15a2   :  { %v9928_v53 = vadd.f32 %v5575_v50, %v5367_v7  ;;  %v10301_v7 = vld [vmem:[#allocation61_spill] sm:$0xff] }
0x15a5   :  { %v5190_v1 = vpop.f32.mrf.mxu1 }
0x15a6   :  { %v5191_v12 = vadd.f32 %v5190_v1, %v4982_v4  ;;  %5625 = vmatmul.f32.gmra.mxu2 %v4402_v29 }
0x15a8   :  { %v9931_v30 = vadd.f32 %v5399_v57, %v5191_v12  ;;  %v4990_v21 = vpop.f32.mrf.mxu0  ;;  %v5411_v44 = vpop.f32.mrf.mxu3  ;;  %v10302_v12 = vld [vmem:[#allocation41_spill] sm:$0xff] }
0x15a9   :  { %v9933_v60 = vpop.f32.mrf.mxu2  ;;  %v4991_v48 = vadd.f32 %v4990_v21, %v10300_v46  ;;  %v4426_v21 = vld [vmem:[#allocation3 + $0x7f8] sm:$0xff] }
0x15aa   :  { %v10306_v46 = vld [vmem:[#allocation40_spill] sm:$0xff] }
0x15ad   :  { %v5193_v39 = vpop.f32.mrf.mxu1 }
0x15ae   :  { %v5194_v0 = vadd.f32 %v5193_v39, %v4985_v25  ;;  %5628 = vmatmul.f32.gmra.mxu2 %v4406_v36 }
0x15b0   :  { %v9936_v49 = vadd.f32 %v5402_v61, %v5194_v0  ;;  %v4993_v9 = vpop.f32.mrf.mxu0  ;;  %v4422_v61 = vld [vmem:[#allocation3 + $0x7d8] sm:$0xff]  ;;  %v5414_v43 = vpop.f32.mrf.mxu3 }
0x15b1   :  { %v9938_v28 = vpop.f32.mrf.mxu2  ;;  %v4994_v52 = vadd.f32 %v4993_v9, %v10301_v7  ;;  %v10308_v9 = vld [vmem:[#allocation26_spill] sm:$0xff] }
0x15b5   :  { %v5196_v17 = vpop.f32.mrf.mxu1 }
0x15b6   :  { %v5197_v27 = vadd.f32 %v5196_v17, %v4988_v24  ;;  %5631 = vmatmul.f32.gmra.mxu2 %v4410_v40  ;;  %v4970_v24 = vadd.f32 %v9868_v54, %v10304_v55  ;;  %v10305_v17 = vld [vmem:[#allocation37_spill] sm:$0xff] }
0x15b8   :  { %v9941_v6 = vadd.f32 %v5405_v5, %v5197_v27  ;;  %v4996_v4 = vpop.f32.mrf.mxu0  ;;  %v10303_v5 = vld [vmem:[#allocation34_spill] sm:$0xff]  ;;  %v4964_v27 = vadd.f32 %v9828_v51, %v10305_v17  ;;  %v10310_v51 = vld [vmem:[#allocation19_spill] sm:$0xff] }
0x15b9   :  { %v5584_v18 = vpop.f32.mrf.mxu2  ;;  %v4997_v42 = vadd.f32 %v4996_v4, %v10302_v12  ;;  %v4967_v40 = vadd.f32 %v9851_v31, %v10303_v5  ;;  %v10313_v12 = vld [vmem:[#allocation35_spill] sm:$0xff] }
0x15bd   :  { %v5199_v57 = vpop.f32.mrf.mxu1 }
0x15be   :  { %v5200_v35 = vadd.f32 %v5199_v57, %v4991_v48  ;;  %5634 = vmatmul.f32.gmra.mxu2 %v4414_v62  ;;  %v5179_v62 = vadd.f32 %v9900_v37, %v4970_v24  ;;  %v10307_v48 = vld [vmem:[#allocation67_spill] sm:$0xff] }
0x15bf   :  { %v4961_v57 = vadd.f32 %v10307_v48, %v10306_v46 }
0x15c0   :  { %v9944_v11 = vadd.f32 %v5408_v45, %v5200_v35  ;;  %v5176_v45 = vadd.f32 %v9892_v23, %v4967_v40  ;;  %v5173_v35 = vadd.f32 %v9881_v63, %v4964_v27  ;;  %v5388_v7 = vadd.f32 %v9877_v19, %v5179_v62  ;;  %v10315_v19 = vld [vmem:[#allocation57_spill] sm:$0xff]  ;;  %v10316_v40 = vld [vmem:[#allocation63_spill] sm:$0xff] }
0x15c1   :  { %v5587_v14 = vpop.f32.mrf.mxu2 }
0x15c2   :  { %v5385_v54 = vadd.f32 %v9857_v10, %v5176_v45  ;;  %v10318_v45 = vld [vmem:[#allocation47_spill] sm:$0xff] }
0x15c5   :  { %v5202_v50 = vpop.f32.mrf.mxu1 }
0x15c6   :  { %v5203_v29 = vadd.f32 %v5202_v50, %v4994_v52  ;;  %5637 = vmatmul.f32.gmra.mxu2 %v4418_v15  ;;  %v10309_v15 = vld [vmem:[#allocation50_spill] sm:$0xff]  ;;  %v10311_v52 = vld [vmem:[#allocation48_spill] sm:$0xff] }
0x15c7   :  { %v4958_v31 = vadd.f32 %v10309_v15, %v10308_v9  ;;  %v4955_v23 = vadd.f32 %v10311_v52, %v10310_v51  ;;  %v5687_v9 = vmax.f32 %v9928_v53, 0.0  ;;  %v5681_v53 = vmax.f32 %v9874_v20, 0.0 }
0x15c8   :  { %v9947_v26 = vadd.f32 %v5411_v44, %v5203_v29  ;;  %v5170_v44 = vadd.f32 %v9865_v34, %v4961_v57  ;;  %v5382_v29 = vadd.f32 %v9840_v32, %v5173_v35  ;;  %v10314_v34 = vld [vmem:[#allocation36_spill] sm:$0xff] }
0x15c9   :  { %v5590_v1 = vpop.f32.mrf.mxu2  ;;  %v5167_v37 = vadd.f32 %v9854_v16, %v4958_v31  ;;  %v10317_v16 = vld [vmem:[#allocation9_spill] sm:$0xff] }
0x15ca   :  { %v5591_v10 = vadd.f32 %v5590_v1, %v5382_v29 }
0x15cb   :  { %v5376_v55 = vadd.f32 %v10316_v40, %v5167_v37 }
0x15cc   :  { %v5692_v17 = vmax.f32 %v5591_v10, 0.0 }
0x15cd   :  { %v5205_v36 = vpop.f32.mrf.mxu1 }
0x15ce   :  { %v5206_v25 = vadd.f32 %v5205_v36, %v4997_v42  ;;  %5640 = vmatmul.f32.gmra.mxu2 %v4422_v61  ;;  %v10312_v61 = vld [vmem:[#allocation25_spill] sm:$0xff]  ;;  %v5164_v36 = vadd.f32 %v9835_v2, %v4955_v23  ;;  %v4999_v23 = vpop.f32.mrf.mxu0 }
0x15cf   :  { %v4952_v42 = vadd.f32 %v10313_v12, %v10312_v61 }
0x15d0   :  { %v9950_v39 = vadd.f32 %v5414_v43, %v5206_v25  ;;  %v5379_v43 = vadd.f32 %v10314_v34, %v5170_v44  ;;  %v5373_v32 = vadd.f32 %v10317_v16, %v5164_v36  ;;  %v5683_v44 = vmax.f32 %v9897_v59, 0.0 }
0x15d1   :  { %v5593_v0 = vpop.f32.mrf.mxu2  ;;  %v5161_v5 = vadd.f32 %v10315_v19, %v4952_v42 }
0x15d2   :  { %v5594_v4 = vadd.f32 %v5593_v0, %v5385_v54  ;;  %v5588_v24 = vadd.f32 %v5587_v14, %v5379_v43  ;;  %v5585_v0 = vadd.f32 %v5584_v18, %v5376_v55  ;;  %v5582_v2 = vadd.f32 %v9938_v28, %v5373_v32 }
0x15d3   :  { %v5370_v62 = vadd.f32 %v10318_v45, %v5161_v5  ;;  %v5686_v28 = vmax.f32 %v9922_v33, 0.0  ;;  %v5680_v33 = vmax.f32 %v9860_v58, 0.0  ;;  %v10320_v45 = vld [vmem:[#allocation23_spill] sm:$0xff] }
0x15d4   :  { %v5691_v46 = vmax.f32 %v5588_v24, 0.0  ;;  %v5690_v14 = vmax.f32 %v5585_v0, 0.0  ;;  %v5689_v57 = vmax.f32 %v5582_v2, 0.0  ;;  %v10321_v2 = vld [vmem:[#allocation22_spill] sm:$0xff] }
0x15d5   :  { %v5579_v48 = vadd.f32 %v9933_v60, %v5370_v62  ;;  %v5684_v60 = vmax.f32 %v9905_v13, 0.0  ;;  %v5722_v13 = vperm.slane %v10287_v47, 2 }
0x15d6   :  { %5643 = vmatmul.f32.gmra.mxu2 %v4426_v21  ;;  %v5693_v21 = vmax.f32 %v5594_v4, 0.0  ;;  %v5002_v29 = vpop.f32.mrf.mxu0 }
0x15d7   :  { %v5688_v35 = vmax.f32 %v5579_v48, 0.0 }
0x15d9   :  { %v5596_v50 = vpop.f32.mrf.mxu2 }
0x15da   :  { %v5597_v63 = vadd.f32 %v5596_v50, %v5388_v7  ;;  %v5679_v7 = vmax.f32 %v9846_v8, 0.0  ;;  %v5208_v8 = vpop.f32.mrf.mxu1  ;;  %v5417_v50 = vpop.f32.mrf.mxu3 }
0x15dc   :  { %v5694_v25 = vmax.f32 %v5597_v63, 0.0 }
0x15de   :  { %5768 = vmatpush.msra.mxu0 %v5694_v25 }
0x15e0   :  { %5769 = vmatpush.msra.mxu0 %v5693_v21 }
0x15e1   :  { %v5599_v27 = vpop.f32.mrf.mxu2 }
0x15e2   :  { %v9982_v1 = vadd.f32 %v5599_v27, %v9910_v3  ;;  %5770 = vmatpush.msra.mxu0 %v5692_v17  ;;  %v5685_v3 = vmax.f32 %v9914_v56, 0.0  ;;  %v5211_v4 = vpop.f32.mrf.mxu1  ;;  %v5420_v61 = vpop.f32.mrf.mxu3  ;;  %v10319_v17 = vld [vmem:[#allocation15_spill] sm:$0xff] }
0x15e4   :  { %5771 = vmatpush.msra.mxu0 %v5691_v46 }
0x15e6   :  { %5772 = vmatpush.msra.mxu0 %v5690_v14 }
0x15e8   :  { %5773 = vmatpush.msra.mxu0 %v5689_v57 }
0x15e9   :  { %v5602_v18 = vpop.f32.mrf.mxu2 }
0x15ea   :  { %v9987_v15 = vadd.f32 %v5602_v18, %v9918_v38  ;;  %5774 = vmatpush.msra.mxu0 %v5688_v35  ;;  %v5682_v38 = vmax.f32 %v9888_v41, 0.0  ;;  %v5214_v12 = vpop.f32.mrf.mxu1  ;;  %v5423_v36 = vpop.f32.mrf.mxu3  ;;  %v10322_v35 = vld [vmem:[#allocation29_spill] sm:$0xff] }
0x15ec   :  { %5775 = vmatpush.msra.mxu0 %v5687_v9 }
0x15ee   :  { %5776 = vmatpush.msra.mxu0 %v5686_v28  ;;  %v10323_v28 = vld [vmem:[#allocation39_spill] sm:$0xff] }
0x15f0   :  { %5777 = vmatpush.msra.mxu0 %v5685_v3 }
0x15f1   :  { %v5605_v31 = vpop.f32.mrf.mxu2 }
0x15f2   :  { %v9994_v54 = vadd.f32 %v5605_v31, %v9926_v22  ;;  %5778 = vmatpush.msra.mxu0 %v5684_v60  ;;  %v5217_v43 = vpop.f32.mrf.mxu1  ;;  %v5426_v10 = vpop.f32.mrf.mxu3 }
0x15f4   :  { %5779 = vmatpush.msra.mxu0 %v5683_v44 }
0x15f6   :  { %5780 = vmatpush.msra.mxu0 %v5682_v38  ;;  %v10324_v38 = vld [vmem:[#allocation12_spill] sm:$0xff] }
0x15f8   :  { %5781 = vmatpush.msra.mxu0 %v5681_v53  ;;  %v5003_v53 = vadd.f32 %v5002_v29, %v10324_v38 }
0x15f9   :  { %v5608_v56 = vpop.f32.mrf.mxu2 }
0x15fa   :  { %v10002_v59 = vadd.f32 %v5608_v56, %v9931_v30  ;;  %5782 = vmatpush.msra.mxu0 %v5680_v33  ;;  %v5220_v5 = vpop.f32.mrf.mxu1 }
0x15fc   :  { %5783 = vmatpush.msra.mxu0 %v5679_v7 }
0x15fd   :  { %5784 = vmatmul.f32.vlgmr.msra.gmra.mxu0 %v5722_v13 }
0x1601   :  { %v5611_v22 = vpop.f32.mrf.mxu2 }
0x1602   :  { %v10005_v41 = vadd.f32 %v5611_v22, %v9936_v49  ;;  %v5223_v24 = vpop.f32.mrf.mxu1 }
0x1609   :  { %v5614_v20 = vpop.f32.mrf.mxu2 }
0x160a   :  { %v10008_v51 = vadd.f32 %v5614_v20, %v9941_v6  ;;  %v5005_v6 = vpop.f32.mrf.mxu0  ;;  %v5226_v32 = vpop.f32.mrf.mxu1  ;;  %v10325_v20 = vld [vmem:[#allocation43_spill] sm:$0xff] }
0x160b   :  { %v5006_v3 = vadd.f32 %v5005_v6, %v10323_v28 }
0x160d   :  { %v5215_v56 = vadd.f32 %v5214_v12, %v5006_v3 }
0x1611   :  { %v5617_v58 = vpop.f32.mrf.mxu2 }
0x1612   :  { %v10011_v52 = vadd.f32 %v5617_v58, %v9944_v11  ;;  %v5008_v11 = vpop.f32.mrf.mxu0  ;;  %v5000_v58 = vadd.f32 %v4999_v23, %v10325_v20 }
0x1613   :  { %v5009_v18 = vadd.f32 %v5008_v11, %v10322_v35 }
0x1614   :  { %v5209_v11 = vadd.f32 %v5208_v8, %v5000_v58 }
0x1615   :  { %v5218_v60 = vadd.f32 %v5217_v43, %v5009_v18 }
0x1616   :  { %v5418_v29 = vadd.f32 %v5417_v50, %v5209_v11  ;;  %v5700_v50 = vmax.f32 %v10008_v51, 0.0 }
0x1619   :  { %v5620_v30 = vpop.f32.mrf.mxu2 }
0x161a   :  { %v10014_v37 = vadd.f32 %v5620_v30, %v9947_v26  ;;  %v5011_v19 = vpop.f32.mrf.mxu0  ;;  %v5429_v26 = vpop.f32.mrf.mxu3  ;;  %v5212_v30 = vadd.f32 %v5211_v4, %v5003_v53 }
0x161b   :  { %v5012_v46 = vadd.f32 %v5011_v19, %v10321_v2 }
0x161c   :  { %v5421_v43 = vadd.f32 %v5420_v61, %v5212_v30  ;;  %v5701_v61 = vmax.f32 %v10011_v52, 0.0  ;;  %v5695_v52 = vmax.f32 %v9982_v1, 0.0 }
0x161d   :  { %v5221_v9 = vadd.f32 %v5220_v5, %v5012_v46  ;;  %v5424_v5 = vadd.f32 %v5423_v36, %v5215_v56  ;;  %v5702_v36 = vmax.f32 %v10014_v37, 0.0  ;;  %v5723_v37 = vperm.slane %v10287_v47, 3 }
0x161f   :  { %v5430_v13 = vadd.f32 %v5429_v26, %v5221_v9 }
0x1621   :  { %v5623_v63 = vpop.f32.mrf.mxu2 }
0x1622   :  { %v10017_v49 = vadd.f32 %v5623_v63, %v9950_v39  ;;  %v5014_v55 = vpop.f32.mrf.mxu0  ;;  %v5432_v16 = vpop.f32.mrf.mxu3  ;;  %v5427_v63 = vadd.f32 %v5426_v10, %v5218_v60  ;;  %v5697_v10 = vmax.f32 %v9994_v54, 0.0 }
0x1623   :  { %v5015_v27 = vadd.f32 %v5014_v55, %v10319_v17 }
0x1624   :  { %v5703_v8 = vmax.f32 %v10017_v49, 0.0  ;;  %v5696_v49 = vmax.f32 %v9987_v15, 0.0 }
0x1625   :  { %v5224_v48 = vadd.f32 %v5223_v24, %v5015_v27 }
0x1627   :  { %v5433_v31 = vadd.f32 %v5432_v16, %v5224_v48 }
0x1629   :  { %v5626_v42 = vpop.f32.mrf.mxu2 }
0x162a   :  { %v5017_v39 = vpop.f32.mrf.mxu0  ;;  %v5435_v57 = vpop.f32.mrf.mxu3 }
0x162b   :  { %v5018_v62 = vadd.f32 %v5017_v39, %v10320_v45 }
0x162d   :  { %v5227_v14 = vadd.f32 %v5226_v32, %v5018_v62  ;;  %v5627_v32 = vadd.f32 %v5626_v42, %v5418_v29  ;;  %v5699_v42 = vmax.f32 %v10005_v41, 0.0  ;;  %v5765_v41 = vpop.f32.mrf.mxu1 }
0x162f   :  { %v5436_v44 = vadd.f32 %v5435_v57, %v5227_v14  ;;  %v5704_v4 = vmax.f32 %v5627_v32, 0.0 }
0x1631   :  { %v5629_v34 = vpop.f32.mrf.mxu2 }
0x1632   :  { %v5630_v12 = vadd.f32 %v5629_v34, %v5421_v43  ;;  %v5698_v34 = vmax.f32 %v10002_v59, 0.0  ;;  %v5745_v51 = vpop.f32.mrf.mxu0 }
0x1634   :  { %v5705_v23 = vmax.f32 %v5630_v12, 0.0 }
0x1639   :  { %v5632_v25 = vpop.f32.mrf.mxu2 }
0x163a   :  { %v5633_v16 = vadd.f32 %v5632_v25, %v5424_v5  ;;  %v5716_v25 = vpop.permute.xlu2 %5715 }
0x1641   :  { %v5635_v40 = vpop.f32.mrf.mxu2 }
0x1642   :  { %v5636_v24 = vadd.f32 %v5635_v40, %v5427_v63  ;;  %v5718_v40 = vperm.slane %v5716_v25, 0 }
0x1644   :  { %v5707_v26 = vmax.f32 %v5636_v24, 0.0 }
0x1649   :  { %v5638_v21 = vpop.f32.mrf.mxu2 }
0x164a   :  { %v5639_v19 = vadd.f32 %v5638_v21, %v5430_v13  ;;  %v5746_v21 = vadd.f32 %v5745_v51, %v5718_v40 }
0x164c   :  { %v5708_v39 = vmax.f32 %v5639_v19, 0.0  ;;  %v5766_v17 = vadd.f32 %v5765_v41, %v5746_v21 }
0x1651   :  { %v5641_v0 = vpop.f32.mrf.mxu2 }
0x1652   :  { %v5642_v7 = vadd.f32 %v5641_v0, %v5433_v31  ;;  %v5706_v0 = vmax.f32 %v5633_v16, 0.0 }
0x1654   :  { %v5709_v6 = vmax.f32 %v5642_v7, 0.0 }
0x1659   :  { %v5644_v33 = vpop.f32.mrf.mxu2 }
0x165a   :  { %v5645_v22 = vadd.f32 %v5644_v33, %v5436_v44 }
0x165c   :  { %v5710_v55 = vmax.f32 %v5645_v22, 0.0 }
0x165e   :  { %5788 = vmatpush.msrb.mxu1 %v5710_v55 }
0x1660   :  { %5789 = vmatpush.msrb.mxu1 %v5709_v6 }
0x1662   :  { %5790 = vmatpush.msrb.mxu1 %v5708_v39 }
0x1664   :  { %5791 = vmatpush.msrb.mxu1 %v5707_v26 }
0x1666   :  { %5792 = vmatpush.msrb.mxu1 %v5706_v0 }
0x1668   :  { %5793 = vmatpush.msrb.mxu1 %v5705_v23 }
0x166a   :  { %5794 = vmatpush.msrb.mxu1 %v5704_v4 }
0x166c   :  { %5795 = vmatpush.msrb.mxu1 %v5703_v8 }
0x166e   :  { %5796 = vmatpush.msrb.mxu1 %v5702_v36 }
0x1670   :  { %5797 = vmatpush.msrb.mxu1 %v5701_v61 }
0x1672   :  { %5798 = vmatpush.msrb.mxu1 %v5700_v50 }
0x1674   :  { %5799 = vmatpush.msrb.mxu1 %v5699_v42 }
0x1676   :  { %5800 = vmatpush.msrb.mxu1 %v5698_v34 }
0x1678   :  { %5801 = vmatpush.msrb.mxu1 %v5697_v10 }
0x167a   :  { %5802 = vmatpush.msrb.mxu1 %v5696_v49  ;;  %v5785_v59 = vpop.f32.mrf.mxu0 }
0x167b   :  { %v5786_v27 = vadd.f32 %v5785_v59, %v5766_v17 }
0x167c   :  { %5803 = vmatpush.msrb.mxu1 %v5695_v52 }
0x167d   :  { %5804 = vmatmul.f32.vlgmr.msrb.gmra.mxu1 %v5723_v37 }
0x16fa   :  { %v5805_v54 = vpop.f32.mrf.mxu1 }
0x16fb   :  { %v5806_v45 = vadd.f32 %v5805_v54, %v5786_v27 }
0x16fd   :  { %v6153_v62 = vmul.f32 -1.442695, %v5806_v45 }
0x16ff   :  { %6459 = vpow2.f32 %v6153_v62 }
0x1705   :  { %v6460_v15 = vpop.eup %6459 }
0x1706   :  { %v5811_v2 = vadd.f32 1.0, %v6460_v15 }
0x1708   :  { %6461 = vrcp.f32 %v5811_v2  ;;  %v5823_v48 = vand.u32 2147483648, %v5811_v2  ;;  %v5821_v57 = vand.u32 2147483647, %v5811_v2  ;;  %vm5817_vm14 = vweird.f32 %v5811_v2 }
0x170a   :  { %v5824_v18 = vor.u32 1.1754944e-38, %v5823_v48  ;;  %vm5822_vm10 = vcmp.eq.f32.partialorder %v5821_v57, 8.507059e+37 }
0x170e   :  { %v6462_v47 = vpop.eup %6461 }
0x170f   :  { %v5813_v1 = vmul.f32 %v6462_v47, %v5811_v2  ;;  %vm5818_vm0 = vweird.f32 %v6462_v47 }
0x1710   :  { %vm5819_vm15 = vmor %vm5817_vm14, %vm5818_vm0 }
0x1711   :  { %v5814_v46 = vsub.f32 1.0, %v5813_v1 }
0x1713   :  { %v5815_v14 = vmul.f32 %v6462_v47, %v5814_v46 }
0x1715   :  { %v5816_v35 = vadd.f32 %v6462_v47, %v5815_v14 }
0x1717   :  { %v5820_v9 = vsel %vm5819_vm15, %v6462_v47, %v5816_v35 }
0x1718   :  { %v5825_v28 = vsel %vm5822_vm10, %v5824_v18, %v5820_v9 }
0x1719   :  { %5828 = vst.msk [vmem:[#allocation6] sm:$0x1] %vm5827_vm1, %v5825_v28 }
0x171a   :  { %5839 = dma.vmem_to_hbm [thread:$0]  %s5835_s3, 16, %s5837_s14, [#allocation5]  }
0x171b   :  { %6541 = dma.done.wait [#allocation5], 16  }
0x171c   :  { %6542 = vsyncadd [#allocation5], 4294967280 }
0x171d   :  { %5844 = vsyncpa [#allocation4], 1 }
0x171e   :  { %5845 = vsyncpa [#allocation5], 1 }

</bundles_post_ra>
